<compile_context>
chip_gen: v6e
topology: v6e:2x2x1
jax: 0.10.0
libtpu: 0.0.40
codegen_flags: <defaults>
</compile_context>

<pallas_src>
import math
import jax
import jax.numpy as jnp
from jax.experimental import pallas as pl
from jax.experimental.pallas import tpu as pltpu

LN_EPS = 1e-5


def _layernorm(h, gamma, beta):
    # f32 statistics; rsqrt lowers to the EUP (separate bundle slot).
    mu = jnp.mean(h, axis=-1, keepdims=True)
    d = h - mu
    var = jnp.mean(d * d, axis=-1, keepdims=True)
    return d * jax.lax.rsqrt(var + LN_EPS) * gamma + beta


def mlp_kernel(x_ref, w1_ref, w2_ref, w3_ref, vecs_ref, b3_ref, o_ref):
    # Single DMA'd (6, H) pack of the small vectors; static row slices are free.
    vecs = vecs_ref[...]
    b1, g1, be1 = vecs[0:1, :], vecs[1:2, :], vecs[2:3, :]
    b2, g2, be2 = vecs[3:4, :], vecs[4:5, :], vecs[5:6, :]
    b3 = b3_ref[...]

    # x arrives f32 (no wrapper cast pass); cast to bf16 for the MXU operands.
    x = x_ref[...].astype(jnp.bfloat16)

    # layer 1: Linear -> ReLU -> LayerNorm   (dropout: eval-mode no-op)
    h = jnp.dot(x, w1_ref[...], preferred_element_type=jnp.float32) + b1
    h = jnp.maximum(h, 0.0)
    h = _layernorm(h, g1, be1)

    # layer 2: Linear -> ReLU -> LayerNorm   (dropout: eval-mode no-op)
    h = jnp.dot(h.astype(jnp.bfloat16), w2_ref[...],
                preferred_element_type=jnp.float32) + b2
    h = jnp.maximum(h, 0.0)
    h = _layernorm(h, g2, be2)

    # final layer: Linear only (unpadded Cout columns -> minimal HBM writeback)
    out = jnp.dot(h.astype(jnp.bfloat16), w3_ref[...],
                  preferred_element_type=jnp.float32) + b3
    o_ref[...] = out.astype(o_ref.dtype)


def _round16(v):
    return ((v + 15) // 16) * 16


def _choose_tile(N, tm_max=1024):
    """Row tile (multiple of 16) and grid length.

    Small N  -> one grid step (no per-step overhead; v5e/v6e have a single TC).
    Large N  -> an even number of ~tm_max-row tiles so v7x's two TensorCores
                split the 'parallel' axis without a tail-imbalance step.
    """
    np16 = _round16(max(N, 16))
    if np16 <= tm_max:
        return np16, 1
    steps = pl.cdiv(np16, tm_max)
    if steps % 2:
        steps += 1
    tm = _round16(pl.cdiv(N, steps))
    grid_m = pl.cdiv(N, tm)
    return tm, grid_m


def _build_specs(tm, cin, h, cout, buffered):
    kw = {"pipeline_mode": pl.Buffered(1)} if buffered else {}

    def resident(shape):
        # Block index is constant across the grid -> single-buffer if possible.
        return pl.BlockSpec(shape, lambda i: (0,) * len(shape), **kw)

    in_specs = [
        pl.BlockSpec((tm, cin), lambda i: (i, 0)),   # x row tiles (streamed)
        resident((cin, h)),                          # w1
        resident((h, h)),                            # w2
        resident((h, cout)),                         # w3
        resident((6, h)),                            # b1,g1,be1,b2,g2,be2 pack
        resident((1, cout)),                         # b3
    ]
    out_spec = pl.BlockSpec((tm, cout), lambda i: (i, 0))
    return in_specs, out_spec


def mlp_forward(x, params, *, tm_max=1024):
    """x: [N, Cin] float32.  params: dict of kernel weights (see init_params)."""
    N, Cin = x.shape
    H = params["w1"].shape[1]
    Cout = params["w3"].shape[1]

    tm, grid_m = _choose_tile(N, tm_max)
    Np = tm * grid_m

    x_in = x
    if Np != N:
        x_in = jnp.pad(x_in, ((0, Np - N), (0, 0)))   # zero rows: LN-safe (var+eps)

    # Weights to bf16 once (tiny, one-off); biases/LN params packed into (6, H).
    w1 = params["w1"].astype(jnp.bfloat16)
    w2 = params["w2"].astype(jnp.bfloat16)
    w3 = params["w3"].astype(jnp.bfloat16)
    vecs = jnp.concatenate(
        [params["b1"], params["g1"], params["be1"],
         params["b2"], params["g2"], params["be2"]], axis=0)   # (6, H) f32
    b3 = params["b3"]                                          # (1, Cout) f32

    # Advisory cost for XLA's scheduler.
    flops = 2 * Np * (Cin * H + H * H + H * Cout) + 12 * Np * H
    bytes_accessed = (Np * Cin * 4 + Np * Cout * 4
                      + (Cin * H + H * H + H * Cout) * 2
                      + (6 * H + Cout) * 4)
    cost = pl.CostEstimate(flops=int(flops),
                           transcendentals=int(2 * Np),
                           bytes_accessed=int(bytes_accessed))

    # Explicit VMEM budget (portable to v7x's 64 MiB physical / 32 MiB default).
    w_bytes = (Cin * H + H * H + H * Cout) * 2 + (8 * max(H, 128) + 128) * 4
    tile_bytes = 2 * tm * Cin * 4 + 2 * tm * Cout * 4 + 2 * w_bytes
    vmem_limit = int(min(64 << 20, max(32 << 20, 4 * tile_bytes)))

    def call(buffered):
        in_specs, out_spec = _build_specs(tm, Cin, H, Cout, buffered)
        return pl.pallas_call(
            mlp_kernel,
            out_shape=jax.ShapeDtypeStruct((Np, Cout), jnp.float32),
            grid_spec=pltpu.PrefetchScalarGridSpec(
                num_scalar_prefetch=0,
                grid=(grid_m,),
                in_specs=in_specs,
                out_specs=out_spec,
            ),
            compiler_params=pltpu.CompilerParams(
                dimension_semantics=("parallel",),
                vmem_limit_bytes=vmem_limit),
            cost_estimate=cost,
        )(x_in, w1, w2, w3, vecs, b3)

    try:
        out = call(buffered=True)     # Buffered(1) on resident operands
    except Exception:
        out = call(buffered=False)    # fallback if pipeline_mode unsupported

    if Np != N:
        out = out[:N]
    return out


def init_params(key, in_c, hid_c, out_c):
    """Deterministic PyTorch-style (uniform +/- 1/sqrt(fan_in)) init.
    Linear weights stored as (in_features, out_features)."""
    ks = jax.random.split(key, 6)

    def lin(kw, kb, fan_in, fan_out):
        bound = 1.0 / math.sqrt(fan_in)
        w = jax.random.uniform(kw, (fan_in, fan_out), jnp.float32, -bound, bound)
        b = jax.random.uniform(kb, (1, fan_out), jnp.float32, -bound, bound)
        return w, b

    w1, b1 = lin(ks[0], ks[1], in_c, hid_c)
    w2, b2 = lin(ks[2], ks[3], hid_c, hid_c)
    w3, b3 = lin(ks[4], ks[5], hid_c, out_c)
    return {
        "w1": w1, "b1": b1,
        "g1": jnp.ones((1, hid_c), jnp.float32), "be1": jnp.zeros((1, hid_c), jnp.float32),
        "w2": w2, "b2": b2,
        "g2": jnp.ones((1, hid_c), jnp.float32), "be2": jnp.zeros((1, hid_c), jnp.float32),
        "w3": w3, "b3": b3,
    }


def mlp_reference(x, p):
    """Pure-JAX reference of the same forward (eval mode, dropout no-op),
    mirroring the kernel's bf16-operand / f32-accumulation recipe."""
    bf = lambda a: a.astype(jnp.bfloat16).astype(jnp.float32)
    h = jnp.maximum(bf(x) @ bf(p["w1"]) + p["b1"], 0.0)
    h = _layernorm(h, p["g1"], p["be1"])
    h = jnp.maximum(bf(h) @ bf(p["w2"]) + p["b2"], 0.0)
    h = _layernorm(h, p["g2"], p["be2"])
    return bf(h) @ bf(p["w3"]) + p["b3"]


if __name__ == "__main__":
    in_channels, hidden_channels, out_channels = 32, 64, 16
    N = 512  # number of rows (nodes / samples); fits one grid step

    key = jax.random.PRNGKey(0)
    k_x, k_p = jax.random.split(key)
    x = jax.random.normal(k_x, (N, in_channels), jnp.float32)
    params = init_params(k_p, in_channels, hidden_channels, out_channels)

    out = mlp_forward(x, params)
    out = jax.block_until_ready(out)

    ref = mlp_reference(x, params)
    assert out.shape == (N, out_channels)
    assert jnp.allclose(out, ref, atol=1e-3, rtol=1e-3), "mismatch vs reference"

    print("KERNEL_OK")
</pallas_src>

<mosaic_0001>
module attributes {stable_mosaic.version = 11 : i64} {
  func.func @mlp_kernel(%arg0: i32, %arg1: memref<512x32xf32, #tpu.memory_space<vmem>>, %arg2: memref<32x64xbf16, #tpu.memory_space<vmem>>, %arg3: memref<64x64xbf16, #tpu.memory_space<vmem>>, %arg4: memref<64x16xbf16, #tpu.memory_space<vmem>>, %arg5: memref<6x64xf32, #tpu.memory_space<vmem>>, %arg6: memref<1x16xf32, #tpu.memory_space<vmem>>, %arg7: memref<512x16xf32, #tpu.memory_space<vmem>>) attributes {dimension_semantics = [#tpu.dimension_semantics<parallel>], iteration_bounds = array<i64: 1>, scalar_prefetch = 0 : i64, scratch_operands = 0 : i64, tpu.core_type = #tpu.core_type<tc>, window_params = [{transform_indices = @transform_0, window_bounds = array<i64: 512, 32>}, {pipeline_mode = #tpu.pipeline_mode<synchronous>, transform_indices = @transform_1, window_bounds = array<i64: 32, 64>}, {pipeline_mode = #tpu.pipeline_mode<synchronous>, transform_indices = @transform_2, window_bounds = array<i64: 64, 64>}, {pipeline_mode = #tpu.pipeline_mode<synchronous>, transform_indices = @transform_3, window_bounds = array<i64: 64, 16>}, {pipeline_mode = #tpu.pipeline_mode<synchronous>, transform_indices = @transform_4, window_bounds = array<i64: 6, 64>}, {pipeline_mode = #tpu.pipeline_mode<synchronous>, transform_indices = @transform_5, window_bounds = array<i64: 1, 16>}, {transform_indices = @transform_6, window_bounds = array<i64: 512, 16>}]} {
    %c0 = arith.constant 0 : index
    %c0_0 = arith.constant 0 : index
    %0 = vector.load %arg5[%c0, %c0_0] : memref<6x64xf32, #tpu.memory_space<vmem>>, vector<6x64xf32>
    %1 = vector.extract_strided_slice %0 {offsets = [0, 0], sizes = [1, 64], strides = [1, 1]} : vector<6x64xf32> to vector<1x64xf32>
    %2 = vector.extract_strided_slice %0 {offsets = [1, 0], sizes = [1, 64], strides = [1, 1]} : vector<6x64xf32> to vector<1x64xf32>
    %3 = vector.extract_strided_slice %0 {offsets = [2, 0], sizes = [1, 64], strides = [1, 1]} : vector<6x64xf32> to vector<1x64xf32>
    %4 = vector.extract_strided_slice %0 {offsets = [3, 0], sizes = [1, 64], strides = [1, 1]} : vector<6x64xf32> to vector<1x64xf32>
    %5 = vector.extract_strided_slice %0 {offsets = [4, 0], sizes = [1, 64], strides = [1, 1]} : vector<6x64xf32> to vector<1x64xf32>
    %6 = vector.extract_strided_slice %0 {offsets = [5, 0], sizes = [1, 64], strides = [1, 1]} : vector<6x64xf32> to vector<1x64xf32>
    %c0_1 = arith.constant 0 : index
    %c0_2 = arith.constant 0 : index
    %7 = vector.load %arg6[%c0_1, %c0_2] : memref<1x16xf32, #tpu.memory_space<vmem>>, vector<1x16xf32>
    %c0_3 = arith.constant 0 : index
    %c0_4 = arith.constant 0 : index
    %8 = vector.load %arg1[%c0_3, %c0_4] : memref<512x32xf32, #tpu.memory_space<vmem>>, vector<512x32xf32>
    %9 = arith.truncf %8 : vector<512x32xf32> to vector<512x32xbf16>
    %c0_5 = arith.constant 0 : index
    %c0_6 = arith.constant 0 : index
    %10 = vector.load %arg2[%c0_5, %c0_6] : memref<32x64xbf16, #tpu.memory_space<vmem>>, vector<32x64xbf16>
    %cst = arith.constant dense<0.000000e+00> : vector<512x64xf32>
    %11 = tpu.matmul %9, %10, %cst {dimension_numbers = #tpu.dot_dimension_numbers<[1], [0], [0], [1], [0, 0, 1, 1], [], []>} : vector<512x32xbf16>, vector<32x64xbf16>, vector<512x64xf32> -> vector<512x64xf32>
    %12 = vector.broadcast %1 : vector<1x64xf32> to vector<512x64xf32>
    %13 = arith.addf %11, %12 : vector<512x64xf32>
    %cst_7 = arith.constant 0.000000e+00 : f32
    %14 = vector.broadcast %cst_7 : f32 to vector<512x64xf32>
    %15 = arith.maximumf %13, %14 : vector<512x64xf32>
    %cst_8 = arith.constant dense<0.000000e+00> : vector<512xf32>
    %16 = vector.multi_reduction <add>, %15, %cst_8 [1] : vector<512x64xf32> to vector<512xf32>
    %17 = vector.shape_cast %16 : vector<512xf32> to vector<512x1xf32>
    %cst_9 = arith.constant 6.400000e+01 : f32
    %18 = vector.broadcast %cst_9 : f32 to vector<512x1xf32>
    %19 = arith.divf %17, %18 : vector<512x1xf32>
    %20 = vector.broadcast %19 : vector<512x1xf32> to vector<512x64xf32>
    %21 = arith.subf %15, %20 : vector<512x64xf32>
    %22 = arith.mulf %21, %21 : vector<512x64xf32>
    %cst_10 = arith.constant dense<0.000000e+00> : vector<512xf32>
    %23 = vector.multi_reduction <add>, %22, %cst_10 [1] : vector<512x64xf32> to vector<512xf32>
    %24 = vector.shape_cast %23 : vector<512xf32> to vector<512x1xf32>
    %cst_11 = arith.constant 6.400000e+01 : f32
    %25 = vector.broadcast %cst_11 : f32 to vector<512x1xf32>
    %26 = arith.divf %24, %25 : vector<512x1xf32>
    %cst_12 = arith.constant 9.99999974E-6 : f32
    %27 = vector.broadcast %cst_12 : f32 to vector<512x1xf32>
    %28 = arith.addf %26, %27 : vector<512x1xf32>
    %29 = math.rsqrt %28 : vector<512x1xf32>
    %30 = vector.broadcast %29 : vector<512x1xf32> to vector<512x64xf32>
    %31 = arith.mulf %21, %30 : vector<512x64xf32>
    %32 = vector.broadcast %2 : vector<1x64xf32> to vector<512x64xf32>
    %33 = arith.mulf %31, %32 : vector<512x64xf32>
    %34 = vector.broadcast %3 : vector<1x64xf32> to vector<512x64xf32>
    %35 = arith.addf %33, %34 : vector<512x64xf32>
    %36 = arith.truncf %35 : vector<512x64xf32> to vector<512x64xbf16>
    %c0_13 = arith.constant 0 : index
    %c0_14 = arith.constant 0 : index
    %37 = vector.load %arg3[%c0_13, %c0_14] : memref<64x64xbf16, #tpu.memory_space<vmem>>, vector<64x64xbf16>
    %cst_15 = arith.constant dense<0.000000e+00> : vector<512x64xf32>
    %38 = tpu.matmul %36, %37, %cst_15 {dimension_numbers = #tpu.dot_dimension_numbers<[1], [0], [0], [1], [0, 0, 1, 1], [], []>} : vector<512x64xbf16>, vector<64x64xbf16>, vector<512x64xf32> -> vector<512x64xf32>
    %39 = vector.broadcast %4 : vector<1x64xf32> to vector<512x64xf32>
    %40 = arith.addf %38, %39 : vector<512x64xf32>
    %cst_16 = arith.constant 0.000000e+00 : f32
    %41 = vector.broadcast %cst_16 : f32 to vector<512x64xf32>
    %42 = arith.maximumf %40, %41 : vector<512x64xf32>
    %cst_17 = arith.constant dense<0.000000e+00> : vector<512xf32>
    %43 = vector.multi_reduction <add>, %42, %cst_17 [1] : vector<512x64xf32> to vector<512xf32>
    %44 = vector.shape_cast %43 : vector<512xf32> to vector<512x1xf32>
    %cst_18 = arith.constant 6.400000e+01 : f32
    %45 = vector.broadcast %cst_18 : f32 to vector<512x1xf32>
    %46 = arith.divf %44, %45 : vector<512x1xf32>
    %47 = vector.broadcast %46 : vector<512x1xf32> to vector<512x64xf32>
    %48 = arith.subf %42, %47 : vector<512x64xf32>
    %49 = arith.mulf %48, %48 : vector<512x64xf32>
    %cst_19 = arith.constant dense<0.000000e+00> : vector<512xf32>
    %50 = vector.multi_reduction <add>, %49, %cst_19 [1] : vector<512x64xf32> to vector<512xf32>
    %51 = vector.shape_cast %50 : vector<512xf32> to vector<512x1xf32>
    %cst_20 = arith.constant 6.400000e+01 : f32
    %52 = vector.broadcast %cst_20 : f32 to vector<512x1xf32>
    %53 = arith.divf %51, %52 : vector<512x1xf32>
    %cst_21 = arith.constant 9.99999974E-6 : f32
    %54 = vector.broadcast %cst_21 : f32 to vector<512x1xf32>
    %55 = arith.addf %53, %54 : vector<512x1xf32>
    %56 = math.rsqrt %55 : vector<512x1xf32>
    %57 = vector.broadcast %56 : vector<512x1xf32> to vector<512x64xf32>
    %58 = arith.mulf %48, %57 : vector<512x64xf32>
    %59 = vector.broadcast %5 : vector<1x64xf32> to vector<512x64xf32>
    %60 = arith.mulf %58, %59 : vector<512x64xf32>
    %61 = vector.broadcast %6 : vector<1x64xf32> to vector<512x64xf32>
    %62 = arith.addf %60, %61 : vector<512x64xf32>
    %63 = arith.truncf %62 : vector<512x64xf32> to vector<512x64xbf16>
    %c0_22 = arith.constant 0 : index
    %c0_23 = arith.constant 0 : index
    %64 = vector.load %arg4[%c0_22, %c0_23] : memref<64x16xbf16, #tpu.memory_space<vmem>>, vector<64x16xbf16>
    %cst_24 = arith.constant dense<0.000000e+00> : vector<512x16xf32>
    %65 = tpu.matmul %63, %64, %cst_24 {dimension_numbers = #tpu.dot_dimension_numbers<[1], [0], [0], [1], [0, 0, 1, 1], [], []>} : vector<512x64xbf16>, vector<64x16xbf16>, vector<512x16xf32> -> vector<512x16xf32>
    %66 = vector.broadcast %7 : vector<1x16xf32> to vector<512x16xf32>
    %67 = arith.addf %65, %66 : vector<512x16xf32>
    %c0_25 = arith.constant 0 : index
    %c0_26 = arith.constant 0 : index
    %68 = vector.load %arg7[%c0_25, %c0_26] : memref<512x16xf32, #tpu.memory_space<vmem>>, vector<512x16xf32>
    tpu.vector_store %arg7[%c0_25, %c0_26], %67 {strides = array<i32>} : memref<512x16xf32, #tpu.memory_space<vmem>>, vector<512x16xf32>,
    return
  }
  func.func @transform_0(%arg0: i32) -> (i32, i32) {
    %c0_i32 = arith.constant 0 : i32
    %c0_i32_0 = arith.constant 0 : i32
    return %arg0, %c0_i32 : i32, i32
  }
  func.func @transform_1(%arg0: i32) -> (i32, i32) {
    %c0_i32 = arith.constant 0 : i32
    %c0_i32_0 = arith.constant 0 : i32
    %c0_i32_1 = arith.constant 0 : i32
    return %c0_i32, %c0_i32_0 : i32, i32
  }
  func.func @transform_2(%arg0: i32) -> (i32, i32) {
    %c0_i32 = arith.constant 0 : i32
    %c0_i32_0 = arith.constant 0 : i32
    %c0_i32_1 = arith.constant 0 : i32
    return %c0_i32, %c0_i32_0 : i32, i32
  }
  func.func @transform_3(%arg0: i32) -> (i32, i32) {
    %c0_i32 = arith.constant 0 : i32
    %c0_i32_0 = arith.constant 0 : i32
    %c0_i32_1 = arith.constant 0 : i32
    return %c0_i32, %c0_i32_0 : i32, i32
  }
  func.func @transform_4(%arg0: i32) -> (i32, i32) {
    %c0_i32 = arith.constant 0 : i32
    %c0_i32_0 = arith.constant 0 : i32
    %c0_i32_1 = arith.constant 0 : i32
    return %c0_i32, %c0_i32_0 : i32, i32
  }
  func.func @transform_5(%arg0: i32) -> (i32, i32) {
    %c0_i32 = arith.constant 0 : i32
    %c0_i32_0 = arith.constant 0 : i32
    %c0_i32_1 = arith.constant 0 : i32
    return %c0_i32, %c0_i32_0 : i32, i32
  }
  func.func @transform_6(%arg0: i32) -> (i32, i32) {
    %c0_i32 = arith.constant 0 : i32
    %c0_i32_0 = arith.constant 0 : i32
    return %arg0, %c0_i32 : i32, i32
  }
}

module attributes {stable_mosaic.version = 11 : i64} {
  func.func @mlp_kernel(%arg0: i32, %arg1: memref<512x32xf32, #tpu.memory_space<vmem>>, %arg2: memref<32x64xbf16, #tpu.memory_space<vmem>>, %arg3: memref<64x64xbf16, #tpu.memory_space<vmem>>, %arg4: memref<64x16xbf16, #tpu.memory_space<vmem>>, %arg5: memref<6x64xf32, #tpu.memory_space<vmem>>, %arg6: memref<1x16xf32, #tpu.memory_space<vmem>>, %arg7: memref<512x16xf32, #tpu.memory_space<vmem>>) attributes {dimension_semantics = [#tpu.dimension_semantics<parallel>], iteration_bounds = array<i64: 1>, scalar_prefetch = 0 : i64, scratch_operands = 0 : i64, tpu.core_type = #tpu.core_type<tc>, window_params = [{transform_indices = @transform_0, window_bounds = array<i64: 512, 32>}, {pipeline_mode = #tpu.pipeline_mode<synchronous>, transform_indices = @transform_1, window_bounds = array<i64: 32, 64>}, {pipeline_mode = #tpu.pipeline_mode<synchronous>, transform_indices = @transform_2, window_bounds = array<i64: 64, 64>}, {pipeline_mode = #tpu.pipeline_mode<synchronous>, transform_indices = @transform_3, window_bounds = array<i64: 64, 16>}, {pipeline_mode = #tpu.pipeline_mode<synchronous>, transform_indices = @transform_4, window_bounds = array<i64: 6, 64>}, {pipeline_mode = #tpu.pipeline_mode<synchronous>, transform_indices = @transform_5, window_bounds = array<i64: 1, 16>}, {transform_indices = @transform_6, window_bounds = array<i64: 512, 16>}]} {
    %c0 = arith.constant 0 : index
    %c0_0 = arith.constant 0 : index
    %0 = vector.load %arg5[%c0, %c0_0] : memref<6x64xf32, #tpu.memory_space<vmem>>, vector<6x64xf32>
    %1 = vector.extract_strided_slice %0 {offsets = [0, 0], sizes = [1, 64], strides = [1, 1]} : vector<6x64xf32> to vector<1x64xf32>
    %2 = vector.extract_strided_slice %0 {offsets = [1, 0], sizes = [1, 64], strides = [1, 1]} : vector<6x64xf32> to vector<1x64xf32>
    %3 = vector.extract_strided_slice %0 {offsets = [2, 0], sizes = [1, 64], strides = [1, 1]} : vector<6x64xf32> to vector<1x64xf32>
    %4 = vector.extract_strided_slice %0 {offsets = [3, 0], sizes = [1, 64], strides = [1, 1]} : vector<6x64xf32> to vector<1x64xf32>
    %5 = vector.extract_strided_slice %0 {offsets = [4, 0], sizes = [1, 64], strides = [1, 1]} : vector<6x64xf32> to vector<1x64xf32>
    %6 = vector.extract_strided_slice %0 {offsets = [5, 0], sizes = [1, 64], strides = [1, 1]} : vector<6x64xf32> to vector<1x64xf32>
    %c0_1 = arith.constant 0 : index
    %c0_2 = arith.constant 0 : index
    %7 = vector.load %arg6[%c0_1, %c0_2] : memref<1x16xf32, #tpu.memory_space<vmem>>, vector<1x16xf32>
    %c0_3 = arith.constant 0 : index
    %c0_4 = arith.constant 0 : index
    %8 = vector.load %arg1[%c0_3, %c0_4] : memref<512x32xf32, #tpu.memory_space<vmem>>, vector<512x32xf32>
    %9 = arith.truncf %8 : vector<512x32xf32> to vector<512x32xbf16>
    %c0_5 = arith.constant 0 : index
    %c0_6 = arith.constant 0 : index
    %10 = vector.load %arg2[%c0_5, %c0_6] : memref<32x64xbf16, #tpu.memory_space<vmem>>, vector<32x64xbf16>
    %cst = arith.constant dense<0.000000e+00> : vector<512x64xf32>
    %11 = tpu.matmul %9, %10, %cst {dimension_numbers = #tpu.dot_dimension_numbers<[1], [0], [0], [1], [0, 0, 1, 1], [], []>} : vector<512x32xbf16>, vector<32x64xbf16>, vector<512x64xf32> -> vector<512x64xf32>
    %12 = vector.broadcast %1 : vector<1x64xf32> to vector<512x64xf32>
    %13 = arith.addf %11, %12 : vector<512x64xf32>
    %cst_7 = arith.constant 0.000000e+00 : f32
    %14 = vector.broadcast %cst_7 : f32 to vector<512x64xf32>
    %15 = arith.maximumf %13, %14 : vector<512x64xf32>
    %cst_8 = arith.constant dense<0.000000e+00> : vector<512xf32>
    %16 = vector.multi_reduction <add>, %15, %cst_8 [1] : vector<512x64xf32> to vector<512xf32>
    %17 = vector.shape_cast %16 : vector<512xf32> to vector<512x1xf32>
    %cst_9 = arith.constant 6.400000e+01 : f32
    %18 = vector.broadcast %cst_9 : f32 to vector<512x1xf32>
    %19 = arith.divf %17, %18 : vector<512x1xf32>
    %20 = vector.broadcast %19 : vector<512x1xf32> to vector<512x64xf32>
    %21 = arith.subf %15, %20 : vector<512x64xf32>
    %22 = arith.mulf %21, %21 : vector<512x64xf32>
    %cst_10 = arith.constant dense<0.000000e+00> : vector<512xf32>
    %23 = vector.multi_reduction <add>, %22, %cst_10 [1] : vector<512x64xf32> to vector<512xf32>
    %24 = vector.shape_cast %23 : vector<512xf32> to vector<512x1xf32>
    %cst_11 = arith.constant 6.400000e+01 : f32
    %25 = vector.broadcast %cst_11 : f32 to vector<512x1xf32>
    %26 = arith.divf %24, %25 : vector<512x1xf32>
    %cst_12 = arith.constant 9.99999974E-6 : f32
    %27 = vector.broadcast %cst_12 : f32 to vector<512x1xf32>
    %28 = arith.addf %26, %27 : vector<512x1xf32>
    %29 = math.rsqrt %28 : vector<512x1xf32>
    %30 = vector.broadcast %29 : vector<512x1xf32> to vector<512x64xf32>
    %31 = arith.mulf %21, %30 : vector<512x64xf32>
    %32 = vector.broadcast %2 : vector<1x64xf32> to vector<512x64xf32>
    %33 = arith.mulf %31, %32 : vector<512x64xf32>
    %34 = vector.broadcast %3 : vector<1x64xf32> to vector<512x64xf32>
    %35 = arith.addf %33, %34 : vector<512x64xf32>
    %36 = arith.truncf %35 : vector<512x64xf32> to vector<512x64xbf16>
    %c0_13 = arith.constant 0 : index
    %c0_14 = arith.constant 0 : index
    %37 = vector.load %arg3[%c0_13, %c0_14] : memref<64x64xbf16, #tpu.memory_space<vmem>>, vector<64x64xbf16>
    %cst_15 = arith.constant dense<0.000000e+00> : vector<512x64xf32>
    %38 = tpu.matmul %36, %37, %cst_15 {dimension_numbers = #tpu.dot_dimension_numbers<[1], [0], [0], [1], [0, 0, 1, 1], [], []>} : vector<512x64xbf16>, vector<64x64xbf16>, vector<512x64xf32> -> vector<512x64xf32>
    %39 = vector.broadcast %4 : vector<1x64xf32> to vector<512x64xf32>
    %40 = arith.addf %38, %39 : vector<512x64xf32>
    %cst_16 = arith.constant 0.000000e+00 : f32
    %41 = vector.broadcast %cst_16 : f32 to vector<512x64xf32>
    %42 = arith.maximumf %40, %41 : vector<512x64xf32>
    %cst_17 = arith.constant dense<0.000000e+00> : vector<512xf32>
    %43 = vector.multi_reduction <add>, %42, %cst_17 [1] : vector<512x64xf32> to vector<512xf32>
    %44 = vector.shape_cast %43 : vector<512xf32> to vector<512x1xf32>
    %cst_18 = arith.constant 6.400000e+01 : f32
    %45 = vector.broadcast %cst_18 : f32 to vector<512x1xf32>
    %46 = arith.divf %44, %45 : vector<512x1xf32>
    %47 = vector.broadcast %46 : vector<512x1xf32> to vector<512x64xf32>
    %48 = arith.subf %42, %47 : vector<512x64xf32>
    %49 = arith.mulf %48, %48 : vector<512x64xf32>
    %cst_19 = arith.constant dense<0.000000e+00> : vector<512xf32>
    %50 = vector.multi_reduction <add>, %49, %cst_19 [1] : vector<512x64xf32> to vector<512xf32>
    %51 = vector.shape_cast %50 : vector<512xf32> to vector<512x1xf32>
    %cst_20 = arith.constant 6.400000e+01 : f32
    %52 = vector.broadcast %cst_20 : f32 to vector<512x1xf32>
    %53 = arith.divf %51, %52 : vector<512x1xf32>
    %cst_21 = arith.constant 9.99999974E-6 : f32
    %54 = vector.broadcast %cst_21 : f32 to vector<512x1xf32>
    %55 = arith.addf %53, %54 : vector<512x1xf32>
    %56 = math.rsqrt %55 : vector<512x1xf32>
    %57 = vector.broadcast %56 : vector<512x1xf32> to vector<512x64xf32>
    %58 = arith.mulf %48, %57 : vector<512x64xf32>
    %59 = vector.broadcast %5 : vector<1x64xf32> to vector<512x64xf32>
    %60 = arith.mulf %58, %59 : vector<512x64xf32>
    %61 = vector.broadcast %6 : vector<1x64xf32> to vector<512x64xf32>
    %62 = arith.addf %60, %61 : vector<512x64xf32>
    %63 = arith.truncf %62 : vector<512x64xf32> to vector<512x64xbf16>
    %c0_22 = arith.constant 0 : index
    %c0_23 = arith.constant 0 : index
    %64 = vector.load %arg4[%c0_22, %c0_23] : memref<64x16xbf16, #tpu.memory_space<vmem>>, vector<64x16xbf16>
    %cst_24 = arith.constant dense<0.000000e+00> : vector<512x16xf32>
    %65 = tpu.matmul %63, %64, %cst_24 {dimension_numbers = #tpu.dot_dimension_numbers<[1], [0], [0], [1], [0, 0, 1, 1], [], []>} : vector<512x64xbf16>, vector<64x16xbf16>, vector<512x16xf32> -> vector<512x16xf32>
    %66 = vector.broadcast %7 : vector<1x16xf32> to vector<512x16xf32>
    %67 = arith.addf %65, %66 : vector<512x16xf32>
    %c0_25 = arith.constant 0 : index
    %c0_26 = arith.constant 0 : index
    %68 = vector.load %arg7[%c0_25, %c0_26] : memref<512x16xf32, #tpu.memory_space<vmem>>, vector<512x16xf32>
    tpu.vector_store %arg7[%c0_25, %c0_26], %67 {strides = array<i32>} : memref<512x16xf32, #tpu.memory_space<vmem>>, vector<512x16xf32>,
    return
  }
  func.func @transform_0(%arg0: i32) -> (i32, i32) {
    %c0_i32 = arith.constant 0 : i32
    %c0_i32_0 = arith.constant 0 : i32
    return %arg0, %c0_i32 : i32, i32
  }
  func.func @transform_1(%arg0: i32) -> (i32, i32) {
    %c0_i32 = arith.constant 0 : i32
    %c0_i32_0 = arith.constant 0 : i32
    %c0_i32_1 = arith.constant 0 : i32
    return %c0_i32, %c0_i32_0 : i32, i32
  }
  func.func @transform_2(%arg0: i32) -> (i32, i32) {
    %c0_i32 = arith.constant 0 : i32
    %c0_i32_0 = arith.constant 0 : i32
    %c0_i32_1 = arith.constant 0 : i32
    return %c0_i32, %c0_i32_0 : i32, i32
  }
  func.func @transform_3(%arg0: i32) -> (i32, i32) {
    %c0_i32 = arith.constant 0 : i32
    %c0_i32_0 = arith.constant 0 : i32
    %c0_i32_1 = arith.constant 0 : i32
    return %c0_i32, %c0_i32_0 : i32, i32
  }
  func.func @transform_4(%arg0: i32) -> (i32, i32) {
    %c0_i32 = arith.constant 0 : i32
    %c0_i32_0 = arith.constant 0 : i32
    %c0_i32_1 = arith.constant 0 : i32
    return %c0_i32, %c0_i32_0 : i32, i32
  }
  func.func @transform_5(%arg0: i32) -> (i32, i32) {
    %c0_i32 = arith.constant 0 : i32
    %c0_i32_0 = arith.constant 0 : i32
    %c0_i32_1 = arith.constant 0 : i32
    return %c0_i32, %c0_i32_0 : i32, i32
  }
  func.func @transform_6(%arg0: i32) -> (i32, i32) {
    %c0_i32 = arith.constant 0 : i32
    %c0_i32_0 = arith.constant 0 : i32
    return %arg0, %c0_i32 : i32, i32
  }
}

</mosaic_0001>

<bundles_post_ra>
// kernel: tpu_custom_call.1
= control target key start
LH: loop header
LB: loop body
LE: loop exit
PB: predicated region body
PF: predicated region fallthrough
CT: control target
= control target key end

     0   :  { %vm142_vm0 = vcmask 261120   ;;  %vm592_vm1 = vcmask 523264   ;;  %vm3502_vm2 = vcmask 130048   ;;  %s7398_s1 = inlined_call_operand.vmem [shape: bf16[32,64], index: 1, kind: input, shape index: {}]   ;;  %s7399_s0 = inlined_call_operand.vmem [shape: f32[512,32], index: 0, kind: input, shape index: {}]   ;;  %s7400_s4 = inlined_call_operand.vmem [shape: f32[6,64], index: 4, kind: input, shape index: {}]   ;;  %s7401_s2 = inlined_call_operand.vmem [shape: bf16[64,64], index: 2, kind: input, shape index: {}]   ;;  %s7402_s3 = inlined_call_operand.vmem [shape: bf16[64,16], index: 3, kind: input, shape index: {}]   ;;  %s7403_s5 = inlined_call_operand.vmem [shape: f32[1,16], index: 5, kind: input, shape index: {}]   ;;  %s7404_s6 = inlined_call_operand.vmem [shape: f32[512,16], index: 6, kind: output, shape index: {}]  }
   0x1   :  { %v4000_v0 = vld [vmem:[%s7398_s1 + $0x8] sm:$0xff]   ;;  %v4001_v1 = vld [vmem:[%s7398_s1] sm:$0xff]   ;;  %v28_v7 = vld [vmem:[%s7399_s0 + $0x10] sm:$0xff] }
   0x2   :  { %3784 = vmatprep.subr.bf16.mxu0 %v4000_v0  ;;  %3996 = vmatprep.subr.bf16.mxu1 %v4000_v0  ;;  %v26_v2 = vld [vmem:[%s7399_s0] sm:$0xff]  ;;  %v27_v3 = vld [vmem:[%s7399_s0 + $0x8] sm:$0xff]  ;;  %v29_v8 = vld [vmem:[%s7399_s0 + $0x18] sm:$0xff] }
   0x3   :  { %v58_v4 = vld [vmem:[%s7399_s0 + $0x100] sm:$0xff]  ;;  %3785 = vmatpush3.bf16.msra.mxu0 %v4000_v0  ;;  %3998 = vmatpush3.bf16.msra.mxu1 %v4000_v0  ;;  %v90_v5 = vpack.c.bf16 %v27_v3, %v26_v2  ;;  %v59_v6 = vld [vmem:[%s7399_s0 + $0x108] sm:$0xff]  ;;  %v60_v10 = vld [vmem:[%s7399_s0 + $0x110] sm:$0xff]  ;;  %v91_v14 = vpack.c.bf16 %v29_v8, %v28_v7 }
   0x4   :  { %3786 = vmatprep.subr.bf16.mxu0 %v4001_v1  ;;  %3997 = vmatprep.subr.bf16.mxu1 %v4001_v1  ;;  %v106_v9 = vpack.c.bf16 %v59_v6, %v58_v4  ;;  %v61_v11 = vld [vmem:[%s7399_s0 + $0x118] sm:$0xff]  ;;  %v30_v12 = vld [vmem:[%s7399_s0 + $0x20] sm:$0xff]  ;;  %v31_v13 = vld [vmem:[%s7399_s0 + $0x28] sm:$0xff] }
   0x5   :  { %3788 = vmatprep.mubr.msk.bf16.mxu0 %vm142_vm0, %v90_v5  ;;  %v107_v15 = vpack.c.bf16 %v61_v11, %v60_v10  ;;  %v62_v16 = vld [vmem:[%s7399_s0 + $0x120] sm:$0xff]  ;;  %v63_v17 = vld [vmem:[%s7399_s0 + $0x128] sm:$0xff]  ;;  %v92_v18 = vpack.c.bf16 %v31_v13, %v30_v12  ;;  %v32_v20 = vld [vmem:[%s7399_s0 + $0x30] sm:$0xff] }
   0x6   :  { %3820 = vmatprep.mubr.msk.bf16.mxu1 %vm142_vm0, %v106_v9  ;;  %v108_v19 = vpack.c.bf16 %v63_v17, %v62_v16  ;;  %v33_v21 = vld [vmem:[%s7399_s0 + $0x38] sm:$0xff]  ;;  %v64_v22 = vld [vmem:[%s7399_s0 + $0x130] sm:$0xff]  ;;  %v34_v24 = vld [vmem:[%s7399_s0 + $0x40] sm:$0xff] }
   0x7   :  { %3787 = vmatpush3.bf16.msra.mxu0 %v4001_v1  ;;  %3999 = vmatpush3.bf16.msra.mxu1 %v4001_v1  ;;  %v65_v23 = vld [vmem:[%s7399_s0 + $0x138] sm:$0xff]  ;;  %v35_v25 = vld [vmem:[%s7399_s0 + $0x48] sm:$0xff]  ;;  %v66_v26 = vld [vmem:[%s7399_s0 + $0x140] sm:$0xff]  ;;  %v93_v28 = vpack.c.bf16 %v33_v21, %v32_v20 }
   0x8   :  { %v67_v27 = vld [vmem:[%s7399_s0 + $0x148] sm:$0xff]  ;;  %v109_v29 = vpack.c.bf16 %v65_v23, %v64_v22  ;;  %v94_v30 = vpack.c.bf16 %v35_v25, %v34_v24  ;;  %v36_v32 = vld [vmem:[%s7399_s0 + $0x50] sm:$0xff]  ;;  %v37_v33 = vld [vmem:[%s7399_s0 + $0x58] sm:$0xff] }
   0x9   :  { %v110_v31 = vpack.c.bf16 %v67_v27, %v66_v26  ;;  %v68_v34 = vld [vmem:[%s7399_s0 + $0x150] sm:$0xff]  ;;  %v69_v35 = vld [vmem:[%s7399_s0 + $0x158] sm:$0xff]  ;;  %v38_v36 = vld [vmem:[%s7399_s0 + $0x60] sm:$0xff]  ;;  %v95_v40 = vpack.c.bf16 %v37_v33, %v36_v32 }
   0xa   :  { %3789 = vmatmul.mubr.msk.bf16.vlgmr.msra.gmra.mxu0 %vm142_vm0, %v91_v14  ;;  %3821 = vmatmul.mubr.msk.bf16.vlgmr.msra.gmra.mxu1 %vm142_vm0, %v107_v15  ;;  %v39_v37 = vld [vmem:[%s7399_s0 + $0x68] sm:$0xff]  ;;  %v70_v38 = vld [vmem:[%s7399_s0 + $0x160] sm:$0xff]  ;;  %v111_v41 = vpack.c.bf16 %v69_v35, %v68_v34  ;;  %v40_v44 = vld [vmem:[%s7399_s0 + $0x70] sm:$0xff]  ;;  %v126_v34 = vlaneseq }
   0xb   :  { %3792 = vmatprep.mubr.msk.bf16.mxu0 %vm142_vm0, %v92_v18  ;;  %3824 = vmatprep.mubr.msk.bf16.mxu1 %vm142_vm0, %v108_v19  ;;  %v71_v39 = vld [vmem:[%s7399_s0 + $0x168] sm:$0xff]  ;;  %v96_v42 = vpack.c.bf16 %v39_v37, %v38_v36  ;;  %v41_v45 = vld [vmem:[%s7399_s0 + $0x78] sm:$0xff]  ;;  %v72_v46 = vld [vmem:[%s7399_s0 + $0x170] sm:$0xff] }
   0xc   :  { %v112_v43 = vpack.c.bf16 %v71_v39, %v70_v38  ;;  %v73_v47 = vld [vmem:[%s7399_s0 + $0x178] sm:$0xff]  ;;  %v42_v48 = vld [vmem:[%s7399_s0 + $0x80] sm:$0xff]  ;;  %v43_v49 = vld [vmem:[%s7399_s0 + $0x88] sm:$0xff]  ;;  %v97_v52 = vpack.c.bf16 %v41_v45, %v40_v44  ;;  %v4534_v35 = vshrl.u32 %v126_v34, 7 }
   0xd   :  { %v74_v50 = vld [vmem:[%s7399_s0 + $0x180] sm:$0xff]  ;;  %v75_v51 = vld [vmem:[%s7399_s0 + $0x188] sm:$0xff]  ;;  %v113_v53 = vpack.c.bf16 %v73_v47, %v72_v46  ;;  %v98_v54 = vpack.c.bf16 %v43_v49, %v42_v48  ;;  %v44_v56 = vld [vmem:[%s7399_s0 + $0x90] sm:$0xff] }
   0xe   :  { %v114_v55 = vpack.c.bf16 %v75_v51, %v74_v50  ;;  %v45_v57 = vld [vmem:[%s7399_s0 + $0x98] sm:$0xff]  ;;  %v76_v58 = vld [vmem:[%s7399_s0 + $0x190] sm:$0xff]  ;;  %v46_v60 = vld [vmem:[%s7399_s0 + $0xa0] sm:$0xff]  ;;  %7616 = vst [vmem:[#allocation2_spill] sm:$0xff] %v4534_v35  ;;  %v128_v36 = vsub.s32 0, %v4534_v35 }
   0xf   :  { %v77_v59 = vld [vmem:[%s7399_s0 + $0x198] sm:$0xff]  ;;  %v47_v61 = vld [vmem:[%s7399_s0 + $0xa8] sm:$0xff]  ;;  %v78_v62 = vld [vmem:[%s7399_s0 + $0x1a0] sm:$0xff]  ;;  %v99_v0 = vpack.c.bf16 %v45_v57, %v44_v56 }
  0x10   :  { %v79_v63 = vld [vmem:[%s7399_s0 + $0x1a8] sm:$0xff]  ;;  %v115_v1 = vpack.c.bf16 %v77_v59, %v76_v58  ;;  %v100_v2 = vpack.c.bf16 %v47_v61, %v46_v60  ;;  %v48_v4 = vld [vmem:[%s7399_s0 + $0xb0] sm:$0xff]  ;;  %v49_v5 = vld [vmem:[%s7399_s0 + $0xb8] sm:$0xff] }
  0x11   :  { %v116_v3 = vpack.c.bf16 %v79_v63, %v78_v62  ;;  %v80_v6 = vld [vmem:[%s7399_s0 + $0x1b0] sm:$0xff]  ;;  %v81_v7 = vld [vmem:[%s7399_s0 + $0x1b8] sm:$0xff]  ;;  %v50_v8 = vld [vmem:[%s7399_s0 + $0xc0] sm:$0xff]  ;;  %v101_v12 = vpack.c.bf16 %v49_v5, %v48_v4 }
  0x12   :  { %3793 = vmatmul.mubr.msk.bf16.gmra.mxu0 %vm142_vm0, %v93_v28  ;;  %3825 = vmatmul.mubr.msk.bf16.gmra.mxu1 %vm142_vm0, %v109_v29  ;;  %v51_v9 = vld [vmem:[%s7399_s0 + $0xc8] sm:$0xff]  ;;  %v82_v10 = vld [vmem:[%s7399_s0 + $0x1c0] sm:$0xff]  ;;  %v117_v13 = vpack.c.bf16 %v81_v7, %v80_v6  ;;  %v52_v16 = vld [vmem:[%s7399_s0 + $0xd0] sm:$0xff] }
  0x13   :  { %3796 = vmatprep.mubr.msk.bf16.mxu0 %vm142_vm0, %v94_v30  ;;  %3828 = vmatprep.mubr.msk.bf16.mxu1 %vm142_vm0, %v110_v31  ;;  %v83_v11 = vld [vmem:[%s7399_s0 + $0x1c8] sm:$0xff]  ;;  %v102_v14 = vpack.c.bf16 %v51_v9, %v50_v8  ;;  %v53_v17 = vld [vmem:[%s7399_s0 + $0xd8] sm:$0xff]  ;;  %v54_v18 = vld [vmem:[%s7399_s0 + $0xe0] sm:$0xff] }
  0x14   :  { %v118_v15 = vpack.c.bf16 %v83_v11, %v82_v10  ;;  %v84_v19 = vld [vmem:[%s7399_s0 + $0x1d0] sm:$0xff]  ;;  %v85_v20 = vld [vmem:[%s7399_s0 + $0x1d8] sm:$0xff]  ;;  %v55_v21 = vld [vmem:[%s7399_s0 + $0xe8] sm:$0xff]  ;;  %v103_v24 = vpack.c.bf16 %v53_v17, %v52_v16 }
  0x15   :  { %v86_v22 = vld [vmem:[%s7399_s0 + $0x1e0] sm:$0xff]  ;;  %v87_v23 = vld [vmem:[%s7399_s0 + $0x1e8] sm:$0xff]  ;;  %v119_v25 = vpack.c.bf16 %v85_v20, %v84_v19  ;;  %v104_v26 = vpack.c.bf16 %v55_v21, %v54_v18  ;;  %v56_v28 = vld [vmem:[%s7399_s0 + $0xf0] sm:$0xff] }
  0x16   :  { %v120_v27 = vpack.c.bf16 %v87_v23, %v86_v22  ;;  %v57_v29 = vld [vmem:[%s7399_s0 + $0xf8] sm:$0xff]  ;;  %v88_v30 = vld [vmem:[%s7399_s0 + $0x1f0] sm:$0xff]  ;;  %v24_v37 = vld [vmem:[%s7400_s4] sm:$0x3f] }
  0x17   :  { %v89_v31 = vld [vmem:[%s7399_s0 + $0x1f8] sm:$0xff]  ;;  %v105_v32 = vpack.c.bf16 %v57_v29, %v56_v28  ;;  %v4540_v38 = vrot.slane %v24_v37, %v128_v36 }
  0x18   :  { %v121_v33 = vpack.c.bf16 %v89_v31, %v88_v30 }
  0x1a   :  { %3797 = vmatmul.mubr.msk.bf16.gmra.mxu0 %vm142_vm0, %v95_v40  ;;  %3829 = vmatmul.mubr.msk.bf16.gmra.mxu1 %vm142_vm0, %v111_v41 }
  0x1b   :  { %3800 = vmatprep.mubr.msk.bf16.mxu0 %vm142_vm0, %v96_v42  ;;  %3832 = vmatprep.mubr.msk.bf16.mxu1 %vm142_vm0, %v112_v43 }
  0x22   :  { %3801 = vmatmul.mubr.msk.bf16.gmra.mxu0 %vm142_vm0, %v97_v52  ;;  %3833 = vmatmul.mubr.msk.bf16.gmra.mxu1 %vm142_vm0, %v113_v53 }
  0x23   :  { %3804 = vmatprep.mubr.msk.bf16.mxu0 %vm142_vm0, %v98_v54  ;;  %3836 = vmatprep.mubr.msk.bf16.mxu1 %vm142_vm0, %v114_v55 }
  0x2a   :  { %3805 = vmatmul.mubr.msk.bf16.gmra.mxu0 %vm142_vm0, %v99_v0  ;;  %3837 = vmatmul.mubr.msk.bf16.gmra.mxu1 %vm142_vm0, %v115_v1 }
  0x2b   :  { %3808 = vmatprep.mubr.msk.bf16.mxu0 %vm142_vm0, %v100_v2  ;;  %3840 = vmatprep.mubr.msk.bf16.mxu1 %vm142_vm0, %v116_v3 }
  0x32   :  { %3809 = vmatmul.mubr.msk.bf16.gmra.mxu0 %vm142_vm0, %v101_v12  ;;  %3841 = vmatmul.mubr.msk.bf16.gmra.mxu1 %vm142_vm0, %v117_v13 }
  0x33   :  { %3812 = vmatprep.mubr.msk.bf16.mxu0 %vm142_vm0, %v102_v14  ;;  %3844 = vmatprep.mubr.msk.bf16.mxu1 %vm142_vm0, %v118_v15 }
  0x3a   :  { %3813 = vmatmul.mubr.msk.bf16.gmra.mxu0 %vm142_vm0, %v103_v24  ;;  %3845 = vmatmul.mubr.msk.bf16.gmra.mxu1 %vm142_vm0, %v119_v25 }
  0x3b   :  { %3816 = vmatprep.mubr.msk.bf16.mxu0 %vm142_vm0, %v104_v26  ;;  %3848 = vmatprep.mubr.msk.bf16.mxu1 %vm142_vm0, %v120_v27 }
  0x42   :  { %3817 = vmatmul.mubr.msk.bf16.gmra.mxu0 %vm142_vm0, %v105_v32  ;;  %3849 = vmatmul.mubr.msk.bf16.gmra.mxu1 %vm142_vm0, %v121_v33 }
  0xca   :  { %v3790_v39 = vpop.f32.mrf.mxu0  ;;  %v3822_v40 = vpop.f32.mrf.mxu1 }
  0xcb   :  { %v4543_v41 = vadd.f32 %v3790_v39, %v4540_v38  ;;  %v4546_v42 = vadd.f32 %v3822_v40, %v4540_v38 }
  0xcc   :  { %v273_v43 = vpop.f32.mrf.mxu0  ;;  %v401_v44 = vpop.f32.mrf.mxu1 }
  0xcd   :  { %v7431_v45 = vmax.f32 %v4543_v41, 0.0  ;;  %v7412_v46 = vmax.f32 %v4546_v42, 0.0  ;;  %v4551_v47 = vadd.f32 %v273_v43, %v4540_v38  ;;  %v4554_v50 = vadd.f32 %v401_v44, %v4540_v38 }
  0xce   :  { %v3791_v48 = vpop.f32.mrf.mxu0  ;;  %v3823_v49 = vpop.f32.mrf.mxu1 }
  0xcf   :  { %v4557_v51 = vadd.f32 %v3791_v48, %v4540_v38  ;;  %v4560_v52 = vadd.f32 %v3823_v49, %v4540_v38  ;;  %v7428_v53 = vmax.f32 %v4551_v47, 0.0  ;;  %v695_v54 = vsel %vm592_vm1, %v7412_v46, 0.0 }
  0xd0   :  { %v404_v55 = vpop.f32.mrf.mxu1  ;;  %v599_v56 = vsel %vm592_vm1, %v7431_v45, 0.0  ;;  %v276_v57 = vpop.f32.mrf.mxu0  ;;  %696 = vadd.xlane.f32.xlu0 %v695_v54  ;;  %v7414_v61 = vmax.f32 %v4554_v50, 0.0 }
  0xd1   :  { %v7429_v58 = vmax.f32 %v4557_v51, 0.0  ;;  %600 = vadd.xlane.f32.xlu1 %v599_v56  ;;  %v7410_v62 = vmax.f32 %v4560_v52, 0.0  ;;  %v4573_v63 = vadd.f32 %v404_v55, %v4540_v38  ;;  %v4576_v0 = vadd.f32 %v276_v57, %v4540_v38 }
  0xd2   :  { %v3794_v59 = vpop.f32.mrf.mxu0  ;;  %v3826_v60 = vpop.f32.mrf.mxu1  ;;  %v593_v3 = vsel %vm592_vm1, %v7428_v53, 0.0  ;;  %v689_v8 = vsel %vm592_vm1, %v7414_v61, 0.0 }
  0xd3   :  { %v602_v1 = vsel %vm592_vm1, %v7429_v58, 0.0  ;;  %v4585_v7 = vadd.f32 %v3794_v59, %v4540_v38  ;;  %v7413_v9 = vmax.f32 %v4573_v63, 0.0  ;;  %v7427_v10 = vmax.f32 %v4576_v0, 0.0 }
  0xd4   :  { %v289_v2 = vpop.f32.mrf.mxu0  ;;  %v417_v4 = vpop.f32.mrf.mxu1  ;;  %594 = vadd.xlane.f32.xlu0 %v593_v3  ;;  %v698_v12 = vsel %vm592_vm1, %v7410_v62, 0.0  ;;  %v4600_v17 = vadd.f32 %v3826_v60, %v4540_v38 }
  0xd5   :  { %603 = vadd.xlane.f32.xlu1 %v602_v1  ;;  %v7423_v16 = vmax.f32 %v4585_v7, 0.0  ;;  %v692_v21 = vsel %vm592_vm1, %v7413_v9, 0.0  ;;  %v596_v22 = vsel %vm592_vm1, %v7427_v10, 0.0  ;;  %v4614_v26 = vadd.f32 %v289_v2, %v4540_v38 }
  0xd6   :  { %v3795_v5 = vpop.f32.mrf.mxu0  ;;  %v3827_v6 = vpop.f32.mrf.mxu1  ;;  %v7405_v25 = vmax.f32 %v4600_v17, 0.0  ;;  %v4630_v36 = vadd.f32 %v417_v4, %v4540_v38 }
  0xd7   :  { %v4593_v11 = vadd.f32 %v3795_v5, %v4540_v38  ;;  %v4604_v20 = vadd.f32 %v3827_v6, %v4540_v38  ;;  %v611_v31 = vsel %vm592_vm1, %v7423_v16, 0.0  ;;  %v7420_v34 = vmax.f32 %v4614_v26, 0.0 }
  0xd8   :  { %v420_v13 = vpop.f32.mrf.mxu1  ;;  %v292_v14 = vpop.f32.mrf.mxu0  ;;  %690 = vadd.xlane.f32.xlu0 %v689_v8  ;;  %v707_v44 = vsel %vm592_vm1, %v7405_v25, 0.0  ;;  %v7407_v54 = vmax.f32 %v4630_v36, 0.0 }
  0xd9   :  { %699 = vadd.xlane.f32.xlu1 %v698_v12  ;;  %v7424_v19 = vmax.f32 %v4593_v11, 0.0  ;;  %v7406_v28 = vmax.f32 %v4604_v20, 0.0  ;;  %v4618_v29 = vadd.f32 %v292_v14, %v4540_v38  ;;  %v4634_v40 = vadd.f32 %v420_v13, %v4540_v38 }
  0xda   :  { %v3830_v15 = vpop.f32.mrf.mxu1  ;;  %v3798_v18 = vpop.f32.mrf.mxu0  ;;  %v605_v56 = vsel %vm592_vm1, %v7420_v34, 0.0  ;;  %v701_v6 = vsel %vm592_vm1, %v7407_v54, 0.0 }
  0xdb   :  { %v614_v30 = vsel %vm592_vm1, %v7424_v19, 0.0  ;;  %v7422_v39 = vmax.f32 %v4618_v29, 0.0  ;;  %v710_v43 = vsel %vm592_vm1, %v7406_v28, 0.0  ;;  %v7408_v57 = vmax.f32 %v4634_v40, 0.0 }
  0xdc   :  { %v433_v23 = vpop.f32.mrf.mxu1  ;;  %597 = vadd.xlane.f32.xlu0 %v596_v22  ;;  %v305_v27 = vpop.f32.mrf.mxu0  ;;  %v4650_v59 = vadd.f32 %v3798_v18, %v4540_v38  ;;  %v4663_v5 = vadd.f32 %v3830_v15, %v4540_v38 }
  0xdd   :  { %693 = vadd.xlane.f32.xlu1 %v692_v21  ;;  %v608_v1 = vsel %vm592_vm1, %v7422_v39, 0.0  ;;  %v704_v14 = vsel %vm592_vm1, %v7408_v57, 0.0  ;;  %v4681_v22 = vadd.f32 %v305_v27, %v4540_v38 }
  0xde   :  { %v3831_v24 = vpop.f32.mrf.mxu1  ;;  %v3799_v37 = vpop.f32.mrf.mxu0  ;;  %v7418_v8 = vmax.f32 %v4650_v59, 0.0 }
  0xdf   :  { %v4653_v60 = vadd.f32 %v3799_v37, %v4540_v38  ;;  %v4671_v13 = vadd.f32 %v3831_v24, %v4540_v38 }
  0xe0   :  { %v436_v32 = vpop.f32.mrf.mxu1  ;;  %612 = vadd.xlane.f32.xlu0 %v611_v31  ;;  %v308_v55 = vpop.f32.mrf.mxu0 }
  0xe1   :  { %615 = vadd.xlane.f32.xlu1 %v614_v30  ;;  %v7419_v12 = vmax.f32 %v4653_v60, 0.0  ;;  %v7411_v30 = vmax.f32 %v4663_v5, 0.0  ;;  %v4685_v31 = vadd.f32 %v308_v55, %v4540_v38  ;;  %v7409_v24 = vmax.f32 %v4671_v13, 0.0 }
  0xe2   :  { %v4626_v33 = vpop.f32.mrf.mxu1  ;;  %v3802_v3 = vpop.f32.mrf.mxu0  ;;  %v7415_v55 = vmax.f32 %v4681_v22, 0.0 }
  0xe3   :  { %v626_v37 = vsel %vm592_vm1, %v7419_v12, 0.0  ;;  %v722_v25 = vsel %vm592_vm1, %v7409_v24, 0.0  ;;  %v4722_v62 = vadd.f32 %v3802_v3, %v4540_v38  ;;  %v4736_v9 = vadd.f32 %v4626_v33, %v4540_v38 }
  0xe4   :  { %v4642_v48 = vpop.f32.mrf.mxu1  ;;  %708 = vadd.xlane.f32.xlu0 %v707_v44  ;;  %v321_v15 = vpop.f32.mrf.mxu0 }
  0xe5   :  { %711 = vadd.xlane.f32.xlu1 %v710_v43  ;;  %v623_v43 = vsel %vm592_vm1, %v7418_v8, 0.0  ;;  %7617 = vst [vmem:[#allocation3_spill] sm:$0xff] %v4736_v9  ;;  %v7426_v61 = vmax.f32 %v4722_v62, 0.0  ;;  %v7432_v8 = vmax.f32 %v4736_v9, 0.0 }
  0xe6   :  { %v3835_v49 = vpop.f32.mrf.mxu1  ;;  %v3803_v27 = vpop.f32.mrf.mxu0 }
  0xe8   :  { %v4658_v2 = vpop.f32.mrf.mxu1  ;;  %606 = vadd.xlane.f32.xlu0 %v605_v56  ;;  %v324_v28 = vpop.f32.mrf.mxu0 }
  0xe9   :  { %609 = vadd.xlane.f32.xlu1 %v608_v1  ;;  %v4700_v1 = vadd.f32 %v433_v23, %v4540_v38  ;;  %v4758_v34 = vadd.f32 %v324_v28, %v4540_v38  ;;  %v4772_v28 = vadd.f32 %v4642_v48, %v4540_v38 }
  0xea   :  { %v4660_v4 = vpop.f32.mrf.mxu1  ;;  %v3806_v57 = vpop.f32.mrf.mxu0 }
  0xeb   :  { %v7417_v54 = vmax.f32 %v4700_v1, 0.0  ;;  %7619 = vst [vmem:[#allocation5_spill] sm:$0xff] %v4772_v28  ;;  %v7435_v53 = vmax.f32 %v4772_v28, 0.0  ;;  %v4799_v45 = vadd.f32 %v3806_v57, %v4540_v38 }
  0xec   :  { %v4676_v18 = vpop.f32.mrf.mxu1  ;;  %702 = vadd.xlane.f32.xlu0 %v701_v6  ;;  %v7416_v6 = vmax.f32 %v4685_v31, 0.0 }
  0xed   :  { %705 = vadd.xlane.f32.xlu1 %v704_v14  ;;  %v4704_v14 = vadd.f32 %v436_v32, %v4540_v38  ;;  %v617_v32 = vsel %vm592_vm1, %v7415_v55, 0.0  ;;  %v713_v3 = vsel %vm592_vm1, %v7417_v54, 0.0  ;;  %v4754_v54 = vadd.f32 %v321_v15, %v4540_v38 }
  0xee   :  { %v4678_v21 = vpop.f32.mrf.mxu1  ;;  %v7626_v9 = vmax.f32 %v4799_v45, 0.0 }
  0xef   :  { %v7421_v24 = vmax.f32 %v4704_v14, 0.0  ;;  %v7433_v39 = vmax.f32 %v4754_v54, 0.0 }
  0xf0   :  { %v4694_v44 = vpop.f32.mrf.mxu1  ;;  %624 = vadd.xlane.f32.xlu0 %v623_v43 }
  0xf1   :  { %627 = vadd.xlane.f32.xlu1 %v626_v37  ;;  %v719_v37 = vsel %vm592_vm1, %v7411_v30, 0.0  ;;  %v4725_v30 = vadd.f32 %v3803_v27, %v4540_v38  ;;  %v337_v27 = vpop.f32.mrf.mxu0 }
  0xf2   :  { %v4696_v56 = vpop.f32.mrf.mxu1 }
  0xf3   :  { %v7425_v55 = vmax.f32 %v4725_v30, 0.0  ;;  %v3807_v12 = vpop.f32.mrf.mxu0 }
  0xf4   :  { %v4712_v43 = vpop.f32.mrf.mxu1  ;;  %720 = vadd.xlane.f32.xlu0 %v719_v37 }
  0xf5   :  { %723 = vadd.xlane.f32.xlu1 %v722_v25  ;;  %v620_v25 = vsel %vm592_vm1, %v7416_v6, 0.0  ;;  %v4744_v6 = vadd.f32 %v3835_v49, %v4540_v38  ;;  %v340_v16 = vpop.f32.mrf.mxu0 }
  0xf6   :  { %v4714_v23 = vpop.f32.mrf.mxu1  ;;  %v4828_v57 = vadd.f32 %v340_v16, %v4540_v38 }
  0xf7   :  { %7618 = vst [vmem:[#allocation4_spill] sm:$0xff] %v4744_v6  ;;  %v7430_v49 = vmax.f32 %v4744_v6, 0.0 }
  0xf8   :  { %v4730_v37 = vpop.f32.mrf.mxu1  ;;  %618 = vadd.xlane.f32.xlu0 %v617_v32  ;;  %v716_v32 = vsel %vm592_vm1, %v7421_v24, 0.0  ;;  %v638_v24 = vsel %vm592_vm1, %v7425_v55, 0.0  ;;  %v7434_v55 = vmax.f32 %v4758_v34, 0.0 }
  0xf9   :  { %621 = vadd.xlane.f32.xlu1 %v620_v25 }
  0xfa   :  { %v4732_v46 = vpop.f32.mrf.mxu1 }
  0xfc   :  { %v4749_v25 = vpop.f32.mrf.mxu1  ;;  %714 = vadd.xlane.f32.xlu0 %v713_v3  ;;  %v635_v3 = vsel %vm592_vm1, %v7426_v61, 0.0  ;;  %v4780_v61 = vadd.f32 %v4658_v2, %v4540_v38  ;;  %v629_v2 = vsel %vm592_vm1, %v7433_v39, 0.0  ;;  %v4809_v39 = vadd.f32 %v4660_v4, %v4540_v38 }
  0xfd   :  { %717 = vadd.xlane.f32.xlu1 %v716_v32 }
  0xfe   :  { %v4751_v33 = vpop.f32.mrf.mxu1  ;;  %7622 = vst [vmem:[#allocation8_spill] sm:$0xff] %v4809_v39 }
 0x100   :  { %v4767_v32 = vpop.f32.mrf.mxu1  ;;  %636 = vadd.xlane.f32.xlu0 %v635_v3  ;;  %v731_v3 = vsel %vm592_vm1, %v7432_v8, 0.0  ;;  %v4802_v8 = vadd.f32 %v3807_v12, %v4540_v38  ;;  %v4845_v12 = vadd.f32 %v4694_v44, %v4540_v38  ;;  %v4878_v44 = vadd.f32 %v4714_v23, %v4540_v38 }
 0x101   :  { %639 = vadd.xlane.f32.xlu1 %v638_v24  ;;  %v734_v24 = vsel %vm592_vm1, %v7430_v49, 0.0  ;;  %v4818_v49 = vadd.f32 %v4678_v21, %v4540_v38 }
 0x102   :  { %v3850_v15 = vpop.f32.mrf.mxu1  ;;  %v7625_v21 = vmax.f32 %v4802_v8, 0.0  ;;  %7628 = vst [vmem:[#allocation11_spill] sm:$0xff] %v4845_v12  ;;  %7633 = vst [vmem:[#allocation13_spill] sm:$0xff] %v4878_v44 }
 0x103   :  { %v4775_v19 = vadd.f32 %v3850_v15, %v4540_v38  ;;  %v3810_v15 = vpop.f32.mrf.mxu0  ;;  %7623 = vst [vmem:[#allocation9_spill] sm:$0xff] %v4818_v49 }
 0x104   :  { %v4788_v48 = vpop.f32.mrf.mxu1  ;;  %732 = vadd.xlane.f32.xlu0 %v731_v3  ;;  %v650_v35 = vsel %vm592_vm1, %v7625_v21, 0.0  ;;  %v7629_v21 = vmax.f32 %v4818_v49, 0.0  ;;  %v4859_v28 = vadd.f32 %v3810_v15, %v4540_v38 }
 0x105   :  { %7620 = vst [vmem:[#allocation6_spill] sm:$0xff] %v4775_v19  ;;  %735 = vadd.xlane.f32.xlu1 %v734_v24  ;;  %v632_v24 = vsel %vm592_vm1, %v7434_v55, 0.0  ;;  %v353_v3 = vpop.f32.mrf.mxu0  ;;  %v4824_v55 = vadd.f32 %v337_v27, %v4540_v38 }
 0x106   :  { %v3851_v10 = vpop.f32.mrf.mxu1 }
 0x107   :  { %v4795_v58 = vadd.f32 %v3851_v10, %v4540_v38  ;;  %v725_v10 = vsel %vm592_vm1, %v7435_v53, 0.0  ;;  %v3811_v4 = vpop.f32.mrf.mxu0  ;;  %v7442_v27 = vmax.f32 %v4824_v55, 0.0 }
 0x108   :  { %630 = vadd.xlane.f32.xlu0 %v629_v2 }
 0x109   :  { %7621 = vst [vmem:[#allocation7_spill] sm:$0xff] %v4795_v58  ;;  %633 = vadd.xlane.f32.xlu1 %v632_v24  ;;  %v7624_v24 = vmax.f32 %v4780_v61, 0.0  ;;  %v641_v53 = vsel %vm592_vm1, %v7442_v27, 0.0 }
 0x10b   :  { %v728_v2 = vsel %vm592_vm1, %v7624_v24, 0.0  ;;  %v647_v24 = vsel %vm592_vm1, %v7626_v9, 0.0  ;;  %v746_v9 = vsel %vm592_vm1, %v7629_v21, 0.0  ;;  %v4862_v21 = vadd.f32 %v3811_v4, %v4540_v38 }
 0x10c   :  { %726 = vadd.xlane.f32.xlu0 %v725_v10  ;;  %v356_v10 = vpop.f32.mrf.mxu0  ;;  %v7447_v4 = vmax.f32 %v4878_v44, 0.0 }
 0x10d   :  { %729 = vadd.xlane.f32.xlu1 %v728_v2  ;;  %v4840_v2 = vadd.f32 %v4676_v18, %v4540_v38  ;;  %v4888_v15 = vadd.f32 %v356_v10, %v4540_v38  ;;  %v7635_v23 = vmax.f32 %v4862_v21, 0.0 }
 0x10e   :  { %v3814_v16 = vpop.f32.mrf.mxu0 }
 0x10f   :  { %7627 = vst [vmem:[#allocation10_spill] sm:$0xff] %v4840_v2  ;;  %v7443_v18 = vmax.f32 %v4840_v2, 0.0  ;;  %v662_v49 = vsel %vm592_vm1, %v7635_v23, 0.0  ;;  %v7636_v2 = vmax.f32 %v4859_v28, 0.0  ;;  %v758_v23 = vsel %vm592_vm1, %v7447_v4, 0.0 }
 0x110   :  { %648 = vadd.xlane.f32.xlu0 %v647_v24  ;;  %v369_v6 = vpop.f32.mrf.mxu0  ;;  %v7640_v44 = vmax.f32 %v4888_v15, 0.0 }
 0x111   :  { %651 = vadd.xlane.f32.xlu1 %v650_v35  ;;  %v7630_v35 = vmax.f32 %v4809_v39, 0.0  ;;  %v7631_v39 = vmax.f32 %v4828_v57, 0.0 }
 0x112   :  { %v3815_v27 = vpop.f32.mrf.mxu0  ;;  %v656_v4 = vsel %vm592_vm1, %v7640_v44, 0.0 }
 0x113   :  { %v743_v24 = vsel %vm592_vm1, %v7630_v35, 0.0  ;;  %v4869_v35 = vadd.f32 %v4696_v56, %v4540_v38  ;;  %v4884_v56 = vadd.f32 %v353_v3, %v4540_v38 }
 0x114   :  { %744 = vadd.xlane.f32.xlu0 %v743_v24  ;;  %v737_v24 = vsel %vm592_vm1, %v7443_v18, 0.0  ;;  %v372_v18 = vpop.f32.mrf.mxu0 }
 0x115   :  { %747 = vadd.xlane.f32.xlu1 %v746_v9  ;;  %v644_v9 = vsel %vm592_vm1, %v7631_v39, 0.0  ;;  %7632 = vst [vmem:[#allocation12_spill] sm:$0xff] %v4869_v35  ;;  %v7634_v39 = vmax.f32 %v4845_v12, 0.0 }
 0x116   :  { %v3818_v10 = vpop.f32.mrf.mxu0 }
 0x118   :  { %642 = vadd.xlane.f32.xlu0 %v641_v53  ;;  %v740_v53 = vsel %vm592_vm1, %v7634_v39, 0.0  ;;  %v659_v39 = vsel %vm592_vm1, %v7636_v2, 0.0  ;;  %v385_v3 = vpop.f32.mrf.mxu0 }
 0x119   :  { %645 = vadd.xlane.f32.xlu1 %v644_v9  ;;  %v4905_v9 = vadd.f32 %v4730_v37, %v4540_v38 }
 0x11a   :  { %v3819_v37 = vpop.f32.mrf.mxu0 }
 0x11b   :  { %7638 = vst [vmem:[#allocation15_spill] sm:$0xff] %v4905_v9 }
 0x11c   :  { %738 = vadd.xlane.f32.xlu0 %v737_v24  ;;  %v4900_v24 = vadd.f32 %v4712_v43, %v4540_v38  ;;  %v4914_v43 = vadd.f32 %v3814_v16, %v4540_v38 }
 0x11d   :  { %741 = vadd.xlane.f32.xlu1 %v740_v53  ;;  %v7450_v53 = vmax.f32 %v4905_v9, 0.0 }
 0x11e   :  { %7637 = vst [vmem:[#allocation14_spill] sm:$0xff] %v4900_v24  ;;  %v7642_v12 = vmax.f32 %v4900_v24, 0.0  ;;  %v4953_v24 = vadd.f32 %v3819_v37, %v4540_v38 }
 0x11f   :  { %v752_v44 = vsel %vm592_vm1, %v7450_v53, 0.0 }
 0x120   :  { %660 = vadd.xlane.f32.xlu0 %v659_v39  ;;  %v4917_v39 = vadd.f32 %v3815_v27, %v4540_v38  ;;  %v7453_v27 = vmax.f32 %v4914_v43, 0.0 }
 0x121   :  { %663 = vadd.xlane.f32.xlu1 %v662_v49  ;;  %v7639_v49 = vmax.f32 %v4869_v35, 0.0  ;;  %v7641_v35 = vmax.f32 %v4884_v56, 0.0 }
 0x122   :  { %v7452_v16 = vmax.f32 %v4917_v39, 0.0  ;;  %v671_v53 = vsel %vm592_vm1, %v7453_v27, 0.0 }
 0x123   :  { %v755_v2 = vsel %vm592_vm1, %v7639_v49, 0.0  ;;  %v4928_v49 = vadd.f32 %v369_v6, %v4540_v38 }
 0x124   :  { %756 = vadd.xlane.f32.xlu0 %v755_v2  ;;  %v4933_v2 = vadd.f32 %v372_v18, %v4540_v38  ;;  %v674_v18 = vsel %vm592_vm1, %v7452_v16, 0.0  ;;  %v7456_v16 = vmax.f32 %v4953_v24, 0.0 }
 0x125   :  { %759 = vadd.xlane.f32.xlu1 %v758_v23  ;;  %v653_v23 = vsel %vm592_vm1, %v7641_v35, 0.0  ;;  %v749_v35 = vsel %vm592_vm1, %v7642_v12, 0.0  ;;  %v7454_v6 = vmax.f32 %v4928_v49, 0.0  ;;  %v388_v12 = vpop.f32.mrf.mxu0 }
 0x126   :  { %v4967_v37 = vadd.f32 %v388_v12, %v4540_v38 }
 0x128   :  { %654 = vadd.xlane.f32.xlu0 %v653_v23  ;;  %v7455_v23 = vmax.f32 %v4933_v2, 0.0 }
 0x129   :  { %657 = vadd.xlane.f32.xlu1 %v656_v4  ;;  %v4943_v4 = vadd.f32 %v3818_v10, %v4540_v38  ;;  %v665_v10 = vsel %vm592_vm1, %v7454_v6, 0.0  ;;  %v7459_v6 = vmax.f32 %v4967_v37, 0.0 }
 0x12a   :  { %v668_v27 = vsel %vm592_vm1, %v7455_v23, 0.0  ;;  %v686_v23 = vsel %vm592_vm1, %v7456_v16, 0.0 }
 0x12b   :  { %v680_v16 = vsel %vm592_vm1, %v7459_v6, 0.0 }
 0x12c   :  { %750 = vadd.xlane.f32.xlu0 %v749_v35  ;;  %v4960_v35 = vadd.f32 %v385_v3, %v4540_v38 }
 0x12d   :  { %753 = vadd.xlane.f32.xlu1 %v752_v44  ;;  %v7457_v44 = vmax.f32 %v4943_v4, 0.0 }
 0x12e   :  { %v7460_v3 = vmax.f32 %v4960_v35, 0.0 }
 0x130   :  { %672 = vadd.xlane.f32.xlu0 %v671_v53  ;;  %v4971_v53 = vadd.f32 %v4749_v25, %v4540_v38  ;;  %v4987_v25 = vadd.f32 %v4732_v46, %v4540_v38  ;;  %v516_v46 = vpop.f32.mrf.mxu1 }
 0x131   :  { %675 = vadd.xlane.f32.xlu1 %v674_v18  ;;  %v4975_v18 = vadd.f32 %v4767_v32, %v4540_v38  ;;  %v4991_v32 = vadd.f32 %v4751_v33, %v4540_v38 }
 0x132   :  { %7643 = vst [vmem:[#allocation16_spill] sm:$0xff] %v4987_v25  ;;  %v7463_v12 = vmax.f32 %v4971_v53, 0.0  ;;  %v7465_v9 = vmax.f32 %v4987_v25, 0.0 }
 0x133   :  { %v7462_v33 = vmax.f32 %v4991_v32, 0.0 }
 0x134   :  { %666 = vadd.xlane.f32.xlu0 %v665_v10  ;;  %v7461_v10 = vmax.f32 %v4975_v18, 0.0  ;;  %v761_v6 = vsel %vm592_vm1, %v7463_v12, 0.0  ;;  %v7646_v12 = vmax.f32 %v4543_v41, 0.0 }
 0x135   :  { %669 = vadd.xlane.f32.xlu1 %v668_v27  ;;  %v683_v27 = vsel %vm592_vm1, %v7457_v44, 0.0  ;;  %v677_v44 = vsel %vm592_vm1, %v7460_v3, 0.0  ;;  %v5014_v3 = vadd.f32 %v516_v46, %v4540_v38 }
 0x137   :  { %7645 = vst [vmem:[#allocation18_spill] sm:$0xff] %v5014_v3 }
 0x138   :  { %684 = vadd.xlane.f32.xlu0 %v683_v27  ;;  %v764_v27 = vsel %vm592_vm1, %v7461_v10, 0.0  ;;  %v767_v10 = vsel %vm592_vm1, %v7465_v9, 0.0 }
 0x139   :  { %687 = vadd.xlane.f32.xlu1 %v686_v23  ;;  %v5005_v23 = vadd.f32 %v4788_v48, %v4540_v38  ;;  %v770_v48 = vsel %vm592_vm1, %v7462_v33, 0.0 }
 0x13b   :  { %7644 = vst [vmem:[#allocation17_spill] sm:$0xff] %v5005_v23 }
 0x13c   :  { %678 = vadd.xlane.f32.xlu0 %v677_v44  ;;  %v7467_v44 = vmax.f32 %v5014_v3, 0.0 }
 0x13d   :  { %681 = vadd.xlane.f32.xlu1 %v680_v16  ;;  %v7469_v16 = vmax.f32 %v5005_v23, 0.0  ;;  %v7648_v23 = vmax.f32 %v4557_v51, 0.0 }
 0x13e   :  { %v776_v38 = vsel %vm592_vm1, %v7467_v44, 0.0 }
 0x140   :  { %762 = vadd.xlane.f32.xlu0 %v761_v6  ;;  %v773_v6 = vsel %vm592_vm1, %v7469_v16, 0.0 }
 0x141   :  { %765 = vadd.xlane.f32.xlu1 %v764_v27 }
 0x144   :  { %768 = vadd.xlane.f32.xlu0 %v767_v10 }
 0x145   :  { %771 = vadd.xlane.f32.xlu1 %v770_v48 }
 0x148   :  { %774 = vadd.xlane.f32.xlu0 %v773_v6 }
 0x149   :  { %777 = vadd.xlane.f32.xlu1 %v776_v38  ;;  %v7650_v38 = vmax.f32 %v4551_v47, 0.0 }
 0x159   :  { %v5030_v46 = vpop.xlane.xlu0 %696 }
 0x15a   :  { %v601_v27 = vpop.xlane.xlu1 %600 }
 0x15b   :  { %v788_v33 = vmul.f32 0.015625, %v601_v27 }
 0x15d   :  { %v5034_v25 = vsub.f32 %v7646_v12, %v788_v33  ;;  %v595_v10 = vpop.xlane.xlu0 %594 }
 0x15e   :  { %v604_v48 = vpop.xlane.xlu1 %603  ;;  %v786_v3 = vmul.f32 0.015625, %v595_v10 }
 0x15f   :  { %7647 = vst [vmem:[#allocation19_spill] sm:$0xff] %v5034_v25  ;;  %v789_v9 = vmul.f32 0.015625, %v604_v48  ;;  %v916_v44 = vmul.f32 %v5034_v25, %v5034_v25 }
 0x160   :  { %v5044_v6 = vsub.f32 %v7650_v38, %v786_v3 }
 0x161   :  { %v5040_v16 = vsub.f32 %v7648_v23, %v789_v9  ;;  %v984_v27 = vsel %vm592_vm1, %v916_v44, 0.0  ;;  %v5049_v12 = vpop.xlane.xlu0 %690  ;;  %v7652_v44 = vmax.f32 %v4576_v0, 0.0 }
 0x162   :  { %7651 = vst [vmem:[#allocation21_spill] sm:$0xff] %v5044_v6  ;;  %v5047_v41 = vpop.xlane.xlu1 %699  ;;  %985 = vadd.xlane.f32.xlu0 %v984_v27  ;;  %v914_v48 = vmul.f32 %v5044_v6, %v5044_v6 }
 0x163   :  { %7649 = vst [vmem:[#allocation20_spill] sm:$0xff] %v5040_v16  ;;  %v917_v33 = vmul.f32 %v5040_v16, %v5040_v16 }
 0x164   :  { %v978_v9 = vsel %vm592_vm1, %v914_v48, 0.0 }
 0x165   :  { %v987_v51 = vsel %vm592_vm1, %v917_v33, 0.0  ;;  %v598_v3 = vpop.xlane.xlu0 %597  ;;  %v7654_v33 = vmax.f32 %v4593_v11, 0.0 }
 0x166   :  { %v5057_v47 = vpop.xlane.xlu1 %693  ;;  %988 = vadd.xlane.f32.xlu1 %v987_v51  ;;  %979 = vadd.xlane.f32.xlu0 %v978_v9  ;;  %v787_v23 = vmul.f32 0.015625, %v598_v3  ;;  %v7656_v51 = vmax.f32 %v4585_v7, 0.0 }
 0x168   :  { %v5061_v10 = vsub.f32 %v7652_v44, %v787_v23 }
 0x169   :  { %v613_v27 = vpop.xlane.xlu0 %612 }
 0x16a   :  { %7653 = vst [vmem:[#allocation22_spill] sm:$0xff] %v5061_v10  ;;  %v616_v38 = vpop.xlane.xlu1 %615  ;;  %v792_v16 = vmul.f32 0.015625, %v613_v27  ;;  %v915_v6 = vmul.f32 %v5061_v10, %v5061_v10 }
 0x16b   :  { %v793_v25 = vmul.f32 0.015625, %v616_v38 }
 0x16c   :  { %v5071_v9 = vsub.f32 %v7656_v51, %v792_v16  ;;  %v981_v3 = vsel %vm592_vm1, %v915_v6, 0.0 }
 0x16d   :  { %v5067_v48 = vsub.f32 %v7654_v33, %v793_v25  ;;  %982 = vadd.xlane.f32.xlu1 %v981_v3  ;;  %v5076_v23 = vpop.xlane.xlu0 %708  ;;  %v7658_v33 = vmax.f32 %v4618_v29, 0.0  ;;  %v7660_v3 = vmax.f32 %v4614_v26, 0.0 }
 0x16e   :  { %7657 = vst [vmem:[#allocation24_spill] sm:$0xff] %v5071_v9  ;;  %v5074_v0 = vpop.xlane.xlu1 %711  ;;  %v920_v38 = vmul.f32 %v5071_v9, %v5071_v9 }
 0x16f   :  { %7655 = vst [vmem:[#allocation23_spill] sm:$0xff] %v5067_v48  ;;  %v921_v44 = vmul.f32 %v5067_v48, %v5067_v48 }
 0x170   :  { %v996_v25 = vsel %vm592_vm1, %v920_v38, 0.0 }
 0x171   :  { %v999_v11 = vsel %vm592_vm1, %v921_v44, 0.0  ;;  %997 = vadd.xlane.f32.xlu0 %v996_v25  ;;  %v607_v16 = vpop.xlane.xlu0 %606 }
 0x172   :  { %v610_v7 = vpop.xlane.xlu1 %609  ;;  %1000 = vadd.xlane.f32.xlu1 %v999_v11  ;;  %v790_v27 = vmul.f32 0.015625, %v607_v16 }
 0x173   :  { %v791_v6 = vmul.f32 0.015625, %v610_v7 }
 0x174   :  { %v5090_v48 = vsub.f32 %v7660_v3, %v790_v27 }
 0x175   :  { %v5086_v51 = vsub.f32 %v7658_v33, %v791_v6  ;;  %v5094_v9 = vpop.xlane.xlu0 %702  ;;  %v7662_v6 = vmax.f32 %v4653_v60, 0.0  ;;  %v7664_v33 = vmax.f32 %v4650_v59, 0.0 }
 0x176   :  { %7661 = vst [vmem:[#allocation26_spill] sm:$0xff] %v5090_v48  ;;  %v5092_v10 = vpop.xlane.xlu1 %705  ;;  %v918_v38 = vmul.f32 %v5090_v48, %v5090_v48 }
 0x177   :  { %7659 = vst [vmem:[#allocation25_spill] sm:$0xff] %v5086_v51  ;;  %v919_v44 = vmul.f32 %v5086_v51, %v5086_v51 }
 0x178   :  { %v990_v29 = vsel %vm592_vm1, %v918_v38, 0.0 }
 0x179   :  { %v993_v11 = vsel %vm592_vm1, %v919_v44, 0.0  ;;  %991 = vadd.xlane.f32.xlu0 %v990_v29  ;;  %v625_v26 = vpop.xlane.xlu0 %624 }
 0x17a   :  { %v628_v25 = vpop.xlane.xlu1 %627  ;;  %994 = vadd.xlane.f32.xlu1 %v993_v11  ;;  %v796_v16 = vmul.f32 0.015625, %v625_v26 }
 0x17b   :  { %v797_v7 = vmul.f32 0.015625, %v628_v25  ;;  %v4002_v25 = vld [vmem:[%s7401_s2 + $0x18] sm:$0xff]  }
 0x17c   :  { %v5108_v3 = vsub.f32 %v7664_v33, %v796_v16  ;;  %3852 = vmatprep.subr.bf16.mxu1 %v4002_v25  ;;  %v7666_v16 = vmax.f32 %v4685_v31, 0.0  ;;  %v7668_v33 = vmax.f32 %v4681_v22, 0.0 }
 0x17d   :  { %v5104_v27 = vsub.f32 %v7662_v6, %v797_v7  ;;  %v5112_v48 = vpop.xlane.xlu0 %720  ;;  %3853 = vmatpush3.bf16.msra.mxu1 %v4002_v25 }
 0x17e   :  { %7665 = vst [vmem:[#allocation28_spill] sm:$0xff] %v5108_v3  ;;  %v5110_v51 = vpop.xlane.xlu1 %723  ;;  %v924_v38 = vmul.f32 %v5108_v3, %v5108_v3 }
 0x17f   :  { %7663 = vst [vmem:[#allocation27_spill] sm:$0xff] %v5104_v27  ;;  %v925_v44 = vmul.f32 %v5104_v27, %v5104_v27 }
 0x180   :  { %v1008_v60 = vsel %vm592_vm1, %v924_v38, 0.0 }
 0x181   :  { %v1011_v11 = vsel %vm592_vm1, %v925_v44, 0.0  ;;  %1009 = vadd.xlane.f32.xlu0 %v1008_v60  ;;  %v619_v59 = vpop.xlane.xlu0 %618  ;;  %v4003_v60 = vld [vmem:[%s7401_s2 + $0x10] sm:$0xff]  }
 0x182   :  { %v622_v29 = vpop.xlane.xlu1 %621  ;;  %1012 = vadd.xlane.f32.xlu1 %v1011_v11  ;;  %v794_v7 = vmul.f32 0.015625, %v619_v59  ;;  %3854 = vmatprep.subr.bf16.mxu1 %v4003_v60 }
 0x183   :  { %v795_v26 = vmul.f32 0.015625, %v622_v29  ;;  %3855 = vmatpush3.bf16.msra.mxu1 %v4003_v60 }
 0x184   :  { %v5129_v44 = vsub.f32 %v7668_v33, %v794_v7  ;;  %v4004_v7 = vld [vmem:[%s7401_s2 + $0x8] sm:$0xff]  }
 0x185   :  { %v5125_v6 = vsub.f32 %v7666_v16, %v795_v26  ;;  %v5133_v11 = vpop.xlane.xlu0 %714  ;;  %3856 = vmatprep.subr.bf16.mxu1 %v4004_v7 }
 0x186   :  { %7669 = vst [vmem:[#allocation30_spill] sm:$0xff] %v5129_v44  ;;  %v5131_v38 = vpop.xlane.xlu1 %717  ;;  %v922_v31 = vmul.f32 %v5129_v44, %v5129_v44 }
 0x187   :  { %7667 = vst [vmem:[#allocation29_spill] sm:$0xff] %v5125_v6  ;;  %v923_v29 = vmul.f32 %v5125_v6, %v5125_v6  ;;  %v7670_v6 = vmax.f32 %v4725_v30, 0.0  ;;  %3857 = vmatpush3.bf16.msra.mxu1 %v4004_v7 }
 0x188   :  { %v1002_v59 = vsel %vm592_vm1, %v922_v31, 0.0 }
 0x189   :  { %v1005_v22 = vsel %vm592_vm1, %v923_v29, 0.0  ;;  %1003 = vadd.xlane.f32.xlu0 %v1002_v59  ;;  %v637_v26 = vpop.xlane.xlu0 %636  ;;  %v7672_v29 = vmax.f32 %v4722_v62, 0.0 }
 0x18a   :  { %v640_v25 = vpop.xlane.xlu1 %639  ;;  %1006 = vadd.xlane.f32.xlu1 %v1005_v22  ;;  %v800_v33 = vmul.f32 0.015625, %v637_v26  ;;  %v4005_v22 = vld [vmem:[%s7401_s2] sm:$0xff]  }
 0x18b   :  { %v801_v16 = vmul.f32 0.015625, %v640_v25  ;;  %3858 = vmatprep.subr.bf16.mxu1 %v4005_v22 }
 0x18c   :  { %v5153_v3 = vsub.f32 %v7672_v29, %v800_v33  ;;  %3859 = vmatpush3.bf16.msra.mxu1 %v4005_v22  ;;  %v7674_v33 = vmax.f32 %v4758_v34, 0.0 }
 0x18d   :  { %v5149_v44 = vsub.f32 %v7670_v6, %v801_v16  ;;  %v5157_v31 = vpop.xlane.xlu0 %732 }
 0x18e   :  { %7673 = vst [vmem:[#allocation32_spill] sm:$0xff] %v5153_v3  ;;  %v5155_v60 = vpop.xlane.xlu1 %735  ;;  %v928_v30 = vmul.f32 %v5153_v3, %v5153_v3 }
 0x18f   :  { %7671 = vst [vmem:[#allocation31_spill] sm:$0xff] %v5149_v44  ;;  %v929_v59 = vmul.f32 %v5149_v44, %v5149_v44  ;;  %v7676_v44 = vmax.f32 %v4754_v54, 0.0 }
 0x190   :  { %v1020_v6 = vsel %vm592_vm1, %v928_v30, 0.0 }
 0x191   :  { %v1023_v62 = vsel %vm592_vm1, %v929_v59, 0.0  ;;  %1021 = vadd.xlane.f32.xlu0 %v1020_v6  ;;  %v631_v26 = vpop.xlane.xlu0 %630 }
 0x192   :  { %v634_v25 = vpop.xlane.xlu1 %633  ;;  %1024 = vadd.xlane.f32.xlu1 %v1023_v62  ;;  %v798_v16 = vmul.f32 0.015625, %v631_v26  ;;  %v7678_v26 = vmax.f32 %v4802_v8, 0.0 }
 0x193   :  { %v799_v7 = vmul.f32 0.015625, %v634_v25 }
 0x194   :  { %v5174_v27 = vsub.f32 %v7676_v44, %v798_v16  ;;  %v7680_v16 = vmax.f32 %v4799_v45, 0.0 }
 0x195   :  { %v5170_v29 = vsub.f32 %v7674_v33, %v799_v7  ;;  %v5178_v59 = vpop.xlane.xlu0 %726 }
 0x196   :  { %7677 = vst [vmem:[#allocation34_spill] sm:$0xff] %v5174_v27  ;;  %v5176_v3 = vpop.xlane.xlu1 %729  ;;  %v926_v30 = vmul.f32 %v5174_v27, %v5174_v27 }
 0x197   :  { %7675 = vst [vmem:[#allocation33_spill] sm:$0xff] %v5170_v29  ;;  %v927_v22 = vmul.f32 %v5170_v29, %v5170_v29 }
 0x198   :  { %v1014_v34 = vsel %vm592_vm1, %v926_v30, 0.0 }
 0x199   :  { %v1017_v62 = vsel %vm592_vm1, %v927_v22, 0.0  ;;  %1015 = vadd.xlane.f32.xlu0 %v1014_v34  ;;  %v649_v54 = vpop.xlane.xlu0 %648 }
 0x19a   :  { %v652_v6 = vpop.xlane.xlu1 %651  ;;  %1018 = vadd.xlane.f32.xlu1 %v1017_v62  ;;  %v804_v25 = vmul.f32 0.015625, %v649_v54 }
 0x19b   :  { %v805_v44 = vmul.f32 0.015625, %v652_v6 }
 0x19c   :  { %v5192_v33 = vsub.f32 %v7680_v16, %v804_v25 }
 0x19d   :  { %v5188_v7 = vsub.f32 %v7678_v26, %v805_v44  ;;  %v5196_v27 = vpop.xlane.xlu0 %744  ;;  %v7682_v44 = vmax.f32 %v4828_v57, 0.0  ;;  %v7684_v26 = vmax.f32 %v4824_v55, 0.0 }
 0x19e   :  { %7681 = vst [vmem:[#allocation36_spill] sm:$0xff] %v5192_v33  ;;  %v5194_v29 = vpop.xlane.xlu1 %747  ;;  %v932_v30 = vmul.f32 %v5192_v33, %v5192_v33 }
 0x19f   :  { %7679 = vst [vmem:[#allocation35_spill] sm:$0xff] %v5188_v7  ;;  %v933_v22 = vmul.f32 %v5188_v7, %v5188_v7 }
 0x1a0   :  { %v1032_v8 = vsel %vm592_vm1, %v932_v30, 0.0 }
 0x1a1   :  { %v1035_v62 = vsel %vm592_vm1, %v933_v22, 0.0  ;;  %1033 = vadd.xlane.f32.xlu0 %v1032_v8  ;;  %v643_v45 = vpop.xlane.xlu0 %642 }
 0x1a2   :  { %v646_v34 = vpop.xlane.xlu1 %645  ;;  %1036 = vadd.xlane.f32.xlu1 %v1035_v62  ;;  %v802_v54 = vmul.f32 0.015625, %v643_v45 }
 0x1a3   :  { %v803_v6 = vmul.f32 0.015625, %v646_v34 }
 0x1a4   :  { %v5210_v16 = vsub.f32 %v7684_v26, %v802_v54 }
 0x1a5   :  { %v5206_v25 = vsub.f32 %v7682_v44, %v803_v6  ;;  %v5214_v33 = vpop.xlane.xlu0 %738  ;;  %v7686_v6 = vmax.f32 %v4862_v21, 0.0  ;;  %v7688_v44 = vmax.f32 %v4859_v28, 0.0 }
 0x1a6   :  { %7685 = vst [vmem:[#allocation38_spill] sm:$0xff] %v5210_v16  ;;  %v5212_v7 = vpop.xlane.xlu1 %741  ;;  %v930_v30 = vmul.f32 %v5210_v16, %v5210_v16 }
 0x1a7   :  { %7683 = vst [vmem:[#allocation37_spill] sm:$0xff] %v5206_v25  ;;  %v931_v22 = vmul.f32 %v5206_v25, %v5206_v25 }
 0x1a8   :  { %v1026_v57 = vsel %vm592_vm1, %v930_v30, 0.0 }
 0x1a9   :  { %v1029_v62 = vsel %vm592_vm1, %v931_v22, 0.0  ;;  %1027 = vadd.xlane.f32.xlu0 %v1026_v57  ;;  %v661_v55 = vpop.xlane.xlu0 %660 }
 0x1aa   :  { %v664_v8 = vpop.xlane.xlu1 %663  ;;  %1030 = vadd.xlane.f32.xlu1 %v1029_v62  ;;  %v808_v45 = vmul.f32 0.015625, %v661_v55 }
 0x1ab   :  { %v809_v34 = vmul.f32 0.015625, %v664_v8 }
 0x1ac   :  { %v5228_v26 = vsub.f32 %v7688_v44, %v808_v45 }
 0x1ad   :  { %v5224_v54 = vsub.f32 %v7686_v6, %v809_v34  ;;  %v5232_v16 = vpop.xlane.xlu0 %756  ;;  %v7690_v34 = vmax.f32 %v4888_v15, 0.0  ;;  %v7692_v6 = vmax.f32 %v4884_v56, 0.0  ;;  %v7494_v15 = vmax.f32 %v4795_v58, 0.0 }
 0x1ae   :  { %7689 = vst [vmem:[#allocation40_spill] sm:$0xff] %v5228_v26  ;;  %v5230_v25 = vpop.xlane.xlu1 %759  ;;  %v936_v30 = vmul.f32 %v5228_v26, %v5228_v26 }
 0x1af   :  { %7687 = vst [vmem:[#allocation39_spill] sm:$0xff] %v5224_v54  ;;  %v937_v22 = vmul.f32 %v5224_v54, %v5224_v54 }
 0x1b0   :  { %v1044_v21 = vsel %vm592_vm1, %v936_v30, 0.0 }
 0x1b1   :  { %v1047_v62 = vsel %vm592_vm1, %v937_v22, 0.0  ;;  %1045 = vadd.xlane.f32.xlu0 %v1044_v21  ;;  %v655_v28 = vpop.xlane.xlu0 %654 }
 0x1b2   :  { %v658_v57 = vpop.xlane.xlu1 %657  ;;  %1048 = vadd.xlane.f32.xlu1 %v1047_v62  ;;  %v806_v55 = vmul.f32 0.015625, %v655_v28  ;;  %v7496_v62 = vmax.f32 %v4775_v19, 0.0 }
 0x1b3   :  { %v807_v8 = vmul.f32 0.015625, %v658_v57 }
 0x1b4   :  { %v5246_v44 = vsub.f32 %v7692_v6, %v806_v55  ;;  %v779_v6 = vsel %vm592_vm1, %v7496_v62, 0.0  ;;  %v7699_v62 = vmax.f32 %v4928_v49, 0.0 }
 0x1b5   :  { %v5242_v45 = vsub.f32 %v7690_v34, %v807_v8  ;;  %v5250_v26 = vpop.xlane.xlu0 %750  ;;  %v782_v34 = vsel %vm592_vm1, %v7494_v15, 0.0  ;;  %v7698_v15 = vmax.f32 %v4933_v2, 0.0 }
 0x1b6   :  { %7693 = vst [vmem:[#allocation42_spill] sm:$0xff] %v5246_v44  ;;  %v5248_v54 = vpop.xlane.xlu1 %753  ;;  %v934_v30 = vmul.f32 %v5246_v44, %v5246_v44 }
 0x1b7   :  { %7691 = vst [vmem:[#allocation41_spill] sm:$0xff] %v5242_v45  ;;  %v935_v22 = vmul.f32 %v5242_v45, %v5242_v45 }
 0x1b8   :  { %v1038_v56 = vsel %vm592_vm1, %v934_v30, 0.0 }
 0x1b9   :  { %v1041_v21 = vsel %vm592_vm1, %v935_v22, 0.0  ;;  %1039 = vadd.xlane.f32.xlu0 %v1038_v56  ;;  %v673_v28 = vpop.xlane.xlu0 %672 }
 0x1ba   :  { %v676_v57 = vpop.xlane.xlu1 %675  ;;  %1042 = vadd.xlane.f32.xlu1 %v1041_v21  ;;  %v812_v55 = vmul.f32 0.015625, %v673_v28  ;;  %v7694_v21 = vmax.f32 %v4917_v39, 0.0 }
 0x1bb   :  { %v813_v8 = vmul.f32 0.015625, %v676_v57  ;;  %v7696_v57 = vmax.f32 %v4914_v43, 0.0 }
 0x1bd   :  { %780 = vadd.xlane.f32.xlu0 %v779_v6  ;;  %v667_v22 = vpop.xlane.xlu0 %666  ;;  %v5268_v56 = vsub.f32 %v7694_v21, %v813_v8  ;;  %v5272_v28 = vsub.f32 %v7696_v57, %v812_v55  ;;  %v818_v21 = vmul.f32 0.015625, %v5049_v12  ;;  %v819_v57 = vmul.f32 0.015625, %v5057_v47 }
 0x1be   :  { %v670_v44 = vpop.xlane.xlu1 %669  ;;  %783 = vadd.xlane.f32.xlu1 %v782_v34  ;;  %v810_v30 = vmul.f32 0.015625, %v667_v22  ;;  %v7703_v12 = vmax.f32 %v4960_v35, 0.0  ;;  %v7705_v35 = vmax.f32 %v4573_v63, 0.0  ;;  %v7707_v63 = vmax.f32 %v4560_v52, 0.0 }
 0x1bf   :  { %v811_v45 = vmul.f32 0.015625, %v670_v44  ;;  %7695 = vst [vmem:[#allocation43_spill] sm:$0xff] %v5268_v56  ;;  %7697 = vst [vmem:[#allocation44_spill] sm:$0xff] %v5272_v28  ;;  %v941_v43 = vmul.f32 %v5268_v56, %v5268_v56  ;;  %v940_v2 = vmul.f32 %v5272_v28, %v5272_v28  ;;  %v825_v52 = vmul.f32 0.015625, %v5074_v0 }
 0x1c0   :  { %v5280_v19 = vsub.f32 %v7699_v62, %v810_v30 }
 0x1c1   :  { %v5276_v58 = vsub.f32 %v7698_v15, %v811_v45  ;;  %v685_v6 = vpop.xlane.xlu0 %684  ;;  %v1059_v56 = vsel %vm592_vm1, %v941_v43, 0.0  ;;  %v1056_v28 = vsel %vm592_vm1, %v940_v2, 0.0  ;;  %v821_v43 = vmul.f32 0.015625, %v5047_v41 }
 0x1c2   :  { %v688_v34 = vpop.xlane.xlu1 %687  ;;  %v938_v39 = vmul.f32 %v5280_v19, %v5280_v19  ;;  %v816_v15 = vmul.f32 0.015625, %v685_v6 }
 0x1c3   :  { %v939_v44 = vmul.f32 %v5276_v58, %v5276_v58  ;;  %v817_v45 = vmul.f32 0.015625, %v688_v34  ;;  %v7700_v34 = vmax.f32 %v4953_v24, 0.0 }
 0x1c4   :  { %v1050_v62 = vsel %vm592_vm1, %v938_v39, 0.0 }
 0x1c5   :  { %v1053_v49 = vsel %vm592_vm1, %v939_v44, 0.0  ;;  %1051 = vadd.xlane.f32.xlu0 %v1050_v62  ;;  %v679_v55 = vpop.xlane.xlu0 %678  ;;  %v5298_v6 = vsub.f32 %v7700_v34, %v817_v45  ;;  %v7701_v44 = vmax.f32 %v4943_v4, 0.0  ;;  %v820_v4 = vmul.f32 0.015625, %v5030_v46 }
 0x1c6   :  { %v682_v8 = vpop.xlane.xlu1 %681  ;;  %1054 = vadd.xlane.f32.xlu1 %v1053_v49  ;;  %v814_v30 = vmul.f32 0.015625, %v679_v55  ;;  %v7702_v49 = vmax.f32 %v4967_v37, 0.0  ;;  %v7704_v37 = vmax.f32 %v4554_v50, 0.0  ;;  %v5324_v45 = vsub.f32 %v7705_v35, %v819_v57 }
 0x1c7   :  { %v815_v22 = vmul.f32 0.015625, %v682_v8  ;;  %v5302_v39 = vsub.f32 %v7701_v44, %v816_v15  ;;  %v945_v15 = vmul.f32 %v5298_v6, %v5298_v6  ;;  %v7706_v50 = vmax.f32 %v4546_v42, 0.0 }
 0x1c8   :  { %v5310_v8 = vsub.f32 %v7703_v12, %v814_v30  ;;  %v5320_v2 = vsub.f32 %v7704_v37, %v818_v21  ;;  %v5338_v55 = vsub.f32 %v7707_v63, %v821_v43  ;;  %v823_v21 = vmul.f32 0.015625, %v5092_v10 }
 0x1c9   :  { %v5306_v62 = vsub.f32 %v7702_v49, %v815_v22  ;;  %1057 = vadd.xlane.f32.xlu0 %v1056_v28  ;;  %v944_v46 = vmul.f32 %v5302_v39, %v5302_v39  ;;  %v5334_v41 = vsub.f32 %v7706_v50, %v820_v4  ;;  %v947_v22 = vmul.f32 %v5324_v45, %v5324_v45 }
 0x1ca   :  { %1060 = vadd.xlane.f32.xlu1 %v1059_v56  ;;  %v942_v24 = vmul.f32 %v5310_v8, %v5310_v8  ;;  %v946_v30 = vmul.f32 %v5320_v2, %v5320_v2  ;;  %v822_v57 = vmul.f32 0.015625, %v5094_v9  ;;  %v1071_v34 = vsel %vm592_vm1, %v945_v15, 0.0 }
 0x1cb   :  { %v943_v47 = vmul.f32 %v5306_v62, %v5306_v62  ;;  %v1068_v42 = vsel %vm592_vm1, %v944_v46, 0.0  ;;  %v949_v49 = vmul.f32 %v5338_v55, %v5338_v55  ;;  %v948_v12 = vmul.f32 %v5334_v41, %v5334_v41  ;;  %v5380_v46 = vpop.xlane.xlu0 %762 }
 0x1cc   :  { %v1062_v28 = vsel %vm592_vm1, %v942_v24, 0.0  ;;  %v1074_v44 = vsel %vm592_vm1, %v946_v30, 0.0  ;;  %v824_v10 = vmul.f32 0.015625, %v5076_v23  ;;  %v7708_v9 = vmax.f32 %v4634_v40, 0.0 }
 0x1cd   :  { %v1065_v56 = vsel %vm592_vm1, %v943_v47, 0.0  ;;  %1063 = vadd.xlane.f32.xlu0 %v1062_v28  ;;  %v7709_v24 = vmax.f32 %v4630_v36, 0.0  ;;  %v1077_v0 = vsel %vm592_vm1, %v947_v22, 0.0  ;;  %v7710_v43 = vmax.f32 %v4604_v20, 0.0 }
 0x1ce   :  { %1066 = vadd.xlane.f32.xlu1 %v1065_v56  ;;  %v5357_v47 = vsub.f32 %v7708_v9, %v823_v21  ;;  %v827_v35 = vmul.f32 0.015625, %v5131_v38  ;;  %v1083_v23 = vsel %vm592_vm1, %v949_v49, 0.0  ;;  %v1080_v40 = vsel %vm592_vm1, %v948_v12, 0.0 }
 0x1cf   :  { %v5361_v4 = vsub.f32 %v7709_v24, %v822_v57  ;;  %v5366_v37 = vsub.f32 %v7710_v43, %v825_v52  ;;  %v7711_v56 = vmax.f32 %v4600_v17, 0.0  ;;  %v826_v36 = vmul.f32 0.015625, %v5133_v11 }
 0x1d0   :  { %v951_v15 = vmul.f32 %v5357_v47, %v5357_v47  ;;  %v829_v38 = vmul.f32 0.015625, %v5110_v51  ;;  %v828_v50 = vmul.f32 0.015625, %v5112_v48  ;;  %v7712_v17 = vmax.f32 %v4704_v14, 0.0  ;;  %v5398_v48 = vpop.xlane.xlu1 %765 }
 0x1d1   :  { %1069 = vadd.xlane.f32.xlu0 %v1068_v42  ;;  %v5373_v28 = vsub.f32 %v7711_v56, %v824_v10  ;;  %v950_v20 = vmul.f32 %v5361_v4, %v5361_v4  ;;  %v953_v11 = vmul.f32 %v5366_v37, %v5366_v37  ;;  %v7713_v22 = vmax.f32 %v4700_v1, 0.0  ;;  %v5413_v10 = vpop.xlane.xlu0 %768 }
 0x1d2   :  { %1072 = vadd.xlane.f32.xlu1 %v1071_v34  ;;  %v5386_v63 = vsub.f32 %v7712_v17, %v827_v35  ;;  %v1089_v21 = vsel %vm592_vm1, %v951_v15, 0.0  ;;  %v7714_v14 = vmax.f32 %v4671_v13, 0.0  ;;  %v7715_v42 = vmax.f32 %v4663_v5, 0.0  ;;  %v7719_v15 = vld [vmem:[#allocation4_spill] sm:$0xff] }
 0x1d3   :  { %v5392_v30 = vsub.f32 %v7713_v22, %v826_v36  ;;  %v1086_v57 = vsel %vm592_vm1, %v950_v20, 0.0  ;;  %v952_v51 = vmul.f32 %v5373_v28, %v5373_v28  ;;  %v1095_v52 = vsel %vm592_vm1, %v953_v11, 0.0  ;;  %v7721_v11 = vld [vmem:[#allocation3_spill] sm:$0xff] }
 0x1d4   :  { %v5402_v34 = vsub.f32 %v7714_v14, %v829_v38  ;;  %v5406_v1 = vsub.f32 %v7715_v42, %v828_v50  ;;  %v831_v49 = vmul.f32 0.015625, %v5176_v3  ;;  %v830_v12 = vmul.f32 0.015625, %v5178_v59  ;;  %v5433_v36 = vpop.xlane.xlu1 %771 }
 0x1d5   :  { %1075 = vadd.xlane.f32.xlu0 %v1074_v44  ;;  %v955_v44 = vmul.f32 %v5386_v63, %v5386_v63  ;;  %v1092_v9 = vsel %vm592_vm1, %v952_v51, 0.0  ;;  %v954_v13 = vmul.f32 %v5392_v30, %v5392_v30  ;;  %v833_v5 = vmul.f32 0.015625, %v5155_v60  ;;  %v5440_v50 = vpop.xlane.xlu0 %774 }
 0x1d6   :  { %1078 = vadd.xlane.f32.xlu1 %v1077_v0  ;;  %v957_v0 = vmul.f32 %v5402_v34, %v5402_v34  ;;  %v956_v3 = vmul.f32 %v5406_v1, %v5406_v1  ;;  %v832_v59 = vmul.f32 0.015625, %v5157_v31  ;;  %v7716_v43 = vmax.f32 %v4780_v61, 0.0 }
 0x1d7   :  { %v1101_v24 = vsel %vm592_vm1, %v955_v44, 0.0  ;;  %v1098_v60 = vsel %vm592_vm1, %v954_v13, 0.0  ;;  %v7720_v20 = vmax.f32 %v7719_v15, 0.0  ;;  %v835_v61 = vmul.f32 0.015625, %v5212_v7  ;;  %v7725_v13 = vld [vmem:[#allocation10_spill] sm:$0xff] }
 0x1d8   :  { %v5427_v35 = vsub.f32 %v7716_v43, %v831_v49  ;;  %v1107_v31 = vsel %vm592_vm1, %v957_v0, 0.0  ;;  %v1104_v17 = vsel %vm592_vm1, %v956_v3, 0.0  ;;  %v7722_v22 = vmax.f32 %v7721_v11, 0.0  ;;  %v5455_v42 = vpop.xlane.xlu1 %777 }
 0x1d9   :  { %1081 = vadd.xlane.f32.xlu0 %v1080_v40  ;;  %v5438_v38 = vsub.f32 %v7720_v20, %v833_v5  ;;  %v837_v7 = vmul.f32 0.015625, %v5194_v29  ;;  %v836_v49 = vmul.f32 0.015625, %v5196_v27  ;;  %v7726_v5 = vmax.f32 %v7725_v13, 0.0  ;;  %v7729_v20 = vld [vmem:[#allocation8_spill] sm:$0xff] }
 0x1da   :  { %1084 = vadd.xlane.f32.xlu1 %v1083_v23  ;;  %v7717_v23 = vld [vmem:[#allocation5_spill] sm:$0xff]  ;;  %v959_v51 = vmul.f32 %v5427_v35, %v5427_v35 }
 0x1db   :  { %v7718_v40 = vmax.f32 %v7717_v23, 0.0  ;;  %v961_v44 = vmul.f32 %v5438_v38, %v5438_v38 }
 0x1dc   :  { %v1113_v0 = vsel %vm592_vm1, %v959_v51, 0.0  ;;  %v838_v51 = vmul.f32 0.015625, %v5250_v26 }
 0x1dd   :  { %1087 = vadd.xlane.f32.xlu0 %v1086_v57  ;;  %v5431_v56 = vsub.f32 %v7718_v40, %v830_v12  ;;  %v834_v57 = vmul.f32 0.015625, %v5214_v33  ;;  %v7723_v12 = vld [vmem:[#allocation11_spill] sm:$0xff]  ;;  %v1119_v15 = vsel %vm592_vm1, %v961_v44, 0.0 }
 0x1de   :  { %1090 = vadd.xlane.f32.xlu1 %v1089_v21  ;;  %v5447_v21 = vsub.f32 %v7722_v22, %v832_v59  ;;  %v7724_v33 = vmax.f32 %v7723_v12, 0.0  ;;  %v7727_v59 = vld [vmem:[#allocation9_spill] sm:$0xff]  ;;  %v840_v12 = vmul.f32 0.015625, %v5232_v16 }
 0x1df   :  { %v958_v14 = vmul.f32 %v5431_v56, %v5431_v56  ;;  %v7728_v43 = vmax.f32 %v7727_v59, 0.0  ;;  %v7735_v16 = vld [vmem:[#allocation13_spill] sm:$0xff] }
 0x1e0   :  { %v960_v3 = vmul.f32 %v5447_v21, %v5447_v21 }
 0x1e1   :  { %1093 = vadd.xlane.f32.xlu0 %v1092_v9  ;;  %v5462_v9 = vsub.f32 %v7724_v33, %v835_v61  ;;  %v1110_v29 = vsel %vm592_vm1, %v958_v14, 0.0  ;;  %v5474_v27 = vsub.f32 %v7728_v43, %v837_v7  ;;  %v7730_v61 = vmax.f32 %v7729_v20, 0.0 }
 0x1e2   :  { %1096 = vadd.xlane.f32.xlu1 %v1095_v52  ;;  %v1116_v14 = vsel %vm592_vm1, %v960_v3, 0.0  ;;  %v7733_v3 = vld [vmem:[#allocation14_spill] sm:$0xff] }
 0x1e3   :  { %v963_v22 = vmul.f32 %v5462_v9, %v5462_v9  ;;  %v7734_v59 = vmax.f32 %v7733_v3, 0.0 }
 0x1e5   :  { %1099 = vadd.xlane.f32.xlu0 %v1098_v60  ;;  %v1125_v13 = vsel %vm592_vm1, %v963_v22, 0.0  ;;  %v5501_v43 = vsub.f32 %v7734_v59, %v838_v51 }
 0x1e6   :  { %1102 = vadd.xlane.f32.xlu1 %v1101_v24  ;;  %v5466_v24 = vsub.f32 %v7726_v5, %v834_v57  ;;  %v839_v57 = vmul.f32 0.015625, %v5248_v54  ;;  %v965_v54 = vmul.f32 %v5474_v27, %v5474_v27  ;;  %v7731_v5 = vld [vmem:[#allocation15_spill] sm:$0xff] }
 0x1e8   :  { %v962_v7 = vmul.f32 %v5466_v24, %v5466_v24  ;;  %v1131_v22 = vsel %vm592_vm1, %v965_v54, 0.0  ;;  %v844_v54 = vmul.f32 0.015625, %v5413_v10  ;;  %v7741_v10 = vmax.f32 %v4991_v32, 0.0 }
 0x1e9   :  { %1105 = vadd.xlane.f32.xlu0 %v1104_v17 }
 0x1ea   :  { %1108 = vadd.xlane.f32.xlu1 %v1107_v31  ;;  %v5479_v31 = vsub.f32 %v7730_v61, %v836_v49  ;;  %v841_v49 = vmul.f32 0.015625, %v5230_v25  ;;  %v1122_v25 = vsel %vm592_vm1, %v962_v7, 0.0  ;;  %v843_v61 = vmul.f32 0.015625, %v5398_v48 }
 0x1eb   :  { %v986_v52 = vpop.xlane.xlu0 %985  ;;  %v966_v7 = vmul.f32 %v5501_v43, %v5501_v43  ;;  %v7739_v48 = vmax.f32 %v4975_v18, 0.0 }
 0x1ec   :  { %v1172_v23 = vmul.f32 0.015625, %v986_v52  ;;  %v964_v26 = vmul.f32 %v5479_v31, %v5479_v31 }
 0x1ed   :  { %1111 = vadd.xlane.f32.xlu0 %v1110_v29 }
 0x1ee   :  { %1114 = vadd.xlane.f32.xlu1 %v1113_v0  ;;  %v1236_v33 = vadd.f32 1e-05, %v1172_v23  ;;  %v7732_v0 = vmax.f32 %v7731_v5, 0.0  ;;  %v7736_v23 = vmax.f32 %v7735_v16, 0.0  ;;  %v1128_v51 = vsel %vm592_vm1, %v964_v26, 0.0 }
 0x1ef   :  { %v989_v40 = vpop.xlane.xlu1 %988  ;;  %v980_v60 = vpop.xlane.xlu0 %979 }
 0x1f0   :  { %v1173_v17 = vmul.f32 0.015625, %v989_v40  ;;  %v1170_v11 = vmul.f32 0.015625, %v980_v60  ;;  %v5497_v29 = vsub.f32 %v7732_v0, %v839_v57  ;;  %v5506_v40 = vsub.f32 %v7736_v23, %v841_v49  ;;  %v7737_v60 = vld [vmem:[#allocation12_spill] sm:$0xff] }
 0x1f1   :  { %1117 = vadd.xlane.f32.xlu0 %v1116_v14  ;;  %v842_v57 = vmul.f32 0.015625, %v5380_v46  ;;  %v845_v49 = vmul.f32 0.015625, %v5433_v36  ;;  %v7740_v0 = vmax.f32 %v4971_v53, 0.0  ;;  %v1134_v36 = vsel %vm592_vm1, %v966_v7, 0.0 }
 0x1f2   :  { %v1237_v52 = vadd.f32 1e-05, %v1173_v17  ;;  %v1234_v44 = vadd.f32 1e-05, %v1170_v11  ;;  %1120 = vadd.xlane.f32.xlu1 %v1119_v15  ;;  %v7738_v15 = vmax.f32 %v7737_v60, 0.0  ;;  %v967_v14 = vmul.f32 %v5497_v29, %v5497_v29  ;;  %v7742_v60 = vld [vmem:[#allocation16_spill] sm:$0xff] }
 0x1f3   :  { %v969_v46 = vmul.f32 %v5506_v40, %v5506_v40  ;;  %v5532_v18 = vsub.f32 %v7740_v0, %v842_v57  ;;  %v5540_v23 = vsub.f32 %v7741_v10, %v845_v49 }
 0x1f4   :  { %4010 = vrsqrt.f32 %v1237_v52  ;;  %v5510_v20 = vsub.f32 %v7738_v15, %v840_v12  ;;  %v1137_v3 = vsel %vm592_vm1, %v967_v14, 0.0  ;;  %v7743_v15 = vmax.f32 %v7742_v60, 0.0  ;;  %v7744_v14 = vld [vmem:[#allocation2_spill] sm:$0xff]  ;;  %v7750_v60 = vld [vmem:[#allocation21_spill] sm:$0xff] }
 0x1f5   :  { %4012 = vrsqrt.f32 %v1234_v44  ;;  %1123 = vadd.xlane.f32.xlu0 %v1122_v25  ;;  %v5522_v44 = vsub.f32 %v7739_v48, %v843_v61  ;;  %v1143_v61 = vsel %vm592_vm1, %v969_v46, 0.0  ;;  %v970_v57 = vmul.f32 %v5532_v18, %v5532_v18 }
 0x1f6   :  { %1126 = vadd.xlane.f32.xlu1 %v1125_v13  ;;  %4014 = vrsqrt.f32 %v1236_v33  ;;  %v983_v17 = vpop.xlane.xlu1 %982  ;;  %v968_v13 = vmul.f32 %v5510_v20, %v5510_v20  ;;  %v5544_v53 = vsub.f32 %v7743_v15, %v844_v54  ;;  %v1428_v7 = vsub.s32 1, %v7744_v14 }
 0x1f7   :  { %v1171_v11 = vmul.f32 0.015625, %v983_v17  ;;  %v971_v16 = vmul.f32 %v5522_v44, %v5522_v44 }
 0x1f8   :  { %v1140_v17 = vsel %vm592_vm1, %v968_v13, 0.0  ;;  %v972_v46 = vmul.f32 %v5544_v53, %v5544_v53  ;;  %v7745_v13 = vld [vmem:[#allocation18_spill] sm:$0xff] }
 0x1f9   :  { %v1235_v52 = vadd.f32 1e-05, %v1171_v11  ;;  %1129 = vadd.xlane.f32.xlu0 %v1128_v51  ;;  %v847_v11 = vmul.f32 0.015625, %v5455_v42  ;;  %v1149_v49 = vsel %vm592_vm1, %v971_v16, 0.0  ;;  %v7746_v54 = vmax.f32 %v7745_v13, 0.0 }
 0x1fa   :  { %1132 = vadd.xlane.f32.xlu1 %v1131_v22  ;;  %v998_v33 = vpop.xlane.xlu0 %997  ;;  %v846_v22 = vmul.f32 0.015625, %v5440_v50  ;;  %v973_v50 = vmul.f32 %v5540_v23, %v5540_v23 }
 0x1fb   :  { %v1001_v12 = vpop.xlane.xlu1 %1000  ;;  %4016 = vrsqrt.f32 %v1235_v52  ;;  %v1176_v5 = vmul.f32 0.015625, %v998_v33 }
 0x1fc   :  { %v1177_v26 = vmul.f32 0.015625, %v1001_v12 }
 0x1fd   :  { %v1240_v25 = vadd.f32 1e-05, %v1176_v5  ;;  %1135 = vadd.xlane.f32.xlu0 %v1134_v36  ;;  %v7747_v5 = vld [vmem:[#allocation17_spill] sm:$0xff]  ;;  %v7749_v36 = vld [vmem:[#allocation20_spill] sm:$0xff] }
 0x1fe   :  { %v1241_v59 = vadd.f32 1e-05, %v1177_v26  ;;  %1138 = vadd.xlane.f32.xlu1 %v1137_v3  ;;  %v5560_v26 = vsub.f32 %v7746_v54, %v847_v11  ;;  %v7748_v0 = vmax.f32 %v7747_v5, 0.0  ;;  %v7751_v11 = vld [vmem:[#allocation19_spill] sm:$0xff] }
 0x200   :  { %4018 = vrsqrt.f32 %v1241_v59  ;;  %v5564_v3 = vsub.f32 %v7748_v0, %v846_v22  ;;  %v1496_v22 = vsub.s32 2, %v7744_v14 }
 0x201   :  { %v4011_v51 = vpop.eup %4010  ;;  %4020 = vrsqrt.f32 %v1240_v25  ;;  %1141 = vadd.xlane.f32.xlu0 %v1140_v17  ;;  %v1146_v25 = vsel %vm592_vm1, %v970_v57, 0.0  ;;  %v1152_v57 = vsel %vm592_vm1, %v972_v46, 0.0 }
 0x202   :  { %1144 = vadd.xlane.f32.xlu1 %v1143_v61  ;;  %v4013_v32 = vpop.eup %4012  ;;  %v992_v48 = vpop.xlane.xlu0 %991  ;;  %v1365_v59 = vmul.f32 %v4011_v51, %v7749_v36  ;;  %v4266_v61 = vld [vmem:[%s7400_s4] sm:$0x3f]  ;;  %v1155_v51 = vsel %vm592_vm1, %v973_v50, 0.0 }
 0x203   :  { %v995_v52 = vpop.xlane.xlu1 %994  ;;  %v4015_v12 = vpop.eup %4014  ;;  %v1174_v42 = vmul.f32 0.015625, %v992_v48  ;;  %v1362_v15 = vmul.f32 %v4013_v32, %v7750_v60  ;;  %v5572_v17 = vrot.slane %v4266_v61, %v1428_v7  ;;  %v975_v32 = vmul.f32 %v5560_v26, %v5560_v26 }
 0x204   :  { %v1175_v33 = vmul.f32 0.015625, %v995_v52  ;;  %v1364_v52 = vmul.f32 %v4015_v12, %v7751_v11  ;;  %v974_v7 = vmul.f32 %v5564_v3, %v5564_v3  ;;  %v7752_v12 = vld [vmem:[#allocation22_spill] sm:$0xff]  ;;  %v5586_v54 = vrot.slane %v4266_v61, %v1496_v22 }
 0x205   :  { %v1238_v10 = vadd.f32 1e-05, %v1174_v42  ;;  %1147 = vadd.xlane.f32.xlu0 %v1146_v25  ;;  %v1430_v42 = vmul.f32 %v5572_v17, %v1362_v15 }
 0x206   :  { %v1239_v16 = vadd.f32 1e-05, %v1175_v33  ;;  %1150 = vadd.xlane.f32.xlu1 %v1149_v49  ;;  %v1433_v49 = vmul.f32 %v5572_v17, %v1365_v59  ;;  %v1432_v50 = vmul.f32 %v5572_v17, %v1364_v52  ;;  %v1161_v59 = vsel %vm592_vm1, %v975_v32, 0.0 }
 0x207   :  { %v1158_v25 = vsel %vm592_vm1, %v974_v7, 0.0  ;;  %v1498_v15 = vadd.f32 %v5586_v54, %v1430_v42 }
 0x208   :  { %4022 = vrsqrt.f32 %v1239_v16  ;;  %v4017_v48 = vpop.eup %4016  ;;  %v1501_v16 = vadd.f32 %v5586_v54, %v1433_v49  ;;  %v1500_v22 = vadd.f32 %v5586_v54, %v1432_v50  ;;  %v7754_v49 = vld [vmem:[#allocation24_spill] sm:$0xff] }
 0x209   :  { %4024 = vrsqrt.f32 %v1238_v10  ;;  %1153 = vadd.xlane.f32.xlu0 %v1152_v57  ;;  %v1363_v33 = vmul.f32 %v4017_v48, %v7752_v12  ;;  %v7753_v48 = vld [vmem:[#allocation23_spill] sm:$0xff] }
 0x20a   :  { %1156 = vadd.xlane.f32.xlu1 %v1155_v51  ;;  %v1010_v46 = vpop.xlane.xlu0 %1009  ;;  %v1563_v57 = vpack.c.bf16 %v1501_v16, %v1500_v22 }
 0x20b   :  { %v1013_v13 = vpop.xlane.xlu1 %1012  ;;  %v1180_v0 = vmul.f32 0.015625, %v1010_v46  ;;  %v1431_v36 = vmul.f32 %v5572_v17, %v1363_v33 }
 0x20c   :  { %v1181_v5 = vmul.f32 0.015625, %v1013_v13 }
 0x20d   :  { %v4019_v10 = vpop.eup %4018  ;;  %v1244_v11 = vadd.f32 1e-05, %v1180_v0  ;;  %1159 = vadd.xlane.f32.xlu0 %v1158_v25  ;;  %v1499_v61 = vadd.f32 %v5586_v54, %v1431_v36 }
 0x20e   :  { %v1245_v60 = vadd.f32 1e-05, %v1181_v5  ;;  %1162 = vadd.xlane.f32.xlu1 %v1161_v59  ;;  %v4021_v52 = vpop.eup %4020  ;;  %v1369_v32 = vmul.f32 %v4019_v10, %v7753_v48  ;;  %v7755_v59 = vld [vmem:[#allocation25_spill] sm:$0xff]  ;;  %v7756_v10 = vld [vmem:[#allocation26_spill] sm:$0xff] }
 0x20f   :  { %v1562_v51 = vpack.c.bf16 %v1499_v61, %v1498_v15  ;;  %v1368_v7 = vmul.f32 %v4021_v52, %v7754_v49 }
 0x210   :  { %4026 = vrsqrt.f32 %v1245_v60  ;;  %v1437_v5 = vmul.f32 %v5572_v17, %v1369_v32 }
 0x211   :  { %4028 = vrsqrt.f32 %v1244_v11  ;;  %3860 = vmatprep.mubr.msk.bf16.mxu1 %vm592_vm1, %v1562_v51  ;;  %v1436_v16 = vmul.f32 %v5572_v17, %v1368_v7 }
 0x212   :  { %3861 = vmatmul.mubr.msk.bf16.vlgmr.msra.gmra.mxu1 %vm592_vm1, %v1563_v57  ;;  %v1004_v33 = vpop.xlane.xlu0 %1003  ;;  %v1505_v22 = vadd.f32 %v5586_v54, %v1437_v5  ;;  %v7758_v5 = vld [vmem:[#allocation28_spill] sm:$0xff] }
 0x213   :  { %v1007_v12 = vpop.xlane.xlu1 %1006  ;;  %v1178_v13 = vmul.f32 0.015625, %v1004_v33  ;;  %v1504_v52 = vadd.f32 %v5586_v54, %v1436_v16 }
 0x214   :  { %v1179_v42 = vmul.f32 0.015625, %v1007_v12 }
 0x215   :  { %v4023_v46 = vpop.eup %4022  ;;  %v1242_v36 = vadd.f32 1e-05, %v1178_v13  ;;  %v1565_v13 = vpack.c.bf16 %v1505_v22, %v1504_v52  ;;  %v7759_v22 = vld [vmem:[#allocation29_spill] sm:$0xff] }
 0x216   :  { %v4025_v50 = vpop.eup %4024  ;;  %v1243_v0 = vadd.f32 1e-05, %v1179_v42  ;;  %v1367_v25 = vmul.f32 %v4023_v46, %v7755_v59 }
 0x217   :  { %v1366_v60 = vmul.f32 %v4025_v50, %v7756_v10  ;;  %v7757_v50 = vld [vmem:[#allocation27_spill] sm:$0xff] }
 0x218   :  { %4030 = vrsqrt.f32 %v1243_v0  ;;  %v1435_v11 = vmul.f32 %v5572_v17, %v1367_v25 }
 0x219   :  { %4032 = vrsqrt.f32 %v1242_v36  ;;  %v1434_v15 = vmul.f32 %v5572_v17, %v1366_v60 }
 0x21a   :  { %v1503_v61 = vadd.f32 %v5586_v54, %v1435_v11  ;;  %v1022_v57 = vpop.xlane.xlu0 %1021 }
 0x21b   :  { %v1025_v51 = vpop.xlane.xlu1 %1024  ;;  %v1502_v48 = vadd.f32 %v5586_v54, %v1434_v15  ;;  %v1184_v49 = vmul.f32 0.015625, %v1022_v57 }
 0x21c   :  { %v1185_v32 = vmul.f32 0.015625, %v1025_v51 }
 0x21d   :  { %v1564_v7 = vpack.c.bf16 %v1503_v61, %v1502_v48  ;;  %v4027_v12 = vpop.eup %4026  ;;  %v1248_v42 = vadd.f32 1e-05, %v1184_v49  ;;  %v7760_v48 = vld [vmem:[#allocation30_spill] sm:$0xff] }
 0x21e   :  { %v1249_v33 = vadd.f32 1e-05, %v1185_v32  ;;  %v4029_v46 = vpop.eup %4028  ;;  %v1373_v0 = vmul.f32 %v4027_v12, %v7757_v50 }
 0x21f   :  { %3864 = vmatprep.mubr.msk.bf16.mxu1 %vm592_vm1, %v1564_v7  ;;  %v1372_v36 = vmul.f32 %v4029_v46, %v7758_v5 }
 0x220   :  { %3865 = vmatmul.mubr.msk.bf16.gmra.mxu1 %vm592_vm1, %v1565_v13  ;;  %4034 = vrsqrt.f32 %v1249_v33  ;;  %v1441_v11 = vmul.f32 %v5572_v17, %v1373_v0 }
 0x221   :  { %4036 = vrsqrt.f32 %v1248_v42  ;;  %v1440_v57 = vmul.f32 %v5572_v17, %v1372_v36 }
 0x222   :  { %v1016_v25 = vpop.xlane.xlu0 %1015  ;;  %v1509_v42 = vadd.f32 %v5586_v54, %v1441_v11  ;;  %v7762_v11 = vld [vmem:[#allocation32_spill] sm:$0xff] }
 0x223   :  { %v1019_v59 = vpop.xlane.xlu1 %1018  ;;  %v1182_v10 = vmul.f32 0.015625, %v1016_v25  ;;  %v1508_v33 = vadd.f32 %v5586_v54, %v1440_v57 }
 0x224   :  { %v1183_v16 = vmul.f32 0.015625, %v1019_v59 }
 0x225   :  { %v4031_v60 = vpop.eup %4030  ;;  %v1246_v52 = vadd.f32 1e-05, %v1182_v10  ;;  %v1567_v10 = vpack.c.bf16 %v1509_v42, %v1508_v33  ;;  %v7763_v42 = vld [vmem:[#allocation33_spill] sm:$0xff] }
 0x226   :  { %v4033_v15 = vpop.eup %4032  ;;  %v1247_v61 = vadd.f32 1e-05, %v1183_v16  ;;  %v1371_v51 = vmul.f32 %v4031_v60, %v7759_v22 }
 0x227   :  { %v1370_v32 = vmul.f32 %v4033_v15, %v7760_v48  ;;  %v7761_v15 = vld [vmem:[#allocation31_spill] sm:$0xff] }
 0x228   :  { %4038 = vrsqrt.f32 %v1247_v61  ;;  %v1439_v49 = vmul.f32 %v5572_v17, %v1371_v51 }
 0x229   :  { %4040 = vrsqrt.f32 %v1246_v52  ;;  %v1438_v7 = vmul.f32 %v5572_v17, %v1370_v32 }
 0x22a   :  { %v1507_v12 = vadd.f32 %v5586_v54, %v1439_v49  ;;  %v1034_v46 = vpop.xlane.xlu0 %1033 }
 0x22b   :  { %v1037_v13 = vpop.xlane.xlu1 %1036  ;;  %v1506_v50 = vadd.f32 %v5586_v54, %v1438_v7  ;;  %v1188_v5 = vmul.f32 0.015625, %v1034_v46 }
 0x22c   :  { %v1189_v0 = vmul.f32 0.015625, %v1037_v13 }
 0x22d   :  { %v1566_v36 = vpack.c.bf16 %v1507_v12, %v1506_v50  ;;  %v4035_v59 = vpop.eup %4034  ;;  %v1252_v16 = vadd.f32 1e-05, %v1188_v5  ;;  %v7764_v50 = vld [vmem:[#allocation34_spill] sm:$0xff] }
 0x22e   :  { %v1253_v25 = vadd.f32 1e-05, %v1189_v0  ;;  %v4037_v60 = vpop.eup %4036  ;;  %v1377_v61 = vmul.f32 %v4035_v59, %v7761_v15 }
 0x22f   :  { %3868 = vmatprep.mubr.msk.bf16.mxu1 %vm592_vm1, %v1566_v36  ;;  %v1376_v52 = vmul.f32 %v4037_v60, %v7762_v11 }
 0x230   :  { %3869 = vmatmul.mubr.msk.bf16.gmra.mxu1 %vm592_vm1, %v1567_v10  ;;  %4042 = vrsqrt.f32 %v1253_v25  ;;  %v1445_v49 = vmul.f32 %v5572_v17, %v1377_v61 }
 0x231   :  { %4044 = vrsqrt.f32 %v1252_v16  ;;  %v1444_v46 = vmul.f32 %v5572_v17, %v1376_v52 }
 0x232   :  { %v1028_v51 = vpop.xlane.xlu0 %1027  ;;  %v1513_v16 = vadd.f32 %v5586_v54, %v1445_v49  ;;  %v7766_v49 = vld [vmem:[#allocation36_spill] sm:$0xff] }
 0x233   :  { %v1031_v22 = vpop.xlane.xlu1 %1030  ;;  %v1186_v48 = vmul.f32 0.015625, %v1028_v51  ;;  %v1512_v25 = vadd.f32 %v5586_v54, %v1444_v46 }
 0x234   :  { %v1187_v57 = vmul.f32 0.015625, %v1031_v22 }
 0x235   :  { %v4039_v32 = vpop.eup %4038  ;;  %v1250_v33 = vadd.f32 1e-05, %v1186_v48  ;;  %v1569_v48 = vpack.c.bf16 %v1513_v16, %v1512_v25  ;;  %v7767_v16 = vld [vmem:[#allocation37_spill] sm:$0xff] }
 0x236   :  { %v4041_v7 = vpop.eup %4040  ;;  %v1251_v12 = vadd.f32 1e-05, %v1187_v57  ;;  %v1375_v13 = vmul.f32 %v4039_v32, %v7763_v42 }
 0x237   :  { %v1374_v0 = vmul.f32 %v4041_v7, %v7764_v50  ;;  %v7765_v7 = vld [vmem:[#allocation35_spill] sm:$0xff] }
 0x238   :  { %4046 = vrsqrt.f32 %v1251_v12  ;;  %v1443_v5 = vmul.f32 %v5572_v17, %v1375_v13 }
 0x239   :  { %4048 = vrsqrt.f32 %v1250_v33  ;;  %v1442_v36 = vmul.f32 %v5572_v17, %v1374_v0 }
 0x23a   :  { %v1511_v59 = vadd.f32 %v5586_v54, %v1443_v5  ;;  %v1046_v60 = vpop.xlane.xlu0 %1045 }
 0x23b   :  { %v1049_v10 = vpop.xlane.xlu1 %1048  ;;  %v1510_v15 = vadd.f32 %v5586_v54, %v1442_v36  ;;  %v1192_v11 = vmul.f32 0.015625, %v1046_v60 }
 0x23c   :  { %v1193_v61 = vmul.f32 0.015625, %v1049_v10 }
 0x23d   :  { %v1568_v52 = vpack.c.bf16 %v1511_v59, %v1510_v15  ;;  %v4043_v22 = vpop.eup %4042  ;;  %v1256_v57 = vadd.f32 1e-05, %v1192_v11  ;;  %v7768_v11 = vld [vmem:[#allocation38_spill] sm:$0xff] }
 0x23e   :  { %v1257_v51 = vadd.f32 1e-05, %v1193_v61  ;;  %v4045_v32 = vpop.eup %4044  ;;  %v1381_v12 = vmul.f32 %v4043_v22, %v7765_v7  ;;  %v7769_v7 = vld [vmem:[#allocation7_spill] sm:$0xff] }
 0x23f   :  { %3872 = vmatprep.mubr.msk.bf16.mxu1 %vm592_vm1, %v1568_v52  ;;  %v1380_v33 = vmul.f32 %v4045_v32, %v7766_v49 }
 0x240   :  { %3873 = vmatmul.mubr.msk.bf16.gmra.mxu1 %vm592_vm1, %v1569_v48  ;;  %4050 = vrsqrt.f32 %v1257_v51  ;;  %v1449_v5 = vmul.f32 %v5572_v17, %v1381_v12  ;;  %v7770_v12 = vmax.f32 %v7769_v7, 0.0 }
 0x241   :  { %4052 = vrsqrt.f32 %v1256_v57  ;;  %v1448_v60 = vmul.f32 %v5572_v17, %v1380_v33 }
 0x242   :  { %v1040_v13 = vpop.xlane.xlu0 %1039  ;;  %v1517_v32 = vadd.f32 %v5586_v54, %v1449_v5 }
 0x243   :  { %v1043_v42 = vpop.xlane.xlu1 %1042  ;;  %v1190_v50 = vmul.f32 0.015625, %v1040_v13 }
 0x244   :  { %v1191_v46 = vmul.f32 0.015625, %v1043_v42  ;;  %v7771_v42 = vld [vmem:[#allocation6_spill] sm:$0xff] }
 0x245   :  { %v4047_v0 = vpop.eup %4046  ;;  %v1254_v25 = vadd.f32 1e-05, %v1190_v50  ;;  %v7772_v33 = vmax.f32 %v7771_v42, 0.0  ;;  %v1516_v50 = vadd.f32 %v5586_v54, %v1448_v60 }
 0x246   :  { %v4049_v36 = vpop.eup %4048  ;;  %v1255_v59 = vadd.f32 1e-05, %v1191_v46  ;;  %v1379_v10 = vmul.f32 %v4047_v0, %v7767_v16  ;;  %v781_v61 = vpop.xlane.xlu0 %780 }
 0x247   :  { %v784_v15 = vpop.xlane.xlu1 %783  ;;  %v1378_v52 = vmul.f32 %v4049_v36, %v7768_v11  ;;  %v848_v51 = vmul.f32 0.015625, %v781_v61 }
 0x248   :  { %4054 = vrsqrt.f32 %v1255_v59  ;;  %v849_v22 = vmul.f32 0.015625, %v784_v15  ;;  %v1447_v57 = vmul.f32 %v5572_v17, %v1379_v10  ;;  %v1571_v10 = vpack.c.bf16 %v1517_v32, %v1516_v50 }
 0x249   :  { %4056 = vrsqrt.f32 %v1254_v25  ;;  %v1446_v48 = vmul.f32 %v5572_v17, %v1378_v52  ;;  %v5654_v13 = vsub.f32 %v7772_v33, %v848_v51  ;;  %v7773_v51 = vld [vmem:[#allocation39_spill] sm:$0xff] }
 0x24a   :  { %v5650_v49 = vsub.f32 %v7770_v12, %v849_v22  ;;  %v1515_v46 = vadd.f32 %v5586_v54, %v1447_v57  ;;  %v7774_v12 = vld [vmem:[#allocation40_spill] sm:$0xff] }
 0x24b   :  { %v1514_v0 = vadd.f32 %v5586_v54, %v1446_v48  ;;  %v976_v5 = vmul.f32 %v5654_v13, %v5654_v13 }
 0x24c   :  { %v977_v36 = vmul.f32 %v5650_v49, %v5650_v49 }
 0x24d   :  { %v1570_v59 = vpack.c.bf16 %v1515_v46, %v1514_v0  ;;  %v4051_v25 = vpop.eup %4050  ;;  %v1164_v15 = vsel %vm592_vm1, %v976_v5, 0.0 }
 0x24e   :  { %v1167_v16 = vsel %vm592_vm1, %v977_v36, 0.0  ;;  %v4053_v61 = vpop.eup %4052  ;;  %v1052_v11 = vpop.xlane.xlu0 %1051  ;;  %1165 = vadd.xlane.f32.xlu0 %v1164_v15  ;;  %v1385_v57 = vmul.f32 %v4051_v25, %v7773_v51 }
 0x24f   :  { %3876 = vmatprep.mubr.msk.bf16.mxu1 %vm592_vm1, %v1570_v59  ;;  %1168 = vadd.xlane.f32.xlu1 %v1167_v16  ;;  %v1055_v60 = vpop.xlane.xlu1 %1054  ;;  %v1194_v22 = vmul.f32 0.015625, %v1052_v11  ;;  %v1384_v42 = vmul.f32 %v4053_v61, %v7774_v12 }
 0x250   :  { %v1195_v52 = vmul.f32 0.015625, %v1055_v60  ;;  %3877 = vmatmul.mubr.msk.bf16.gmra.mxu1 %vm592_vm1, %v1571_v10  ;;  %v1453_v36 = vmul.f32 %v5572_v17, %v1385_v57  ;;  %v7775_v10 = vld [vmem:[#allocation41_spill] sm:$0xff] }
 0x251   :  { %v1258_v7 = vadd.f32 1e-05, %v1194_v22  ;;  %v1452_v25 = vmul.f32 %v5572_v17, %v1384_v42 }
 0x252   :  { %v1259_v48 = vadd.f32 1e-05, %v1195_v52  ;;  %v1058_v33 = vpop.xlane.xlu0 %1057  ;;  %v7776_v52 = vld [vmem:[#allocation42_spill] sm:$0xff]  ;;  %v1521_v57 = vadd.f32 %v5586_v54, %v1453_v36 }
 0x253   :  { %v1061_v32 = vpop.xlane.xlu1 %1060  ;;  %v1196_v50 = vmul.f32 0.015625, %v1058_v33  ;;  %v1520_v42 = vadd.f32 %v5586_v54, %v1452_v25 }
 0x254   :  { %4058 = vrsqrt.f32 %v1259_v48  ;;  %v1197_v46 = vmul.f32 0.015625, %v1061_v32 }
 0x255   :  { %v4055_v0 = vpop.eup %4054  ;;  %4060 = vrsqrt.f32 %v1258_v7  ;;  %v1260_v16 = vadd.f32 1e-05, %v1196_v50 }
 0x256   :  { %v4057_v5 = vpop.eup %4056  ;;  %v1261_v59 = vadd.f32 1e-05, %v1197_v46  ;;  %v1383_v15 = vmul.f32 %v4055_v0, %v7775_v10  ;;  %v1064_v11 = vpop.xlane.xlu0 %1063 }
 0x257   :  { %v1067_v60 = vpop.xlane.xlu1 %1066  ;;  %v1382_v61 = vmul.f32 %v4057_v5, %v7776_v52  ;;  %v1198_v51 = vmul.f32 0.015625, %v1064_v11 }
 0x258   :  { %4062 = vrsqrt.f32 %v1261_v59  ;;  %v1199_v22 = vmul.f32 0.015625, %v1067_v60  ;;  %v1451_v48 = vmul.f32 %v5572_v17, %v1383_v15  ;;  %v1573_v60 = vpack.c.bf16 %v1521_v57, %v1520_v42 }
 0x259   :  { %4064 = vrsqrt.f32 %v1260_v16  ;;  %v1450_v7 = vmul.f32 %v5572_v17, %v1382_v61  ;;  %v1262_v32 = vadd.f32 1e-05, %v1198_v51 }
 0x25a   :  { %v1263_v12 = vadd.f32 1e-05, %v1199_v22  ;;  %v1519_v33 = vadd.f32 %v5586_v54, %v1451_v48  ;;  %v1070_v50 = vpop.xlane.xlu0 %1069 }
 0x25b   :  { %v1073_v46 = vpop.xlane.xlu1 %1072  ;;  %v1518_v0 = vadd.f32 %v5586_v54, %v1450_v7  ;;  %v1200_v59 = vmul.f32 0.015625, %v1070_v50 }
 0x25c   :  { %4066 = vrsqrt.f32 %v1263_v12  ;;  %v1201_v5 = vmul.f32 0.015625, %v1073_v46 }
 0x25d   :  { %4068 = vrsqrt.f32 %v1262_v32  ;;  %v1572_v10 = vpack.c.bf16 %v1519_v33, %v1518_v0  ;;  %v1264_v15 = vadd.f32 1e-05, %v1200_v59 }
 0x25e   :  { %v1265_v16 = vadd.f32 1e-05, %v1201_v5  ;;  %v1076_v11 = vpop.xlane.xlu0 %1075 }
 0x25f   :  { %3880 = vmatprep.mubr.msk.bf16.mxu1 %vm592_vm1, %v1572_v10  ;;  %v1079_v36 = vpop.xlane.xlu1 %1078  ;;  %v1202_v25 = vmul.f32 0.015625, %v1076_v11  ;;  %v7778_v11 = vld [vmem:[#allocation44_spill] sm:$0xff] }
 0x260   :  { %4070 = vrsqrt.f32 %v1265_v16  ;;  %v1203_v52 = vmul.f32 0.015625, %v1079_v36  ;;  %3881 = vmatmul.mubr.msk.bf16.gmra.mxu1 %vm592_vm1, %v1573_v60 }
 0x261   :  { %v4059_v61 = vpop.eup %4058  ;;  %4072 = vrsqrt.f32 %v1264_v15  ;;  %v1266_v48 = vadd.f32 1e-05, %v1202_v25  ;;  %v7777_v15 = vld [vmem:[#allocation43_spill] sm:$0xff] }
 0x262   :  { %v4061_v22 = vpop.eup %4060  ;;  %v1267_v51 = vadd.f32 1e-05, %v1203_v52  ;;  %v1387_v7 = vmul.f32 %v4059_v61, %v5276_v58  ;;  %v1082_v32 = vpop.xlane.xlu0 %1081 }
 0x263   :  { %v1085_v12 = vpop.xlane.xlu1 %1084  ;;  %v1386_v57 = vmul.f32 %v4061_v22, %v5280_v19  ;;  %v1204_v42 = vmul.f32 0.015625, %v1082_v32 }
 0x264   :  { %4074 = vrsqrt.f32 %v1267_v51  ;;  %v1205_v33 = vmul.f32 0.015625, %v1085_v12  ;;  %v1455_v46 = vmul.f32 %v5572_v17, %v1387_v7 }
 0x265   :  { %v4063_v50 = vpop.eup %4062  ;;  %4076 = vrsqrt.f32 %v1266_v48  ;;  %v1454_v0 = vmul.f32 %v5572_v17, %v1386_v57  ;;  %v1268_v10 = vadd.f32 1e-05, %v1204_v42 }
 0x266   :  { %v4065_v5 = vpop.eup %4064  ;;  %v1269_v59 = vadd.f32 1e-05, %v1205_v33  ;;  %v1523_v16 = vadd.f32 %v5586_v54, %v1455_v46  ;;  %v1389_v58 = vmul.f32 %v4063_v50, %v7777_v15  ;;  %v1088_v36 = vpop.xlane.xlu0 %1087 }
 0x267   :  { %v1091_v60 = vpop.xlane.xlu1 %1090  ;;  %v1522_v19 = vadd.f32 %v5586_v54, %v1454_v0  ;;  %v1388_v52 = vmul.f32 %v4065_v5, %v7778_v11  ;;  %v1206_v61 = vmul.f32 0.015625, %v1088_v36 }
 0x268   :  { %4078 = vrsqrt.f32 %v1269_v59  ;;  %v1207_v25 = vmul.f32 0.015625, %v1091_v60  ;;  %v1457_v22 = vmul.f32 %v5572_v17, %v1389_v58 }
 0x269   :  { %v4067_v51 = vpop.eup %4066  ;;  %4080 = vrsqrt.f32 %v1268_v10  ;;  %v1574_v48 = vpack.c.bf16 %v1523_v16, %v1522_v19  ;;  %v1456_v7 = vmul.f32 %v5572_v17, %v1388_v52  ;;  %v1270_v57 = vadd.f32 1e-05, %v1206_v61 }
 0x26a   :  { %v4069_v12 = vpop.eup %4068  ;;  %v1271_v32 = vadd.f32 1e-05, %v1207_v25  ;;  %v1525_v33 = vadd.f32 %v5586_v54, %v1457_v22  ;;  %v1391_v42 = vmul.f32 %v4067_v51, %v5306_v62  ;;  %v1094_v50 = vpop.xlane.xlu0 %1093 }
 0x26b   :  { %3884 = vmatprep.mubr.msk.bf16.mxu1 %vm592_vm1, %v1574_v48  ;;  %v1097_v46 = vpop.xlane.xlu1 %1096  ;;  %v1524_v0 = vadd.f32 %v5586_v54, %v1456_v7  ;;  %v1390_v5 = vmul.f32 %v4069_v12, %v5310_v8  ;;  %v1208_v10 = vmul.f32 0.015625, %v1094_v50 }
 0x26c   :  { %4082 = vrsqrt.f32 %v1271_v32  ;;  %v1209_v59 = vmul.f32 0.015625, %v1097_v46  ;;  %v1459_v16 = vmul.f32 %v5572_v17, %v1391_v42 }
 0x26d   :  { %v4071_v15 = vpop.eup %4070  ;;  %4084 = vrsqrt.f32 %v1270_v57  ;;  %v1575_v58 = vpack.c.bf16 %v1525_v33, %v1524_v0  ;;  %v1458_v60 = vmul.f32 %v5572_v17, %v1390_v5  ;;  %v1272_v19 = vadd.f32 1e-05, %v1208_v10 }
 0x26e   :  { %v4073_v36 = vpop.eup %4072  ;;  %v1273_v62 = vadd.f32 1e-05, %v1209_v59  ;;  %v1527_v11 = vadd.f32 %v5586_v54, %v1459_v16  ;;  %v1393_v52 = vmul.f32 %v4071_v15, %v5298_v6  ;;  %v1100_v25 = vpop.xlane.xlu0 %1099 }
 0x26f   :  { %3885 = vmatmul.mubr.msk.bf16.gmra.mxu1 %vm592_vm1, %v1575_v58  ;;  %v1103_v8 = vpop.xlane.xlu1 %1102  ;;  %v1526_v61 = vadd.f32 %v5586_v54, %v1458_v60  ;;  %v1392_v22 = vmul.f32 %v4073_v36, %v5302_v39  ;;  %v1210_v48 = vmul.f32 0.015625, %v1100_v25 }
 0x270   :  { %4086 = vrsqrt.f32 %v1273_v62  ;;  %v1211_v51 = vmul.f32 0.015625, %v1103_v8  ;;  %v1461_v7 = vmul.f32 %v5572_v17, %v1393_v52 }
 0x271   :  { %v4075_v12 = vpop.eup %4074  ;;  %4088 = vrsqrt.f32 %v1272_v19  ;;  %v1576_v32 = vpack.c.bf16 %v1527_v11, %v1526_v61  ;;  %v1460_v57 = vmul.f32 %v5572_v17, %v1392_v22  ;;  %v1274_v42 = vadd.f32 1e-05, %v1210_v48 }
 0x272   :  { %v4077_v33 = vpop.eup %4076  ;;  %v1275_v6 = vadd.f32 1e-05, %v1211_v51  ;;  %v1529_v46 = vadd.f32 %v5586_v54, %v1461_v7  ;;  %v1395_v50 = vmul.f32 %v4075_v12, %v5324_v45  ;;  %v1106_v0 = vpop.xlane.xlu0 %1105 }
 0x273   :  { %3888 = vmatprep.mubr.msk.bf16.mxu1 %vm592_vm1, %v1576_v32  ;;  %v1109_v39 = vpop.xlane.xlu1 %1108  ;;  %v1528_v5 = vadd.f32 %v5586_v54, %v1460_v57  ;;  %v1394_v59 = vmul.f32 %v4077_v33, %v5320_v2  ;;  %v1212_v16 = vmul.f32 0.015625, %v1106_v0 }
 0x274   :  { %4090 = vrsqrt.f32 %v1275_v6  ;;  %v1213_v10 = vmul.f32 0.015625, %v1109_v39  ;;  %v1463_v15 = vmul.f32 %v5572_v17, %v1395_v50 }
 0x275   :  { %v4079_v58 = vpop.eup %4078  ;;  %4092 = vrsqrt.f32 %v1274_v42  ;;  %v1577_v60 = vpack.c.bf16 %v1529_v46, %v1528_v5  ;;  %v1462_v36 = vmul.f32 %v5572_v17, %v1394_v59  ;;  %v1276_v19 = vadd.f32 1e-05, %v1212_v16 }
 0x276   :  { %v4081_v62 = vpop.eup %4080  ;;  %v1277_v45 = vadd.f32 1e-05, %v1213_v10  ;;  %v1531_v11 = vadd.f32 %v5586_v54, %v1463_v15  ;;  %v1397_v52 = vmul.f32 %v4079_v58, %v5338_v55  ;;  %v1112_v8 = vpop.xlane.xlu0 %1111 }
 0x277   :  { %3889 = vmatmul.mubr.msk.bf16.gmra.mxu1 %vm592_vm1, %v1577_v60  ;;  %v1115_v2 = vpop.xlane.xlu1 %1114  ;;  %v1530_v25 = vadd.f32 %v5586_v54, %v1462_v36  ;;  %v1396_v61 = vmul.f32 %v4081_v62, %v5334_v41  ;;  %v1214_v51 = vmul.f32 0.015625, %v1112_v8 }
 0x278   :  { %4094 = vrsqrt.f32 %v1277_v45  ;;  %v1215_v22 = vmul.f32 0.015625, %v1115_v2  ;;  %v1465_v48 = vmul.f32 %v5572_v17, %v1397_v52 }
 0x279   :  { %v4083_v7 = vpop.eup %4082  ;;  %4096 = vrsqrt.f32 %v1276_v19  ;;  %v1578_v12 = vpack.c.bf16 %v1531_v11, %v1530_v25  ;;  %v1464_v32 = vmul.f32 %v5572_v17, %v1396_v61  ;;  %v1278_v33 = vadd.f32 1e-05, %v1214_v51 }
 0x27a   :  { %v4085_v57 = vpop.eup %4084  ;;  %v1279_v55 = vadd.f32 1e-05, %v1215_v22  ;;  %v1533_v6 = vadd.f32 %v5586_v54, %v1465_v48  ;;  %v1399_v42 = vmul.f32 %v4083_v7, %v5357_v47  ;;  %v1118_v46 = vpop.xlane.xlu0 %1117 }
 0x27b   :  { %3892 = vmatprep.mubr.msk.bf16.mxu1 %vm592_vm1, %v1578_v12  ;;  %v1121_v41 = vpop.xlane.xlu1 %1120  ;;  %v1532_v50 = vadd.f32 %v5586_v54, %v1464_v32  ;;  %v1398_v39 = vmul.f32 %v4085_v57, %v5361_v4  ;;  %v1216_v5 = vmul.f32 0.015625, %v1118_v46 }
 0x27c   :  { %4098 = vrsqrt.f32 %v1279_v55  ;;  %v1217_v0 = vmul.f32 0.015625, %v1121_v41  ;;  %v1467_v59 = vmul.f32 %v5572_v17, %v1399_v42 }
 0x27d   :  { %v4087_v10 = vpop.eup %4086  ;;  %4100 = vrsqrt.f32 %v1278_v33  ;;  %v1579_v16 = vpack.c.bf16 %v1533_v6, %v1532_v50  ;;  %v1466_v15 = vmul.f32 %v5572_v17, %v1398_v39  ;;  %v1280_v60 = vadd.f32 1e-05, %v1216_v5 }
 0x27e   :  { %v4089_v58 = vpop.eup %4088  ;;  %v1281_v47 = vadd.f32 1e-05, %v1217_v0  ;;  %v1535_v36 = vadd.f32 %v5586_v54, %v1467_v59  ;;  %v1401_v62 = vmul.f32 %v4087_v10, %v5366_v37  ;;  %v1124_v45 = vpop.xlane.xlu0 %1123 }
 0x27f   :  { %3893 = vmatmul.mubr.msk.bf16.gmra.mxu1 %vm592_vm1, %v1579_v16  ;;  %v1127_v4 = vpop.xlane.xlu1 %1126  ;;  %v1534_v19 = vadd.f32 %v5586_v54, %v1466_v15  ;;  %v1400_v11 = vmul.f32 %v4089_v58, %v5373_v28  ;;  %v1218_v2 = vmul.f32 0.015625, %v1124_v45 }
 0x280   :  { %4102 = vrsqrt.f32 %v1281_v47  ;;  %v1219_v52 = vmul.f32 0.015625, %v1127_v4  ;;  %v1469_v8 = vmul.f32 %v5572_v17, %v1401_v62 }
 0x281   :  { %v4091_v25 = vpop.eup %4090  ;;  %4104 = vrsqrt.f32 %v1280_v60  ;;  %v1580_v61 = vpack.c.bf16 %v1535_v36, %v1534_v19  ;;  %v1468_v22 = vmul.f32 %v5572_v17, %v1400_v11  ;;  %v1282_v48 = vadd.f32 1e-05, %v1218_v2 }
 0x282   :  { %v4093_v51 = vpop.eup %4092  ;;  %v1283_v37 = vadd.f32 1e-05, %v1219_v52  ;;  %v1537_v7 = vadd.f32 %v5586_v54, %v1469_v8  ;;  %v1403_v12 = vmul.f32 %v4091_v25, %v5386_v63  ;;  %v1130_v32 = vpop.xlane.xlu0 %1129 }
 0x283   :  { %3896 = vmatprep.mubr.msk.bf16.mxu1 %vm592_vm1, %v1580_v61  ;;  %v1133_v28 = vpop.xlane.xlu1 %1132  ;;  %v1536_v57 = vadd.f32 %v5586_v54, %v1468_v22  ;;  %v1402_v55 = vmul.f32 %v4093_v51, %v5392_v30  ;;  %v1220_v6 = vmul.f32 0.015625, %v1130_v32 }
 0x284   :  { %4106 = vrsqrt.f32 %v1283_v37  ;;  %v1221_v33 = vmul.f32 0.015625, %v1133_v28  ;;  %v1471_v42 = vmul.f32 %v5572_v17, %v1403_v12 }
 0x285   :  { %v4095_v41 = vpop.eup %4094  ;;  %4108 = vrsqrt.f32 %v1282_v48  ;;  %v1581_v46 = vpack.c.bf16 %v1537_v7, %v1536_v57  ;;  %v1470_v50 = vmul.f32 %v5572_v17, %v1402_v55  ;;  %v1284_v0 = vadd.f32 1e-05, %v1220_v6 }
 0x286   :  { %v4097_v39 = vpop.eup %4096  ;;  %v1285_v63 = vadd.f32 1e-05, %v1221_v33  ;;  %v1539_v5 = vadd.f32 %v5586_v54, %v1471_v42  ;;  %v1405_v59 = vmul.f32 %v4095_v41, %v5402_v34  ;;  %v1136_v10 = vpop.xlane.xlu0 %1135 }
 0x287   :  { %3897 = vmatmul.mubr.msk.bf16.gmra.mxu1 %vm592_vm1, %v1581_v46  ;;  %v1139_v30 = vpop.xlane.xlu1 %1138  ;;  %v1538_v16 = vadd.f32 %v5586_v54, %v1470_v50  ;;  %v1404_v15 = vmul.f32 %v4097_v39, %v5406_v1  ;;  %v1222_v47 = vmul.f32 0.015625, %v1136_v10 }
 0x288   :  { %4110 = vrsqrt.f32 %v1285_v63  ;;  %v1223_v58 = vmul.f32 0.015625, %v1139_v30  ;;  %v1473_v60 = vmul.f32 %v5572_v17, %v1405_v59 }
 0x289   :  { %v4099_v36 = vpop.eup %4098  ;;  %4112 = vrsqrt.f32 %v1284_v0  ;;  %v1582_v62 = vpack.c.bf16 %v1539_v5, %v1538_v16  ;;  %v1472_v4 = vmul.f32 %v5572_v17, %v1404_v15  ;;  %v1286_v19 = vadd.f32 1e-05, %v1222_v47 }
 0x28a   :  { %v4101_v45 = vpop.eup %4100  ;;  %v1287_v34 = vadd.f32 1e-05, %v1223_v58  ;;  %v1541_v11 = vadd.f32 %v5586_v54, %v1473_v60  ;;  %v1407_v52 = vmul.f32 %v4099_v36, %v5427_v35  ;;  %v1142_v2 = vpop.xlane.xlu0 %1141 }
 0x28b   :  { %3900 = vmatprep.mubr.msk.bf16.mxu1 %vm592_vm1, %v1582_v62  ;;  %v1145_v1 = vpop.xlane.xlu1 %1144  ;;  %v1540_v8 = vadd.f32 %v5586_v54, %v1472_v4  ;;  %v1406_v25 = vmul.f32 %v4101_v45, %v5431_v56  ;;  %v1224_v22 = vmul.f32 0.015625, %v1142_v2 }
 0x28c   :  { %4114 = vrsqrt.f32 %v1287_v34  ;;  %v1225_v61 = vmul.f32 0.015625, %v1145_v1  ;;  %v1475_v51 = vmul.f32 %v5572_v17, %v1407_v52 }
 0x28d   :  { %v4103_v37 = vpop.eup %4102  ;;  %4116 = vrsqrt.f32 %v1286_v19  ;;  %v1583_v48 = vpack.c.bf16 %v1541_v11, %v1540_v8  ;;  %v1474_v7 = vmul.f32 %v5572_v17, %v1406_v25  ;;  %v1288_v28 = vadd.f32 1e-05, %v1224_v22 }
 0x28e   :  { %v4105_v12 = vpop.eup %4104  ;;  %v1289_v35 = vadd.f32 1e-05, %v1225_v61  ;;  %v1543_v32 = vadd.f32 %v5586_v54, %v1475_v51  ;;  %v1409_v57 = vmul.f32 %v4103_v37, %v5438_v38  ;;  %v1148_v55 = vpop.xlane.xlu0 %1147 }
 0x28f   :  { %3901 = vmatmul.mubr.msk.bf16.gmra.mxu1 %vm592_vm1, %v1583_v48  ;;  %v1151_v56 = vpop.xlane.xlu1 %1150  ;;  %v1542_v33 = vadd.f32 %v5586_v54, %v1474_v7  ;;  %v1408_v6 = vmul.f32 %v4105_v12, %v5447_v21  ;;  %v1226_v41 = vmul.f32 0.015625, %v1148_v55 }
 0x290   :  { %4118 = vrsqrt.f32 %v1289_v35  ;;  %v1227_v42 = vmul.f32 0.015625, %v1151_v56  ;;  %v1477_v46 = vmul.f32 %v5572_v17, %v1409_v57 }
 0x291   :  { %v4107_v50 = vpop.eup %4106  ;;  %4120 = vrsqrt.f32 %v1288_v28  ;;  %v1584_v39 = vpack.c.bf16 %v1543_v32, %v1542_v33  ;;  %v1476_v63 = vmul.f32 %v5572_v17, %v1408_v6  ;;  %v1290_v5 = vadd.f32 1e-05, %v1226_v41 }
 0x292   :  { %v4109_v0 = vpop.eup %4108  ;;  %v1291_v38 = vadd.f32 1e-05, %v1227_v42  ;;  %v1545_v59 = vadd.f32 %v5586_v54, %v1477_v46  ;;  %v1411_v30 = vmul.f32 %v4107_v50, %v5462_v9  ;;  %v1154_v10 = vpop.xlane.xlu0 %1153 }
 0x293   :  { %3904 = vmatprep.mubr.msk.bf16.mxu1 %vm592_vm1, %v1584_v39  ;;  %v1157_v21 = vpop.xlane.xlu1 %1156  ;;  %v1544_v16 = vadd.f32 %v5586_v54, %v1476_v63  ;;  %v1410_v15 = vmul.f32 %v4109_v0, %v5466_v24  ;;  %v1228_v47 = vmul.f32 0.015625, %v1154_v10 }
 0x294   :  { %4122 = vrsqrt.f32 %v1291_v38  ;;  %v1229_v58 = vmul.f32 0.015625, %v1157_v21  ;;  %v1479_v60 = vmul.f32 %v5572_v17, %v1411_v30 }
 0x295   :  { %v4111_v36 = vpop.eup %4110  ;;  %4124 = vrsqrt.f32 %v1290_v5  ;;  %v1585_v62 = vpack.c.bf16 %v1545_v59, %v1544_v16  ;;  %v1478_v4 = vmul.f32 %v5572_v17, %v1410_v15  ;;  %v1292_v34 = vadd.f32 1e-05, %v1228_v47 }
 0x296   :  { %v4113_v45 = vpop.eup %4112  ;;  %v1293_v9 = vadd.f32 1e-05, %v1229_v58  ;;  %v1547_v19 = vadd.f32 %v5586_v54, %v1479_v60  ;;  %v1413_v11 = vmul.f32 %v4111_v36, %v5474_v27  ;;  %v1160_v52 = vpop.xlane.xlu0 %1159 }
 0x297   :  { %3905 = vmatmul.mubr.msk.bf16.gmra.mxu1 %vm592_vm1, %v1585_v62  ;;  %v1163_v24 = vpop.xlane.xlu1 %1162  ;;  %v1546_v1 = vadd.f32 %v5586_v54, %v1478_v4  ;;  %v1412_v2 = vmul.f32 %v4113_v45, %v5479_v31  ;;  %v1230_v25 = vmul.f32 0.015625, %v1160_v52 }
 0x298   :  { %4126 = vrsqrt.f32 %v1293_v9  ;;  %v1231_v8 = vmul.f32 0.015625, %v1163_v24  ;;  %v1481_v61 = vmul.f32 %v5572_v17, %v1413_v11 }
 0x299   :  { %v4115_v22 = vpop.eup %4114  ;;  %4128 = vrsqrt.f32 %v1292_v34  ;;  %v1586_v51 = vpack.c.bf16 %v1547_v19, %v1546_v1  ;;  %v1480_v37 = vmul.f32 %v5572_v17, %v1412_v2  ;;  %v1294_v7 = vadd.f32 1e-05, %v1230_v25 }
 0x29a   :  { %v4117_v48 = vpop.eup %4116  ;;  %v1295_v27 = vadd.f32 1e-05, %v1231_v8  ;;  %v1549_v12 = vadd.f32 %v5586_v54, %v1481_v61  ;;  %v1415_v35 = vmul.f32 %v4115_v22, %v5497_v29 }
 0x29b   :  { %3908 = vmatprep.mubr.msk.bf16.mxu1 %vm592_vm1, %v1586_v51  ;;  %v1548_v31 = vadd.f32 %v5586_v54, %v1480_v37  ;;  %v1414_v28 = vmul.f32 %v4117_v48, %v5501_v43 }
 0x29c   :  { %4130 = vrsqrt.f32 %v1295_v27  ;;  %v1483_v32 = vmul.f32 %v5572_v17, %v1415_v35 }
 0x29d   :  { %v4119_v57 = vpop.eup %4118  ;;  %4132 = vrsqrt.f32 %v1294_v7  ;;  %v1587_v56 = vpack.c.bf16 %v1549_v12, %v1548_v31  ;;  %v1482_v55 = vmul.f32 %v5572_v17, %v1414_v28 }
 0x29e   :  { %v4121_v33 = vpop.eup %4120  ;;  %v1551_v6 = vadd.f32 %v5586_v54, %v1483_v32  ;;  %v1417_v42 = vmul.f32 %v4119_v57, %v5506_v40 }
 0x29f   :  { %3909 = vmatmul.mubr.msk.bf16.gmra.mxu1 %vm592_vm1, %v1587_v56  ;;  %v1550_v29 = vadd.f32 %v5586_v54, %v1482_v55  ;;  %v1416_v41 = vmul.f32 %v4121_v33, %v5510_v20 }
 0x2a0   :  { %v1485_v43 = vmul.f32 %v5572_v17, %v1417_v42 }
 0x2a1   :  { %v4123_v46 = vpop.eup %4122  ;;  %v1588_v50 = vpack.c.bf16 %v1551_v6, %v1550_v29  ;;  %v1484_v39 = vmul.f32 %v5572_v17, %v1416_v41 }
 0x2a2   :  { %v4125_v63 = vpop.eup %4124  ;;  %v1553_v0 = vadd.f32 %v5586_v54, %v1485_v43  ;;  %v1419_v38 = vmul.f32 %v4123_v46, %v5522_v44 }
 0x2a3   :  { %3912 = vmatprep.mubr.msk.bf16.mxu1 %vm592_vm1, %v1588_v50  ;;  %v1552_v40 = vadd.f32 %v5586_v54, %v1484_v39  ;;  %v1418_v5 = vmul.f32 %v4125_v63, %v5532_v18 }
 0x2a4   :  { %v1487_v59 = vmul.f32 %v5572_v17, %v1419_v38 }
 0x2a5   :  { %v4127_v20 = vpop.eup %4126  ;;  %v1589_v30 = vpack.c.bf16 %v1553_v0, %v1552_v40  ;;  %v1486_v21 = vmul.f32 %v5572_v17, %v1418_v5 }
 0x2a6   :  { %v4129_v10 = vpop.eup %4128  ;;  %v1555_v16 = vadd.f32 %v5586_v54, %v1487_v59  ;;  %v1421_v15 = vmul.f32 %v4127_v20, %v5540_v23 }
 0x2a7   :  { %3913 = vmatmul.mubr.msk.bf16.gmra.mxu1 %vm592_vm1, %v1589_v30  ;;  %v1554_v44 = vadd.f32 %v5586_v54, %v1486_v21  ;;  %v1420_v58 = vmul.f32 %v4129_v10, %v5544_v53 }
 0x2a8   :  { %v1489_v47 = vmul.f32 %v5572_v17, %v1421_v15 }
 0x2a9   :  { %v4131_v18 = vpop.eup %4130  ;;  %v1590_v60 = vpack.c.bf16 %v1555_v16, %v1554_v44  ;;  %v1488_v36 = vmul.f32 %v5572_v17, %v1420_v58 }
 0x2aa   :  { %v4133_v62 = vpop.eup %4132  ;;  %v1557_v4 = vadd.f32 %v5586_v54, %v1489_v47  ;;  %v1423_v45 = vmul.f32 %v4131_v18, %v5560_v26  ;;  %v1604_v26 = vsub.s32 3, %v7744_v14 }
 0x2ab   :  { %3916 = vmatprep.mubr.msk.bf16.mxu1 %vm592_vm1, %v1590_v60  ;;  %v1556_v23 = vadd.f32 %v5586_v54, %v1488_v36  ;;  %v1422_v9 = vmul.f32 %v4133_v62, %v5564_v3  ;;  %v4267_v3 = vld [vmem:[%s7400_s4] sm:$0x3f] }
 0x2ac   :  { %v1491_v34 = vmul.f32 %v5572_v17, %v1423_v45  ;;  %v5818_v1 = vrot.slane %v4267_v3, %v1604_v26 }
 0x2ad   :  { %v1591_v53 = vpack.c.bf16 %v1557_v4, %v1556_v23  ;;  %v1490_v19 = vmul.f32 %v5572_v17, %v1422_v9 }
 0x2ae   :  { %v1559_v11 = vadd.f32 %v5586_v54, %v1491_v34 }
 0x2af   :  { %3917 = vmatmul.mubr.msk.bf16.gmra.mxu1 %vm592_vm1, %v1591_v53  ;;  %v1558_v24 = vadd.f32 %v5586_v54, %v1490_v19 }
 0x2b1   :  { %v1592_v52 = vpack.c.bf16 %v1559_v11, %v1558_v24 }
 0x2b3   :  { %3920 = vmatprep.mubr.msk.bf16.mxu1 %vm592_vm1, %v1592_v52 }
 0x2d2   :  { %v3862_v2 = vpop.f32.mrf.mxu1 }
 0x2d3   :  { %v5821_v8 = vadd.f32 %v3862_v2, %v5818_v1 }
 0x2d4   :  { %v1760_v25 = vpop.f32.mrf.mxu1 }
 0x2d5   :  { %v7546_v61 = vmax.f32 %v5821_v8, 0.0  ;;  %v5825_v22 = vadd.f32 %v1760_v25, %v5818_v1 }
 0x2d6   :  { %v3863_v51 = vpop.f32.mrf.mxu1 }
 0x2d7   :  { %v7542_v37 = vmax.f32 %v5825_v22, 0.0  ;;  %v5829_v48 = vadd.f32 %v3863_v51, %v5818_v1  ;;  %v2085_v7 = vsel %vm592_vm1, %v7546_v61, 0.0  ;;  %v1166_v35 = vpop.xlane.xlu0 %1165 }
 0x2d8   :  { %v1169_v27 = vpop.xlane.xlu1 %1168  ;;  %v1763_v31 = vpop.f32.mrf.mxu1  ;;  %2086 = vadd.xlane.f32.xlu0 %v2085_v7  ;;  %v1232_v32 = vmul.f32 0.015625, %v1166_v35 }
 0x2d9   :  { %v1233_v12 = vmul.f32 0.015625, %v1169_v27  ;;  %v7545_v28 = vmax.f32 %v5829_v48, 0.0  ;;  %v5836_v57 = vadd.f32 %v1763_v31, %v5818_v1  ;;  %v2079_v42 = vsel %vm592_vm1, %v7542_v37, 0.0 }
 0x2da   :  { %v1296_v55 = vadd.f32 1e-05, %v1232_v32 }
 0x2db   :  { %v1297_v56 = vadd.f32 1e-05, %v1233_v12  ;;  %v7541_v33 = vmax.f32 %v5836_v57, 0.0  ;;  %v2088_v6 = vsel %vm592_vm1, %v7545_v28, 0.0 }
 0x2dc   :  { %2089 = vadd.xlane.f32.xlu1 %v2088_v6  ;;  %2080 = vadd.xlane.f32.xlu0 %v2079_v42 }
 0x2dd   :  { %4134 = vrsqrt.f32 %v1297_v56  ;;  %v2082_v41 = vsel %vm592_vm1, %v7541_v33, 0.0 }
 0x2de   :  { %4136 = vrsqrt.f32 %v1296_v55 }
 0x2e0   :  { %v3866_v29 = vpop.f32.mrf.mxu1  ;;  %2083 = vadd.xlane.f32.xlu1 %v2082_v41 }
 0x2e1   :  { %v5849_v43 = vadd.f32 %v3866_v29, %v5818_v1 }
 0x2e2   :  { %v1776_v46 = vpop.f32.mrf.mxu1 }
 0x2e3   :  { %v7538_v50 = vmax.f32 %v5849_v43, 0.0  ;;  %v5853_v39 = vadd.f32 %v1776_v46, %v5818_v1 }
 0x2e4   :  { %v3867_v63 = vpop.f32.mrf.mxu1 }
 0x2e5   :  { %v7534_v0 = vmax.f32 %v5853_v39, 0.0  ;;  %v5857_v38 = vadd.f32 %v3867_v63, %v5818_v1  ;;  %v2097_v40 = vsel %vm592_vm1, %v7538_v50, 0.0 }
 0x2e6   :  { %v1779_v5 = vpop.f32.mrf.mxu1  ;;  %2098 = vadd.xlane.f32.xlu0 %v2097_v40 }
 0x2e7   :  { %v7537_v59 = vmax.f32 %v5857_v38, 0.0  ;;  %v5864_v20 = vadd.f32 %v1779_v5, %v5818_v1  ;;  %v2091_v10 = vsel %vm592_vm1, %v7534_v0, 0.0 }
 0x2e9   :  { %v7533_v30 = vmax.f32 %v5864_v20, 0.0  ;;  %v2100_v21 = vsel %vm592_vm1, %v7537_v59, 0.0 }
 0x2ea   :  { %v4135_v16 = vpop.eup %4134  ;;  %2101 = vadd.xlane.f32.xlu1 %v2100_v21  ;;  %2092 = vadd.xlane.f32.xlu0 %v2091_v10 }
 0x2eb   :  { %v4137_v15 = vpop.eup %4136  ;;  %v1425_v44 = vmul.f32 %v4135_v16, %v5650_v49  ;;  %v2094_v47 = vsel %vm592_vm1, %v7533_v30, 0.0 }
 0x2ec   :  { %v1424_v58 = vmul.f32 %v4137_v15, %v5654_v13 }
 0x2ed   :  { %v1493_v18 = vmul.f32 %v5572_v17, %v1425_v44 }
 0x2ee   :  { %2095 = vadd.xlane.f32.xlu1 %v2094_v47  ;;  %v1492_v60 = vmul.f32 %v5572_v17, %v1424_v58 }
 0x2ef   :  { %v1561_v36 = vadd.f32 %v5586_v54, %v1493_v18 }
 0x2f0   :  { %v3870_v62 = vpop.f32.mrf.mxu1  ;;  %v1560_v4 = vadd.f32 %v5586_v54, %v1492_v60 }
 0x2f1   :  { %v5883_v45 = vadd.f32 %v3870_v62, %v5818_v1 }
 0x2f2   :  { %v1792_v49 = vpop.f32.mrf.mxu1  ;;  %v1593_v23 = vpack.c.bf16 %v1561_v36, %v1560_v4 }
 0x2f3   :  { %v7530_v13 = vmax.f32 %v5883_v45, 0.0  ;;  %v5887_v9 = vadd.f32 %v1792_v49, %v5818_v1 }
 0x2f4   :  { %v3871_v34 = vpop.f32.mrf.mxu1  ;;  %3921 = vmatmul.mubr.msk.bf16.gmra.mxu1 %vm592_vm1, %v1593_v23 }
 0x2f5   :  { %v7526_v17 = vmax.f32 %v5887_v9, 0.0  ;;  %v5892_v53 = vadd.f32 %v3871_v34, %v5818_v1  ;;  %v2109_v54 = vsel %vm592_vm1, %v7530_v13, 0.0 }
 0x2f6   :  { %v1795_v19 = vpop.f32.mrf.mxu1  ;;  %2110 = vadd.xlane.f32.xlu0 %v2109_v54 }
 0x2f7   :  { %v7529_v11 = vmax.f32 %v5892_v53, 0.0  ;;  %v5899_v24 = vadd.f32 %v1795_v19, %v5818_v1  ;;  %v2103_v3 = vsel %vm592_vm1, %v7526_v17, 0.0 }
 0x2f9   :  { %v7525_v52 = vmax.f32 %v5899_v24, 0.0  ;;  %v2112_v26 = vsel %vm592_vm1, %v7529_v11, 0.0 }
 0x2fa   :  { %2113 = vadd.xlane.f32.xlu1 %v2112_v26  ;;  %2104 = vadd.xlane.f32.xlu0 %v2103_v3 }
 0x2fb   :  { %v2106_v2 = vsel %vm592_vm1, %v7525_v52, 0.0 }
 0x2fe   :  { %2107 = vadd.xlane.f32.xlu1 %v2106_v2 }
 0x300   :  { %v3874_v25 = vpop.f32.mrf.mxu1 }
 0x301   :  { %v5912_v51 = vadd.f32 %v3874_v25, %v5818_v1 }
 0x302   :  { %v1808_v27 = vpop.f32.mrf.mxu1 }
 0x303   :  { %v7522_v7 = vmax.f32 %v5912_v51, 0.0  ;;  %v5916_v12 = vadd.f32 %v1808_v27, %v5818_v1 }
 0x304   :  { %v3875_v35 = vpop.f32.mrf.mxu1 }
 0x305   :  { %v7518_v31 = vmax.f32 %v5916_v12, 0.0  ;;  %v5920_v32 = vadd.f32 %v3875_v35, %v5818_v1  ;;  %v2121_v56 = vsel %vm592_vm1, %v7522_v7, 0.0 }
 0x306   :  { %v1811_v55 = vpop.f32.mrf.mxu1  ;;  %2122 = vadd.xlane.f32.xlu0 %v2121_v56 }
 0x307   :  { %v7521_v6 = vmax.f32 %v5920_v32, 0.0  ;;  %v5927_v42 = vadd.f32 %v1811_v55, %v5818_v1  ;;  %v2115_v46 = vsel %vm592_vm1, %v7518_v31, 0.0 }
 0x309   :  { %v7517_v29 = vmax.f32 %v5927_v42, 0.0  ;;  %v2124_v41 = vsel %vm592_vm1, %v7521_v6, 0.0 }
 0x30a   :  { %2125 = vadd.xlane.f32.xlu1 %v2124_v41  ;;  %2116 = vadd.xlane.f32.xlu0 %v2115_v46 }
 0x30b   :  { %v2118_v63 = vsel %vm592_vm1, %v7517_v29, 0.0 }
 0x30e   :  { %2119 = vadd.xlane.f32.xlu1 %v2118_v63 }
 0x310   :  { %v3878_v40 = vpop.f32.mrf.mxu1 }
 0x311   :  { %v5940_v5 = vadd.f32 %v3878_v40, %v5818_v1 }
 0x312   :  { %v1824_v21 = vpop.f32.mrf.mxu1 }
 0x313   :  { %v7514_v10 = vmax.f32 %v5940_v5, 0.0  ;;  %v5944_v16 = vadd.f32 %v1824_v21, %v5818_v1 }
 0x314   :  { %v3879_v15 = vpop.f32.mrf.mxu1 }
 0x315   :  { %v7510_v44 = vmax.f32 %v5944_v16, 0.0  ;;  %v5948_v58 = vadd.f32 %v3879_v15, %v5818_v1  ;;  %v2133_v47 = vsel %vm592_vm1, %v7514_v10, 0.0 }
 0x316   :  { %v1827_v18 = vpop.f32.mrf.mxu1  ;;  %2134 = vadd.xlane.f32.xlu0 %v2133_v47 }
 0x317   :  { %v7513_v60 = vmax.f32 %v5948_v58, 0.0  ;;  %v5955_v36 = vadd.f32 %v1827_v18, %v5818_v1  ;;  %v2127_v49 = vsel %vm592_vm1, %v7510_v44, 0.0 }
 0x319   :  { %v7509_v62 = vmax.f32 %v5955_v36, 0.0  ;;  %v2136_v4 = vsel %vm592_vm1, %v7513_v60, 0.0 }
 0x31a   :  { %2137 = vadd.xlane.f32.xlu1 %v2136_v4  ;;  %2128 = vadd.xlane.f32.xlu0 %v2127_v49 }
 0x31b   :  { %v2130_v23 = vsel %vm592_vm1, %v7509_v62, 0.0 }
 0x31e   :  { %2131 = vadd.xlane.f32.xlu1 %v2130_v23 }
 0x320   :  { %v3882_v34 = vpop.f32.mrf.mxu1 }
 0x321   :  { %v5968_v54 = vadd.f32 %v3882_v34, %v5818_v1 }
 0x322   :  { %v1840_v19 = vpop.f32.mrf.mxu1 }
 0x323   :  { %v7506_v26 = vmax.f32 %v5968_v54, 0.0  ;;  %v5972_v3 = vadd.f32 %v1840_v19, %v5818_v1 }
 0x324   :  { %v3883_v2 = vpop.f32.mrf.mxu1 }
 0x325   :  { %v7502_v25 = vmax.f32 %v5972_v3, 0.0  ;;  %v5976_v27 = vadd.f32 %v3883_v2, %v5818_v1  ;;  %v2145_v35 = vsel %vm592_vm1, %v7506_v26, 0.0 }
 0x326   :  { %v1843_v56 = vpop.f32.mrf.mxu1  ;;  %2146 = vadd.xlane.f32.xlu0 %v2145_v35 }
 0x327   :  { %v7505_v55 = vmax.f32 %v5976_v27, 0.0  ;;  %v5983_v41 = vadd.f32 %v1843_v56, %v5818_v1  ;;  %v2139_v40 = vsel %vm592_vm1, %v7502_v25, 0.0 }
 0x329   :  { %v7501_v46 = vmax.f32 %v5983_v41, 0.0  ;;  %v2148_v63 = vsel %vm592_vm1, %v7505_v55, 0.0 }
 0x32a   :  { %2149 = vadd.xlane.f32.xlu1 %v2148_v63  ;;  %2140 = vadd.xlane.f32.xlu0 %v2139_v40 }
 0x32b   :  { %v2142_v21 = vsel %vm592_vm1, %v7501_v46, 0.0 }
 0x32e   :  { %2143 = vadd.xlane.f32.xlu1 %v2142_v21 }
 0x32f   :  { %v3886_v15 = vpop.f32.mrf.mxu1 }
 0x330   :  { %v5996_v47 = vadd.f32 %v3886_v15, %v5818_v1 }
 0x331   :  { %v1856_v18 = vpop.f32.mrf.mxu1 }
 0x332   :  { %v7500_v4 = vmax.f32 %v5996_v47, 0.0  ;;  %v6000_v49 = vadd.f32 %v1856_v18, %v5818_v1 }
 0x333   :  { %v3887_v23 = vpop.f32.mrf.mxu1 }
 0x334   :  { %v7504_v34 = vmax.f32 %v6000_v49, 0.0  ;;  %v6004_v19 = vadd.f32 %v3887_v23, %v5818_v1  ;;  %v2157_v2 = vsel %vm592_vm1, %v7500_v4, 0.0 }
 0x335   :  { %2158 = vadd.xlane.f32.xlu0 %v2157_v2  ;;  %v1859_v35 = vpop.f32.mrf.mxu1 }
 0x336   :  { %7779 = vst [vmem:[#allocation5_spill] sm:$0xff] %v6004_v19  ;;  %v7503_v56 = vmax.f32 %v6004_v19, 0.0  ;;  %v6011_v63 = vadd.f32 %v1859_v35, %v5818_v1  ;;  %v2151_v23 = vsel %vm592_vm1, %v7504_v34, 0.0 }
 0x337   :  { %v3890_v40 = vpop.f32.mrf.mxu1 }
 0x338   :  { %v7507_v21 = vmax.f32 %v6011_v63, 0.0  ;;  %v6015_v15 = vadd.f32 %v3890_v40, %v5818_v1  ;;  %v2160_v18 = vsel %vm592_vm1, %v7503_v56, 0.0 }
 0x339   :  { %2161 = vadd.xlane.f32.xlu1 %v2160_v18  ;;  %2152 = vadd.xlane.f32.xlu0 %v2151_v23  ;;  %v1872_v2 = vpop.f32.mrf.mxu1 }
 0x33a   :  { %7780 = vst [vmem:[#allocation4_spill] sm:$0xff] %v6015_v15  ;;  %v7508_v35 = vmax.f32 %v6015_v15, 0.0  ;;  %v6025_v4 = vadd.f32 %v1872_v2, %v5818_v1  ;;  %v2154_v56 = vsel %vm592_vm1, %v7507_v21, 0.0 }
 0x33b   :  { %v3891_v46 = vpop.f32.mrf.mxu1 }
 0x33c   :  { %7781 = vst [vmem:[#allocation3_spill] sm:$0xff] %v6025_v4  ;;  %v7512_v40 = vmax.f32 %v6025_v4, 0.0  ;;  %v6029_v25 = vadd.f32 %v3891_v46, %v5818_v1  ;;  %v2169_v18 = vsel %vm592_vm1, %v7508_v35, 0.0 }
 0x33d   :  { %2155 = vadd.xlane.f32.xlu1 %v2154_v56  ;;  %2170 = vadd.xlane.f32.xlu0 %v2169_v18  ;;  %v1875_v23 = vpop.f32.mrf.mxu1 }
 0x33e   :  { %7782 = vst [vmem:[#allocation11_spill] sm:$0xff] %v6029_v25  ;;  %v7511_v2 = vmax.f32 %v6029_v25, 0.0  ;;  %v6039_v34 = vadd.f32 %v1875_v23, %v5818_v1  ;;  %v2163_v56 = vsel %vm592_vm1, %v7512_v40, 0.0  ;;  %v7818_v25 = vmax.f32 %v5829_v48, 0.0 }
 0x33f   :  { %v3894_v55 = vpop.f32.mrf.mxu1 }
 0x340   :  { %7783 = vst [vmem:[#allocation10_spill] sm:$0xff] %v6039_v34  ;;  %v7515_v46 = vmax.f32 %v6039_v34, 0.0  ;;  %v6043_v26 = vadd.f32 %v3894_v55, %v5818_v1  ;;  %v2172_v21 = vsel %vm592_vm1, %v7511_v2, 0.0 }
 0x341   :  { %2173 = vadd.xlane.f32.xlu1 %v2172_v21  ;;  %2164 = vadd.xlane.f32.xlu0 %v2163_v56  ;;  %v1888_v18 = vpop.f32.mrf.mxu1 }
 0x342   :  { %7784 = vst [vmem:[#allocation9_spill] sm:$0xff] %v6043_v26  ;;  %v7516_v23 = vmax.f32 %v6043_v26, 0.0  ;;  %v6053_v35 = vadd.f32 %v1888_v18, %v5818_v1  ;;  %v2166_v2 = vsel %vm592_vm1, %v7515_v46, 0.0 }
 0x343   :  { %v3895_v62 = vpop.f32.mrf.mxu1 }
 0x344   :  { %7785 = vst [vmem:[#allocation8_spill] sm:$0xff] %v6053_v35  ;;  %v7520_v55 = vmax.f32 %v6053_v35, 0.0  ;;  %v6057_v44 = vadd.f32 %v3895_v62, %v5818_v1  ;;  %v2181_v21 = vsel %vm592_vm1, %v7516_v23, 0.0 }
 0x345   :  { %2167 = vadd.xlane.f32.xlu1 %v2166_v2  ;;  %2182 = vadd.xlane.f32.xlu0 %v2181_v21  ;;  %v1891_v56 = vpop.f32.mrf.mxu1 }
 0x346   :  { %7786 = vst [vmem:[#allocation15_spill] sm:$0xff] %v6057_v44  ;;  %v7519_v18 = vmax.f32 %v6057_v44, 0.0  ;;  %v6067_v40 = vadd.f32 %v1891_v56, %v5818_v1  ;;  %v2175_v2 = vsel %vm592_vm1, %v7520_v55, 0.0 }
 0x347   :  { %v3898_v60 = vpop.f32.mrf.mxu1 }
 0x348   :  { %7787 = vst [vmem:[#allocation14_spill] sm:$0xff] %v6067_v40  ;;  %v7523_v62 = vmax.f32 %v6067_v40, 0.0  ;;  %v6071_v10 = vadd.f32 %v3898_v60, %v5818_v1  ;;  %v2184_v46 = vsel %vm592_vm1, %v7519_v18, 0.0 }
 0x349   :  { %2185 = vadd.xlane.f32.xlu1 %v2184_v46  ;;  %2176 = vadd.xlane.f32.xlu0 %v2175_v2  ;;  %v1904_v21 = vpop.f32.mrf.mxu1 }
 0x34a   :  { %7788 = vst [vmem:[#allocation13_spill] sm:$0xff] %v6071_v10  ;;  %v7524_v56 = vmax.f32 %v6071_v10, 0.0  ;;  %v6081_v23 = vadd.f32 %v1904_v21, %v5818_v1  ;;  %v2178_v18 = vsel %vm592_vm1, %v7523_v62, 0.0 }
 0x34b   :  { %v3899_v29 = vpop.f32.mrf.mxu1 }
 0x34c   :  { %7789 = vst [vmem:[#allocation12_spill] sm:$0xff] %v6081_v23  ;;  %v7528_v60 = vmax.f32 %v6081_v23, 0.0  ;;  %v6085_v31 = vadd.f32 %v3899_v29, %v5818_v1  ;;  %v2193_v46 = vsel %vm592_vm1, %v7524_v56, 0.0 }
 0x34d   :  { %2179 = vadd.xlane.f32.xlu1 %v2178_v18  ;;  %2194 = vadd.xlane.f32.xlu0 %v2193_v46  ;;  %v1907_v2 = vpop.f32.mrf.mxu1 }
 0x34e   :  { %7790 = vst [vmem:[#allocation16_spill] sm:$0xff] %v6085_v31  ;;  %v7527_v21 = vmax.f32 %v6085_v31, 0.0  ;;  %v6095_v55 = vadd.f32 %v1907_v2, %v5818_v1  ;;  %v2187_v18 = vsel %vm592_vm1, %v7528_v60, 0.0  ;;  %v7816_v31 = vmax.f32 %v5821_v8, 0.0 }
 0x34f   :  { %v3902_v6 = vpop.f32.mrf.mxu1 }
 0x350   :  { %7791 = vst [vmem:[#allocation18_spill] sm:$0xff] %v6095_v55  ;;  %v7531_v29 = vmax.f32 %v6095_v55, 0.0  ;;  %v6099_v7 = vadd.f32 %v3902_v6, %v5818_v1  ;;  %v2196_v62 = vsel %vm592_vm1, %v7527_v21, 0.0 }
 0x351   :  { %2197 = vadd.xlane.f32.xlu1 %v2196_v62  ;;  %2188 = vadd.xlane.f32.xlu0 %v2187_v18  ;;  %v1920_v46 = vpop.f32.mrf.mxu1 }
 0x352   :  { %7792 = vst [vmem:[#allocation17_spill] sm:$0xff] %v6099_v7  ;;  %v7532_v2 = vmax.f32 %v6099_v7, 0.0  ;;  %v6109_v56 = vadd.f32 %v1920_v46, %v5818_v1  ;;  %v2190_v21 = vsel %vm592_vm1, %v7531_v29, 0.0 }
 0x353   :  { %v3903_v52 = vpop.f32.mrf.mxu1 }
 0x354   :  { %7793 = vst [vmem:[#allocation20_spill] sm:$0xff] %v6109_v56  ;;  %v7536_v6 = vmax.f32 %v6109_v56, 0.0  ;;  %v6113_v17 = vadd.f32 %v3903_v52, %v5818_v1  ;;  %v2205_v62 = vsel %vm592_vm1, %v7532_v2, 0.0 }
 0x355   :  { %2191 = vadd.xlane.f32.xlu1 %v2190_v21  ;;  %2206 = vadd.xlane.f32.xlu0 %v2205_v62  ;;  %v1923_v18 = vpop.f32.mrf.mxu1 }
 0x356   :  { %7794 = vst [vmem:[#allocation21_spill] sm:$0xff] %v6113_v17  ;;  %v7535_v46 = vmax.f32 %v6113_v17, 0.0  ;;  %v6123_v60 = vadd.f32 %v1923_v18, %v5818_v1  ;;  %v2199_v21 = vsel %vm592_vm1, %v7536_v6, 0.0 }
 0x357   :  { %v3906_v11 = vpop.f32.mrf.mxu1 }
 0x358   :  { %7795 = vst [vmem:[#allocation19_spill] sm:$0xff] %v6123_v60  ;;  %v7539_v52 = vmax.f32 %v6123_v60, 0.0  ;;  %v6127_v13 = vadd.f32 %v3906_v11, %v5818_v1  ;;  %v2208_v29 = vsel %vm592_vm1, %v7535_v46, 0.0 }
 0x359   :  { %2209 = vadd.xlane.f32.xlu1 %v2208_v29  ;;  %2200 = vadd.xlane.f32.xlu0 %v2199_v21  ;;  %v1936_v62 = vpop.f32.mrf.mxu1 }
 0x35a   :  { %7796 = vst [vmem:[#allocation22_spill] sm:$0xff] %v6127_v13  ;;  %v7540_v18 = vmax.f32 %v6127_v13, 0.0  ;;  %v6137_v2 = vadd.f32 %v1936_v62, %v5818_v1  ;;  %v2202_v46 = vsel %vm592_vm1, %v7539_v52, 0.0 }
 0x35b   :  { %v3907_v30 = vpop.f32.mrf.mxu1 }
 0x35c   :  { %7797 = vst [vmem:[#allocation23_spill] sm:$0xff] %v6137_v2  ;;  %v7544_v11 = vmax.f32 %v6137_v2, 0.0  ;;  %v6141_v0 = vadd.f32 %v3907_v30, %v5818_v1  ;;  %v2217_v29 = vsel %vm592_vm1, %v7540_v18, 0.0 }
 0x35d   :  { %2203 = vadd.xlane.f32.xlu1 %v2202_v46  ;;  %2218 = vadd.xlane.f32.xlu0 %v2217_v29  ;;  %v1939_v21 = vpop.f32.mrf.mxu1 }
 0x35e   :  { %7798 = vst [vmem:[#allocation24_spill] sm:$0xff] %v6141_v0  ;;  %v7543_v62 = vmax.f32 %v6141_v0, 0.0  ;;  %v6151_v6 = vadd.f32 %v1939_v21, %v5818_v1  ;;  %v2211_v46 = vsel %vm592_vm1, %v7544_v11, 0.0 }
 0x35f   :  { %v3910_v59 = vpop.f32.mrf.mxu1 }
 0x360   :  { %7799 = vst [vmem:[#allocation25_spill] sm:$0xff] %v6151_v6  ;;  %v7547_v30 = vmax.f32 %v6151_v6, 0.0  ;;  %v6155_v50 = vadd.f32 %v3910_v59, %v5818_v1  ;;  %v2220_v52 = vsel %vm592_vm1, %v7543_v62, 0.0 }
 0x361   :  { %2221 = vadd.xlane.f32.xlu1 %v2220_v52  ;;  %2212 = vadd.xlane.f32.xlu0 %v2211_v46  ;;  %v1952_v29 = vpop.f32.mrf.mxu1 }
 0x362   :  { %7800 = vst [vmem:[#allocation26_spill] sm:$0xff] %v6155_v50  ;;  %v7548_v21 = vmax.f32 %v6155_v50, 0.0  ;;  %v6165_v18 = vadd.f32 %v1952_v29, %v5818_v1  ;;  %v2214_v62 = vsel %vm592_vm1, %v7547_v30, 0.0 }
 0x363   :  { %v3911_v33 = vpop.f32.mrf.mxu1 }
 0x364   :  { %7801 = vst [vmem:[#allocation27_spill] sm:$0xff] %v6165_v18  ;;  %v7552_v59 = vmax.f32 %v6165_v18, 0.0  ;;  %v6169_v37 = vadd.f32 %v3911_v33, %v5818_v1  ;;  %v2229_v52 = vsel %vm592_vm1, %v7548_v21, 0.0 }
 0x365   :  { %2215 = vadd.xlane.f32.xlu1 %v2214_v62  ;;  %2230 = vadd.xlane.f32.xlu0 %v2229_v52  ;;  %v1955_v46 = vpop.f32.mrf.mxu1 }
 0x366   :  { %7802 = vst [vmem:[#allocation28_spill] sm:$0xff] %v6169_v37  ;;  %v7550_v29 = vmax.f32 %v6169_v37, 0.0  ;;  %v6179_v11 = vadd.f32 %v1955_v46, %v5818_v1  ;;  %v2223_v62 = vsel %vm592_vm1, %v7552_v59, 0.0 }
 0x367   :  { %v3914_v28 = vpop.f32.mrf.mxu1 }
 0x368   :  { %7803 = vst [vmem:[#allocation29_spill] sm:$0xff] %v6179_v11  ;;  %v6183_v61 = vadd.f32 %v3914_v28, %v5818_v1  ;;  %v2232_v30 = vsel %vm592_vm1, %v7550_v29, 0.0  ;;  %v7807_v29 = vmax.f32 %v6179_v11, 0.0 }
 0x369   :  { %2233 = vadd.xlane.f32.xlu1 %v2232_v30  ;;  %2224 = vadd.xlane.f32.xlu0 %v2223_v62  ;;  %v1968_v52 = vpop.f32.mrf.mxu1 }
 0x36a   :  { %7804 = vst [vmem:[#allocation30_spill] sm:$0xff] %v6183_v61  ;;  %v7554_v46 = vmax.f32 %v6183_v61, 0.0  ;;  %v6193_v21 = vadd.f32 %v1968_v52, %v5818_v1  ;;  %v2226_v37 = vsel %vm592_vm1, %v7807_v29, 0.0 }
 0x36b   :  { %v3915_v33 = vpop.f32.mrf.mxu1 }
 0x36c   :  { %7805 = vst [vmem:[#allocation31_spill] sm:$0xff] %v6193_v21  ;;  %v6197_v14 = vadd.f32 %v3915_v33, %v5818_v1  ;;  %v2241_v30 = vsel %vm592_vm1, %v7554_v46, 0.0  ;;  %v7810_v46 = vmax.f32 %v6193_v21, 0.0 }
 0x36d   :  { %2227 = vadd.xlane.f32.xlu1 %v2226_v37  ;;  %2242 = vadd.xlane.f32.xlu0 %v2241_v30  ;;  %v1971_v62 = vpop.f32.mrf.mxu1 }
 0x36e   :  { %7806 = vst [vmem:[#allocation32_spill] sm:$0xff] %v6197_v14  ;;  %v7557_v52 = vmax.f32 %v6197_v14, 0.0  ;;  %v6207_v59 = vadd.f32 %v1971_v62, %v5818_v1  ;;  %v2235_v37 = vsel %vm592_vm1, %v7810_v46, 0.0 }
 0x36f   :  { %v3918_v28 = vpop.f32.mrf.mxu1 }
 0x370   :  { %7808 = vst [vmem:[#allocation33_spill] sm:$0xff] %v6207_v59  ;;  %v6211_v50 = vadd.f32 %v3918_v28, %v5818_v1  ;;  %v2244_v29 = vsel %vm592_vm1, %v7557_v52, 0.0  ;;  %v7813_v52 = vmax.f32 %v6207_v59, 0.0 }
 0x371   :  { %2245 = vadd.xlane.f32.xlu1 %v2244_v29  ;;  %2236 = vadd.xlane.f32.xlu0 %v2235_v37  ;;  %v1984_v30 = vpop.f32.mrf.mxu1 }
 0x372   :  { %7809 = vst [vmem:[#allocation34_spill] sm:$0xff] %v6211_v50  ;;  %v7560_v62 = vmax.f32 %v6211_v50, 0.0  ;;  %v6221_v61 = vadd.f32 %v1984_v30, %v5818_v1  ;;  %v2238_v14 = vsel %vm592_vm1, %v7813_v52, 0.0 }
 0x373   :  { %v3919_v33 = vpop.f32.mrf.mxu1 }
 0x374   :  { %7811 = vst [vmem:[#allocation35_spill] sm:$0xff] %v6221_v61  ;;  %v6225_v11 = vadd.f32 %v3919_v33, %v5818_v1  ;;  %v2253_v46 = vsel %vm592_vm1, %v7560_v62, 0.0  ;;  %v7815_v52 = vmax.f32 %v6221_v61, 0.0 }
 0x375   :  { %2239 = vadd.xlane.f32.xlu1 %v2238_v14  ;;  %2254 = vadd.xlane.f32.xlu0 %v2253_v46  ;;  %v1987_v29 = vpop.f32.mrf.mxu1  ;;  %v2087_v46 = vpop.xlane.xlu0 %2086 }
 0x376   :  { %7812 = vst [vmem:[#allocation36_spill] sm:$0xff] %v6225_v11  ;;  %v7566_v37 = vmax.f32 %v6225_v11, 0.0  ;;  %v6235_v30 = vadd.f32 %v1987_v29, %v5818_v1  ;;  %v2247_v50 = vsel %vm592_vm1, %v7815_v52, 0.0  ;;  %v2090_v29 = vpop.xlane.xlu1 %2089  ;;  %v2273_v17 = vmul.f32 0.015625, %v2087_v46 }
 0x377   :  { %v2274_v10 = vmul.f32 0.015625, %v2090_v29 }
 0x378   :  { %7814 = vst [vmem:[#allocation37_spill] sm:$0xff] %v6235_v30  ;;  %v7570_v28 = vmax.f32 %v6235_v30, 0.0  ;;  %v2256_v33 = vsel %vm592_vm1, %v7566_v37, 0.0  ;;  %v6271_v55 = vsub.f32 %v7816_v31, %v2273_v17 }
 0x379   :  { %2257 = vadd.xlane.f32.xlu1 %v2256_v33  ;;  %2248 = vadd.xlane.f32.xlu0 %v2247_v50  ;;  %v2081_v62 = vpop.xlane.xlu0 %2080  ;;  %v6283_v34 = vsub.f32 %v7818_v25, %v2274_v10  ;;  %v7820_v25 = vmax.f32 %v5836_v57, 0.0 }
 0x37a   :  { %v2250_v14 = vsel %vm592_vm1, %v7570_v28, 0.0  ;;  %v2084_v59 = vpop.xlane.xlu1 %2083  ;;  %7817 = vst [vmem:[#allocation38_spill] sm:$0xff] %v6271_v55  ;;  %v2271_v44 = vmul.f32 0.015625, %v2081_v62  ;;  %v2401_v31 = vmul.f32 %v6271_v55, %v6271_v55 }
 0x37b   :  { %v2272_v15 = vmul.f32 0.015625, %v2084_v59 }
 0x37d   :  { %2251 = vadd.xlane.f32.xlu1 %v2250_v14  ;;  %v2099_v21 = vpop.xlane.xlu0 %2098  ;;  %v6302_v59 = vsub.f32 %v7820_v25, %v2272_v15 }
 0x37e   :  { %v2102_v18 = vpop.xlane.xlu1 %2101  ;;  %v2277_v29 = vmul.f32 0.015625, %v2099_v21  ;;  %v2402_v21 = vmul.f32 %v6283_v34, %v6283_v34 }
 0x37f   :  { %v2278_v55 = vmul.f32 0.015625, %v2102_v18  ;;  %v7822_v18 = vmax.f32 %v5857_v38, 0.0 }
 0x381   :  { %v2093_v11 = vpop.xlane.xlu0 %2092 }
 0x382   :  { %v2096_v0 = vpop.xlane.xlu1 %2095 }
 0x383   :  { %v2276_v25 = vmul.f32 0.015625, %v2096_v0  ;;  %v7824_v0 = vmax.f32 %v5864_v20, 0.0  ;;  %v7826_v20 = vmax.f32 %v5892_v53, 0.0 }
 0x385   :  { %v2111_v37 = vpop.xlane.xlu0 %2110 }
 0x386   :  { %v2114_v6 = vpop.xlane.xlu1 %2113 }
 0x389   :  { %v2105_v61 = vpop.xlane.xlu0 %2104 }
 0x38a   :  { %v6247_v13 = vpop.xlane.xlu1 %2107 }
 0x38f   :  { %v6249_v33 = vpop.xlane.xlu0 %2122 }
 0x393   :  { %v6251_v50 = vpop.xlane.xlu1 %2125  ;;  %v6253_v52 = vpop.xlane.xlu0 %2116 }
 0x397   :  { %v6255_v14 = vpop.xlane.xlu1 %2119 }
 0x39f   :  { %v6257_v28 = vpop.xlane.xlu0 %2134 }
 0x3a3   :  { %v6259_v30 = vpop.xlane.xlu1 %2137  ;;  %v6261_v2 = vpop.xlane.xlu0 %2128 }
 0x3a7   :  { %v6263_v60 = vpop.xlane.xlu1 %2131 }
 0x3af   :  { %v6265_v7 = vpop.xlane.xlu0 %2146 }
 0x3b3   :  { %v6276_v26 = vpop.xlane.xlu1 %2149  ;;  %v6285_v8 = vpop.xlane.xlu0 %2140 }
 0x3b4   :  { %v6267_v56 = vpop.f32.mrf.mxu1 }
 0x3b6   :  { %v2000_v23 = vpop.f32.mrf.mxu1 }
 0x3b7   :  { %v6274_v40 = vadd.f32 %v2000_v23, %v5818_v1  ;;  %v7819_v23 = vmax.f32 %v5825_v22, 0.0  ;;  %v6304_v19 = vpop.xlane.xlu1 %2143 }
 0x3b8   :  { %v6278_v35 = vpop.f32.mrf.mxu1 }
 0x3b9   :  { %v7591_v46 = vmax.f32 %v6274_v40, 0.0  ;;  %v6291_v62 = vsub.f32 %v7819_v23, %v2271_v44  ;;  %v2469_v44 = vsel %vm592_vm1, %v2401_v31, 0.0  ;;  %v6322_v31 = vsub.f32 %v7822_v18, %v2278_v55 }
 0x3ba   :  { %v2003_v17 = vpop.f32.mrf.mxu1 }
 0x3bb   :  { %v6294_v4 = vadd.f32 %v2003_v17, %v5818_v1  ;;  %v2259_v48 = vsel %vm592_vm1, %v7591_v46, 0.0  ;;  %v7821_v17 = vmax.f32 %v5849_v43, 0.0  ;;  %v2399_v15 = vmul.f32 %v6291_v62, %v6291_v62 }
 0x3bc   :  { %2260 = vadd.xlane.f32.xlu0 %v2259_v48  ;;  %v2275_v48 = vmul.f32 0.015625, %v2093_v11  ;;  %v2472_v43 = vsel %vm592_vm1, %v2402_v21, 0.0  ;;  %v2400_v11 = vmul.f32 %v6302_v59, %v6302_v59  ;;  %v2282_v21 = vmul.f32 0.015625, %v2114_v6 }
 0x3bd   :  { %v7592_v10 = vmax.f32 %v6294_v4, 0.0  ;;  %v6313_v23 = vsub.f32 %v7821_v17, %v2277_v29  ;;  %v7823_v29 = vmax.f32 %v5853_v39, 0.0  ;;  %v2406_v39 = vmul.f32 %v6322_v31, %v6322_v31 }
 0x3be   :  { %v6306_v22 = vpop.xlane.xlu0 %2158  ;;  %v2466_v18 = vsel %vm592_vm1, %v2400_v11, 0.0  ;;  %v6356_v6 = vsub.f32 %v7826_v20, %v2282_v21 }
 0x3bf   :  { %v2262_v57 = vsel %vm592_vm1, %v7592_v10, 0.0  ;;  %v6331_v17 = vsub.f32 %v7823_v29, %v2275_v48  ;;  %v2281_v10 = vmul.f32 0.015625, %v2111_v37  ;;  %v2405_v38 = vmul.f32 %v6313_v23, %v6313_v23 }
 0x3c0   :  { %2263 = vadd.xlane.f32.xlu1 %v2262_v57  ;;  %2470 = vadd.xlane.f32.xlu0 %v2469_v44  ;;  %v2463_v57 = vsel %vm592_vm1, %v2399_v15, 0.0  ;;  %v6340_v44 = vsub.f32 %v7824_v0, %v2276_v25  ;;  %v7825_v37 = vmax.f32 %v5883_v45, 0.0  ;;  %v2279_v15 = vmul.f32 0.015625, %v2105_v61 }
 0x3c1   :  { %v2481_v29 = vsel %vm592_vm1, %v2405_v38, 0.0  ;;  %v2280_v25 = vmul.f32 0.015625, %v6247_v13  ;;  %v2484_v45 = vsel %vm592_vm1, %v2406_v39, 0.0  ;;  %v2285_v0 = vmul.f32 0.015625, %v6249_v33 }
 0x3c2   :  { %v6324_v46 = vpop.xlane.xlu1 %2161  ;;  %v6336_v55 = vpop.xlane.xlu0 %2152  ;;  %v6347_v48 = vsub.f32 %v7825_v37, %v2281_v10  ;;  %v2404_v61 = vmul.f32 %v6340_v44, %v6340_v44  ;;  %v7827_v10 = vmax.f32 %v5887_v9, 0.0  ;;  %v7828_v13 = vmax.f32 %v5899_v24, 0.0 }
 0x3c3   :  { %v2286_v39 = vmul.f32 0.015625, %v6251_v50  ;;  %v2410_v33 = vmul.f32 %v6356_v6, %v6356_v6  ;;  %v2284_v50 = vmul.f32 0.015625, %v6255_v14 }
 0x3c4   :  { %2473 = vadd.xlane.f32.xlu1 %v2472_v43  ;;  %2464 = vadd.xlane.f32.xlu0 %v2463_v57  ;;  %v2403_v43 = vmul.f32 %v6331_v17, %v6331_v17  ;;  %v6366_v38 = vsub.f32 %v7827_v10, %v2279_v15  ;;  %v2409_v53 = vmul.f32 %v6347_v48, %v6347_v48  ;;  %v2478_v9 = vsel %vm592_vm1, %v2404_v61, 0.0 }
 0x3c5   :  { %v6374_v21 = vsub.f32 %v7828_v13, %v2280_v25  ;;  %v7829_v15 = vmax.f32 %v5912_v51, 0.0  ;;  %v2496_v51 = vsel %vm592_vm1, %v2410_v33, 0.0  ;;  %v7831_v10 = vmax.f32 %v5916_v12, 0.0 }
 0x3c6   :  { %v6352_v57 = vpop.xlane.xlu1 %2155  ;;  %v6359_v11 = vpop.xlane.xlu0 %2170  ;;  %v2493_v20 = vsel %vm592_vm1, %v2409_v53, 0.0  ;;  %v2407_v24 = vmul.f32 %v6366_v38, %v6366_v38 }
 0x3c8   :  { %2467 = vadd.xlane.f32.xlu1 %v2466_v18  ;;  %2482 = vadd.xlane.f32.xlu0 %v2481_v29  ;;  %v2475_v18 = vsel %vm592_vm1, %v2403_v43, 0.0  ;;  %v6384_v29 = vsub.f32 %v7829_v15, %v2285_v0  ;;  %v2283_v43 = vmul.f32 0.015625, %v6253_v52  ;;  %v2408_v52 = vmul.f32 %v6374_v21, %v6374_v21 }
 0x3c9   :  { %v2487_v53 = vsel %vm592_vm1, %v2407_v24, 0.0  ;;  %v7833_v15 = vmax.f32 %v5940_v5, 0.0  ;;  %v2288_v5 = vmul.f32 0.015625, %v6263_v60  ;;  %v4006_v60 = vld [vmem:[%s7402_s3 + $0x18] sm:$0xff]  }
 0x3ca   :  { %v6377_v37 = vpop.xlane.xlu1 %2173  ;;  %v6390_v25 = vpop.xlane.xlu0 %2164  ;;  %v6402_v0 = vsub.f32 %v7831_v10, %v2283_v43  ;;  %v2413_v14 = vmul.f32 %v6384_v29, %v6384_v29  ;;  %v2490_v33 = vsel %vm592_vm1, %v2408_v52, 0.0  ;;  %v7835_v52 = vmax.f32 %v5944_v16, 0.0  ;;  %3924 = vmatprep.subr.bf16.mxu0 %v4006_v60 }
 0x3cb   :  { %3925 = vmatpush3.bf16.msra.mxu0 %v4006_v60  ;;  %v6494_v60 = vadd.f32 %v6267_v56, %v5818_v1 }
 0x3cc   :  { %2485 = vadd.xlane.f32.xlu1 %v2484_v45  ;;  %2476 = vadd.xlane.f32.xlu0 %v2475_v18  ;;  %v7830_v45 = vmax.f32 %v5920_v32, 0.0  ;;  %v2289_v18 = vmul.f32 0.015625, %v6257_v28  ;;  %v7832_v32 = vmax.f32 %v5927_v42, 0.0  ;;  %v2505_v24 = vsel %vm592_vm1, %v2413_v14, 0.0 }
 0x3cd   :  { %v2411_v42 = vmul.f32 %v6402_v0, %v6402_v0 }
 0x3ce   :  { %v6395_v61 = vsub.f32 %v7830_v45, %v2286_v39  ;;  %v6408_v13 = vpop.xlane.xlu1 %2167  ;;  %v6412_v39 = vsub.f32 %v7832_v32, %v2284_v50  ;;  %v6415_v12 = vpop.xlane.xlu0 %2182  ;;  %v6422_v43 = vsub.f32 %v7833_v15, %v2289_v18  ;;  %v7834_v50 = vmax.f32 %v5948_v58, 0.0 }
 0x3cf   :  { %v2293_v18 = vmul.f32 0.015625, %v6265_v7  ;;  %v2294_v32 = vmul.f32 0.015625, %v6276_v26 }
 0x3d0   :  { %2479 = vadd.xlane.f32.xlu1 %v2478_v9  ;;  %2494 = vadd.xlane.f32.xlu0 %v2493_v20  ;;  %v2290_v9 = vmul.f32 0.015625, %v6259_v30  ;;  %v2414_v28 = vmul.f32 %v6395_v61, %v6395_v61  ;;  %v2287_v20 = vmul.f32 0.015625, %v6261_v2  ;;  %v2412_v30 = vmul.f32 %v6412_v39, %v6412_v39 }
 0x3d1   :  { %v2417_v14 = vmul.f32 %v6422_v43, %v6422_v43 }
 0x3d2   :  { %v6432_v45 = vsub.f32 %v7834_v50, %v2290_v9  ;;  %v2508_v2 = vsel %vm592_vm1, %v2414_v28, 0.0  ;;  %v6440_v10 = vsub.f32 %v7835_v52, %v2287_v20  ;;  %v6446_v58 = vpop.xlane.xlu0 %2176  ;;  %v2502_v16 = vsel %vm592_vm1, %v2412_v30, 0.0 }
 0x3d3   :  { %v7836_v9 = vmax.f32 %v5955_v36, 0.0  ;;  %v7837_v28 = vmax.f32 %v5968_v54, 0.0  ;;  %v2291_v20 = vmul.f32 0.015625, %v6285_v8  ;;  %v4007_v36 = vld [vmem:[%s7402_s3 + $0x10] sm:$0xff]   ;;  %v7838_v54 = vmax.f32 %v5976_v27, 0.0 }
 0x3d4   :  { %2497 = vadd.xlane.f32.xlu1 %v2496_v51  ;;  %2488 = vadd.xlane.f32.xlu0 %v2487_v53  ;;  %v6435_v51 = vpop.xlane.xlu1 %2185  ;;  %v2499_v53 = vsel %vm592_vm1, %v2411_v42, 0.0  ;;  %v2415_v26 = vmul.f32 %v6440_v10, %v6440_v10 }
 0x3d5   :  { %v6455_v7 = vsub.f32 %v7836_v9, %v2288_v5  ;;  %v6461_v15 = vsub.f32 %v7837_v28, %v2293_v18  ;;  %v6474_v30 = vsub.f32 %v7838_v54, %v2294_v32  ;;  %3926 = vmatprep.subr.bf16.mxu0 %v4007_v36  ;;  %v2292_v18 = vmul.f32 0.015625, %v6304_v19 }
 0x3d6   :  { %v6476_v50 = vpop.xlane.xlu0 %2194  ;;  %3927 = vmatpush3.bf16.msra.mxu0 %v4007_v36  ;;  %v7841_v54 = vmax.f32 %v6000_v49, 0.0  ;;  %v2298_v49 = vmul.f32 0.015625, %v6324_v46  ;;  %v7844_v46 = vld [vmem:[#allocation5_spill] sm:$0xff] }
 0x3d7   :  { %v2416_v5 = vmul.f32 %v6455_v7, %v6455_v7  ;;  %v2421_v27 = vmul.f32 %v6461_v15, %v6461_v15  ;;  %v2422_v32 = vmul.f32 %v6474_v30, %v6474_v30 }
 0x3d8   :  { %2491 = vadd.xlane.f32.xlu1 %v2490_v33  ;;  %2506 = vadd.xlane.f32.xlu0 %v2505_v24  ;;  %v2418_v33 = vmul.f32 %v6432_v45, %v6432_v45  ;;  %v2517_v24 = vsel %vm592_vm1, %v2417_v14, 0.0  ;;  %v6467_v42 = vpop.xlane.xlu1 %2179  ;;  %v4008_v14 = vld [vmem:[%s7402_s3 + $0x8] sm:$0xff]  }
 0x3d9   :  { %v2514_v19 = vsel %vm592_vm1, %v2416_v5, 0.0  ;;  %3928 = vmatprep.subr.bf16.mxu0 %v4008_v14  ;;  %v2529_v28 = vsel %vm592_vm1, %v2421_v27, 0.0  ;;  %v2532_v36 = vsel %vm592_vm1, %v2422_v32, 0.0  ;;  %v2296_v5 = vmul.f32 0.015625, %v6352_v57 }
 0x3da   :  { %v2520_v8 = vsel %vm592_vm1, %v2418_v33, 0.0  ;;  %v2295_v33 = vmul.f32 0.015625, %v6336_v55  ;;  %3929 = vmatpush3.bf16.msra.mxu0 %v4008_v14  ;;  %v2297_v55 = vmul.f32 0.015625, %v6306_v22  ;;  %v7843_v14 = vmax.f32 %v6011_v63, 0.0 }
 0x3db   :  { %v2299_v32 = vmul.f32 0.015625, %v6390_v25 }
 0x3dc   :  { %2509 = vadd.xlane.f32.xlu1 %v2508_v2  ;;  %2500 = vadd.xlane.f32.xlu0 %v2499_v53  ;;  %v7839_v2 = vmax.f32 %v5972_v3, 0.0  ;;  %v2511_v53 = vsel %vm592_vm1, %v2415_v26, 0.0  ;;  %v6496_v3 = vpop.xlane.xlu1 %2197  ;;  %v6517_v26 = vadd.f32 %v6278_v35, %v5818_v1  ;;  %v7842_v35 = vmax.f32 %v5996_v47, 0.0 }
 0x3de   :  { %v6483_v52 = vsub.f32 %v7839_v2, %v2291_v20  ;;  %v6509_v20 = vpop.xlane.xlu0 %2188  ;;  %v7593_v1 = vmax.f32 %v6517_v26, 0.0  ;;  %v6534_v22 = vsub.f32 %v7842_v35, %v2297_v55  ;;  %v7846_v55 = vld [vmem:[#allocation3_spill] sm:$0xff]  ;;  %v7848_v35 = vld [vmem:[#allocation4_spill] sm:$0xff] }
 0x3e0   :  { %2503 = vadd.xlane.f32.xlu1 %v2502_v16  ;;  %2518 = vadd.xlane.f32.xlu0 %v2517_v24  ;;  %v7840_v16 = vmax.f32 %v5983_v41, 0.0  ;;  %v2419_v56 = vmul.f32 %v6483_v52, %v6483_v52  ;;  %v4009_v24 = vld [vmem:[%s7402_s3] sm:$0xff]   ;;  %v7594_v41 = vmax.f32 %v6494_v60, 0.0  ;;  %v2268_v63 = vsel %vm592_vm1, %v7593_v1, 0.0 }
 0x3e1   :  { %3930 = vmatprep.subr.bf16.mxu0 %v4009_v24  ;;  %v2425_v25 = vmul.f32 %v6534_v22, %v6534_v22  ;;  %v2309_v1 = vmul.f32 0.015625, %v6476_v50  ;;  %v7867_v50 = vld [vmem:[#allocation13_spill] sm:$0xff] }
 0x3e2   :  { %v6503_v9 = vsub.f32 %v7840_v16, %v2292_v18  ;;  %v2523_v2 = vsel %vm592_vm1, %v2419_v56, 0.0  ;;  %3931 = vmatpush3.bf16.msra.mxu0 %v4009_v24  ;;  %v6537_v27 = vpop.xlane.xlu0 %2206  ;;  %v2265_v57 = vsel %vm592_vm1, %v7594_v41, 0.0  ;;  %v2301_v56 = vmul.f32 0.015625, %v6359_v11 }
 0x3e4   :  { %2521 = vadd.xlane.f32.xlu1 %v2520_v8  ;;  %2512 = vadd.xlane.f32.xlu0 %v2511_v53  ;;  %v6523_v8 = vsub.f32 %v7841_v54, %v2295_v33  ;;  %v2420_v18 = vmul.f32 %v6503_v9, %v6503_v9  ;;  %v6529_v53 = vpop.xlane.xlu1 %2191  ;;  %v7845_v33 = vmax.f32 %v7844_v46, 0.0 }
 0x3e5   :  { %v2308_v41 = vmul.f32 0.015625, %v6529_v53 }
 0x3e6   :  { %v2526_v16 = vsel %vm592_vm1, %v2420_v18, 0.0  ;;  %v2423_v47 = vmul.f32 %v6523_v8, %v6523_v8  ;;  %v2201_v18 = vpop.xlane.xlu0 %2200 }
 0x3e8   :  { %2515 = vadd.xlane.f32.xlu1 %v2514_v19  ;;  %2530 = vadd.xlane.f32.xlu0 %v2529_v28  ;;  %v6544_v19 = vsub.f32 %v7843_v14, %v2296_v5  ;;  %v6552_v28 = vsub.f32 %v7845_v33, %v2298_v49  ;;  %v6555_v24 = vpop.xlane.xlu1 %2209  ;;  %v2300_v5 = vmul.f32 0.015625, %v6408_v13  ;;  %v7849_v49 = vmax.f32 %v7848_v35, 0.0  ;;  %v7850_v13 = vld [vmem:[#allocation10_spill] sm:$0xff] }
 0x3e9   :  { %v2302_v14 = vmul.f32 0.015625, %v6377_v37  ;;  %v7851_v46 = vmax.f32 %v7850_v13, 0.0  ;;  %v2303_v33 = vmul.f32 0.015625, %v6446_v58  ;;  %v7852_v37 = vld [vmem:[#allocation11_spill] sm:$0xff] }
 0x3ea   :  { %v2424_v11 = vmul.f32 %v6544_v19, %v6544_v19  ;;  %v6591_v35 = vpop.xlane.xlu0 %2218 }
 0x3ec   :  { %2533 = vadd.xlane.f32.xlu1 %v2532_v36  ;;  %2524 = vadd.xlane.f32.xlu0 %v2523_v2  ;;  %v7847_v36 = vmax.f32 %v7846_v55, 0.0  ;;  %v2535_v2 = vsel %vm592_vm1, %v2423_v47, 0.0  ;;  %v6580_v47 = vsub.f32 %v7851_v46, %v2300_v5  ;;  %v2304_v46 = vmul.f32 0.015625, %v6467_v42 }
 0x3ee   :  { %v6564_v54 = vsub.f32 %v7847_v36, %v2299_v32  ;;  %v2426_v32 = vmul.f32 %v6552_v28, %v6552_v28  ;;  %v7853_v36 = vmax.f32 %v7852_v37, 0.0 }
 0x3f0   :  { %2527 = vadd.xlane.f32.xlu1 %v2526_v16  ;;  %2266 = vadd.xlane.f32.xlu0 %v2265_v57  ;;  %v6572_v57 = vsub.f32 %v7849_v49, %v2301_v56  ;;  %v2541_v16 = vsel %vm592_vm1, %v2425_v25, 0.0  ;;  %v2427_v55 = vmul.f32 %v6564_v54, %v6564_v54  ;;  %v2204_v56 = vpop.xlane.xlu1 %2203  ;;  %v6588_v25 = vsub.f32 %v7853_v36, %v2302_v14 }
 0x3f1   :  { %v2544_v5 = vsel %vm592_vm1, %v2426_v32, 0.0  ;;  %v2428_v14 = vmul.f32 %v6580_v47, %v6580_v47  ;;  %v2306_v32 = vmul.f32 0.015625, %v6435_v51  ;;  %v7862_v51 = vld [vmem:[#allocation15_spill] sm:$0xff] }
 0x3f2   :  { %v2429_v58 = vmul.f32 %v6572_v57, %v6572_v57  ;;  %v2430_v42 = vmul.f32 %v6588_v25, %v6588_v25 }
 0x3f4   :  { %2269 = vadd.xlane.f32.xlu1 %v2268_v63  ;;  %2536 = vadd.xlane.f32.xlu0 %v2535_v2  ;;  %v2538_v63 = vsel %vm592_vm1, %v2424_v11, 0.0  ;;  %v2305_v2 = vmul.f32 0.015625, %v6415_v12  ;;  %v7854_v11 = vld [vmem:[#allocation8_spill] sm:$0xff]  ;;  %v7856_v12 = vld [vmem:[#allocation9_spill] sm:$0xff]  ;;  %v6609_v36 = vpop.xlane.xlu1 %2221 }
 0x3f5   :  { %v7855_v49 = vmax.f32 %v7854_v11, 0.0  ;;  %v7859_v11 = vld [vmem:[#allocation14_spill] sm:$0xff] }
 0x3f7   :  { %v6598_v13 = vsub.f32 %v7855_v49, %v2303_v33  ;;  %v2553_v33 = vsel %vm592_vm1, %v2429_v58, 0.0 }
 0x3f8   :  { %2539 = vadd.xlane.f32.xlu1 %v2538_v63  ;;  %2542 = vadd.xlane.f32.xlu0 %v2541_v16  ;;  %v2547_v16 = vsel %vm592_vm1, %v2427_v55, 0.0  ;;  %v7857_v63 = vmax.f32 %v7856_v12, 0.0  ;;  %v7860_v55 = vmax.f32 %v7859_v11, 0.0  ;;  %v2213_v12 = vpop.xlane.xlu0 %2212  ;;  %v2556_v11 = vsel %vm592_vm1, %v2430_v42, 0.0 }
 0x3fa   :  { %v6606_v37 = vsub.f32 %v7857_v63, %v2305_v2  ;;  %v6616_v49 = vsub.f32 %v7860_v55, %v2304_v46  ;;  %v2431_v2 = vmul.f32 %v6598_v13, %v6598_v13  ;;  %v7863_v63 = vmax.f32 %v7862_v51, 0.0 }
 0x3fb   :  { %v7868_v51 = vmax.f32 %v7867_v50, 0.0 }
 0x3fc   :  { %2545 = vadd.xlane.f32.xlu1 %v2544_v5  ;;  %2548 = vadd.xlane.f32.xlu0 %v2547_v16  ;;  %7858 = vst [vmem:[#allocation7_spill] sm:$0xff] %v6606_v37  ;;  %7861 = vst [vmem:[#allocation6_spill] sm:$0xff] %v6616_v49  ;;  %v2307_v5 = vmul.f32 0.015625, %v6509_v20  ;;  %v2550_v16 = vsel %vm592_vm1, %v2428_v14, 0.0  ;;  %v6624_v58 = vsub.f32 %v7863_v63, %v2306_v32  ;;  %v7865_v20 = vld [vmem:[#allocation12_spill] sm:$0xff]  ;;  %v2216_v32 = vpop.xlane.xlu1 %2215  ;;  %v2310_v63 = vmul.f32 0.015625, %v6496_v3 }
 0x3fd   :  { %v2433_v46 = vmul.f32 %v6606_v37, %v6606_v37  ;;  %v7866_v55 = vmax.f32 %v7865_v20, 0.0  ;;  %v6640_v42 = vsub.f32 %v7868_v51, %v2309_v1  ;;  %v2231_v37 = vpop.xlane.xlu0 %2230  ;;  %v7870_v20 = vld [vmem:[#allocation18_spill] sm:$0xff]  ;;  %v7873_v1 = vld [vmem:[#allocation16_spill] sm:$0xff] }
 0x3fe   :  { %7864 = vst [vmem:[#allocation39_spill] sm:$0xff] %v6624_v58  ;;  %v2434_v53 = vmul.f32 %v6624_v58, %v6624_v58  ;;  %v7874_v3 = vmax.f32 %v7873_v1, 0.0 }
 0x3ff   :  { %v6632_v14 = vsub.f32 %v7866_v55, %v2307_v5  ;;  %7869 = vst [vmem:[#allocation40_spill] sm:$0xff] %v6640_v42  ;;  %v2565_v5 = vsel %vm592_vm1, %v2433_v46, 0.0  ;;  %v2313_v46 = vmul.f32 0.015625, %v6537_v27  ;;  %v7878_v27 = vld [vmem:[#allocation17_spill] sm:$0xff] }
 0x400   :  { %2551 = vadd.xlane.f32.xlu1 %v2550_v16  ;;  %2554 = vadd.xlane.f32.xlu0 %v2553_v33  ;;  %v2559_v16 = vsel %vm592_vm1, %v2431_v2, 0.0  ;;  %v2432_v33 = vmul.f32 %v6616_v49, %v6616_v49  ;;  %v7871_v2 = vmax.f32 %v7870_v20, 0.0  ;;  %v2311_v49 = vmul.f32 0.015625, %v2201_v18  ;;  %v2234_v51 = vpop.xlane.xlu1 %2233  ;;  %v7875_v18 = vld [vmem:[#allocation20_spill] sm:$0xff] }
 0x401   :  { %v6655_v50 = vsub.f32 %v7874_v3, %v2310_v63  ;;  %v2568_v58 = vsel %vm592_vm1, %v2434_v53, 0.0  ;;  %v7876_v20 = vmax.f32 %v7875_v18, 0.0  ;;  %v2225_v63 = vpop.xlane.xlu0 %2224  ;;  %v7879_v1 = vmax.f32 %v7878_v27, 0.0 }
 0x402   :  { %v6648_v55 = vsub.f32 %v7871_v2, %v2308_v41  ;;  %v2437_v41 = vmul.f32 %v6640_v42, %v6640_v42  ;;  %v2312_v2 = vmul.f32 0.015625, %v2204_v56  ;;  %v2314_v53 = vmul.f32 0.015625, %v6555_v24  ;;  %v7881_v56 = vld [vmem:[#allocation19_spill] sm:$0xff] }
 0x403   :  { %v6670_v3 = vsub.f32 %v7879_v1, %v2313_v46  ;;  %v7882_v18 = vmax.f32 %v7881_v56, 0.0  ;;  %v7883_v46 = vld [vmem:[#allocation21_spill] sm:$0xff] }
 0x404   :  { %2557 = vadd.xlane.f32.xlu1 %v2556_v11  ;;  %2560 = vadd.xlane.f32.xlu0 %v2559_v16  ;;  %7872 = vst [vmem:[#allocation41_spill] sm:$0xff] %v6648_v55  ;;  %v2562_v11 = vsel %vm592_vm1, %v2432_v33, 0.0  ;;  %v2435_v16 = vmul.f32 %v6632_v14, %v6632_v14  ;;  %v6663_v33 = vsub.f32 %v7876_v20, %v2311_v49  ;;  %v2577_v42 = vsel %vm592_vm1, %v2437_v41, 0.0 }
 0x405   :  { %7880 = vst [vmem:[#allocation43_spill] sm:$0xff] %v6670_v3  ;;  %v2438_v49 = vmul.f32 %v6655_v50, %v6655_v50  ;;  %v2315_v20 = vmul.f32 0.015625, %v2213_v12  ;;  %v7884_v24 = vmax.f32 %v7883_v46, 0.0  ;;  %v2317_v41 = vmul.f32 0.015625, %v6591_v35  ;;  %v2243_v1 = vpop.xlane.xlu0 %2242 }
 0x406   :  { %7877 = vst [vmem:[#allocation42_spill] sm:$0xff] %v6663_v33  ;;  %v2441_v12 = vmul.f32 %v6670_v3, %v6670_v3 }
 0x407   :  { %v6685_v27 = vsub.f32 %v7884_v24, %v2314_v53  ;;  %v2580_v56 = vsel %vm592_vm1, %v2438_v49, 0.0  ;;  %v7889_v53 = vld [vmem:[#allocation22_spill] sm:$0xff]  ;;  %v2318_v49 = vmul.f32 0.015625, %v6609_v36  ;;  %v7895_v36 = vld [vmem:[#allocation24_spill] sm:$0xff] }
 0x408   :  { %2563 = vadd.xlane.f32.xlu1 %v2562_v11  ;;  %2566 = vadd.xlane.f32.xlu0 %v2565_v5  ;;  %v2571_v11 = vsel %vm592_vm1, %v2435_v16, 0.0  ;;  %v2436_v5 = vmul.f32 %v6648_v55, %v6648_v55  ;;  %v6678_v16 = vsub.f32 %v7882_v18, %v2312_v2  ;;  %v7886_v2 = vld [vmem:[#allocation23_spill] sm:$0xff]  ;;  %v7890_v35 = vmax.f32 %v7889_v53, 0.0 }
 0x409   :  { %7885 = vst [vmem:[#allocation44_spill] sm:$0xff] %v6685_v27  ;;  %v2589_v3 = vsel %vm592_vm1, %v2441_v12, 0.0  ;;  %v7896_v53 = vmax.f32 %v7895_v36, 0.0  ;;  %v2321_v12 = vmul.f32 0.015625, %v2231_v37 }
 0x40a   :  { %v2574_v55 = vsel %vm592_vm1, %v2436_v5, 0.0  ;;  %v7887_v5 = vmax.f32 %v7886_v2, 0.0  ;;  %v6700_v46 = vsub.f32 %v7890_v35, %v2317_v41  ;;  %v2237_v41 = vpop.xlane.xlu0 %2236 }
 0x40b   :  { %v6715_v35 = vsub.f32 %v7896_v53, %v2318_v49  ;;  %v7900_v49 = vld [vmem:[#allocation26_spill] sm:$0xff] }
 0x40c   :  { %2569 = vadd.xlane.f32.xlu1 %v2568_v58  ;;  %2572 = vadd.xlane.f32.xlu0 %v2571_v11  ;;  %v2439_v58 = vmul.f32 %v6663_v33, %v6663_v33  ;;  %v2228_v11 = vpop.xlane.xlu1 %2227  ;;  %v6693_v18 = vsub.f32 %v7887_v5, %v2315_v20  ;;  %v2316_v33 = vmul.f32 0.015625, %v2216_v32  ;;  %7891 = vst [vmem:[#allocation3_spill] sm:$0xff] %v6700_v46  ;;  %v7892_v32 = vld [vmem:[#allocation25_spill] sm:$0xff]  ;;  %v2319_v5 = vmul.f32 0.015625, %v2225_v63 }
 0x40d   :  { %v2442_v20 = vmul.f32 %v6685_v27, %v6685_v27  ;;  %v7893_v2 = vmax.f32 %v7892_v32, 0.0  ;;  %v7897_v32 = vld [vmem:[#allocation27_spill] sm:$0xff]  ;;  %v7901_v37 = vmax.f32 %v7900_v49, 0.0 }
 0x40e   :  { %7888 = vst [vmem:[#allocation5_spill] sm:$0xff] %v6693_v18  ;;  %v7898_v63 = vmax.f32 %v7897_v32, 0.0  ;;  %v2255_v53 = vpop.xlane.xlu0 %2254 }
 0x40f   :  { %v2592_v27 = vsel %vm592_vm1, %v2442_v20, 0.0  ;;  %v6729_v36 = vsub.f32 %v7901_v37, %v2321_v12  ;;  %v2322_v20 = vmul.f32 0.015625, %v2234_v51 }
 0x410   :  { %2575 = vadd.xlane.f32.xlu1 %v2574_v55  ;;  %2578 = vadd.xlane.f32.xlu0 %v2577_v42  ;;  %v2583_v55 = vsel %vm592_vm1, %v2439_v58, 0.0  ;;  %v2440_v42 = vmul.f32 %v6678_v16, %v6678_v16  ;;  %v2246_v24 = vpop.xlane.xlu1 %2245  ;;  %v6708_v58 = vsub.f32 %v7893_v2, %v2316_v33  ;;  %v2445_v33 = vmul.f32 %v6700_v46, %v6700_v46 }
 0x411   :  { %v6722_v2 = vsub.f32 %v7898_v63, %v2319_v5  ;;  %7902 = vst [vmem:[#allocation11_spill] sm:$0xff] %v6729_v36  ;;  %v2446_v5 = vmul.f32 %v6715_v35, %v6715_v35  ;;  %v2323_v63 = vmul.f32 0.015625, %v2237_v41 }
 0x412   :  { %7894 = vst [vmem:[#allocation4_spill] sm:$0xff] %v6708_v58  ;;  %v2601_v46 = vsel %vm592_vm1, %v2445_v33, 0.0  ;;  %v2325_v33 = vmul.f32 0.015625, %v2243_v1  ;;  %v7910_v1 = vld [vmem:[#allocation30_spill] sm:$0xff] }
 0x413   :  { %7899 = vst [vmem:[#allocation10_spill] sm:$0xff] %v6722_v2  ;;  %v2604_v37 = vsel %vm592_vm1, %v2446_v5, 0.0  ;;  %v2326_v5 = vmul.f32 0.015625, %v2246_v24 }
 0x414   :  { %2581 = vadd.xlane.f32.xlu1 %v2580_v56  ;;  %2584 = vadd.xlane.f32.xlu0 %v2583_v55  ;;  %v2586_v56 = vsel %vm592_vm1, %v2440_v42, 0.0  ;;  %v2443_v55 = vmul.f32 %v6693_v18, %v6693_v18  ;;  %v2320_v42 = vmul.f32 0.015625, %v2228_v11  ;;  %v7903_v11 = vld [vmem:[#allocation29_spill] sm:$0xff] }
 0x415   :  { %v7904_v32 = vmax.f32 %v7903_v11, 0.0  ;;  %v7907_v11 = vld [vmem:[#allocation31_spill] sm:$0xff] }
 0x416   :  { %v2595_v18 = vsel %vm592_vm1, %v2443_v55, 0.0  ;;  %v7908_v41 = vmax.f32 %v7907_v11, 0.0  ;;  %v7912_v11 = vld [vmem:[#allocation33_spill] sm:$0xff] }
 0x417   :  { %v6736_v55 = vsub.f32 %v7904_v32, %v2320_v42  ;;  %v2449_v42 = vmul.f32 %v6729_v36, %v6729_v36 }
 0x418   :  { %2587 = vadd.xlane.f32.xlu1 %v2586_v56  ;;  %2590 = vadd.xlane.f32.xlu0 %v2589_v3  ;;  %v2444_v3 = vmul.f32 %v6708_v58, %v6708_v58  ;;  %v2240_v56 = vpop.xlane.xlu1 %2239  ;;  %v6750_v32 = vsub.f32 %v7908_v41, %v2323_v63 }
 0x41a   :  { %v2598_v58 = vsel %vm592_vm1, %v2444_v3, 0.0  ;;  %7909 = vst [vmem:[#allocation8_spill] sm:$0xff] %v6750_v32  ;;  %v2324_v3 = vmul.f32 0.015625, %v2240_v56  ;;  %v7913_v56 = vmax.f32 %v7912_v11, 0.0  ;;  %v7917_v11 = vld [vmem:[#allocation35_spill] sm:$0xff] }
 0x41c   :  { %2593 = vadd.xlane.f32.xlu1 %v2592_v27  ;;  %2596 = vadd.xlane.f32.xlu0 %v2595_v18  ;;  %v2447_v27 = vmul.f32 %v6722_v2, %v6722_v2  ;;  %v7905_v18 = vld [vmem:[#allocation28_spill] sm:$0xff]  ;;  %v2258_v49 = vpop.xlane.xlu1 %2257  ;;  %v6764_v41 = vsub.f32 %v7913_v56, %v2324_v3 }
 0x41d   :  { %v7906_v51 = vmax.f32 %v7905_v18, 0.0 }
 0x41e   :  { %v2607_v2 = vsel %vm592_vm1, %v2447_v27, 0.0 }
 0x41f   :  { %v6743_v12 = vsub.f32 %v7906_v51, %v2322_v20  ;;  %v7911_v20 = vmax.f32 %v7910_v1, 0.0  ;;  %v2613_v51 = vsel %vm592_vm1, %v2449_v42, 0.0  ;;  %v2329_v42 = vmul.f32 0.015625, %v2255_v53 }
 0x420   :  { %2599 = vadd.xlane.f32.xlu1 %v2598_v58  ;;  %2602 = vadd.xlane.f32.xlu0 %v2601_v46  ;;  %v2448_v46 = vmul.f32 %v6736_v55, %v6736_v55  ;;  %v2249_v58 = vpop.xlane.xlu0 %2248 }
 0x421   :  { %v6757_v18 = vsub.f32 %v7911_v20, %v2325_v33  ;;  %v2450_v63 = vmul.f32 %v6743_v12, %v6743_v12  ;;  %v2327_v27 = vmul.f32 0.015625, %v2249_v58  ;;  %v7914_v33 = vld [vmem:[#allocation32_spill] sm:$0xff]  ;;  %v7918_v58 = vmax.f32 %v7917_v11, 0.0 }
 0x422   :  { %v2610_v36 = vsel %vm592_vm1, %v2448_v46, 0.0  ;;  %v7915_v24 = vmax.f32 %v7914_v33, 0.0 }
 0x423   :  { %v2616_v20 = vsel %vm592_vm1, %v2450_v63, 0.0  ;;  %v2453_v3 = vmul.f32 %v6757_v18, %v6757_v18  ;;  %v6778_v56 = vsub.f32 %v7918_v58, %v2327_v27  ;;  %v7923_v27 = vld [vmem:[#allocation37_spill] sm:$0xff] }
 0x424   :  { %2605 = vadd.xlane.f32.xlu1 %v2604_v37  ;;  %2608 = vadd.xlane.f32.xlu0 %v2607_v2  ;;  %v2451_v2 = vmul.f32 %v6750_v32, %v6750_v32  ;;  %v2252_v37 = vpop.xlane.xlu1 %2251  ;;  %v6771_v1 = vsub.f32 %v7915_v24, %v2326_v5  ;;  %v7920_v5 = vld [vmem:[#allocation34_spill] sm:$0xff]  ;;  %v2330_v24 = vmul.f32 0.015625, %v2258_v49  ;;  %v7924_v11 = vmax.f32 %v7923_v27, 0.0 }
 0x425   :  { %7919 = vst [vmem:[#allocation14_spill] sm:$0xff] %v6778_v56  ;;  %v2328_v46 = vmul.f32 0.015625, %v2252_v37  ;;  %v2625_v63 = vsel %vm592_vm1, %v2453_v3, 0.0 }
 0x426   :  { %7916 = vst [vmem:[#allocation9_spill] sm:$0xff] %v6771_v1  ;;  %v2619_v32 = vsel %vm592_vm1, %v2451_v2, 0.0  ;;  %v2454_v33 = vmul.f32 %v6771_v1, %v6771_v1 }
 0x427   :  { %v6792_v37 = vsub.f32 %v7924_v11, %v2328_v46  ;;  %v7929_v11 = vmax.f32 %v6274_v40, 0.0 }
 0x428   :  { %2611 = vadd.xlane.f32.xlu1 %v2610_v36  ;;  %2614 = vadd.xlane.f32.xlu0 %v2613_v51  ;;  %v2452_v36 = vmul.f32 %v6764_v41, %v6764_v41  ;;  %v7921_v51 = vmax.f32 %v7920_v5, 0.0 }
 0x429   :  { %7925 = vst [vmem:[#allocation12_spill] sm:$0xff] %v6792_v37  ;;  %v2456_v49 = vmul.f32 %v6792_v37, %v6792_v37 }
 0x42a   :  { %v6785_v53 = vsub.f32 %v7921_v51, %v2329_v42  ;;  %v2622_v2 = vsel %vm592_vm1, %v2452_v36, 0.0  ;;  %v7926_v42 = vld [vmem:[#allocation36_spill] sm:$0xff] }
 0x42b   :  { %v7927_v58 = vmax.f32 %v7926_v42, 0.0  ;;  %v2634_v36 = vsel %vm592_vm1, %v2456_v49, 0.0  ;;  %v7931_v49 = vmax.f32 %v6294_v4, 0.0 }
 0x42c   :  { %2617 = vadd.xlane.f32.xlu1 %v2616_v20  ;;  %2620 = vadd.xlane.f32.xlu0 %v2619_v32  ;;  %7922 = vst [vmem:[#allocation15_spill] sm:$0xff] %v6785_v53  ;;  %v2455_v20 = vmul.f32 %v6778_v56, %v6778_v56  ;;  %v2628_v32 = vsel %vm592_vm1, %v2454_v33, 0.0  ;;  %v2457_v46 = vmul.f32 %v6785_v53, %v6785_v53 }
 0x42d   :  { %v6800_v3 = vsub.f32 %v7927_v58, %v2330_v24 }
 0x42e   :  { %v2631_v5 = vsel %vm592_vm1, %v2455_v20, 0.0  ;;  %v2637_v51 = vsel %vm592_vm1, %v2457_v46, 0.0 }
 0x42f   :  { %7928 = vst [vmem:[#allocation13_spill] sm:$0xff] %v6800_v3 }
 0x430   :  { %2623 = vadd.xlane.f32.xlu1 %v2622_v2  ;;  %2626 = vadd.xlane.f32.xlu0 %v2625_v63  ;;  %v2458_v63 = vmul.f32 %v6800_v3, %v6800_v3 }
 0x432   :  { %v2640_v33 = vsel %vm592_vm1, %v2458_v63, 0.0 }
 0x434   :  { %2629 = vadd.xlane.f32.xlu1 %v2628_v32  ;;  %2632 = vadd.xlane.f32.xlu0 %v2631_v5 }
 0x438   :  { %2635 = vadd.xlane.f32.xlu1 %v2634_v36  ;;  %2638 = vadd.xlane.f32.xlu0 %v2637_v51 }
 0x43c   :  { %2641 = vadd.xlane.f32.xlu1 %v2640_v33 }
 0x445   :  { %v2261_v24 = vpop.xlane.xlu0 %2260 }
 0x446   :  { %v2331_v27 = vmul.f32 0.015625, %v2261_v24 }
 0x448   :  { %v6814_v2 = vsub.f32 %v7929_v11, %v2331_v27 }
 0x449   :  { %v2264_v20 = vpop.xlane.xlu1 %2263  ;;  %v2471_v32 = vpop.xlane.xlu0 %2470 }
 0x44a   :  { %7930 = vst [vmem:[#allocation18_spill] sm:$0xff] %v6814_v2  ;;  %v2332_v42 = vmul.f32 0.015625, %v2264_v20  ;;  %v2657_v58 = vmul.f32 0.015625, %v2471_v32  ;;  %v2459_v5 = vmul.f32 %v6814_v2, %v6814_v2 }
 0x44c   :  { %v6820_v46 = vsub.f32 %v7931_v49, %v2332_v42  ;;  %v2643_v36 = vsel %vm592_vm1, %v2459_v5, 0.0  ;;  %v2721_v51 = vadd.f32 1e-05, %v2657_v58 }
 0x44d   :  { %v2474_v63 = vpop.xlane.xlu1 %2473  ;;  %2644 = vadd.xlane.f32.xlu0 %v2643_v36  ;;  %v2465_v33 = vpop.xlane.xlu0 %2464 }
 0x44e   :  { %7932 = vst [vmem:[#allocation16_spill] sm:$0xff] %v6820_v46  ;;  %v2658_v40 = vmul.f32 0.015625, %v2474_v63  ;;  %v2655_v24 = vmul.f32 0.015625, %v2465_v33  ;;  %v2460_v27 = vmul.f32 %v6820_v46, %v6820_v46  ;;  %4138 = vrsqrt.f32 %v2721_v51 }
 0x450   :  { %v2722_v11 = vadd.f32 1e-05, %v2658_v40  ;;  %v2719_v20 = vadd.f32 1e-05, %v2655_v24  ;;  %v2646_v32 = vsel %vm592_vm1, %v2460_v27, 0.0 }
 0x451   :  { %2647 = vadd.xlane.f32.xlu1 %v2646_v32  ;;  %v2468_v4 = vpop.xlane.xlu1 %2467  ;;  %v2483_v42 = vpop.xlane.xlu0 %2482 }
 0x452   :  { %4140 = vrsqrt.f32 %v2722_v11  ;;  %v2656_v49 = vmul.f32 0.015625, %v2468_v4  ;;  %v2661_v5 = vmul.f32 0.015625, %v2483_v42  ;;  %v7933_v11 = vld [vmem:[#allocation2_spill] sm:$0xff] }
 0x453   :  { %4142 = vrsqrt.f32 %v2719_v20  ;;  %v2913_v4 = vsub.s32 4, %v7933_v11 }
 0x454   :  { %v2720_v58 = vadd.f32 1e-05, %v2656_v49  ;;  %v2725_v36 = vadd.f32 1e-05, %v2661_v5 }
 0x455   :  { %v2486_v2 = vpop.xlane.xlu1 %2485  ;;  %v2477_v63 = vpop.xlane.xlu0 %2476 }
 0x456   :  { %4144 = vrsqrt.f32 %v2720_v58  ;;  %v2662_v33 = vmul.f32 0.015625, %v2486_v2  ;;  %v2659_v3 = vmul.f32 0.015625, %v2477_v63 }
 0x457   :  { %4146 = vrsqrt.f32 %v2725_v36 }
 0x458   :  { %v2726_v46 = vadd.f32 1e-05, %v2662_v33  ;;  %v2723_v40 = vadd.f32 1e-05, %v2659_v3  ;;  %v4268_v3 = vld [vmem:[%s7400_s4] sm:$0x3f] }
 0x459   :  { %v2480_v24 = vpop.xlane.xlu1 %2479  ;;  %v2495_v27 = vpop.xlane.xlu0 %2494 }
 0x45a   :  { %4148 = vrsqrt.f32 %v2726_v46  ;;  %v2660_v51 = vmul.f32 0.015625, %v2480_v24  ;;  %v2665_v32 = vmul.f32 0.015625, %v2495_v27  ;;  %v6830_v46 = vrot.slane %v4268_v3, %v2913_v4  ;;  %v7934_v27 = vld [vmem:[#allocation38_spill] sm:$0xff] }
 0x45b   :  { %4150 = vrsqrt.f32 %v2723_v40  ;;  %v4139_v53 = vpop.eup %4138 }
 0x45c   :  { %v2724_v42 = vadd.f32 1e-05, %v2660_v51  ;;  %v2729_v20 = vadd.f32 1e-05, %v2665_v32  ;;  %v2849_v51 = vmul.f32 %v4139_v53, %v7934_v27 }
 0x45d   :  { %v2498_v49 = vpop.xlane.xlu1 %2497  ;;  %v2489_v5 = vpop.xlane.xlu0 %2488 }
 0x45e   :  { %4152 = vrsqrt.f32 %v2724_v42  ;;  %v2666_v58 = vmul.f32 0.015625, %v2498_v49  ;;  %v2663_v2 = vmul.f32 0.015625, %v2489_v5  ;;  %v2981_v49 = vsub.s32 5, %v7933_v11 }
 0x45f   :  { %v4141_v63 = vpop.eup %4140  ;;  %4154 = vrsqrt.f32 %v2729_v20  ;;  %v2917_v20 = vmul.f32 %v6830_v46, %v2849_v51 }
 0x460   :  { %v4143_v33 = vpop.eup %4142  ;;  %v2850_v36 = vmul.f32 %v4141_v63, %v6283_v34  ;;  %v2730_v40 = vadd.f32 1e-05, %v2666_v58  ;;  %v2727_v24 = vadd.f32 1e-05, %v2663_v2 }
 0x461   :  { %v2492_v32 = vpop.xlane.xlu1 %2491  ;;  %v2507_v37 = vpop.xlane.xlu0 %2506  ;;  %v2847_v42 = vmul.f32 %v4143_v33, %v6291_v62  ;;  %v6840_v62 = vrot.slane %v4268_v3, %v2981_v49 }
 0x462   :  { %4156 = vrsqrt.f32 %v2730_v40  ;;  %v2664_v5 = vmul.f32 0.015625, %v2492_v32  ;;  %v2669_v56 = vmul.f32 0.015625, %v2507_v37  ;;  %v2918_v4 = vmul.f32 %v6830_v46, %v2850_v36 }
 0x463   :  { %v4145_v1 = vpop.eup %4144  ;;  %4158 = vrsqrt.f32 %v2727_v24  ;;  %v2915_v34 = vmul.f32 %v6830_v46, %v2847_v42 }
 0x464   :  { %v2728_v58 = vadd.f32 1e-05, %v2664_v5  ;;  %v2733_v2 = vadd.f32 1e-05, %v2669_v56  ;;  %v2848_v53 = vmul.f32 %v4145_v1, %v6302_v59  ;;  %v4147_v11 = vpop.eup %4146  ;;  %v2986_v56 = vadd.f32 %v6840_v62, %v2918_v4 }
 0x465   :  { %v2510_v63 = vpop.xlane.xlu1 %2509  ;;  %v2501_v27 = vpop.xlane.xlu0 %2500  ;;  %v2983_v24 = vadd.f32 %v6840_v62, %v2915_v34  ;;  %v2985_v5 = vadd.f32 %v6840_v62, %v2917_v20 }
 0x466   :  { %4160 = vrsqrt.f32 %v2728_v58  ;;  %v2670_v33 = vmul.f32 0.015625, %v2510_v63  ;;  %v2667_v37 = vmul.f32 0.015625, %v2501_v27  ;;  %v2916_v40 = vmul.f32 %v6830_v46, %v2848_v53 }
 0x467   :  { %v4149_v36 = vpop.eup %4148  ;;  %4162 = vrsqrt.f32 %v2733_v2  ;;  %v2853_v53 = vmul.f32 %v4147_v11, %v6313_v23  ;;  %v3048_v27 = vpack.c.bf16 %v2986_v56, %v2985_v5 }
 0x468   :  { %v4151_v32 = vpop.eup %4150  ;;  %v2734_v59 = vadd.f32 1e-05, %v2670_v33  ;;  %v2731_v1 = vadd.f32 1e-05, %v2667_v37  ;;  %v2984_v51 = vadd.f32 %v6840_v62, %v2916_v40  ;;  %v2854_v3 = vmul.f32 %v4149_v36, %v6322_v31 }
 0x469   :  { %v2504_v42 = vpop.xlane.xlu1 %2503  ;;  %v2519_v49 = vpop.xlane.xlu0 %2518  ;;  %v2851_v58 = vmul.f32 %v4151_v32, %v6331_v17  ;;  %v2921_v11 = vmul.f32 %v6830_v46, %v2853_v53 }
 0x46a   :  { %4164 = vrsqrt.f32 %v2734_v59  ;;  %v2668_v2 = vmul.f32 0.015625, %v2504_v42  ;;  %v2673_v34 = vmul.f32 0.015625, %v2519_v49  ;;  %v3047_v63 = vpack.c.bf16 %v2984_v51, %v2983_v24 }
 0x46b   :  { %v4153_v4 = vpop.eup %4152  ;;  %4166 = vrsqrt.f32 %v2731_v1  ;;  %v2919_v33 = vmul.f32 %v6830_v46, %v2851_v58  ;;  %v2922_v37 = vmul.f32 %v6830_v46, %v2854_v3 }
 0x46c   :  { %v2732_v31 = vadd.f32 1e-05, %v2668_v2  ;;  %3932 = vmatprep.mubr.msk.bf16.mxu0 %vm592_vm1, %v3047_v63  ;;  %v2852_v20 = vmul.f32 %v4153_v4, %v6340_v44  ;;  %v2737_v40 = vadd.f32 1e-05, %v2673_v34  ;;  %v4155_v36 = vpop.eup %4154  ;;  %v2989_v2 = vadd.f32 %v6840_v62, %v2921_v11 }
 0x46d   :  { %v2522_v17 = vpop.xlane.xlu1 %2521  ;;  %3933 = vmatmul.mubr.msk.bf16.vlgmr.msra.gmra.mxu0 %vm592_vm1, %v3048_v27  ;;  %v2513_v23 = vpop.xlane.xlu0 %2512  ;;  %v2987_v1 = vadd.f32 %v6840_v62, %v2919_v33  ;;  %v2990_v51 = vadd.f32 %v6840_v62, %v2922_v37  ;;  %v2857_v63 = vmul.f32 %v4155_v36, %v6347_v48 }
 0x46e   :  { %4168 = vrsqrt.f32 %v2732_v31  ;;  %v2674_v24 = vmul.f32 0.015625, %v2522_v17  ;;  %v2671_v56 = vmul.f32 0.015625, %v2513_v23  ;;  %v2920_v32 = vmul.f32 %v6830_v46, %v2852_v20 }
 0x46f   :  { %v4157_v59 = vpop.eup %4156  ;;  %4170 = vrsqrt.f32 %v2737_v40  ;;  %v3050_v31 = vpack.c.bf16 %v2990_v51, %v2989_v2  ;;  %v2925_v36 = vmul.f32 %v6830_v46, %v2857_v63 }
 0x470   :  { %v4159_v3 = vpop.eup %4158  ;;  %v2738_v44 = vadd.f32 1e-05, %v2674_v24  ;;  %v2735_v42 = vadd.f32 1e-05, %v2671_v56  ;;  %v2988_v49 = vadd.f32 %v6840_v62, %v2920_v32  ;;  %v2858_v5 = vmul.f32 %v4157_v59, %v6356_v6 }
 0x471   :  { %v2516_v58 = vpop.xlane.xlu1 %2515  ;;  %v2531_v53 = vpop.xlane.xlu0 %2530  ;;  %v2855_v34 = vmul.f32 %v4159_v3, %v6366_v38  ;;  %v2993_v2 = vadd.f32 %v6840_v62, %v2925_v36 }
 0x472   :  { %4172 = vrsqrt.f32 %v2738_v44  ;;  %v2672_v4 = vmul.f32 0.015625, %v2516_v58  ;;  %v2677_v27 = vmul.f32 0.015625, %v2531_v53  ;;  %v3049_v33 = vpack.c.bf16 %v2988_v49, %v2987_v1 }
 0x473   :  { %v4161_v37 = vpop.eup %4160  ;;  %4174 = vrsqrt.f32 %v2735_v42  ;;  %v2923_v20 = vmul.f32 %v6830_v46, %v2855_v34  ;;  %v2926_v6 = vmul.f32 %v6830_v46, %v2858_v5 }
 0x474   :  { %v4163_v40 = vpop.eup %4162  ;;  %v2736_v17 = vadd.f32 1e-05, %v2672_v4  ;;  %3936 = vmatprep.mubr.msk.bf16.mxu0 %vm592_vm1, %v3049_v33  ;;  %v2856_v23 = vmul.f32 %v4161_v37, %v6374_v21  ;;  %v2741_v38 = vadd.f32 1e-05, %v2677_v27 }
 0x475   :  { %v2534_v11 = vpop.xlane.xlu1 %2533  ;;  %3937 = vmatmul.mubr.msk.bf16.gmra.mxu0 %vm592_vm1, %v3050_v31  ;;  %v2525_v48 = vpop.xlane.xlu0 %2524  ;;  %v2991_v1 = vadd.f32 %v6840_v62, %v2923_v20  ;;  %v2994_v51 = vadd.f32 %v6840_v62, %v2926_v6  ;;  %v2861_v3 = vmul.f32 %v4163_v40, %v6384_v29 }
 0x476   :  { %4176 = vrsqrt.f32 %v2736_v17  ;;  %v2678_v24 = vmul.f32 0.015625, %v2534_v11  ;;  %v2675_v56 = vmul.f32 0.015625, %v2525_v48  ;;  %v2924_v32 = vmul.f32 %v6830_v46, %v2856_v23 }
 0x477   :  { %v4165_v59 = vpop.eup %4164  ;;  %4178 = vrsqrt.f32 %v2741_v38  ;;  %v3052_v29 = vpack.c.bf16 %v2994_v51, %v2993_v2  ;;  %v2929_v37 = vmul.f32 %v6830_v46, %v2861_v3 }
 0x478   :  { %v4167_v21 = vpop.eup %4166  ;;  %v2742_v44 = vadd.f32 1e-05, %v2678_v24  ;;  %v2739_v42 = vadd.f32 1e-05, %v2675_v56  ;;  %v2992_v49 = vadd.f32 %v6840_v62, %v2924_v32  ;;  %v2862_v5 = vmul.f32 %v4165_v59, %v6395_v61 }
 0x479   :  { %v2528_v58 = vpop.xlane.xlu1 %2527  ;;  %v2267_v53 = vpop.xlane.xlu0 %2266  ;;  %v2859_v34 = vmul.f32 %v4167_v21, %v6402_v0  ;;  %v7935_v61 = vmax.f32 %v6494_v60, 0.0  ;;  %v2997_v56 = vadd.f32 %v6840_v62, %v2929_v37  ;;  %v7936_v59 = vmax.f32 %v6517_v26, 0.0 }
 0x47a   :  { %4180 = vrsqrt.f32 %v2742_v44  ;;  %v2676_v63 = vmul.f32 0.015625, %v2528_v58  ;;  %v2333_v4 = vmul.f32 0.015625, %v2267_v53  ;;  %v3051_v27 = vpack.c.bf16 %v2992_v49, %v2991_v1 }
 0x47b   :  { %v4169_v33 = vpop.eup %4168  ;;  %4182 = vrsqrt.f32 %v2739_v42  ;;  %v2930_v31 = vmul.f32 %v6830_v46, %v2862_v5  ;;  %v2927_v23 = vmul.f32 %v6830_v46, %v2859_v34 }
 0x47c   :  { %v2740_v20 = vadd.f32 1e-05, %v2676_v63  ;;  %v6882_v6 = vsub.f32 %v7935_v61, %v2333_v4  ;;  %3940 = vmatprep.mubr.msk.bf16.mxu0 %vm592_vm1, %v3051_v27  ;;  %v2860_v0 = vmul.f32 %v4169_v33, %v6412_v39  ;;  %v4171_v38 = vpop.eup %4170 }
 0x47d   :  { %v2270_v40 = vpop.xlane.xlu1 %2269  ;;  %3941 = vmatmul.mubr.msk.bf16.gmra.mxu0 %vm592_vm1, %v3052_v29  ;;  %v2537_v17 = vpop.xlane.xlu0 %2536  ;;  %v2998_v39 = vadd.f32 %v6840_v62, %v2930_v31  ;;  %v2995_v49 = vadd.f32 %v6840_v62, %v2927_v23  ;;  %v2865_v53 = vmul.f32 %v4171_v38, %v6422_v43 }
 0x47e   :  { %4184 = vrsqrt.f32 %v2740_v20  ;;  %v2334_v11 = vmul.f32 0.015625, %v2270_v40  ;;  %v2679_v48 = vmul.f32 0.015625, %v2537_v17  ;;  %v2461_v36 = vmul.f32 %v6882_v6, %v6882_v6 }
 0x47f   :  { %v4173_v60 = vpop.eup %4172  ;;  %v2928_v24 = vmul.f32 %v6830_v46, %v2860_v0  ;;  %v2933_v61 = vmul.f32 %v6830_v46, %v2865_v53 }
 0x480   :  { %v4175_v32 = vpop.eup %4174  ;;  %v6895_v1 = vsub.f32 %v7936_v59, %v2334_v11  ;;  %v2743_v51 = vadd.f32 1e-05, %v2679_v48  ;;  %v2649_v3 = vsel %vm592_vm1, %v2461_v36, 0.0  ;;  %v2866_v21 = vmul.f32 %v4173_v60, %v6432_v45 }
 0x481   :  { %v2540_v44 = vpop.xlane.xlu1 %2539  ;;  %2650 = vadd.xlane.f32.xlu0 %v2649_v3  ;;  %v2543_v42 = vpop.xlane.xlu0 %2542  ;;  %v2996_v5 = vadd.f32 %v6840_v62, %v2928_v24  ;;  %v2863_v58 = vmul.f32 %v4175_v32, %v6440_v10  ;;  %v3054_v45 = vpack.c.bf16 %v2998_v39, %v2997_v56  ;;  %v3001_v59 = vadd.f32 %v6840_v62, %v2933_v61 }
 0x482   :  { %4186 = vrsqrt.f32 %v2743_v51  ;;  %v2680_v26 = vmul.f32 0.015625, %v2540_v44  ;;  %v2681_v2 = vmul.f32 0.015625, %v2543_v42  ;;  %v2462_v34 = vmul.f32 %v6895_v1, %v6895_v1 }
 0x483   :  { %v4177_v63 = vpop.eup %4176  ;;  %v3053_v4 = vpack.c.bf16 %v2996_v5, %v2995_v49  ;;  %v2931_v27 = vmul.f32 %v6830_v46, %v2863_v58  ;;  %v2934_v33 = vmul.f32 %v6830_v46, %v2866_v21 }
 0x484   :  { %v2744_v29 = vadd.f32 1e-05, %v2680_v26  ;;  %v2745_v37 = vadd.f32 1e-05, %v2681_v2  ;;  %v2652_v31 = vsel %vm592_vm1, %v2462_v34, 0.0  ;;  %v2864_v10 = vmul.f32 %v4177_v63, %v6455_v7  ;;  %v4179_v0 = vpop.eup %4178 }
 0x485   :  { %3944 = vmatprep.mubr.msk.bf16.mxu0 %vm592_vm1, %v3053_v4  ;;  %2653 = vadd.xlane.f32.xlu1 %v2652_v31  ;;  %v2546_v43 = vpop.xlane.xlu1 %2545  ;;  %v2549_v20 = vpop.xlane.xlu0 %2548  ;;  %v2999_v11 = vadd.f32 %v6840_v62, %v2931_v27  ;;  %v3002_v7 = vadd.f32 %v6840_v62, %v2934_v33  ;;  %v2869_v3 = vmul.f32 %v4179_v0, %v6461_v15 }
 0x486   :  { %4188 = vrsqrt.f32 %v2744_v29  ;;  %v2682_v40 = vmul.f32 0.015625, %v2546_v43  ;;  %3945 = vmatmul.mubr.msk.bf16.gmra.mxu0 %vm592_vm1, %v3054_v45  ;;  %v2683_v17 = vmul.f32 0.015625, %v2549_v20  ;;  %v2932_v23 = vmul.f32 %v6830_v46, %v2864_v10 }
 0x487   :  { %v4181_v38 = vpop.eup %4180  ;;  %4190 = vrsqrt.f32 %v2745_v37  ;;  %v3056_v26 = vpack.c.bf16 %v3002_v7, %v3001_v59  ;;  %v2937_v15 = vmul.f32 %v6830_v46, %v2869_v3 }
 0x488   :  { %v4183_v48 = vpop.eup %4182  ;;  %v2746_v36 = vadd.f32 1e-05, %v2682_v40  ;;  %v2747_v60 = vadd.f32 1e-05, %v2683_v17  ;;  %v3000_v24 = vadd.f32 %v6840_v62, %v2932_v23  ;;  %v2870_v56 = vmul.f32 %v4181_v38, %v6474_v30 }
 0x489   :  { %v2552_v39 = vpop.xlane.xlu1 %2551  ;;  %v2555_v32 = vpop.xlane.xlu0 %2554  ;;  %v2867_v51 = vmul.f32 %v4183_v48, %v6483_v52  ;;  %v3005_v61 = vadd.f32 %v6840_v62, %v2937_v15 }
 0x48a   :  { %4192 = vrsqrt.f32 %v2746_v36  ;;  %v2684_v21 = vmul.f32 0.015625, %v2552_v39  ;;  %v2685_v44 = vmul.f32 0.015625, %v2555_v32  ;;  %v3055_v42 = vpack.c.bf16 %v3000_v24, %v2999_v11 }
 0x48b   :  { %v4185_v49 = vpop.eup %4184  ;;  %4194 = vrsqrt.f32 %v2747_v60  ;;  %v2935_v5 = vmul.f32 %v6830_v46, %v2867_v51  ;;  %v2938_v58 = vmul.f32 %v6830_v46, %v2870_v56 }
 0x48c   :  { %v2748_v53 = vadd.f32 1e-05, %v2684_v21  ;;  %v2749_v30 = vadd.f32 1e-05, %v2685_v44  ;;  %3948 = vmatprep.mubr.msk.bf16.mxu0 %vm592_vm1, %v3055_v42  ;;  %v2868_v2 = vmul.f32 %v4185_v49, %v6503_v9 }
 0x48d   :  { %v2558_v52 = vpop.xlane.xlu1 %2557  ;;  %v2561_v34 = vpop.xlane.xlu0 %2560  ;;  %v3003_v33 = vadd.f32 %v6840_v62, %v2935_v5  ;;  %v3006_v29 = vadd.f32 %v6840_v62, %v2938_v58 }
 0x48e   :  { %4196 = vrsqrt.f32 %v2748_v53  ;;  %v2686_v63 = vmul.f32 0.015625, %v2558_v52  ;;  %3949 = vmatmul.mubr.msk.bf16.gmra.mxu0 %vm592_vm1, %v3056_v26  ;;  %v2687_v4 = vmul.f32 0.015625, %v2561_v34  ;;  %v2936_v45 = vmul.f32 %v6830_v46, %v2868_v2 }
 0x48f   :  { %v4187_v27 = vpop.eup %4186  ;;  %4198 = vrsqrt.f32 %v2749_v30  ;;  %v3058_v36 = vpack.c.bf16 %v3006_v29, %v3005_v61 }
 0x490   :  { %v2750_v37 = vadd.f32 1e-05, %v2686_v63  ;;  %v2751_v31 = vadd.f32 1e-05, %v2687_v4  ;;  %v3004_v9 = vadd.f32 %v6840_v62, %v2936_v45  ;;  %v2871_v10 = vmul.f32 %v4187_v27, %v6523_v8 }
 0x491   :  { %v2564_v43 = vpop.xlane.xlu1 %2563  ;;  %v2567_v20 = vpop.xlane.xlu0 %2566 }
 0x492   :  { %4200 = vrsqrt.f32 %v2750_v37  ;;  %v2688_v0 = vmul.f32 0.015625, %v2564_v43  ;;  %v2689_v40 = vmul.f32 0.015625, %v2567_v20  ;;  %v3057_v17 = vpack.c.bf16 %v3004_v9, %v3003_v33 }
 0x493   :  { %v4189_v23 = vpop.eup %4188  ;;  %4202 = vrsqrt.f32 %v2751_v31  ;;  %v2939_v38 = vmul.f32 %v6830_v46, %v2871_v10 }
 0x494   :  { %v4191_v11 = vpop.eup %4190  ;;  %v2752_v7 = vadd.f32 1e-05, %v2688_v0  ;;  %v2753_v48 = vadd.f32 1e-05, %v2689_v40  ;;  %3952 = vmatprep.mubr.msk.bf16.mxu0 %vm592_vm1, %v3057_v17  ;;  %v2872_v8 = vmul.f32 %v4189_v23, %v6544_v19 }
 0x495   :  { %v2570_v60 = vpop.xlane.xlu1 %2569  ;;  %v2573_v24 = vpop.xlane.xlu0 %2572  ;;  %v2873_v56 = vmul.f32 %v4191_v11, %v6534_v22  ;;  %v3007_v3 = vadd.f32 %v6840_v62, %v2939_v38 }
 0x496   :  { %4204 = vrsqrt.f32 %v2752_v7  ;;  %v2690_v39 = vmul.f32 0.015625, %v2570_v60  ;;  %3953 = vmatmul.mubr.msk.bf16.gmra.mxu0 %vm592_vm1, %v3058_v36  ;;  %v2691_v32 = vmul.f32 0.015625, %v2573_v24  ;;  %v2940_v59 = vmul.f32 %v6830_v46, %v2872_v8 }
 0x497   :  { %v4193_v51 = vpop.eup %4192  ;;  %4206 = vrsqrt.f32 %v2753_v48  ;;  %v2941_v58 = vmul.f32 %v6830_v46, %v2873_v56 }
 0x498   :  { %v4195_v21 = vpop.eup %4194  ;;  %v2754_v44 = vadd.f32 1e-05, %v2690_v39  ;;  %v2755_v42 = vadd.f32 1e-05, %v2691_v32  ;;  %v3008_v19 = vadd.f32 %v6840_v62, %v2940_v59  ;;  %v2874_v49 = vmul.f32 %v4193_v51, %v6552_v28  ;;  %v7937_v59 = vld [vmem:[#allocation6_spill] sm:$0xff] }
 0x499   :  { %v2576_v5 = vpop.xlane.xlu1 %2575  ;;  %v2579_v22 = vpop.xlane.xlu0 %2578  ;;  %v2875_v53 = vmul.f32 %v4195_v21, %v6564_v54  ;;  %v3009_v54 = vadd.f32 %v6840_v62, %v2941_v58 }
 0x49a   :  { %4208 = vrsqrt.f32 %v2754_v44  ;;  %v2692_v30 = vmul.f32 0.015625, %v2576_v5  ;;  %v2693_v26 = vmul.f32 0.015625, %v2579_v22  ;;  %v3059_v2 = vpack.c.bf16 %v3008_v19, %v3007_v3 }
 0x49b   :  { %v4197_v52 = vpop.eup %4196  ;;  %4210 = vrsqrt.f32 %v2755_v42  ;;  %v2942_v34 = vmul.f32 %v6830_v46, %v2874_v49  ;;  %v2943_v15 = vmul.f32 %v6830_v46, %v2875_v53  ;;  %v7938_v42 = vld [vmem:[#allocation7_spill] sm:$0xff] }
 0x49c   :  { %v4199_v63 = vpop.eup %4198  ;;  %v2756_v4 = vadd.f32 1e-05, %v2692_v30  ;;  %v2757_v45 = vadd.f32 1e-05, %v2693_v26  ;;  %3956 = vmatprep.mubr.msk.bf16.mxu0 %vm592_vm1, %v3059_v2  ;;  %v2876_v28 = vmul.f32 %v4197_v52, %v6580_v47 }
 0x49d   :  { %v2582_v27 = vpop.xlane.xlu1 %2581  ;;  %v2585_v33 = vpop.xlane.xlu0 %2584  ;;  %v3010_v29 = vadd.f32 %v6840_v62, %v2942_v34  ;;  %v2877_v37 = vmul.f32 %v4199_v63, %v6572_v57  ;;  %v3011_v61 = vadd.f32 %v6840_v62, %v2943_v15  ;;  %v7939_v15 = vld [vmem:[#allocation39_spill] sm:$0xff] }
 0x49e   :  { %4212 = vrsqrt.f32 %v2756_v4  ;;  %v2694_v31 = vmul.f32 0.015625, %v2582_v27  ;;  %v2695_v9 = vmul.f32 0.015625, %v2585_v33  ;;  %v2944_v10 = vmul.f32 %v6830_v46, %v2876_v28 }
 0x49f   :  { %v4201_v43 = vpop.eup %4200  ;;  %4214 = vrsqrt.f32 %v2757_v45  ;;  %v3060_v20 = vpack.c.bf16 %v3010_v29, %v3009_v54  ;;  %v2945_v11 = vmul.f32 %v6830_v46, %v2877_v37 }
 0x4a0   :  { %v4203_v0 = vpop.eup %4202  ;;  %v2758_v47 = vadd.f32 1e-05, %v2694_v31  ;;  %v2759_v40 = vadd.f32 1e-05, %v2695_v9  ;;  %v3012_v17 = vadd.f32 %v6840_v62, %v2944_v10  ;;  %v2878_v23 = vmul.f32 %v4201_v43, %v6588_v25 }
 0x4a1   :  { %3957 = vmatmul.mubr.msk.bf16.gmra.mxu0 %vm592_vm1, %v3060_v20  ;;  %v2588_v57 = vpop.xlane.xlu1 %2587  ;;  %v2591_v38 = vpop.xlane.xlu0 %2590  ;;  %v2879_v7 = vmul.f32 %v4203_v0, %v6598_v13  ;;  %v3013_v13 = vadd.f32 %v6840_v62, %v2945_v11 }
 0x4a2   :  { %4216 = vrsqrt.f32 %v2758_v47  ;;  %v2696_v48 = vmul.f32 0.015625, %v2588_v57  ;;  %v2697_v36 = vmul.f32 0.015625, %v2591_v38  ;;  %v3061_v8 = vpack.c.bf16 %v3012_v17, %v3011_v61  ;;  %v7940_v61 = vld [vmem:[#allocation41_spill] sm:$0xff] }
 0x4a3   :  { %v4205_v60 = vpop.eup %4204  ;;  %4218 = vrsqrt.f32 %v2759_v40  ;;  %v2946_v24 = vmul.f32 %v6830_v46, %v2878_v23  ;;  %v2947_v56 = vmul.f32 %v6830_v46, %v2879_v7  ;;  %v7941_v23 = vld [vmem:[#allocation40_spill] sm:$0xff] }
 0x4a4   :  { %v4207_v39 = vpop.eup %4206  ;;  %v2760_v25 = vadd.f32 1e-05, %v2696_v48  ;;  %v2761_v32 = vadd.f32 1e-05, %v2697_v36  ;;  %3960 = vmatprep.mubr.msk.bf16.mxu0 %vm592_vm1, %v3061_v8  ;;  %v2880_v51 = vmul.f32 %v4205_v60, %v7937_v59 }
 0x4a5   :  { %v2594_v3 = vpop.xlane.xlu1 %2593  ;;  %v2597_v21 = vpop.xlane.xlu0 %2596  ;;  %v3014_v44 = vadd.f32 %v6840_v62, %v2946_v24  ;;  %v2881_v19 = vmul.f32 %v4207_v39, %v7938_v42  ;;  %v3015_v30 = vadd.f32 %v6840_v62, %v2947_v56 }
 0x4a6   :  { %4220 = vrsqrt.f32 %v2760_v25  ;;  %v2698_v49 = vmul.f32 0.015625, %v2594_v3  ;;  %v2699_v5 = vmul.f32 0.015625, %v2597_v21  ;;  %v2948_v22 = vmul.f32 %v6830_v46, %v2880_v51  ;;  %v7942_v3 = vld [vmem:[#allocation42_spill] sm:$0xff] }
 0x4a7   :  { %v4209_v58 = vpop.eup %4208  ;;  %4222 = vrsqrt.f32 %v2761_v32  ;;  %v3062_v53 = vpack.c.bf16 %v3014_v44, %v3013_v13  ;;  %v2949_v28 = vmul.f32 %v6830_v46, %v2881_v19 }
 0x4a8   :  { %v4211_v26 = vpop.eup %4210  ;;  %v2762_v2 = vadd.f32 1e-05, %v2698_v49  ;;  %v2763_v52 = vadd.f32 1e-05, %v2699_v5  ;;  %v3016_v34 = vadd.f32 %v6840_v62, %v2948_v22  ;;  %v2882_v63 = vmul.f32 %v4209_v58, %v7939_v15 }
 0x4a9   :  { %3961 = vmatmul.mubr.msk.bf16.gmra.mxu0 %vm592_vm1, %v3062_v53  ;;  %v2600_v4 = vpop.xlane.xlu1 %2599  ;;  %v2603_v45 = vpop.xlane.xlu0 %2602  ;;  %v2883_v27 = vmul.f32 %v4211_v26, %v6632_v14  ;;  %v3017_v14 = vadd.f32 %v6840_v62, %v2949_v28 }
 0x4aa   :  { %4224 = vrsqrt.f32 %v2762_v2  ;;  %v2700_v33 = vmul.f32 0.015625, %v2600_v4  ;;  %v2701_v54 = vmul.f32 0.015625, %v2603_v45  ;;  %v3063_v29 = vpack.c.bf16 %v3016_v34, %v3015_v30  ;;  %v7943_v34 = vld [vmem:[#allocation43_spill] sm:$0xff] }
 0x4ab   :  { %v4213_v37 = vpop.eup %4212  ;;  %4226 = vrsqrt.f32 %v2763_v52  ;;  %v2950_v31 = vmul.f32 %v6830_v46, %v2882_v63  ;;  %v2951_v9 = vmul.f32 %v6830_v46, %v2883_v27 }
 0x4ac   :  { %v4215_v10 = vpop.eup %4214  ;;  %v2764_v43 = vadd.f32 1e-05, %v2700_v33  ;;  %v2765_v20 = vadd.f32 1e-05, %v2701_v54  ;;  %3964 = vmatprep.mubr.msk.bf16.mxu0 %vm592_vm1, %v3063_v29  ;;  %v2884_v0 = vmul.f32 %v4213_v37, %v7940_v61  ;;  %v7945_v61 = vld [vmem:[#allocation5_spill] sm:$0xff] }
 0x4ad   :  { %v2606_v47 = vpop.xlane.xlu1 %2605  ;;  %v2609_v40 = vpop.xlane.xlu0 %2608  ;;  %v3018_v17 = vadd.f32 %v6840_v62, %v2950_v31  ;;  %v2885_v57 = vmul.f32 %v4215_v10, %v7941_v23  ;;  %v3019_v8 = vadd.f32 %v6840_v62, %v2951_v9  ;;  %v7944_v31 = vld [vmem:[#allocation44_spill] sm:$0xff] }
 0x4ae   :  { %4228 = vrsqrt.f32 %v2764_v43  ;;  %v2702_v38 = vmul.f32 0.015625, %v2606_v47  ;;  %v2703_v11 = vmul.f32 0.015625, %v2609_v40  ;;  %v2952_v7 = vmul.f32 %v6830_v46, %v2884_v0 }
 0x4af   :  { %v4217_v48 = vpop.eup %4216  ;;  %4230 = vrsqrt.f32 %v2765_v20  ;;  %v3064_v36 = vpack.c.bf16 %v3018_v17, %v3017_v14  ;;  %v2953_v51 = vmul.f32 %v6830_v46, %v2885_v57 }
 0x4b0   :  { %v4219_v60 = vpop.eup %4218  ;;  %v2766_v24 = vadd.f32 1e-05, %v2702_v38  ;;  %v2767_v56 = vadd.f32 1e-05, %v2703_v11  ;;  %v3020_v39 = vadd.f32 %v6840_v62, %v2952_v7  ;;  %v2886_v25 = vmul.f32 %v4217_v48, %v6655_v50  ;;  %v7946_v48 = vld [vmem:[#allocation4_spill] sm:$0xff] }
 0x4b1   :  { %3965 = vmatmul.mubr.msk.bf16.gmra.mxu0 %vm592_vm1, %v3064_v36  ;;  %v2612_v32 = vpop.xlane.xlu1 %2611  ;;  %v2615_v59 = vpop.xlane.xlu0 %2614  ;;  %v2887_v21 = vmul.f32 %v4219_v60, %v7942_v3  ;;  %v3021_v2 = vadd.f32 %v6840_v62, %v2953_v51 }
 0x4b2   :  { %4232 = vrsqrt.f32 %v2766_v24  ;;  %v2704_v13 = vmul.f32 0.015625, %v2612_v32  ;;  %v2705_v44 = vmul.f32 0.015625, %v2615_v59  ;;  %v3065_v42 = vpack.c.bf16 %v3020_v39, %v3019_v8  ;;  %v7947_v39 = vld [vmem:[#allocation3_spill] sm:$0xff] }
 0x4b3   :  { %v4221_v19 = vpop.eup %4220  ;;  %4234 = vrsqrt.f32 %v2767_v56  ;;  %v2954_v49 = vmul.f32 %v6830_v46, %v2886_v25  ;;  %v2955_v5 = vmul.f32 %v6830_v46, %v2887_v21 }
 0x4b4   :  { %v4223_v22 = vpop.eup %4222  ;;  %v2768_v50 = vadd.f32 1e-05, %v2704_v13  ;;  %v2769_v58 = vadd.f32 1e-05, %v2705_v44  ;;  %3968 = vmatprep.mubr.msk.bf16.mxu0 %vm592_vm1, %v3065_v42  ;;  %v2888_v53 = vmul.f32 %v4221_v19, %v6678_v16 }
 0x4b5   :  { %v2618_v30 = vpop.xlane.xlu1 %2617  ;;  %v2621_v26 = vpop.xlane.xlu0 %2620  ;;  %v3022_v52 = vadd.f32 %v6840_v62, %v2954_v49  ;;  %v2889_v15 = vmul.f32 %v4223_v22, %v7943_v34  ;;  %v3023_v33 = vadd.f32 %v6840_v62, %v2955_v5 }
 0x4b6   :  { %4236 = vrsqrt.f32 %v2768_v50  ;;  %v2706_v63 = vmul.f32 0.015625, %v2618_v30  ;;  %v2707_v4 = vmul.f32 0.015625, %v2621_v26  ;;  %v2956_v45 = vmul.f32 %v6830_v46, %v2888_v53  ;;  %v7948_v53 = vld [vmem:[#allocation10_spill] sm:$0xff] }
 0x4b7   :  { %v4225_v28 = vpop.eup %4224  ;;  %4238 = vrsqrt.f32 %v2769_v58  ;;  %v3066_v27 = vpack.c.bf16 %v3022_v52, %v3021_v2  ;;  %v2957_v20 = vmul.f32 %v6830_v46, %v2889_v15 }
 0x4b8   :  { %v4227_v54 = vpop.eup %4226  ;;  %v2770_v16 = vadd.f32 1e-05, %v2706_v63  ;;  %v2771_v29 = vadd.f32 1e-05, %v2707_v4  ;;  %v3024_v37 = vadd.f32 %v6840_v62, %v2956_v45  ;;  %v2890_v9 = vmul.f32 %v4225_v28, %v7944_v31 }
 0x4b9   :  { %3969 = vmatmul.mubr.msk.bf16.gmra.mxu0 %vm592_vm1, %v3066_v27  ;;  %v2624_v10 = vpop.xlane.xlu1 %2623  ;;  %v2627_v43 = vpop.xlane.xlu0 %2626  ;;  %v2891_v0 = vmul.f32 %v4227_v54, %v7945_v61  ;;  %v3025_v24 = vadd.f32 %v6840_v62, %v2957_v20 }
 0x4ba   :  { %4240 = vrsqrt.f32 %v2770_v16  ;;  %v2708_v47 = vmul.f32 0.015625, %v2624_v10  ;;  %v2709_v40 = vmul.f32 0.015625, %v2627_v43  ;;  %v3067_v14 = vpack.c.bf16 %v3024_v37, %v3023_v33  ;;  %v7949_v16 = vld [vmem:[#allocation11_spill] sm:$0xff] }
 0x4bb   :  { %v4229_v17 = vpop.eup %4228  ;;  %4242 = vrsqrt.f32 %v2771_v29  ;;  %v2958_v23 = vmul.f32 %v6830_v46, %v2890_v9  ;;  %v2959_v57 = vmul.f32 %v6830_v46, %v2891_v0 }
 0x4bc   :  { %v4231_v38 = vpop.eup %4230  ;;  %v2772_v11 = vadd.f32 1e-05, %v2708_v47  ;;  %v2773_v7 = vadd.f32 1e-05, %v2709_v40  ;;  %3972 = vmatprep.mubr.msk.bf16.mxu0 %vm592_vm1, %v3067_v14  ;;  %v2892_v36 = vmul.f32 %v4229_v17, %v7946_v48  ;;  %v7950_v40 = vld [vmem:[#allocation8_spill] sm:$0xff] }
 0x4bd   :  { %v2630_v8 = vpop.xlane.xlu1 %2629  ;;  %v2633_v60 = vpop.xlane.xlu0 %2632  ;;  %v3026_v56 = vadd.f32 %v6840_v62, %v2958_v23  ;;  %v2893_v25 = vmul.f32 %v4231_v38, %v7947_v39  ;;  %v3027_v13 = vadd.f32 %v6840_v62, %v2959_v57 }
 0x4be   :  { %4244 = vrsqrt.f32 %v2772_v11  ;;  %v2710_v32 = vmul.f32 0.015625, %v2630_v8  ;;  %v2711_v59 = vmul.f32 0.015625, %v2633_v60  ;;  %v2960_v51 = vmul.f32 %v6830_v46, %v2892_v36 }
 0x4bf   :  { %v4233_v3 = vpop.eup %4232  ;;  %4246 = vrsqrt.f32 %v2773_v7  ;;  %v3068_v21 = vpack.c.bf16 %v3026_v56, %v3025_v24  ;;  %v2961_v58 = vmul.f32 %v6830_v46, %v2893_v25 }
 0x4c0   :  { %v4235_v44 = vpop.eup %4234  ;;  %v2774_v42 = vadd.f32 1e-05, %v2710_v32  ;;  %v2775_v19 = vadd.f32 1e-05, %v2711_v59  ;;  %v3028_v49 = vadd.f32 %v6840_v62, %v2960_v51  ;;  %v2894_v5 = vmul.f32 %v4233_v3, %v6715_v35  ;;  %v7951_v32 = vld [vmem:[#allocation9_spill] sm:$0xff] }
 0x4c1   :  { %3973 = vmatmul.mubr.msk.bf16.gmra.mxu0 %vm592_vm1, %v3068_v21  ;;  %v2636_v22 = vpop.xlane.xlu1 %2635  ;;  %v2639_v50 = vpop.xlane.xlu0 %2638  ;;  %v2895_v30 = vmul.f32 %v4235_v44, %v7948_v53  ;;  %v3029_v33 = vadd.f32 %v6840_v62, %v2961_v58 }
 0x4c2   :  { %4248 = vrsqrt.f32 %v2774_v42  ;;  %v2712_v26 = vmul.f32 0.015625, %v2636_v22  ;;  %v2713_v2 = vmul.f32 0.015625, %v2639_v50  ;;  %v3069_v52 = vpack.c.bf16 %v3028_v49, %v3027_v13  ;;  %v7953_v49 = vld [vmem:[#allocation12_spill] sm:$0xff]  ;;  %v7954_v50 = vld [vmem:[#allocation15_spill] sm:$0xff] }
 0x4c3   :  { %v4237_v34 = vpop.eup %4236  ;;  %4250 = vrsqrt.f32 %v2775_v19  ;;  %v2962_v15 = vmul.f32 %v6830_v46, %v2894_v5  ;;  %v2963_v63 = vmul.f32 %v6830_v46, %v2895_v30 }
 0x4c4   :  { %v4239_v4 = vpop.eup %4238  ;;  %v2776_v35 = vadd.f32 1e-05, %v2712_v26  ;;  %v2777_v45 = vadd.f32 1e-05, %v2713_v2  ;;  %3976 = vmatprep.mubr.msk.bf16.mxu0 %vm592_vm1, %v3069_v52  ;;  %v2896_v28 = vmul.f32 %v4237_v34, %v6736_v55 }
 0x4c5   :  { %v2642_v27 = vpop.xlane.xlu1 %2641  ;;  %v3030_v54 = vadd.f32 %v6840_v62, %v2962_v15  ;;  %v2897_v29 = vmul.f32 %v4239_v4, %v7949_v16  ;;  %v3031_v43 = vadd.f32 %v6840_v62, %v2963_v63  ;;  %v7955_v63 = vld [vmem:[#allocation13_spill] sm:$0xff] }
 0x4c6   :  { %4252 = vrsqrt.f32 %v2776_v35  ;;  %v2714_v37 = vmul.f32 0.015625, %v2642_v27  ;;  %v2964_v31 = vmul.f32 %v6830_v46, %v2896_v28 }
 0x4c7   :  { %v4241_v9 = vpop.eup %4240  ;;  %4254 = vrsqrt.f32 %v2777_v45  ;;  %v3070_v10 = vpack.c.bf16 %v3030_v54, %v3029_v33  ;;  %v2965_v47 = vmul.f32 %v6830_v46, %v2897_v29 }
 0x4c8   :  { %v4243_v20 = vpop.eup %4242  ;;  %v2778_v61 = vadd.f32 1e-05, %v2714_v37  ;;  %v3032_v55 = vadd.f32 %v6840_v62, %v2964_v31  ;;  %v2898_v0 = vmul.f32 %v4241_v9, %v6743_v12 }
 0x4c9   :  { %3977 = vmatmul.mubr.msk.bf16.gmra.mxu0 %vm592_vm1, %v3070_v10  ;;  %v2899_v14 = vmul.f32 %v4243_v20, %v7950_v40  ;;  %v3033_v11 = vadd.f32 %v6840_v62, %v2965_v47  ;;  %v7956_v10 = vld [vmem:[#allocation18_spill] sm:$0xff] }
 0x4ca   :  { %4256 = vrsqrt.f32 %v2778_v61  ;;  %v3071_v17 = vpack.c.bf16 %v3032_v55, %v3031_v43  ;;  %v2966_v23 = vmul.f32 %v6830_v46, %v2898_v0  ;;  %v7957_v61 = vld [vmem:[#allocation16_spill] sm:$0xff] }
 0x4cb   :  { %v4245_v57 = vpop.eup %4244  ;;  %v2967_v48 = vmul.f32 %v6830_v46, %v2899_v14 }
 0x4cc   :  { %v4247_v38 = vpop.eup %4246  ;;  %3980 = vmatprep.mubr.msk.bf16.mxu0 %vm592_vm1, %v3071_v17  ;;  %v3034_v7 = vadd.f32 %v6840_v62, %v2966_v23  ;;  %v2900_v12 = vmul.f32 %v4245_v57, %v6764_v41  ;;  %v7952_v41 = vld [vmem:[#allocation14_spill] sm:$0xff] }
 0x4cd   :  { %v2901_v36 = vmul.f32 %v4247_v38, %v6757_v18  ;;  %v3035_v39 = vadd.f32 %v6840_v62, %v2967_v48 }
 0x4ce   :  { %v3072_v8 = vpack.c.bf16 %v3034_v7, %v3033_v11  ;;  %v2968_v60 = vmul.f32 %v6830_v46, %v2900_v12 }
 0x4cf   :  { %v4249_v24 = vpop.eup %4248  ;;  %v2969_v51 = vmul.f32 %v6830_v46, %v2901_v36 }
 0x4d0   :  { %v4251_v56 = vpop.eup %4250  ;;  %v3036_v25 = vadd.f32 %v6840_v62, %v2968_v60  ;;  %v2902_v59 = vmul.f32 %v4249_v24, %v7951_v32 }
 0x4d1   :  { %3981 = vmatmul.mubr.msk.bf16.gmra.mxu0 %vm592_vm1, %v3072_v8  ;;  %v2903_v3 = vmul.f32 %v4251_v56, %v7952_v41  ;;  %v3037_v42 = vadd.f32 %v6840_v62, %v2969_v51 }
 0x4d2   :  { %v3073_v21 = vpack.c.bf16 %v3036_v25, %v3035_v39  ;;  %v2970_v18 = vmul.f32 %v6830_v46, %v2902_v59  ;;  %v7076_v59 = vld [vmem:[%s7403_s5] ss:$0 sm:$0xff] }
 0x4d3   :  { %v4253_v13 = vpop.eup %4252  ;;  %v2971_v22 = vmul.f32 %v6830_v46, %v2903_v3 }
 0x4d4   :  { %v4255_v44 = vpop.eup %4254  ;;  %3984 = vmatprep.mubr.msk.bf16.mxu0 %vm592_vm1, %v3073_v21  ;;  %v3038_v19 = vadd.f32 %v6840_v62, %v2970_v18  ;;  %v2904_v5 = vmul.f32 %v4253_v13, %v7953_v49 }
 0x4d5   :  { %v2905_v58 = vmul.f32 %v4255_v44, %v7954_v50  ;;  %v3039_v34 = vadd.f32 %v6840_v62, %v2971_v22 }
 0x4d6   :  { %v2645_v53 = vpop.xlane.xlu0 %2644  ;;  %v3074_v30 = vpack.c.bf16 %v3038_v19, %v3037_v42  ;;  %v2972_v26 = vmul.f32 %v6830_v46, %v2904_v5 }
 0x4d7   :  { %v4257_v2 = vpop.eup %4256  ;;  %v2715_v52 = vmul.f32 0.015625, %v2645_v53  ;;  %v2973_v35 = vmul.f32 %v6830_v46, %v2905_v58 }
 0x4d8   :  { %v3040_v15 = vadd.f32 %v6840_v62, %v2972_v26  ;;  %v2906_v4 = vmul.f32 %v4257_v2, %v7955_v63 }
 0x4d9   :  { %v2779_v45 = vadd.f32 1e-05, %v2715_v52  ;;  %3985 = vmatmul.mubr.msk.bf16.gmra.mxu0 %vm592_vm1, %v3074_v30  ;;  %v3041_v16 = vadd.f32 %v6840_v62, %v2973_v35 }
 0x4da   :  { %v2648_v28 = vpop.xlane.xlu1 %2647  ;;  %v3075_v27 = vpack.c.bf16 %v3040_v15, %v3039_v34  ;;  %v2974_v33 = vmul.f32 %v6830_v46, %v2906_v4 }
 0x4db   :  { %4258 = vrsqrt.f32 %v2779_v45  ;;  %v2716_v54 = vmul.f32 0.015625, %v2648_v28 }
 0x4dc   :  { %3988 = vmatprep.mubr.msk.bf16.mxu0 %vm592_vm1, %v3075_v27  ;;  %v3042_v29 = vadd.f32 %v6840_v62, %v2974_v33 }
 0x4dd   :  { %v2780_v37 = vadd.f32 1e-05, %v2716_v54 }
 0x4de   :  { %v3076_v31 = vpack.c.bf16 %v3042_v29, %v3041_v16 }
 0x4df   :  { %4260 = vrsqrt.f32 %v2780_v37 }
 0x4e1   :  { %3989 = vmatmul.mubr.msk.bf16.gmra.mxu0 %vm592_vm1, %v3076_v31 }
 0x4e8   :  { %v4259_v9 = vpop.eup %4258 }
 0x4e9   :  { %v2907_v43 = vmul.f32 %v4259_v9, %v7956_v10 }
 0x4eb   :  { %v2975_v0 = vmul.f32 %v6830_v46, %v2907_v43 }
 0x4ec   :  { %v4261_v20 = vpop.eup %4260 }
 0x4ed   :  { %v2908_v55 = vmul.f32 %v4261_v20, %v7957_v61  ;;  %v3043_v40 = vadd.f32 %v6840_v62, %v2975_v0 }
 0x4ef   :  { %v2976_v47 = vmul.f32 %v6830_v46, %v2908_v55 }
 0x4f1   :  { %v3044_v14 = vadd.f32 %v6840_v62, %v2976_v47 }
 0x4f3   :  { %v3077_v17 = vpack.c.bf16 %v3044_v14, %v3043_v40 }
 0x4f5   :  { %3992 = vmatprep.mubr.msk.bf16.mxu0 %vm592_vm1, %v3077_v17 }
 0x50a   :  { %v2651_v23 = vpop.xlane.xlu0 %2650 }
 0x50b   :  { %v2717_v57 = vmul.f32 0.015625, %v2651_v23 }
 0x50d   :  { %v2781_v38 = vadd.f32 1e-05, %v2717_v57 }
 0x50e   :  { %v2654_v11 = vpop.xlane.xlu1 %2653 }
 0x50f   :  { %4262 = vrsqrt.f32 %v2781_v38  ;;  %v2718_v7 = vmul.f32 0.015625, %v2654_v11 }
 0x511   :  { %v2782_v12 = vadd.f32 1e-05, %v2718_v7 }
 0x513   :  { %4264 = vrsqrt.f32 %v2782_v12 }
 0x51c   :  { %v4263_v48 = vpop.eup %4262 }
 0x51d   :  { %v2909_v36 = vmul.f32 %v4263_v48, %v6882_v6 }
 0x51f   :  { %v2977_v24 = vmul.f32 %v6830_v46, %v2909_v36 }
 0x520   :  { %v4265_v8 = vpop.eup %4264 }
 0x521   :  { %v2910_v60 = vmul.f32 %v4265_v8, %v6895_v1  ;;  %v3045_v39 = vadd.f32 %v6840_v62, %v2977_v24 }
 0x523   :  { %v2978_v56 = vmul.f32 %v6830_v46, %v2910_v60 }
 0x525   :  { %v3046_v25 = vadd.f32 %v6840_v62, %v2978_v56 }
 0x527   :  { %v3078_v32 = vpack.c.bf16 %v3046_v25, %v3045_v39 }
 0x529   :  { %3993 = vmatmul.mubr.msk.bf16.gmra.mxu0 %vm592_vm1, %v3078_v32 }
 0x52d   :  { %v3934_v6 = vpop.f32.mrf.mxu0 }
 0x52e   :  { %v3256_v1 = vadd.f32 %v3934_v6, %v7076_v59 }
 0x52f   :  { %v3247_v51 = vpop.f32.mrf.mxu0 }
 0x530   :  { %3505 = vst.msk [vmem:[%s7404_s6 + $0x10] sm:$0xff] %vm3502_vm2, %v3256_v1  ;;  %v3248_v46 = vadd.f32 %v7076_v59, %v3247_v51 }
 0x531   :  { %v3935_v62 = vpop.f32.mrf.mxu0 }
 0x532   :  { %3503 = vst.msk [vmem:[%s7404_s6] sm:$0xff] %vm3502_vm2, %v3248_v46  ;;  %v3259_v41 = vadd.f32 %v3935_v62, %v7076_v59 }
 0x533   :  { %v3250_v3 = vpop.f32.mrf.mxu0 }
 0x534   :  { %3506 = vst.msk [vmem:[%s7404_s6 + $0x18] sm:$0xff] %vm3502_vm2, %v3259_v41  ;;  %v3251_v21 = vadd.f32 %v7076_v59, %v3250_v3 }
 0x535   :  { %v3938_v18 = vpop.f32.mrf.mxu0 }
 0x536   :  { %3504 = vst.msk [vmem:[%s7404_s6 + $0x8] sm:$0xff] %vm3502_vm2, %v3251_v21  ;;  %v3272_v13 = vadd.f32 %v3938_v18, %v7076_v59 }
 0x537   :  { %v3263_v44 = vpop.f32.mrf.mxu0 }
 0x538   :  { %3509 = vst.msk [vmem:[%s7404_s6 + $0x30] sm:$0xff] %vm3502_vm2, %v3272_v13  ;;  %v3264_v42 = vadd.f32 %v7076_v59, %v3263_v44 }
 0x539   :  { %v3939_v19 = vpop.f32.mrf.mxu0 }
 0x53a   :  { %3507 = vst.msk [vmem:[%s7404_s6 + $0x20] sm:$0xff] %vm3502_vm2, %v3264_v42  ;;  %v3275_v49 = vadd.f32 %v3939_v19, %v7076_v59 }
 0x53b   :  { %v3266_v5 = vpop.f32.mrf.mxu0 }
 0x53c   :  { %3510 = vst.msk [vmem:[%s7404_s6 + $0x38] sm:$0xff] %vm3502_vm2, %v3275_v49  ;;  %v3267_v22 = vadd.f32 %v7076_v59, %v3266_v5 }
 0x53d   :  { %v3942_v50 = vpop.f32.mrf.mxu0 }
 0x53e   :  { %3508 = vst.msk [vmem:[%s7404_s6 + $0x28] sm:$0xff] %vm3502_vm2, %v3267_v22  ;;  %v3288_v58 = vadd.f32 %v3942_v50, %v7076_v59 }
 0x53f   :  { %v3279_v53 = vpop.f32.mrf.mxu0 }
 0x540   :  { %3513 = vst.msk [vmem:[%s7404_s6 + $0x50] sm:$0xff] %vm3502_vm2, %v3288_v58  ;;  %v3280_v30 = vadd.f32 %v7076_v59, %v3279_v53 }
 0x541   :  { %v3943_v26 = vpop.f32.mrf.mxu0 }
 0x542   :  { %3511 = vst.msk [vmem:[%s7404_s6 + $0x40] sm:$0xff] %vm3502_vm2, %v3280_v30  ;;  %v3291_v2 = vadd.f32 %v3943_v26, %v7076_v59 }
 0x543   :  { %v3282_v52 = vpop.f32.mrf.mxu0 }
 0x544   :  { %3514 = vst.msk [vmem:[%s7404_s6 + $0x58] sm:$0xff] %vm3502_vm2, %v3291_v2  ;;  %v3283_v34 = vadd.f32 %v7076_v59, %v3282_v52 }
 0x546   :  { %3512 = vst.msk [vmem:[%s7404_s6 + $0x48] sm:$0xff] %vm3502_vm2, %v3283_v34  ;;  %v3946_v15 = vpop.f32.mrf.mxu0 }
 0x547   :  { %v3304_v63 = vadd.f32 %v3946_v15, %v7076_v59 }
 0x548   :  { %v3295_v4 = vpop.f32.mrf.mxu0 }
 0x549   :  { %3517 = vst.msk [vmem:[%s7404_s6 + $0x70] sm:$0xff] %vm3502_vm2, %v3304_v63  ;;  %v3296_v35 = vadd.f32 %v7076_v59, %v3295_v4 }
 0x54a   :  { %v3947_v45 = vpop.f32.mrf.mxu0 }
 0x54b   :  { %3515 = vst.msk [vmem:[%s7404_s6 + $0x60] sm:$0xff] %vm3502_vm2, %v3296_v35  ;;  %v3307_v28 = vadd.f32 %v3947_v45, %v7076_v59 }
 0x54c   :  { %v3298_v27 = vpop.f32.mrf.mxu0 }
 0x54d   :  { %3518 = vst.msk [vmem:[%s7404_s6 + $0x78] sm:$0xff] %vm3502_vm2, %v3307_v28  ;;  %v3299_v33 = vadd.f32 %v7076_v59, %v3298_v27 }
 0x54e   :  { %v3950_v54 = vpop.f32.mrf.mxu0 }
 0x54f   :  { %3516 = vst.msk [vmem:[%s7404_s6 + $0x68] sm:$0xff] %vm3502_vm2, %v3299_v33  ;;  %v3320_v16 = vadd.f32 %v3950_v54, %v7076_v59 }
 0x550   :  { %v3311_v29 = vpop.f32.mrf.mxu0 }
 0x551   :  { %3521 = vst.msk [vmem:[%s7404_s6 + $0x90] sm:$0xff] %vm3502_vm2, %v3320_v16  ;;  %v3312_v37 = vadd.f32 %v7076_v59, %v3311_v29 }
 0x552   :  { %v3951_v31 = vpop.f32.mrf.mxu0 }
 0x553   :  { %3519 = vst.msk [vmem:[%s7404_s6 + $0x80] sm:$0xff] %vm3502_vm2, %v3312_v37  ;;  %v3323_v9 = vadd.f32 %v3951_v31, %v7076_v59 }
 0x554   :  { %v3314_v10 = vpop.f32.mrf.mxu0 }
 0x555   :  { %3522 = vst.msk [vmem:[%s7404_s6 + $0x98] sm:$0xff] %vm3502_vm2, %v3323_v9  ;;  %v3315_v43 = vadd.f32 %v7076_v59, %v3314_v10 }
 0x556   :  { %v3954_v20 = vpop.f32.mrf.mxu0 }
 0x557   :  { %3520 = vst.msk [vmem:[%s7404_s6 + $0x88] sm:$0xff] %vm3502_vm2, %v3315_v43  ;;  %v3336_v61 = vadd.f32 %v3954_v20, %v7076_v59 }
 0x558   :  { %v3327_v55 = vpop.f32.mrf.mxu0 }
 0x559   :  { %3525 = vst.msk [vmem:[%s7404_s6 + $0xb0] sm:$0xff] %vm3502_vm2, %v3336_v61  ;;  %v3328_v0 = vadd.f32 %v7076_v59, %v3327_v55 }
 0x55a   :  { %v3955_v47 = vpop.f32.mrf.mxu0 }
 0x55b   :  { %3523 = vst.msk [vmem:[%s7404_s6 + $0xa0] sm:$0xff] %vm3502_vm2, %v3328_v0  ;;  %v3339_v40 = vadd.f32 %v3955_v47, %v7076_v59 }
 0x55c   :  { %v3330_v14 = vpop.f32.mrf.mxu0 }
 0x55d   :  { %3526 = vst.msk [vmem:[%s7404_s6 + $0xb8] sm:$0xff] %vm3502_vm2, %v3339_v40  ;;  %v3331_v17 = vadd.f32 %v7076_v59, %v3330_v14 }
 0x55f   :  { %3524 = vst.msk [vmem:[%s7404_s6 + $0xa8] sm:$0xff] %vm3502_vm2, %v3331_v17 }
 0x561   :  { %v3958_v23 = vpop.f32.mrf.mxu0 }
 0x562   :  { %v3352_v57 = vadd.f32 %v3958_v23, %v7076_v59 }
 0x563   :  { %v3343_v38 = vpop.f32.mrf.mxu0 }
 0x564   :  { %3529 = vst.msk [vmem:[%s7404_s6 + $0xd0] sm:$0xff] %vm3502_vm2, %v3352_v57  ;;  %v3344_v11 = vadd.f32 %v7076_v59, %v3343_v38 }
 0x565   :  { %v3959_v7 = vpop.f32.mrf.mxu0 }
 0x566   :  { %3527 = vst.msk [vmem:[%s7404_s6 + $0xc0] sm:$0xff] %vm3502_vm2, %v3344_v11  ;;  %v3355_v12 = vadd.f32 %v3959_v7, %v7076_v59 }
 0x567   :  { %v3346_v48 = vpop.f32.mrf.mxu0 }
 0x568   :  { %3530 = vst.msk [vmem:[%s7404_s6 + $0xd8] sm:$0xff] %vm3502_vm2, %v3355_v12  ;;  %v3347_v36 = vadd.f32 %v7076_v59, %v3346_v48 }
 0x569   :  { %v3962_v8 = vpop.f32.mrf.mxu0 }
 0x56a   :  { %3528 = vst.msk [vmem:[%s7404_s6 + $0xc8] sm:$0xff] %vm3502_vm2, %v3347_v36  ;;  %v3368_v60 = vadd.f32 %v3962_v8, %v7076_v59 }
 0x56b   :  { %v3359_v24 = vpop.f32.mrf.mxu0 }
 0x56c   :  { %3533 = vst.msk [vmem:[%s7404_s6 + $0xf0] sm:$0xff] %vm3502_vm2, %v3368_v60  ;;  %v3360_v56 = vadd.f32 %v7076_v59, %v3359_v24 }
 0x56d   :  { %v3963_v39 = vpop.f32.mrf.mxu0 }
 0x56e   :  { %3531 = vst.msk [vmem:[%s7404_s6 + $0xe0] sm:$0xff] %vm3502_vm2, %v3360_v56  ;;  %v3371_v25 = vadd.f32 %v3963_v39, %v7076_v59 }
 0x56f   :  { %v3362_v32 = vpop.f32.mrf.mxu0 }
 0x570   :  { %3534 = vst.msk [vmem:[%s7404_s6 + $0xf8] sm:$0xff] %vm3502_vm2, %v3371_v25  ;;  %v3363_v6 = vadd.f32 %v7076_v59, %v3362_v32 }
 0x571   :  { %v3966_v1 = vpop.f32.mrf.mxu0 }
 0x572   :  { %3532 = vst.msk [vmem:[%s7404_s6 + $0xe8] sm:$0xff] %vm3502_vm2, %v3363_v6  ;;  %v3384_v51 = vadd.f32 %v3966_v1, %v7076_v59 }
 0x573   :  { %v3375_v46 = vpop.f32.mrf.mxu0 }
 0x574   :  { %3537 = vst.msk [vmem:[%s7404_s6 + $0x110] sm:$0xff] %vm3502_vm2, %v3384_v51  ;;  %v3376_v62 = vadd.f32 %v7076_v59, %v3375_v46 }
 0x575   :  { %v3967_v41 = vpop.f32.mrf.mxu0 }
 0x576   :  { %3535 = vst.msk [vmem:[%s7404_s6 + $0x100] sm:$0xff] %vm3502_vm2, %v3376_v62  ;;  %v3387_v3 = vadd.f32 %v3967_v41, %v7076_v59 }
 0x577   :  { %v3378_v21 = vpop.f32.mrf.mxu0 }
 0x578   :  { %3538 = vst.msk [vmem:[%s7404_s6 + $0x118] sm:$0xff] %vm3502_vm2, %v3387_v3  ;;  %v3379_v18 = vadd.f32 %v7076_v59, %v3378_v21 }
 0x579   :  { %v3970_v13 = vpop.f32.mrf.mxu0 }
 0x57a   :  { %3536 = vst.msk [vmem:[%s7404_s6 + $0x108] sm:$0xff] %vm3502_vm2, %v3379_v18  ;;  %v3400_v44 = vadd.f32 %v3970_v13, %v7076_v59 }
 0x57b   :  { %v3391_v42 = vpop.f32.mrf.mxu0 }
 0x57c   :  { %3541 = vst.msk [vmem:[%s7404_s6 + $0x130] sm:$0xff] %vm3502_vm2, %v3400_v44  ;;  %v3392_v19 = vadd.f32 %v7076_v59, %v3391_v42 }
 0x57d   :  { %v3971_v49 = vpop.f32.mrf.mxu0 }
 0x57e   :  { %3539 = vst.msk [vmem:[%s7404_s6 + $0x120] sm:$0xff] %vm3502_vm2, %v3392_v19  ;;  %v3403_v5 = vadd.f32 %v3971_v49, %v7076_v59 }
 0x57f   :  { %v3394_v22 = vpop.f32.mrf.mxu0 }
 0x580   :  { %3542 = vst.msk [vmem:[%s7404_s6 + $0x138] sm:$0xff] %vm3502_vm2, %v3403_v5  ;;  %v3395_v50 = vadd.f32 %v7076_v59, %v3394_v22 }
 0x581   :  { %v3974_v58 = vpop.f32.mrf.mxu0 }
 0x582   :  { %3540 = vst.msk [vmem:[%s7404_s6 + $0x128] sm:$0xff] %vm3502_vm2, %v3395_v50  ;;  %v3416_v53 = vadd.f32 %v3974_v58, %v7076_v59 }
 0x583   :  { %v3407_v30 = vpop.f32.mrf.mxu0 }
 0x584   :  { %3545 = vst.msk [vmem:[%s7404_s6 + $0x150] sm:$0xff] %vm3502_vm2, %v3416_v53  ;;  %v3408_v26 = vadd.f32 %v7076_v59, %v3407_v30 }
 0x585   :  { %v3975_v2 = vpop.f32.mrf.mxu0 }
 0x586   :  { %3543 = vst.msk [vmem:[%s7404_s6 + $0x140] sm:$0xff] %vm3502_vm2, %v3408_v26  ;;  %v3419_v52 = vadd.f32 %v3975_v2, %v7076_v59 }
 0x587   :  { %v3410_v34 = vpop.f32.mrf.mxu0 }
 0x588   :  { %3546 = vst.msk [vmem:[%s7404_s6 + $0x158] sm:$0xff] %vm3502_vm2, %v3419_v52  ;;  %v3411_v15 = vadd.f32 %v7076_v59, %v3410_v34 }
 0x589   :  { %v3978_v63 = vpop.f32.mrf.mxu0 }
 0x58a   :  { %3544 = vst.msk [vmem:[%s7404_s6 + $0x148] sm:$0xff] %vm3502_vm2, %v3411_v15  ;;  %v3432_v4 = vadd.f32 %v3978_v63, %v7076_v59 }
 0x58b   :  { %v3423_v35 = vpop.f32.mrf.mxu0 }
 0x58c   :  { %3549 = vst.msk [vmem:[%s7404_s6 + $0x170] sm:$0xff] %vm3502_vm2, %v3432_v4  ;;  %v3424_v45 = vadd.f32 %v7076_v59, %v3423_v35 }
 0x58d   :  { %v3979_v28 = vpop.f32.mrf.mxu0 }
 0x58e   :  { %3547 = vst.msk [vmem:[%s7404_s6 + $0x160] sm:$0xff] %vm3502_vm2, %v3424_v45  ;;  %v3435_v27 = vadd.f32 %v3979_v28, %v7076_v59 }
 0x58f   :  { %v3426_v33 = vpop.f32.mrf.mxu0 }
 0x590   :  { %3550 = vst.msk [vmem:[%s7404_s6 + $0x178] sm:$0xff] %vm3502_vm2, %v3435_v27  ;;  %v3427_v54 = vadd.f32 %v7076_v59, %v3426_v33 }
 0x591   :  { %v3982_v16 = vpop.f32.mrf.mxu0 }
 0x592   :  { %3548 = vst.msk [vmem:[%s7404_s6 + $0x168] sm:$0xff] %vm3502_vm2, %v3427_v54  ;;  %v3448_v29 = vadd.f32 %v3982_v16, %v7076_v59 }
 0x593   :  { %v3439_v37 = vpop.f32.mrf.mxu0 }
 0x594   :  { %3553 = vst.msk [vmem:[%s7404_s6 + $0x190] sm:$0xff] %vm3502_vm2, %v3448_v29  ;;  %v3440_v31 = vadd.f32 %v7076_v59, %v3439_v37 }
 0x595   :  { %v3983_v9 = vpop.f32.mrf.mxu0 }
 0x596   :  { %3551 = vst.msk [vmem:[%s7404_s6 + $0x180] sm:$0xff] %vm3502_vm2, %v3440_v31  ;;  %v3451_v10 = vadd.f32 %v3983_v9, %v7076_v59 }
 0x597   :  { %v3442_v43 = vpop.f32.mrf.mxu0 }
 0x598   :  { %3554 = vst.msk [vmem:[%s7404_s6 + $0x198] sm:$0xff] %vm3502_vm2, %v3451_v10  ;;  %v3443_v20 = vadd.f32 %v7076_v59, %v3442_v43 }
 0x599   :  { %v3986_v61 = vpop.f32.mrf.mxu0 }
 0x59a   :  { %3552 = vst.msk [vmem:[%s7404_s6 + $0x188] sm:$0xff] %vm3502_vm2, %v3443_v20  ;;  %v3464_v55 = vadd.f32 %v3986_v61, %v7076_v59 }
 0x59b   :  { %v3455_v0 = vpop.f32.mrf.mxu0 }
 0x59c   :  { %3557 = vst.msk [vmem:[%s7404_s6 + $0x1b0] sm:$0xff] %vm3502_vm2, %v3464_v55  ;;  %v3456_v47 = vadd.f32 %v7076_v59, %v3455_v0 }
 0x59d   :  { %v3987_v40 = vpop.f32.mrf.mxu0 }
 0x59e   :  { %3555 = vst.msk [vmem:[%s7404_s6 + $0x1a0] sm:$0xff] %vm3502_vm2, %v3456_v47  ;;  %v3467_v14 = vadd.f32 %v3987_v40, %v7076_v59 }
 0x59f   :  { %v3458_v17 = vpop.f32.mrf.mxu0 }
 0x5a0   :  { %3558 = vst.msk [vmem:[%s7404_s6 + $0x1b8] sm:$0xff] %vm3502_vm2, %v3467_v14  ;;  %v3459_v23 = vadd.f32 %v7076_v59, %v3458_v17 }
 0x5a1   :  { %v3990_v57 = vpop.f32.mrf.mxu0 }
 0x5a2   :  { %3556 = vst.msk [vmem:[%s7404_s6 + $0x1a8] sm:$0xff] %vm3502_vm2, %v3459_v23  ;;  %v3480_v38 = vadd.f32 %v3990_v57, %v7076_v59 }
 0x5a3   :  { %v3471_v11 = vpop.f32.mrf.mxu0 }
 0x5a4   :  { %3561 = vst.msk [vmem:[%s7404_s6 + $0x1d0] sm:$0xff] %vm3502_vm2, %v3480_v38  ;;  %v3472_v7 = vadd.f32 %v7076_v59, %v3471_v11 }
 0x5a5   :  { %v3991_v12 = vpop.f32.mrf.mxu0 }
 0x5a6   :  { %3559 = vst.msk [vmem:[%s7404_s6 + $0x1c0] sm:$0xff] %vm3502_vm2, %v3472_v7  ;;  %v3483_v48 = vadd.f32 %v3991_v12, %v7076_v59 }
 0x5a7   :  { %v3474_v36 = vpop.f32.mrf.mxu0 }
 0x5a8   :  { %3562 = vst.msk [vmem:[%s7404_s6 + $0x1d8] sm:$0xff] %vm3502_vm2, %v3483_v48  ;;  %v3475_v8 = vadd.f32 %v7076_v59, %v3474_v36 }
 0x5aa   :  { %3560 = vst.msk [vmem:[%s7404_s6 + $0x1c8] sm:$0xff] %vm3502_vm2, %v3475_v8 }
 0x5e9   :  { %v3994_v60 = vpop.f32.mrf.mxu0 }
 0x5ea   :  { %v3496_v24 = vadd.f32 %v3994_v60, %v7076_v59 }
 0x5eb   :  { %v3487_v56 = vpop.f32.mrf.mxu0 }
 0x5ec   :  { %3565 = vst.msk [vmem:[%s7404_s6 + $0x1f0] sm:$0xff] %vm3502_vm2, %v3496_v24  ;;  %v3488_v39 = vadd.f32 %v7076_v59, %v3487_v56 }
 0x5ed   :  { %v3995_v25 = vpop.f32.mrf.mxu0 }
 0x5ee   :  { %3563 = vst.msk [vmem:[%s7404_s6 + $0x1e0] sm:$0xff] %vm3502_vm2, %v3488_v39  ;;  %v3499_v32 = vadd.f32 %v3995_v25, %v7076_v59 }
 0x5ef   :  { %v3490_v6 = vpop.f32.mrf.mxu0 }
 0x5f0   :  { %3566 = vst.msk [vmem:[%s7404_s6 + $0x1f8] sm:$0xff] %vm3502_vm2, %v3499_v32  ;;  %v3491_v1 = vadd.f32 %v7076_v59, %v3490_v6 }
 0x5f2   :  { %3564 = vst.msk [vmem:[%s7404_s6 + $0x1e8] sm:$0xff] %vm3502_vm2, %v3491_v1 }

// kernel: tpu_custom_call.1
= control target key start
LH: loop header
LB: loop body
LE: loop exit
PB: predicated region body
PF: predicated region fallthrough
CT: control target
= control target key end

     0   :  { %vm142_vm0 = vcmask 261120   ;;  %vm592_vm1 = vcmask 523264   ;;  %vm3502_vm2 = vcmask 130048   ;;  %s7398_s1 = inlined_call_operand.vmem [shape: bf16[32,64], index: 1, kind: input, shape index: {}]   ;;  %s7399_s0 = inlined_call_operand.vmem [shape: f32[512,32], index: 0, kind: input, shape index: {}]   ;;  %s7400_s4 = inlined_call_operand.vmem [shape: f32[6,64], index: 4, kind: input, shape index: {}]   ;;  %s7401_s2 = inlined_call_operand.vmem [shape: bf16[64,64], index: 2, kind: input, shape index: {}]   ;;  %s7402_s3 = inlined_call_operand.vmem [shape: bf16[64,16], index: 3, kind: input, shape index: {}]   ;;  %s7403_s5 = inlined_call_operand.vmem [shape: f32[1,16], index: 5, kind: input, shape index: {}]   ;;  %s7404_s6 = inlined_call_operand.vmem [shape: f32[512,16], index: 6, kind: output, shape index: {}]  }
   0x1   :  { %v4000_v0 = vld [vmem:[%s7398_s1 + $0x8] sm:$0xff]   ;;  %v4001_v1 = vld [vmem:[%s7398_s1] sm:$0xff]   ;;  %v28_v7 = vld [vmem:[%s7399_s0 + $0x10] sm:$0xff] }
   0x2   :  { %3784 = vmatprep.subr.bf16.mxu0 %v4000_v0  ;;  %3996 = vmatprep.subr.bf16.mxu1 %v4000_v0  ;;  %v26_v2 = vld [vmem:[%s7399_s0] sm:$0xff]  ;;  %v27_v3 = vld [vmem:[%s7399_s0 + $0x8] sm:$0xff]  ;;  %v29_v8 = vld [vmem:[%s7399_s0 + $0x18] sm:$0xff] }
   0x3   :  { %v58_v4 = vld [vmem:[%s7399_s0 + $0x100] sm:$0xff]  ;;  %3785 = vmatpush3.bf16.msra.mxu0 %v4000_v0  ;;  %3998 = vmatpush3.bf16.msra.mxu1 %v4000_v0  ;;  %v90_v5 = vpack.c.bf16 %v27_v3, %v26_v2  ;;  %v59_v6 = vld [vmem:[%s7399_s0 + $0x108] sm:$0xff]  ;;  %v60_v10 = vld [vmem:[%s7399_s0 + $0x110] sm:$0xff]  ;;  %v91_v14 = vpack.c.bf16 %v29_v8, %v28_v7 }
   0x4   :  { %3786 = vmatprep.subr.bf16.mxu0 %v4001_v1  ;;  %3997 = vmatprep.subr.bf16.mxu1 %v4001_v1  ;;  %v106_v9 = vpack.c.bf16 %v59_v6, %v58_v4  ;;  %v61_v11 = vld [vmem:[%s7399_s0 + $0x118] sm:$0xff]  ;;  %v30_v12 = vld [vmem:[%s7399_s0 + $0x20] sm:$0xff]  ;;  %v31_v13 = vld [vmem:[%s7399_s0 + $0x28] sm:$0xff] }
   0x5   :  { %3788 = vmatprep.mubr.msk.bf16.mxu0 %vm142_vm0, %v90_v5  ;;  %v107_v15 = vpack.c.bf16 %v61_v11, %v60_v10  ;;  %v62_v16 = vld [vmem:[%s7399_s0 + $0x120] sm:$0xff]  ;;  %v63_v17 = vld [vmem:[%s7399_s0 + $0x128] sm:$0xff]  ;;  %v92_v18 = vpack.c.bf16 %v31_v13, %v30_v12  ;;  %v32_v20 = vld [vmem:[%s7399_s0 + $0x30] sm:$0xff] }
   0x6   :  { %3820 = vmatprep.mubr.msk.bf16.mxu1 %vm142_vm0, %v106_v9  ;;  %v108_v19 = vpack.c.bf16 %v63_v17, %v62_v16  ;;  %v33_v21 = vld [vmem:[%s7399_s0 + $0x38] sm:$0xff]  ;;  %v64_v22 = vld [vmem:[%s7399_s0 + $0x130] sm:$0xff]  ;;  %v34_v24 = vld [vmem:[%s7399_s0 + $0x40] sm:$0xff] }
   0x7   :  { %3787 = vmatpush3.bf16.msra.mxu0 %v4001_v1  ;;  %3999 = vmatpush3.bf16.msra.mxu1 %v4001_v1  ;;  %v65_v23 = vld [vmem:[%s7399_s0 + $0x138] sm:$0xff]  ;;  %v35_v25 = vld [vmem:[%s7399_s0 + $0x48] sm:$0xff]  ;;  %v66_v26 = vld [vmem:[%s7399_s0 + $0x140] sm:$0xff]  ;;  %v93_v28 = vpack.c.bf16 %v33_v21, %v32_v20 }
   0x8   :  { %v67_v27 = vld [vmem:[%s7399_s0 + $0x148] sm:$0xff]  ;;  %v109_v29 = vpack.c.bf16 %v65_v23, %v64_v22  ;;  %v94_v30 = vpack.c.bf16 %v35_v25, %v34_v24  ;;  %v36_v32 = vld [vmem:[%s7399_s0 + $0x50] sm:$0xff]  ;;  %v37_v33 = vld [vmem:[%s7399_s0 + $0x58] sm:$0xff] }
   0x9   :  { %v110_v31 = vpack.c.bf16 %v67_v27, %v66_v26  ;;  %v68_v34 = vld [vmem:[%s7399_s0 + $0x150] sm:$0xff]  ;;  %v69_v35 = vld [vmem:[%s7399_s0 + $0x158] sm:$0xff]  ;;  %v38_v36 = vld [vmem:[%s7399_s0 + $0x60] sm:$0xff]  ;;  %v95_v40 = vpack.c.bf16 %v37_v33, %v36_v32 }
   0xa   :  { %3789 = vmatmul.mubr.msk.bf16.vlgmr.msra.gmra.mxu0 %vm142_vm0, %v91_v14  ;;  %3821 = vmatmul.mubr.msk.bf16.vlgmr.msra.gmra.mxu1 %vm142_vm0, %v107_v15  ;;  %v39_v37 = vld [vmem:[%s7399_s0 + $0x68] sm:$0xff]  ;;  %v70_v38 = vld [vmem:[%s7399_s0 + $0x160] sm:$0xff]  ;;  %v111_v41 = vpack.c.bf16 %v69_v35, %v68_v34  ;;  %v40_v44 = vld [vmem:[%s7399_s0 + $0x70] sm:$0xff]  ;;  %v126_v34 = vlaneseq }
   0xb   :  { %3792 = vmatprep.mubr.msk.bf16.mxu0 %vm142_vm0, %v92_v18  ;;  %3824 = vmatprep.mubr.msk.bf16.mxu1 %vm142_vm0, %v108_v19  ;;  %v71_v39 = vld [vmem:[%s7399_s0 + $0x168] sm:$0xff]  ;;  %v96_v42 = vpack.c.bf16 %v39_v37, %v38_v36  ;;  %v41_v45 = vld [vmem:[%s7399_s0 + $0x78] sm:$0xff]  ;;  %v72_v46 = vld [vmem:[%s7399_s0 + $0x170] sm:$0xff] }
   0xc   :  { %v112_v43 = vpack.c.bf16 %v71_v39, %v70_v38  ;;  %v73_v47 = vld [vmem:[%s7399_s0 + $0x178] sm:$0xff]  ;;  %v42_v48 = vld [vmem:[%s7399_s0 + $0x80] sm:$0xff]  ;;  %v43_v49 = vld [vmem:[%s7399_s0 + $0x88] sm:$0xff]  ;;  %v97_v52 = vpack.c.bf16 %v41_v45, %v40_v44  ;;  %v4534_v35 = vshrl.u32 %v126_v34, 7 }
   0xd   :  { %v74_v50 = vld [vmem:[%s7399_s0 + $0x180] sm:$0xff]  ;;  %v75_v51 = vld [vmem:[%s7399_s0 + $0x188] sm:$0xff]  ;;  %v113_v53 = vpack.c.bf16 %v73_v47, %v72_v46  ;;  %v98_v54 = vpack.c.bf16 %v43_v49, %v42_v48  ;;  %v44_v56 = vld [vmem:[%s7399_s0 + $0x90] sm:$0xff] }
   0xe   :  { %v114_v55 = vpack.c.bf16 %v75_v51, %v74_v50  ;;  %v45_v57 = vld [vmem:[%s7399_s0 + $0x98] sm:$0xff]  ;;  %v76_v58 = vld [vmem:[%s7399_s0 + $0x190] sm:$0xff]  ;;  %v46_v60 = vld [vmem:[%s7399_s0 + $0xa0] sm:$0xff]  ;;  %7616 = vst [vmem:[#allocation2_spill] sm:$0xff] %v4534_v35  ;;  %v128_v36 = vsub.s32 0, %v4534_v35 }
   0xf   :  { %v77_v59 = vld [vmem:[%s7399_s0 + $0x198] sm:$0xff]  ;;  %v47_v61 = vld [vmem:[%s7399_s0 + $0xa8] sm:$0xff]  ;;  %v78_v62 = vld [vmem:[%s7399_s0 + $0x1a0] sm:$0xff]  ;;  %v99_v0 = vpack.c.bf16 %v45_v57, %v44_v56 }
  0x10   :  { %v79_v63 = vld [vmem:[%s7399_s0 + $0x1a8] sm:$0xff]  ;;  %v115_v1 = vpack.c.bf16 %v77_v59, %v76_v58  ;;  %v100_v2 = vpack.c.bf16 %v47_v61, %v46_v60  ;;  %v48_v4 = vld [vmem:[%s7399_s0 + $0xb0] sm:$0xff]  ;;  %v49_v5 = vld [vmem:[%s7399_s0 + $0xb8] sm:$0xff] }
  0x11   :  { %v116_v3 = vpack.c.bf16 %v79_v63, %v78_v62  ;;  %v80_v6 = vld [vmem:[%s7399_s0 + $0x1b0] sm:$0xff]  ;;  %v81_v7 = vld [vmem:[%s7399_s0 + $0x1b8] sm:$0xff]  ;;  %v50_v8 = vld [vmem:[%s7399_s0 + $0xc0] sm:$0xff]  ;;  %v101_v12 = vpack.c.bf16 %v49_v5, %v48_v4 }
  0x12   :  { %3793 = vmatmul.mubr.msk.bf16.gmra.mxu0 %vm142_vm0, %v93_v28  ;;  %3825 = vmatmul.mubr.msk.bf16.gmra.mxu1 %vm142_vm0, %v109_v29  ;;  %v51_v9 = vld [vmem:[%s7399_s0 + $0xc8] sm:$0xff]  ;;  %v82_v10 = vld [vmem:[%s7399_s0 + $0x1c0] sm:$0xff]  ;;  %v117_v13 = vpack.c.bf16 %v81_v7, %v80_v6  ;;  %v52_v16 = vld [vmem:[%s7399_s0 + $0xd0] sm:$0xff] }
  0x13   :  { %3796 = vmatprep.mubr.msk.bf16.mxu0 %vm142_vm0, %v94_v30  ;;  %3828 = vmatprep.mubr.msk.bf16.mxu1 %vm142_vm0, %v110_v31  ;;  %v83_v11 = vld [vmem:[%s7399_s0 + $0x1c8] sm:$0xff]  ;;  %v102_v14 = vpack.c.bf16 %v51_v9, %v50_v8  ;;  %v53_v17 = vld [vmem:[%s7399_s0 + $0xd8] sm:$0xff]  ;;  %v54_v18 = vld [vmem:[%s7399_s0 + $0xe0] sm:$0xff] }
  0x14   :  { %v118_v15 = vpack.c.bf16 %v83_v11, %v82_v10  ;;  %v84_v19 = vld [vmem:[%s7399_s0 + $0x1d0] sm:$0xff]  ;;  %v85_v20 = vld [vmem:[%s7399_s0 + $0x1d8] sm:$0xff]  ;;  %v55_v21 = vld [vmem:[%s7399_s0 + $0xe8] sm:$0xff]  ;;  %v103_v24 = vpack.c.bf16 %v53_v17, %v52_v16 }
  0x15   :  { %v86_v22 = vld [vmem:[%s7399_s0 + $0x1e0] sm:$0xff]  ;;  %v87_v23 = vld [vmem:[%s7399_s0 + $0x1e8] sm:$0xff]  ;;  %v119_v25 = vpack.c.bf16 %v85_v20, %v84_v19  ;;  %v104_v26 = vpack.c.bf16 %v55_v21, %v54_v18  ;;  %v56_v28 = vld [vmem:[%s7399_s0 + $0xf0] sm:$0xff] }
  0x16   :  { %v120_v27 = vpack.c.bf16 %v87_v23, %v86_v22  ;;  %v57_v29 = vld [vmem:[%s7399_s0 + $0xf8] sm:$0xff]  ;;  %v88_v30 = vld [vmem:[%s7399_s0 + $0x1f0] sm:$0xff]  ;;  %v24_v37 = vld [vmem:[%s7400_s4] sm:$0x3f] }
  0x17   :  { %v89_v31 = vld [vmem:[%s7399_s0 + $0x1f8] sm:$0xff]  ;;  %v105_v32 = vpack.c.bf16 %v57_v29, %v56_v28  ;;  %v4540_v38 = vrot.slane %v24_v37, %v128_v36 }
  0x18   :  { %v121_v33 = vpack.c.bf16 %v89_v31, %v88_v30 }
  0x1a   :  { %3797 = vmatmul.mubr.msk.bf16.gmra.mxu0 %vm142_vm0, %v95_v40  ;;  %3829 = vmatmul.mubr.msk.bf16.gmra.mxu1 %vm142_vm0, %v111_v41 }
  0x1b   :  { %3800 = vmatprep.mubr.msk.bf16.mxu0 %vm142_vm0, %v96_v42  ;;  %3832 = vmatprep.mubr.msk.bf16.mxu1 %vm142_vm0, %v112_v43 }
  0x22   :  { %3801 = vmatmul.mubr.msk.bf16.gmra.mxu0 %vm142_vm0, %v97_v52  ;;  %3833 = vmatmul.mubr.msk.bf16.gmra.mxu1 %vm142_vm0, %v113_v53 }
  0x23   :  { %3804 = vmatprep.mubr.msk.bf16.mxu0 %vm142_vm0, %v98_v54  ;;  %3836 = vmatprep.mubr.msk.bf16.mxu1 %vm142_vm0, %v114_v55 }
  0x2a   :  { %3805 = vmatmul.mubr.msk.bf16.gmra.mxu0 %vm142_vm0, %v99_v0  ;;  %3837 = vmatmul.mubr.msk.bf16.gmra.mxu1 %vm142_vm0, %v115_v1 }
  0x2b   :  { %3808 = vmatprep.mubr.msk.bf16.mxu0 %vm142_vm0, %v100_v2  ;;  %3840 = vmatprep.mubr.msk.bf16.mxu1 %vm142_vm0, %v116_v3 }
  0x32   :  { %3809 = vmatmul.mubr.msk.bf16.gmra.mxu0 %vm142_vm0, %v101_v12  ;;  %3841 = vmatmul.mubr.msk.bf16.gmra.mxu1 %vm142_vm0, %v117_v13 }
  0x33   :  { %3812 = vmatprep.mubr.msk.bf16.mxu0 %vm142_vm0, %v102_v14  ;;  %3844 = vmatprep.mubr.msk.bf16.mxu1 %vm142_vm0, %v118_v15 }
  0x3a   :  { %3813 = vmatmul.mubr.msk.bf16.gmra.mxu0 %vm142_vm0, %v103_v24  ;;  %3845 = vmatmul.mubr.msk.bf16.gmra.mxu1 %vm142_vm0, %v119_v25 }
  0x3b   :  { %3816 = vmatprep.mubr.msk.bf16.mxu0 %vm142_vm0, %v104_v26  ;;  %3848 = vmatprep.mubr.msk.bf16.mxu1 %vm142_vm0, %v120_v27 }
  0x42   :  { %3817 = vmatmul.mubr.msk.bf16.gmra.mxu0 %vm142_vm0, %v105_v32  ;;  %3849 = vmatmul.mubr.msk.bf16.gmra.mxu1 %vm142_vm0, %v121_v33 }
  0xca   :  { %v3790_v39 = vpop.f32.mrf.mxu0  ;;  %v3822_v40 = vpop.f32.mrf.mxu1 }
  0xcb   :  { %v4543_v41 = vadd.f32 %v3790_v39, %v4540_v38  ;;  %v4546_v42 = vadd.f32 %v3822_v40, %v4540_v38 }
  0xcc   :  { %v273_v43 = vpop.f32.mrf.mxu0  ;;  %v401_v44 = vpop.f32.mrf.mxu1 }
  0xcd   :  { %v7431_v45 = vmax.f32 %v4543_v41, 0.0  ;;  %v7412_v46 = vmax.f32 %v4546_v42, 0.0  ;;  %v4551_v47 = vadd.f32 %v273_v43, %v4540_v38  ;;  %v4554_v50 = vadd.f32 %v401_v44, %v4540_v38 }
  0xce   :  { %v3791_v48 = vpop.f32.mrf.mxu0  ;;  %v3823_v49 = vpop.f32.mrf.mxu1 }
  0xcf   :  { %v4557_v51 = vadd.f32 %v3791_v48, %v4540_v38  ;;  %v4560_v52 = vadd.f32 %v3823_v49, %v4540_v38  ;;  %v7428_v53 = vmax.f32 %v4551_v47, 0.0  ;;  %v695_v54 = vsel %vm592_vm1, %v7412_v46, 0.0 }
  0xd0   :  { %v404_v55 = vpop.f32.mrf.mxu1  ;;  %v599_v56 = vsel %vm592_vm1, %v7431_v45, 0.0  ;;  %v276_v57 = vpop.f32.mrf.mxu0  ;;  %696 = vadd.xlane.f32.xlu0 %v695_v54  ;;  %v7414_v61 = vmax.f32 %v4554_v50, 0.0 }
  0xd1   :  { %v7429_v58 = vmax.f32 %v4557_v51, 0.0  ;;  %600 = vadd.xlane.f32.xlu1 %v599_v56  ;;  %v7410_v62 = vmax.f32 %v4560_v52, 0.0  ;;  %v4573_v63 = vadd.f32 %v404_v55, %v4540_v38  ;;  %v4576_v0 = vadd.f32 %v276_v57, %v4540_v38 }
  0xd2   :  { %v3794_v59 = vpop.f32.mrf.mxu0  ;;  %v3826_v60 = vpop.f32.mrf.mxu1  ;;  %v593_v3 = vsel %vm592_vm1, %v7428_v53, 0.0  ;;  %v689_v8 = vsel %vm592_vm1, %v7414_v61, 0.0 }
  0xd3   :  { %v602_v1 = vsel %vm592_vm1, %v7429_v58, 0.0  ;;  %v4585_v7 = vadd.f32 %v3794_v59, %v4540_v38  ;;  %v7413_v9 = vmax.f32 %v4573_v63, 0.0  ;;  %v7427_v10 = vmax.f32 %v4576_v0, 0.0 }
  0xd4   :  { %v289_v2 = vpop.f32.mrf.mxu0  ;;  %v417_v4 = vpop.f32.mrf.mxu1  ;;  %594 = vadd.xlane.f32.xlu0 %v593_v3  ;;  %v698_v12 = vsel %vm592_vm1, %v7410_v62, 0.0  ;;  %v4600_v17 = vadd.f32 %v3826_v60, %v4540_v38 }
  0xd5   :  { %603 = vadd.xlane.f32.xlu1 %v602_v1  ;;  %v7423_v16 = vmax.f32 %v4585_v7, 0.0  ;;  %v692_v21 = vsel %vm592_vm1, %v7413_v9, 0.0  ;;  %v596_v22 = vsel %vm592_vm1, %v7427_v10, 0.0  ;;  %v4614_v26 = vadd.f32 %v289_v2, %v4540_v38 }
  0xd6   :  { %v3795_v5 = vpop.f32.mrf.mxu0  ;;  %v3827_v6 = vpop.f32.mrf.mxu1  ;;  %v7405_v25 = vmax.f32 %v4600_v17, 0.0  ;;  %v4630_v36 = vadd.f32 %v417_v4, %v4540_v38 }
  0xd7   :  { %v4593_v11 = vadd.f32 %v3795_v5, %v4540_v38  ;;  %v4604_v20 = vadd.f32 %v3827_v6, %v4540_v38  ;;  %v611_v31 = vsel %vm592_vm1, %v7423_v16, 0.0  ;;  %v7420_v34 = vmax.f32 %v4614_v26, 0.0 }
  0xd8   :  { %v420_v13 = vpop.f32.mrf.mxu1  ;;  %v292_v14 = vpop.f32.mrf.mxu0  ;;  %690 = vadd.xlane.f32.xlu0 %v689_v8  ;;  %v707_v44 = vsel %vm592_vm1, %v7405_v25, 0.0  ;;  %v7407_v54 = vmax.f32 %v4630_v36, 0.0 }
  0xd9   :  { %699 = vadd.xlane.f32.xlu1 %v698_v12  ;;  %v7424_v19 = vmax.f32 %v4593_v11, 0.0  ;;  %v7406_v28 = vmax.f32 %v4604_v20, 0.0  ;;  %v4618_v29 = vadd.f32 %v292_v14, %v4540_v38  ;;  %v4634_v40 = vadd.f32 %v420_v13, %v4540_v38 }
  0xda   :  { %v3830_v15 = vpop.f32.mrf.mxu1  ;;  %v3798_v18 = vpop.f32.mrf.mxu0  ;;  %v605_v56 = vsel %vm592_vm1, %v7420_v34, 0.0  ;;  %v701_v6 = vsel %vm592_vm1, %v7407_v54, 0.0 }
  0xdb   :  { %v614_v30 = vsel %vm592_vm1, %v7424_v19, 0.0  ;;  %v7422_v39 = vmax.f32 %v4618_v29, 0.0  ;;  %v710_v43 = vsel %vm592_vm1, %v7406_v28, 0.0  ;;  %v7408_v57 = vmax.f32 %v4634_v40, 0.0 }
  0xdc   :  { %v433_v23 = vpop.f32.mrf.mxu1  ;;  %597 = vadd.xlane.f32.xlu0 %v596_v22  ;;  %v305_v27 = vpop.f32.mrf.mxu0  ;;  %v4650_v59 = vadd.f32 %v3798_v18, %v4540_v38  ;;  %v4663_v5 = vadd.f32 %v3830_v15, %v4540_v38 }
  0xdd   :  { %693 = vadd.xlane.f32.xlu1 %v692_v21  ;;  %v608_v1 = vsel %vm592_vm1, %v7422_v39, 0.0  ;;  %v704_v14 = vsel %vm592_vm1, %v7408_v57, 0.0  ;;  %v4681_v22 = vadd.f32 %v305_v27, %v4540_v38 }
  0xde   :  { %v3831_v24 = vpop.f32.mrf.mxu1  ;;  %v3799_v37 = vpop.f32.mrf.mxu0  ;;  %v7418_v8 = vmax.f32 %v4650_v59, 0.0 }
  0xdf   :  { %v4653_v60 = vadd.f32 %v3799_v37, %v4540_v38  ;;  %v4671_v13 = vadd.f32 %v3831_v24, %v4540_v38 }
  0xe0   :  { %v436_v32 = vpop.f32.mrf.mxu1  ;;  %612 = vadd.xlane.f32.xlu0 %v611_v31  ;;  %v308_v55 = vpop.f32.mrf.mxu0 }
  0xe1   :  { %615 = vadd.xlane.f32.xlu1 %v614_v30  ;;  %v7419_v12 = vmax.f32 %v4653_v60, 0.0  ;;  %v7411_v30 = vmax.f32 %v4663_v5, 0.0  ;;  %v4685_v31 = vadd.f32 %v308_v55, %v4540_v38  ;;  %v7409_v24 = vmax.f32 %v4671_v13, 0.0 }
  0xe2   :  { %v4626_v33 = vpop.f32.mrf.mxu1  ;;  %v3802_v3 = vpop.f32.mrf.mxu0  ;;  %v7415_v55 = vmax.f32 %v4681_v22, 0.0 }
  0xe3   :  { %v626_v37 = vsel %vm592_vm1, %v7419_v12, 0.0  ;;  %v722_v25 = vsel %vm592_vm1, %v7409_v24, 0.0  ;;  %v4722_v62 = vadd.f32 %v3802_v3, %v4540_v38  ;;  %v4736_v9 = vadd.f32 %v4626_v33, %v4540_v38 }
  0xe4   :  { %v4642_v48 = vpop.f32.mrf.mxu1  ;;  %708 = vadd.xlane.f32.xlu0 %v707_v44  ;;  %v321_v15 = vpop.f32.mrf.mxu0 }
  0xe5   :  { %711 = vadd.xlane.f32.xlu1 %v710_v43  ;;  %v623_v43 = vsel %vm592_vm1, %v7418_v8, 0.0  ;;  %7617 = vst [vmem:[#allocation3_spill] sm:$0xff] %v4736_v9  ;;  %v7426_v61 = vmax.f32 %v4722_v62, 0.0  ;;  %v7432_v8 = vmax.f32 %v4736_v9, 0.0 }
  0xe6   :  { %v3835_v49 = vpop.f32.mrf.mxu1  ;;  %v3803_v27 = vpop.f32.mrf.mxu0 }
  0xe8   :  { %v4658_v2 = vpop.f32.mrf.mxu1  ;;  %606 = vadd.xlane.f32.xlu0 %v605_v56  ;;  %v324_v28 = vpop.f32.mrf.mxu0 }
  0xe9   :  { %609 = vadd.xlane.f32.xlu1 %v608_v1  ;;  %v4700_v1 = vadd.f32 %v433_v23, %v4540_v38  ;;  %v4758_v34 = vadd.f32 %v324_v28, %v4540_v38  ;;  %v4772_v28 = vadd.f32 %v4642_v48, %v4540_v38 }
  0xea   :  { %v4660_v4 = vpop.f32.mrf.mxu1  ;;  %v3806_v57 = vpop.f32.mrf.mxu0 }
  0xeb   :  { %v7417_v54 = vmax.f32 %v4700_v1, 0.0  ;;  %7619 = vst [vmem:[#allocation5_spill] sm:$0xff] %v4772_v28  ;;  %v7435_v53 = vmax.f32 %v4772_v28, 0.0  ;;  %v4799_v45 = vadd.f32 %v3806_v57, %v4540_v38 }
  0xec   :  { %v4676_v18 = vpop.f32.mrf.mxu1  ;;  %702 = vadd.xlane.f32.xlu0 %v701_v6  ;;  %v7416_v6 = vmax.f32 %v4685_v31, 0.0 }
  0xed   :  { %705 = vadd.xlane.f32.xlu1 %v704_v14  ;;  %v4704_v14 = vadd.f32 %v436_v32, %v4540_v38  ;;  %v617_v32 = vsel %vm592_vm1, %v7415_v55, 0.0  ;;  %v713_v3 = vsel %vm592_vm1, %v7417_v54, 0.0  ;;  %v4754_v54 = vadd.f32 %v321_v15, %v4540_v38 }
  0xee   :  { %v4678_v21 = vpop.f32.mrf.mxu1  ;;  %v7626_v9 = vmax.f32 %v4799_v45, 0.0 }
  0xef   :  { %v7421_v24 = vmax.f32 %v4704_v14, 0.0  ;;  %v7433_v39 = vmax.f32 %v4754_v54, 0.0 }
  0xf0   :  { %v4694_v44 = vpop.f32.mrf.mxu1  ;;  %624 = vadd.xlane.f32.xlu0 %v623_v43 }
  0xf1   :  { %627 = vadd.xlane.f32.xlu1 %v626_v37  ;;  %v719_v37 = vsel %vm592_vm1, %v7411_v30, 0.0  ;;  %v4725_v30 = vadd.f32 %v3803_v27, %v4540_v38  ;;  %v337_v27 = vpop.f32.mrf.mxu0 }
  0xf2   :  { %v4696_v56 = vpop.f32.mrf.mxu1 }
  0xf3   :  { %v7425_v55 = vmax.f32 %v4725_v30, 0.0  ;;  %v3807_v12 = vpop.f32.mrf.mxu0 }
  0xf4   :  { %v4712_v43 = vpop.f32.mrf.mxu1  ;;  %720 = vadd.xlane.f32.xlu0 %v719_v37 }
  0xf5   :  { %723 = vadd.xlane.f32.xlu1 %v722_v25  ;;  %v620_v25 = vsel %vm592_vm1, %v7416_v6, 0.0  ;;  %v4744_v6 = vadd.f32 %v3835_v49, %v4540_v38  ;;  %v340_v16 = vpop.f32.mrf.mxu0 }
  0xf6   :  { %v4714_v23 = vpop.f32.mrf.mxu1  ;;  %v4828_v57 = vadd.f32 %v340_v16, %v4540_v38 }
  0xf7   :  { %7618 = vst [vmem:[#allocation4_spill] sm:$0xff] %v4744_v6  ;;  %v7430_v49 = vmax.f32 %v4744_v6, 0.0 }
  0xf8   :  { %v4730_v37 = vpop.f32.mrf.mxu1  ;;  %618 = vadd.xlane.f32.xlu0 %v617_v32  ;;  %v716_v32 = vsel %vm592_vm1, %v7421_v24, 0.0  ;;  %v638_v24 = vsel %vm592_vm1, %v7425_v55, 0.0  ;;  %v7434_v55 = vmax.f32 %v4758_v34, 0.0 }
  0xf9   :  { %621 = vadd.xlane.f32.xlu1 %v620_v25 }
  0xfa   :  { %v4732_v46 = vpop.f32.mrf.mxu1 }
  0xfc   :  { %v4749_v25 = vpop.f32.mrf.mxu1  ;;  %714 = vadd.xlane.f32.xlu0 %v713_v3  ;;  %v635_v3 = vsel %vm592_vm1, %v7426_v61, 0.0  ;;  %v4780_v61 = vadd.f32 %v4658_v2, %v4540_v38  ;;  %v629_v2 = vsel %vm592_vm1, %v7433_v39, 0.0  ;;  %v4809_v39 = vadd.f32 %v4660_v4, %v4540_v38 }
  0xfd   :  { %717 = vadd.xlane.f32.xlu1 %v716_v32 }
  0xfe   :  { %v4751_v33 = vpop.f32.mrf.mxu1  ;;  %7622 = vst [vmem:[#allocation8_spill] sm:$0xff] %v4809_v39 }
 0x100   :  { %v4767_v32 = vpop.f32.mrf.mxu1  ;;  %636 = vadd.xlane.f32.xlu0 %v635_v3  ;;  %v731_v3 = vsel %vm592_vm1, %v7432_v8, 0.0  ;;  %v4802_v8 = vadd.f32 %v3807_v12, %v4540_v38  ;;  %v4845_v12 = vadd.f32 %v4694_v44, %v4540_v38  ;;  %v4878_v44 = vadd.f32 %v4714_v23, %v4540_v38 }
 0x101   :  { %639 = vadd.xlane.f32.xlu1 %v638_v24  ;;  %v734_v24 = vsel %vm592_vm1, %v7430_v49, 0.0  ;;  %v4818_v49 = vadd.f32 %v4678_v21, %v4540_v38 }
 0x102   :  { %v3850_v15 = vpop.f32.mrf.mxu1  ;;  %v7625_v21 = vmax.f32 %v4802_v8, 0.0  ;;  %7628 = vst [vmem:[#allocation11_spill] sm:$0xff] %v4845_v12  ;;  %7633 = vst [vmem:[#allocation13_spill] sm:$0xff] %v4878_v44 }
 0x103   :  { %v4775_v19 = vadd.f32 %v3850_v15, %v4540_v38  ;;  %v3810_v15 = vpop.f32.mrf.mxu0  ;;  %7623 = vst [vmem:[#allocation9_spill] sm:$0xff] %v4818_v49 }
 0x104   :  { %v4788_v48 = vpop.f32.mrf.mxu1  ;;  %732 = vadd.xlane.f32.xlu0 %v731_v3  ;;  %v650_v35 = vsel %vm592_vm1, %v7625_v21, 0.0  ;;  %v7629_v21 = vmax.f32 %v4818_v49, 0.0  ;;  %v4859_v28 = vadd.f32 %v3810_v15, %v4540_v38 }
 0x105   :  { %7620 = vst [vmem:[#allocation6_spill] sm:$0xff] %v4775_v19  ;;  %735 = vadd.xlane.f32.xlu1 %v734_v24  ;;  %v632_v24 = vsel %vm592_vm1, %v7434_v55, 0.0  ;;  %v353_v3 = vpop.f32.mrf.mxu0  ;;  %v4824_v55 = vadd.f32 %v337_v27, %v4540_v38 }
 0x106   :  { %v3851_v10 = vpop.f32.mrf.mxu1 }
 0x107   :  { %v4795_v58 = vadd.f32 %v3851_v10, %v4540_v38  ;;  %v725_v10 = vsel %vm592_vm1, %v7435_v53, 0.0  ;;  %v3811_v4 = vpop.f32.mrf.mxu0  ;;  %v7442_v27 = vmax.f32 %v4824_v55, 0.0 }
 0x108   :  { %630 = vadd.xlane.f32.xlu0 %v629_v2 }
 0x109   :  { %7621 = vst [vmem:[#allocation7_spill] sm:$0xff] %v4795_v58  ;;  %633 = vadd.xlane.f32.xlu1 %v632_v24  ;;  %v7624_v24 = vmax.f32 %v4780_v61, 0.0  ;;  %v641_v53 = vsel %vm592_vm1, %v7442_v27, 0.0 }
 0x10b   :  { %v728_v2 = vsel %vm592_vm1, %v7624_v24, 0.0  ;;  %v647_v24 = vsel %vm592_vm1, %v7626_v9, 0.0  ;;  %v746_v9 = vsel %vm592_vm1, %v7629_v21, 0.0  ;;  %v4862_v21 = vadd.f32 %v3811_v4, %v4540_v38 }
 0x10c   :  { %726 = vadd.xlane.f32.xlu0 %v725_v10  ;;  %v356_v10 = vpop.f32.mrf.mxu0  ;;  %v7447_v4 = vmax.f32 %v4878_v44, 0.0 }
 0x10d   :  { %729 = vadd.xlane.f32.xlu1 %v728_v2  ;;  %v4840_v2 = vadd.f32 %v4676_v18, %v4540_v38  ;;  %v4888_v15 = vadd.f32 %v356_v10, %v4540_v38  ;;  %v7635_v23 = vmax.f32 %v4862_v21, 0.0 }
 0x10e   :  { %v3814_v16 = vpop.f32.mrf.mxu0 }
 0x10f   :  { %7627 = vst [vmem:[#allocation10_spill] sm:$0xff] %v4840_v2  ;;  %v7443_v18 = vmax.f32 %v4840_v2, 0.0  ;;  %v662_v49 = vsel %vm592_vm1, %v7635_v23, 0.0  ;;  %v7636_v2 = vmax.f32 %v4859_v28, 0.0  ;;  %v758_v23 = vsel %vm592_vm1, %v7447_v4, 0.0 }
 0x110   :  { %648 = vadd.xlane.f32.xlu0 %v647_v24  ;;  %v369_v6 = vpop.f32.mrf.mxu0  ;;  %v7640_v44 = vmax.f32 %v4888_v15, 0.0 }
 0x111   :  { %651 = vadd.xlane.f32.xlu1 %v650_v35  ;;  %v7630_v35 = vmax.f32 %v4809_v39, 0.0  ;;  %v7631_v39 = vmax.f32 %v4828_v57, 0.0 }
 0x112   :  { %v3815_v27 = vpop.f32.mrf.mxu0  ;;  %v656_v4 = vsel %vm592_vm1, %v7640_v44, 0.0 }
 0x113   :  { %v743_v24 = vsel %vm592_vm1, %v7630_v35, 0.0  ;;  %v4869_v35 = vadd.f32 %v4696_v56, %v4540_v38  ;;  %v4884_v56 = vadd.f32 %v353_v3, %v4540_v38 }
 0x114   :  { %744 = vadd.xlane.f32.xlu0 %v743_v24  ;;  %v737_v24 = vsel %vm592_vm1, %v7443_v18, 0.0  ;;  %v372_v18 = vpop.f32.mrf.mxu0 }
 0x115   :  { %747 = vadd.xlane.f32.xlu1 %v746_v9  ;;  %v644_v9 = vsel %vm592_vm1, %v7631_v39, 0.0  ;;  %7632 = vst [vmem:[#allocation12_spill] sm:$0xff] %v4869_v35  ;;  %v7634_v39 = vmax.f32 %v4845_v12, 0.0 }
 0x116   :  { %v3818_v10 = vpop.f32.mrf.mxu0 }
 0x118   :  { %642 = vadd.xlane.f32.xlu0 %v641_v53  ;;  %v740_v53 = vsel %vm592_vm1, %v7634_v39, 0.0  ;;  %v659_v39 = vsel %vm592_vm1, %v7636_v2, 0.0  ;;  %v385_v3 = vpop.f32.mrf.mxu0 }
 0x119   :  { %645 = vadd.xlane.f32.xlu1 %v644_v9  ;;  %v4905_v9 = vadd.f32 %v4730_v37, %v4540_v38 }
 0x11a   :  { %v3819_v37 = vpop.f32.mrf.mxu0 }
 0x11b   :  { %7638 = vst [vmem:[#allocation15_spill] sm:$0xff] %v4905_v9 }
 0x11c   :  { %738 = vadd.xlane.f32.xlu0 %v737_v24  ;;  %v4900_v24 = vadd.f32 %v4712_v43, %v4540_v38  ;;  %v4914_v43 = vadd.f32 %v3814_v16, %v4540_v38 }
 0x11d   :  { %741 = vadd.xlane.f32.xlu1 %v740_v53  ;;  %v7450_v53 = vmax.f32 %v4905_v9, 0.0 }
 0x11e   :  { %7637 = vst [vmem:[#allocation14_spill] sm:$0xff] %v4900_v24  ;;  %v7642_v12 = vmax.f32 %v4900_v24, 0.0  ;;  %v4953_v24 = vadd.f32 %v3819_v37, %v4540_v38 }
 0x11f   :  { %v752_v44 = vsel %vm592_vm1, %v7450_v53, 0.0 }
 0x120   :  { %660 = vadd.xlane.f32.xlu0 %v659_v39  ;;  %v4917_v39 = vadd.f32 %v3815_v27, %v4540_v38  ;;  %v7453_v27 = vmax.f32 %v4914_v43, 0.0 }
 0x121   :  { %663 = vadd.xlane.f32.xlu1 %v662_v49  ;;  %v7639_v49 = vmax.f32 %v4869_v35, 0.0  ;;  %v7641_v35 = vmax.f32 %v4884_v56, 0.0 }
 0x122   :  { %v7452_v16 = vmax.f32 %v4917_v39, 0.0  ;;  %v671_v53 = vsel %vm592_vm1, %v7453_v27, 0.0 }
 0x123   :  { %v755_v2 = vsel %vm592_vm1, %v7639_v49, 0.0  ;;  %v4928_v49 = vadd.f32 %v369_v6, %v4540_v38 }
 0x124   :  { %756 = vadd.xlane.f32.xlu0 %v755_v2  ;;  %v4933_v2 = vadd.f32 %v372_v18, %v4540_v38  ;;  %v674_v18 = vsel %vm592_vm1, %v7452_v16, 0.0  ;;  %v7456_v16 = vmax.f32 %v4953_v24, 0.0 }
 0x125   :  { %759 = vadd.xlane.f32.xlu1 %v758_v23  ;;  %v653_v23 = vsel %vm592_vm1, %v7641_v35, 0.0  ;;  %v749_v35 = vsel %vm592_vm1, %v7642_v12, 0.0  ;;  %v7454_v6 = vmax.f32 %v4928_v49, 0.0  ;;  %v388_v12 = vpop.f32.mrf.mxu0 }
 0x126   :  { %v4967_v37 = vadd.f32 %v388_v12, %v4540_v38 }
 0x128   :  { %654 = vadd.xlane.f32.xlu0 %v653_v23  ;;  %v7455_v23 = vmax.f32 %v4933_v2, 0.0 }
 0x129   :  { %657 = vadd.xlane.f32.xlu1 %v656_v4  ;;  %v4943_v4 = vadd.f32 %v3818_v10, %v4540_v38  ;;  %v665_v10 = vsel %vm592_vm1, %v7454_v6, 0.0  ;;  %v7459_v6 = vmax.f32 %v4967_v37, 0.0 }
 0x12a   :  { %v668_v27 = vsel %vm592_vm1, %v7455_v23, 0.0  ;;  %v686_v23 = vsel %vm592_vm1, %v7456_v16, 0.0 }
 0x12b   :  { %v680_v16 = vsel %vm592_vm1, %v7459_v6, 0.0 }
 0x12c   :  { %750 = vadd.xlane.f32.xlu0 %v749_v35  ;;  %v4960_v35 = vadd.f32 %v385_v3, %v4540_v38 }
 0x12d   :  { %753 = vadd.xlane.f32.xlu1 %v752_v44  ;;  %v7457_v44 = vmax.f32 %v4943_v4, 0.0 }
 0x12e   :  { %v7460_v3 = vmax.f32 %v4960_v35, 0.0 }
 0x130   :  { %672 = vadd.xlane.f32.xlu0 %v671_v53  ;;  %v4971_v53 = vadd.f32 %v4749_v25, %v4540_v38  ;;  %v4987_v25 = vadd.f32 %v4732_v46, %v4540_v38  ;;  %v516_v46 = vpop.f32.mrf.mxu1 }
 0x131   :  { %675 = vadd.xlane.f32.xlu1 %v674_v18  ;;  %v4975_v18 = vadd.f32 %v4767_v32, %v4540_v38  ;;  %v4991_v32 = vadd.f32 %v4751_v33, %v4540_v38 }
 0x132   :  { %7643 = vst [vmem:[#allocation16_spill] sm:$0xff] %v4987_v25  ;;  %v7463_v12 = vmax.f32 %v4971_v53, 0.0  ;;  %v7465_v9 = vmax.f32 %v4987_v25, 0.0 }
 0x133   :  { %v7462_v33 = vmax.f32 %v4991_v32, 0.0 }
 0x134   :  { %666 = vadd.xlane.f32.xlu0 %v665_v10  ;;  %v7461_v10 = vmax.f32 %v4975_v18, 0.0  ;;  %v761_v6 = vsel %vm592_vm1, %v7463_v12, 0.0  ;;  %v7646_v12 = vmax.f32 %v4543_v41, 0.0 }
 0x135   :  { %669 = vadd.xlane.f32.xlu1 %v668_v27  ;;  %v683_v27 = vsel %vm592_vm1, %v7457_v44, 0.0  ;;  %v677_v44 = vsel %vm592_vm1, %v7460_v3, 0.0  ;;  %v5014_v3 = vadd.f32 %v516_v46, %v4540_v38 }
 0x137   :  { %7645 = vst [vmem:[#allocation18_spill] sm:$0xff] %v5014_v3 }
 0x138   :  { %684 = vadd.xlane.f32.xlu0 %v683_v27  ;;  %v764_v27 = vsel %vm592_vm1, %v7461_v10, 0.0  ;;  %v767_v10 = vsel %vm592_vm1, %v7465_v9, 0.0 }
 0x139   :  { %687 = vadd.xlane.f32.xlu1 %v686_v23  ;;  %v5005_v23 = vadd.f32 %v4788_v48, %v4540_v38  ;;  %v770_v48 = vsel %vm592_vm1, %v7462_v33, 0.0 }
 0x13b   :  { %7644 = vst [vmem:[#allocation17_spill] sm:$0xff] %v5005_v23 }
 0x13c   :  { %678 = vadd.xlane.f32.xlu0 %v677_v44  ;;  %v7467_v44 = vmax.f32 %v5014_v3, 0.0 }
 0x13d   :  { %681 = vadd.xlane.f32.xlu1 %v680_v16  ;;  %v7469_v16 = vmax.f32 %v5005_v23, 0.0  ;;  %v7648_v23 = vmax.f32 %v4557_v51, 0.0 }
 0x13e   :  { %v776_v38 = vsel %vm592_vm1, %v7467_v44, 0.0 }
 0x140   :  { %762 = vadd.xlane.f32.xlu0 %v761_v6  ;;  %v773_v6 = vsel %vm592_vm1, %v7469_v16, 0.0 }
 0x141   :  { %765 = vadd.xlane.f32.xlu1 %v764_v27 }
 0x144   :  { %768 = vadd.xlane.f32.xlu0 %v767_v10 }
 0x145   :  { %771 = vadd.xlane.f32.xlu1 %v770_v48 }
 0x148   :  { %774 = vadd.xlane.f32.xlu0 %v773_v6 }
 0x149   :  { %777 = vadd.xlane.f32.xlu1 %v776_v38  ;;  %v7650_v38 = vmax.f32 %v4551_v47, 0.0 }
 0x159   :  { %v5030_v46 = vpop.xlane.xlu0 %696 }
 0x15a   :  { %v601_v27 = vpop.xlane.xlu1 %600 }
 0x15b   :  { %v788_v33 = vmul.f32 0.015625, %v601_v27 }
 0x15d   :  { %v5034_v25 = vsub.f32 %v7646_v12, %v788_v33  ;;  %v595_v10 = vpop.xlane.xlu0 %594 }
 0x15e   :  { %v604_v48 = vpop.xlane.xlu1 %603  ;;  %v786_v3 = vmul.f32 0.015625, %v595_v10 }
 0x15f   :  { %7647 = vst [vmem:[#allocation19_spill] sm:$0xff] %v5034_v25  ;;  %v789_v9 = vmul.f32 0.015625, %v604_v48  ;;  %v916_v44 = vmul.f32 %v5034_v25, %v5034_v25 }
 0x160   :  { %v5044_v6 = vsub.f32 %v7650_v38, %v786_v3 }
 0x161   :  { %v5040_v16 = vsub.f32 %v7648_v23, %v789_v9  ;;  %v984_v27 = vsel %vm592_vm1, %v916_v44, 0.0  ;;  %v5049_v12 = vpop.xlane.xlu0 %690  ;;  %v7652_v44 = vmax.f32 %v4576_v0, 0.0 }
 0x162   :  { %7651 = vst [vmem:[#allocation21_spill] sm:$0xff] %v5044_v6  ;;  %v5047_v41 = vpop.xlane.xlu1 %699  ;;  %985 = vadd.xlane.f32.xlu0 %v984_v27  ;;  %v914_v48 = vmul.f32 %v5044_v6, %v5044_v6 }
 0x163   :  { %7649 = vst [vmem:[#allocation20_spill] sm:$0xff] %v5040_v16  ;;  %v917_v33 = vmul.f32 %v5040_v16, %v5040_v16 }
 0x164   :  { %v978_v9 = vsel %vm592_vm1, %v914_v48, 0.0 }
 0x165   :  { %v987_v51 = vsel %vm592_vm1, %v917_v33, 0.0  ;;  %v598_v3 = vpop.xlane.xlu0 %597  ;;  %v7654_v33 = vmax.f32 %v4593_v11, 0.0 }
 0x166   :  { %v5057_v47 = vpop.xlane.xlu1 %693  ;;  %988 = vadd.xlane.f32.xlu1 %v987_v51  ;;  %979 = vadd.xlane.f32.xlu0 %v978_v9  ;;  %v787_v23 = vmul.f32 0.015625, %v598_v3  ;;  %v7656_v51 = vmax.f32 %v4585_v7, 0.0 }
 0x168   :  { %v5061_v10 = vsub.f32 %v7652_v44, %v787_v23 }
 0x169   :  { %v613_v27 = vpop.xlane.xlu0 %612 }
 0x16a   :  { %7653 = vst [vmem:[#allocation22_spill] sm:$0xff] %v5061_v10  ;;  %v616_v38 = vpop.xlane.xlu1 %615  ;;  %v792_v16 = vmul.f32 0.015625, %v613_v27  ;;  %v915_v6 = vmul.f32 %v5061_v10, %v5061_v10 }
 0x16b   :  { %v793_v25 = vmul.f32 0.015625, %v616_v38 }
 0x16c   :  { %v5071_v9 = vsub.f32 %v7656_v51, %v792_v16  ;;  %v981_v3 = vsel %vm592_vm1, %v915_v6, 0.0 }
 0x16d   :  { %v5067_v48 = vsub.f32 %v7654_v33, %v793_v25  ;;  %982 = vadd.xlane.f32.xlu1 %v981_v3  ;;  %v5076_v23 = vpop.xlane.xlu0 %708  ;;  %v7658_v33 = vmax.f32 %v4618_v29, 0.0  ;;  %v7660_v3 = vmax.f32 %v4614_v26, 0.0 }
 0x16e   :  { %7657 = vst [vmem:[#allocation24_spill] sm:$0xff] %v5071_v9  ;;  %v5074_v0 = vpop.xlane.xlu1 %711  ;;  %v920_v38 = vmul.f32 %v5071_v9, %v5071_v9 }
 0x16f   :  { %7655 = vst [vmem:[#allocation23_spill] sm:$0xff] %v5067_v48  ;;  %v921_v44 = vmul.f32 %v5067_v48, %v5067_v48 }
 0x170   :  { %v996_v25 = vsel %vm592_vm1, %v920_v38, 0.0 }
 0x171   :  { %v999_v11 = vsel %vm592_vm1, %v921_v44, 0.0  ;;  %997 = vadd.xlane.f32.xlu0 %v996_v25  ;;  %v607_v16 = vpop.xlane.xlu0 %606 }
 0x172   :  { %v610_v7 = vpop.xlane.xlu1 %609  ;;  %1000 = vadd.xlane.f32.xlu1 %v999_v11  ;;  %v790_v27 = vmul.f32 0.015625, %v607_v16 }
 0x173   :  { %v791_v6 = vmul.f32 0.015625, %v610_v7 }
 0x174   :  { %v5090_v48 = vsub.f32 %v7660_v3, %v790_v27 }
 0x175   :  { %v5086_v51 = vsub.f32 %v7658_v33, %v791_v6  ;;  %v5094_v9 = vpop.xlane.xlu0 %702  ;;  %v7662_v6 = vmax.f32 %v4653_v60, 0.0  ;;  %v7664_v33 = vmax.f32 %v4650_v59, 0.0 }
 0x176   :  { %7661 = vst [vmem:[#allocation26_spill] sm:$0xff] %v5090_v48  ;;  %v5092_v10 = vpop.xlane.xlu1 %705  ;;  %v918_v38 = vmul.f32 %v5090_v48, %v5090_v48 }
 0x177   :  { %7659 = vst [vmem:[#allocation25_spill] sm:$0xff] %v5086_v51  ;;  %v919_v44 = vmul.f32 %v5086_v51, %v5086_v51 }
 0x178   :  { %v990_v29 = vsel %vm592_vm1, %v918_v38, 0.0 }
 0x179   :  { %v993_v11 = vsel %vm592_vm1, %v919_v44, 0.0  ;;  %991 = vadd.xlane.f32.xlu0 %v990_v29  ;;  %v625_v26 = vpop.xlane.xlu0 %624 }
 0x17a   :  { %v628_v25 = vpop.xlane.xlu1 %627  ;;  %994 = vadd.xlane.f32.xlu1 %v993_v11  ;;  %v796_v16 = vmul.f32 0.015625, %v625_v26 }
 0x17b   :  { %v797_v7 = vmul.f32 0.015625, %v628_v25  ;;  %v4002_v25 = vld [vmem:[%s7401_s2 + $0x18] sm:$0xff]  }
 0x17c   :  { %v5108_v3 = vsub.f32 %v7664_v33, %v796_v16  ;;  %3852 = vmatprep.subr.bf16.mxu1 %v4002_v25  ;;  %v7666_v16 = vmax.f32 %v4685_v31, 0.0  ;;  %v7668_v33 = vmax.f32 %v4681_v22, 0.0 }
 0x17d   :  { %v5104_v27 = vsub.f32 %v7662_v6, %v797_v7  ;;  %v5112_v48 = vpop.xlane.xlu0 %720  ;;  %3853 = vmatpush3.bf16.msra.mxu1 %v4002_v25 }
 0x17e   :  { %7665 = vst [vmem:[#allocation28_spill] sm:$0xff] %v5108_v3  ;;  %v5110_v51 = vpop.xlane.xlu1 %723  ;;  %v924_v38 = vmul.f32 %v5108_v3, %v5108_v3 }
 0x17f   :  { %7663 = vst [vmem:[#allocation27_spill] sm:$0xff] %v5104_v27  ;;  %v925_v44 = vmul.f32 %v5104_v27, %v5104_v27 }
 0x180   :  { %v1008_v60 = vsel %vm592_vm1, %v924_v38, 0.0 }
 0x181   :  { %v1011_v11 = vsel %vm592_vm1, %v925_v44, 0.0  ;;  %1009 = vadd.xlane.f32.xlu0 %v1008_v60  ;;  %v619_v59 = vpop.xlane.xlu0 %618  ;;  %v4003_v60 = vld [vmem:[%s7401_s2 + $0x10] sm:$0xff]  }
 0x182   :  { %v622_v29 = vpop.xlane.xlu1 %621  ;;  %1012 = vadd.xlane.f32.xlu1 %v1011_v11  ;;  %v794_v7 = vmul.f32 0.015625, %v619_v59  ;;  %3854 = vmatprep.subr.bf16.mxu1 %v4003_v60 }
 0x183   :  { %v795_v26 = vmul.f32 0.015625, %v622_v29  ;;  %3855 = vmatpush3.bf16.msra.mxu1 %v4003_v60 }
 0x184   :  { %v5129_v44 = vsub.f32 %v7668_v33, %v794_v7  ;;  %v4004_v7 = vld [vmem:[%s7401_s2 + $0x8] sm:$0xff]  }
 0x185   :  { %v5125_v6 = vsub.f32 %v7666_v16, %v795_v26  ;;  %v5133_v11 = vpop.xlane.xlu0 %714  ;;  %3856 = vmatprep.subr.bf16.mxu1 %v4004_v7 }
 0x186   :  { %7669 = vst [vmem:[#allocation30_spill] sm:$0xff] %v5129_v44  ;;  %v5131_v38 = vpop.xlane.xlu1 %717  ;;  %v922_v31 = vmul.f32 %v5129_v44, %v5129_v44 }
 0x187   :  { %7667 = vst [vmem:[#allocation29_spill] sm:$0xff] %v5125_v6  ;;  %v923_v29 = vmul.f32 %v5125_v6, %v5125_v6  ;;  %v7670_v6 = vmax.f32 %v4725_v30, 0.0  ;;  %3857 = vmatpush3.bf16.msra.mxu1 %v4004_v7 }
 0x188   :  { %v1002_v59 = vsel %vm592_vm1, %v922_v31, 0.0 }
 0x189   :  { %v1005_v22 = vsel %vm592_vm1, %v923_v29, 0.0  ;;  %1003 = vadd.xlane.f32.xlu0 %v1002_v59  ;;  %v637_v26 = vpop.xlane.xlu0 %636  ;;  %v7672_v29 = vmax.f32 %v4722_v62, 0.0 }
 0x18a   :  { %v640_v25 = vpop.xlane.xlu1 %639  ;;  %1006 = vadd.xlane.f32.xlu1 %v1005_v22  ;;  %v800_v33 = vmul.f32 0.015625, %v637_v26  ;;  %v4005_v22 = vld [vmem:[%s7401_s2] sm:$0xff]  }
 0x18b   :  { %v801_v16 = vmul.f32 0.015625, %v640_v25  ;;  %3858 = vmatprep.subr.bf16.mxu1 %v4005_v22 }
 0x18c   :  { %v5153_v3 = vsub.f32 %v7672_v29, %v800_v33  ;;  %3859 = vmatpush3.bf16.msra.mxu1 %v4005_v22  ;;  %v7674_v33 = vmax.f32 %v4758_v34, 0.0 }
 0x18d   :  { %v5149_v44 = vsub.f32 %v7670_v6, %v801_v16  ;;  %v5157_v31 = vpop.xlane.xlu0 %732 }
 0x18e   :  { %7673 = vst [vmem:[#allocation32_spill] sm:$0xff] %v5153_v3  ;;  %v5155_v60 = vpop.xlane.xlu1 %735  ;;  %v928_v30 = vmul.f32 %v5153_v3, %v5153_v3 }
 0x18f   :  { %7671 = vst [vmem:[#allocation31_spill] sm:$0xff] %v5149_v44  ;;  %v929_v59 = vmul.f32 %v5149_v44, %v5149_v44  ;;  %v7676_v44 = vmax.f32 %v4754_v54, 0.0 }
 0x190   :  { %v1020_v6 = vsel %vm592_vm1, %v928_v30, 0.0 }
 0x191   :  { %v1023_v62 = vsel %vm592_vm1, %v929_v59, 0.0  ;;  %1021 = vadd.xlane.f32.xlu0 %v1020_v6  ;;  %v631_v26 = vpop.xlane.xlu0 %630 }
 0x192   :  { %v634_v25 = vpop.xlane.xlu1 %633  ;;  %1024 = vadd.xlane.f32.xlu1 %v1023_v62  ;;  %v798_v16 = vmul.f32 0.015625, %v631_v26  ;;  %v7678_v26 = vmax.f32 %v4802_v8, 0.0 }
 0x193   :  { %v799_v7 = vmul.f32 0.015625, %v634_v25 }
 0x194   :  { %v5174_v27 = vsub.f32 %v7676_v44, %v798_v16  ;;  %v7680_v16 = vmax.f32 %v4799_v45, 0.0 }
 0x195   :  { %v5170_v29 = vsub.f32 %v7674_v33, %v799_v7  ;;  %v5178_v59 = vpop.xlane.xlu0 %726 }
 0x196   :  { %7677 = vst [vmem:[#allocation34_spill] sm:$0xff] %v5174_v27  ;;  %v5176_v3 = vpop.xlane.xlu1 %729  ;;  %v926_v30 = vmul.f32 %v5174_v27, %v5174_v27 }
 0x197   :  { %7675 = vst [vmem:[#allocation33_spill] sm:$0xff] %v5170_v29  ;;  %v927_v22 = vmul.f32 %v5170_v29, %v5170_v29 }
 0x198   :  { %v1014_v34 = vsel %vm592_vm1, %v926_v30, 0.0 }
 0x199   :  { %v1017_v62 = vsel %vm592_vm1, %v927_v22, 0.0  ;;  %1015 = vadd.xlane.f32.xlu0 %v1014_v34  ;;  %v649_v54 = vpop.xlane.xlu0 %648 }
 0x19a   :  { %v652_v6 = vpop.xlane.xlu1 %651  ;;  %1018 = vadd.xlane.f32.xlu1 %v1017_v62  ;;  %v804_v25 = vmul.f32 0.015625, %v649_v54 }
 0x19b   :  { %v805_v44 = vmul.f32 0.015625, %v652_v6 }
 0x19c   :  { %v5192_v33 = vsub.f32 %v7680_v16, %v804_v25 }
 0x19d   :  { %v5188_v7 = vsub.f32 %v7678_v26, %v805_v44  ;;  %v5196_v27 = vpop.xlane.xlu0 %744  ;;  %v7682_v44 = vmax.f32 %v4828_v57, 0.0  ;;  %v7684_v26 = vmax.f32 %v4824_v55, 0.0 }
 0x19e   :  { %7681 = vst [vmem:[#allocation36_spill] sm:$0xff] %v5192_v33  ;;  %v5194_v29 = vpop.xlane.xlu1 %747  ;;  %v932_v30 = vmul.f32 %v5192_v33, %v5192_v33 }
 0x19f   :  { %7679 = vst [vmem:[#allocation35_spill] sm:$0xff] %v5188_v7  ;;  %v933_v22 = vmul.f32 %v5188_v7, %v5188_v7 }
 0x1a0   :  { %v1032_v8 = vsel %vm592_vm1, %v932_v30, 0.0 }
 0x1a1   :  { %v1035_v62 = vsel %vm592_vm1, %v933_v22, 0.0  ;;  %1033 = vadd.xlane.f32.xlu0 %v1032_v8  ;;  %v643_v45 = vpop.xlane.xlu0 %642 }
 0x1a2   :  { %v646_v34 = vpop.xlane.xlu1 %645  ;;  %1036 = vadd.xlane.f32.xlu1 %v1035_v62  ;;  %v802_v54 = vmul.f32 0.015625, %v643_v45 }
 0x1a3   :  { %v803_v6 = vmul.f32 0.015625, %v646_v34 }
 0x1a4   :  { %v5210_v16 = vsub.f32 %v7684_v26, %v802_v54 }
 0x1a5   :  { %v5206_v25 = vsub.f32 %v7682_v44, %v803_v6  ;;  %v5214_v33 = vpop.xlane.xlu0 %738  ;;  %v7686_v6 = vmax.f32 %v4862_v21, 0.0  ;;  %v7688_v44 = vmax.f32 %v4859_v28, 0.0 }
 0x1a6   :  { %7685 = vst [vmem:[#allocation38_spill] sm:$0xff] %v5210_v16  ;;  %v5212_v7 = vpop.xlane.xlu1 %741  ;;  %v930_v30 = vmul.f32 %v5210_v16, %v5210_v16 }
 0x1a7   :  { %7683 = vst [vmem:[#allocation37_spill] sm:$0xff] %v5206_v25  ;;  %v931_v22 = vmul.f32 %v5206_v25, %v5206_v25 }
 0x1a8   :  { %v1026_v57 = vsel %vm592_vm1, %v930_v30, 0.0 }
 0x1a9   :  { %v1029_v62 = vsel %vm592_vm1, %v931_v22, 0.0  ;;  %1027 = vadd.xlane.f32.xlu0 %v1026_v57  ;;  %v661_v55 = vpop.xlane.xlu0 %660 }
 0x1aa   :  { %v664_v8 = vpop.xlane.xlu1 %663  ;;  %1030 = vadd.xlane.f32.xlu1 %v1029_v62  ;;  %v808_v45 = vmul.f32 0.015625, %v661_v55 }
 0x1ab   :  { %v809_v34 = vmul.f32 0.015625, %v664_v8 }
 0x1ac   :  { %v5228_v26 = vsub.f32 %v7688_v44, %v808_v45 }
 0x1ad   :  { %v5224_v54 = vsub.f32 %v7686_v6, %v809_v34  ;;  %v5232_v16 = vpop.xlane.xlu0 %756  ;;  %v7690_v34 = vmax.f32 %v4888_v15, 0.0  ;;  %v7692_v6 = vmax.f32 %v4884_v56, 0.0  ;;  %v7494_v15 = vmax.f32 %v4795_v58, 0.0 }
 0x1ae   :  { %7689 = vst [vmem:[#allocation40_spill] sm:$0xff] %v5228_v26  ;;  %v5230_v25 = vpop.xlane.xlu1 %759  ;;  %v936_v30 = vmul.f32 %v5228_v26, %v5228_v26 }
 0x1af   :  { %7687 = vst [vmem:[#allocation39_spill] sm:$0xff] %v5224_v54  ;;  %v937_v22 = vmul.f32 %v5224_v54, %v5224_v54 }
 0x1b0   :  { %v1044_v21 = vsel %vm592_vm1, %v936_v30, 0.0 }
 0x1b1   :  { %v1047_v62 = vsel %vm592_vm1, %v937_v22, 0.0  ;;  %1045 = vadd.xlane.f32.xlu0 %v1044_v21  ;;  %v655_v28 = vpop.xlane.xlu0 %654 }
 0x1b2   :  { %v658_v57 = vpop.xlane.xlu1 %657  ;;  %1048 = vadd.xlane.f32.xlu1 %v1047_v62  ;;  %v806_v55 = vmul.f32 0.015625, %v655_v28  ;;  %v7496_v62 = vmax.f32 %v4775_v19, 0.0 }
 0x1b3   :  { %v807_v8 = vmul.f32 0.015625, %v658_v57 }
 0x1b4   :  { %v5246_v44 = vsub.f32 %v7692_v6, %v806_v55  ;;  %v779_v6 = vsel %vm592_vm1, %v7496_v62, 0.0  ;;  %v7699_v62 = vmax.f32 %v4928_v49, 0.0 }
 0x1b5   :  { %v5242_v45 = vsub.f32 %v7690_v34, %v807_v8  ;;  %v5250_v26 = vpop.xlane.xlu0 %750  ;;  %v782_v34 = vsel %vm592_vm1, %v7494_v15, 0.0  ;;  %v7698_v15 = vmax.f32 %v4933_v2, 0.0 }
 0x1b6   :  { %7693 = vst [vmem:[#allocation42_spill] sm:$0xff] %v5246_v44  ;;  %v5248_v54 = vpop.xlane.xlu1 %753  ;;  %v934_v30 = vmul.f32 %v5246_v44, %v5246_v44 }
 0x1b7   :  { %7691 = vst [vmem:[#allocation41_spill] sm:$0xff] %v5242_v45  ;;  %v935_v22 = vmul.f32 %v5242_v45, %v5242_v45 }
 0x1b8   :  { %v1038_v56 = vsel %vm592_vm1, %v934_v30, 0.0 }
 0x1b9   :  { %v1041_v21 = vsel %vm592_vm1, %v935_v22, 0.0  ;;  %1039 = vadd.xlane.f32.xlu0 %v1038_v56  ;;  %v673_v28 = vpop.xlane.xlu0 %672 }
 0x1ba   :  { %v676_v57 = vpop.xlane.xlu1 %675  ;;  %1042 = vadd.xlane.f32.xlu1 %v1041_v21  ;;  %v812_v55 = vmul.f32 0.015625, %v673_v28  ;;  %v7694_v21 = vmax.f32 %v4917_v39, 0.0 }
 0x1bb   :  { %v813_v8 = vmul.f32 0.015625, %v676_v57  ;;  %v7696_v57 = vmax.f32 %v4914_v43, 0.0 }
 0x1bd   :  { %780 = vadd.xlane.f32.xlu0 %v779_v6  ;;  %v667_v22 = vpop.xlane.xlu0 %666  ;;  %v5268_v56 = vsub.f32 %v7694_v21, %v813_v8  ;;  %v5272_v28 = vsub.f32 %v7696_v57, %v812_v55  ;;  %v818_v21 = vmul.f32 0.015625, %v5049_v12  ;;  %v819_v57 = vmul.f32 0.015625, %v5057_v47 }
 0x1be   :  { %v670_v44 = vpop.xlane.xlu1 %669  ;;  %783 = vadd.xlane.f32.xlu1 %v782_v34  ;;  %v810_v30 = vmul.f32 0.015625, %v667_v22  ;;  %v7703_v12 = vmax.f32 %v4960_v35, 0.0  ;;  %v7705_v35 = vmax.f32 %v4573_v63, 0.0  ;;  %v7707_v63 = vmax.f32 %v4560_v52, 0.0 }
 0x1bf   :  { %v811_v45 = vmul.f32 0.015625, %v670_v44  ;;  %7695 = vst [vmem:[#allocation43_spill] sm:$0xff] %v5268_v56  ;;  %7697 = vst [vmem:[#allocation44_spill] sm:$0xff] %v5272_v28  ;;  %v941_v43 = vmul.f32 %v5268_v56, %v5268_v56  ;;  %v940_v2 = vmul.f32 %v5272_v28, %v5272_v28  ;;  %v825_v52 = vmul.f32 0.015625, %v5074_v0 }
 0x1c0   :  { %v5280_v19 = vsub.f32 %v7699_v62, %v810_v30 }
 0x1c1   :  { %v5276_v58 = vsub.f32 %v7698_v15, %v811_v45  ;;  %v685_v6 = vpop.xlane.xlu0 %684  ;;  %v1059_v56 = vsel %vm592_vm1, %v941_v43, 0.0  ;;  %v1056_v28 = vsel %vm592_vm1, %v940_v2, 0.0  ;;  %v821_v43 = vmul.f32 0.015625, %v5047_v41 }
 0x1c2   :  { %v688_v34 = vpop.xlane.xlu1 %687  ;;  %v938_v39 = vmul.f32 %v5280_v19, %v5280_v19  ;;  %v816_v15 = vmul.f32 0.015625, %v685_v6 }
 0x1c3   :  { %v939_v44 = vmul.f32 %v5276_v58, %v5276_v58  ;;  %v817_v45 = vmul.f32 0.015625, %v688_v34  ;;  %v7700_v34 = vmax.f32 %v4953_v24, 0.0 }
 0x1c4   :  { %v1050_v62 = vsel %vm592_vm1, %v938_v39, 0.0 }
 0x1c5   :  { %v1053_v49 = vsel %vm592_vm1, %v939_v44, 0.0  ;;  %1051 = vadd.xlane.f32.xlu0 %v1050_v62  ;;  %v679_v55 = vpop.xlane.xlu0 %678  ;;  %v5298_v6 = vsub.f32 %v7700_v34, %v817_v45  ;;  %v7701_v44 = vmax.f32 %v4943_v4, 0.0  ;;  %v820_v4 = vmul.f32 0.015625, %v5030_v46 }
 0x1c6   :  { %v682_v8 = vpop.xlane.xlu1 %681  ;;  %1054 = vadd.xlane.f32.xlu1 %v1053_v49  ;;  %v814_v30 = vmul.f32 0.015625, %v679_v55  ;;  %v7702_v49 = vmax.f32 %v4967_v37, 0.0  ;;  %v7704_v37 = vmax.f32 %v4554_v50, 0.0  ;;  %v5324_v45 = vsub.f32 %v7705_v35, %v819_v57 }
 0x1c7   :  { %v815_v22 = vmul.f32 0.015625, %v682_v8  ;;  %v5302_v39 = vsub.f32 %v7701_v44, %v816_v15  ;;  %v945_v15 = vmul.f32 %v5298_v6, %v5298_v6  ;;  %v7706_v50 = vmax.f32 %v4546_v42, 0.0 }
 0x1c8   :  { %v5310_v8 = vsub.f32 %v7703_v12, %v814_v30  ;;  %v5320_v2 = vsub.f32 %v7704_v37, %v818_v21  ;;  %v5338_v55 = vsub.f32 %v7707_v63, %v821_v43  ;;  %v823_v21 = vmul.f32 0.015625, %v5092_v10 }
 0x1c9   :  { %v5306_v62 = vsub.f32 %v7702_v49, %v815_v22  ;;  %1057 = vadd.xlane.f32.xlu0 %v1056_v28  ;;  %v944_v46 = vmul.f32 %v5302_v39, %v5302_v39  ;;  %v5334_v41 = vsub.f32 %v7706_v50, %v820_v4  ;;  %v947_v22 = vmul.f32 %v5324_v45, %v5324_v45 }
 0x1ca   :  { %1060 = vadd.xlane.f32.xlu1 %v1059_v56  ;;  %v942_v24 = vmul.f32 %v5310_v8, %v5310_v8  ;;  %v946_v30 = vmul.f32 %v5320_v2, %v5320_v2  ;;  %v822_v57 = vmul.f32 0.015625, %v5094_v9  ;;  %v1071_v34 = vsel %vm592_vm1, %v945_v15, 0.0 }
 0x1cb   :  { %v943_v47 = vmul.f32 %v5306_v62, %v5306_v62  ;;  %v1068_v42 = vsel %vm592_vm1, %v944_v46, 0.0  ;;  %v949_v49 = vmul.f32 %v5338_v55, %v5338_v55  ;;  %v948_v12 = vmul.f32 %v5334_v41, %v5334_v41  ;;  %v5380_v46 = vpop.xlane.xlu0 %762 }
 0x1cc   :  { %v1062_v28 = vsel %vm592_vm1, %v942_v24, 0.0  ;;  %v1074_v44 = vsel %vm592_vm1, %v946_v30, 0.0  ;;  %v824_v10 = vmul.f32 0.015625, %v5076_v23  ;;  %v7708_v9 = vmax.f32 %v4634_v40, 0.0 }
 0x1cd   :  { %v1065_v56 = vsel %vm592_vm1, %v943_v47, 0.0  ;;  %1063 = vadd.xlane.f32.xlu0 %v1062_v28  ;;  %v7709_v24 = vmax.f32 %v4630_v36, 0.0  ;;  %v1077_v0 = vsel %vm592_vm1, %v947_v22, 0.0  ;;  %v7710_v43 = vmax.f32 %v4604_v20, 0.0 }
 0x1ce   :  { %1066 = vadd.xlane.f32.xlu1 %v1065_v56  ;;  %v5357_v47 = vsub.f32 %v7708_v9, %v823_v21  ;;  %v827_v35 = vmul.f32 0.015625, %v5131_v38  ;;  %v1083_v23 = vsel %vm592_vm1, %v949_v49, 0.0  ;;  %v1080_v40 = vsel %vm592_vm1, %v948_v12, 0.0 }
 0x1cf   :  { %v5361_v4 = vsub.f32 %v7709_v24, %v822_v57  ;;  %v5366_v37 = vsub.f32 %v7710_v43, %v825_v52  ;;  %v7711_v56 = vmax.f32 %v4600_v17, 0.0  ;;  %v826_v36 = vmul.f32 0.015625, %v5133_v11 }
 0x1d0   :  { %v951_v15 = vmul.f32 %v5357_v47, %v5357_v47  ;;  %v829_v38 = vmul.f32 0.015625, %v5110_v51  ;;  %v828_v50 = vmul.f32 0.015625, %v5112_v48  ;;  %v7712_v17 = vmax.f32 %v4704_v14, 0.0  ;;  %v5398_v48 = vpop.xlane.xlu1 %765 }
 0x1d1   :  { %1069 = vadd.xlane.f32.xlu0 %v1068_v42  ;;  %v5373_v28 = vsub.f32 %v7711_v56, %v824_v10  ;;  %v950_v20 = vmul.f32 %v5361_v4, %v5361_v4  ;;  %v953_v11 = vmul.f32 %v5366_v37, %v5366_v37  ;;  %v7713_v22 = vmax.f32 %v4700_v1, 0.0  ;;  %v5413_v10 = vpop.xlane.xlu0 %768 }
 0x1d2   :  { %1072 = vadd.xlane.f32.xlu1 %v1071_v34  ;;  %v5386_v63 = vsub.f32 %v7712_v17, %v827_v35  ;;  %v1089_v21 = vsel %vm592_vm1, %v951_v15, 0.0  ;;  %v7714_v14 = vmax.f32 %v4671_v13, 0.0  ;;  %v7715_v42 = vmax.f32 %v4663_v5, 0.0  ;;  %v7719_v15 = vld [vmem:[#allocation4_spill] sm:$0xff] }
 0x1d3   :  { %v5392_v30 = vsub.f32 %v7713_v22, %v826_v36  ;;  %v1086_v57 = vsel %vm592_vm1, %v950_v20, 0.0  ;;  %v952_v51 = vmul.f32 %v5373_v28, %v5373_v28  ;;  %v1095_v52 = vsel %vm592_vm1, %v953_v11, 0.0  ;;  %v7721_v11 = vld [vmem:[#allocation3_spill] sm:$0xff] }
 0x1d4   :  { %v5402_v34 = vsub.f32 %v7714_v14, %v829_v38  ;;  %v5406_v1 = vsub.f32 %v7715_v42, %v828_v50  ;;  %v831_v49 = vmul.f32 0.015625, %v5176_v3  ;;  %v830_v12 = vmul.f32 0.015625, %v5178_v59  ;;  %v5433_v36 = vpop.xlane.xlu1 %771 }
 0x1d5   :  { %1075 = vadd.xlane.f32.xlu0 %v1074_v44  ;;  %v955_v44 = vmul.f32 %v5386_v63, %v5386_v63  ;;  %v1092_v9 = vsel %vm592_vm1, %v952_v51, 0.0  ;;  %v954_v13 = vmul.f32 %v5392_v30, %v5392_v30  ;;  %v833_v5 = vmul.f32 0.015625, %v5155_v60  ;;  %v5440_v50 = vpop.xlane.xlu0 %774 }
 0x1d6   :  { %1078 = vadd.xlane.f32.xlu1 %v1077_v0  ;;  %v957_v0 = vmul.f32 %v5402_v34, %v5402_v34  ;;  %v956_v3 = vmul.f32 %v5406_v1, %v5406_v1  ;;  %v832_v59 = vmul.f32 0.015625, %v5157_v31  ;;  %v7716_v43 = vmax.f32 %v4780_v61, 0.0 }
 0x1d7   :  { %v1101_v24 = vsel %vm592_vm1, %v955_v44, 0.0  ;;  %v1098_v60 = vsel %vm592_vm1, %v954_v13, 0.0  ;;  %v7720_v20 = vmax.f32 %v7719_v15, 0.0  ;;  %v835_v61 = vmul.f32 0.015625, %v5212_v7  ;;  %v7725_v13 = vld [vmem:[#allocation10_spill] sm:$0xff] }
 0x1d8   :  { %v5427_v35 = vsub.f32 %v7716_v43, %v831_v49  ;;  %v1107_v31 = vsel %vm592_vm1, %v957_v0, 0.0  ;;  %v1104_v17 = vsel %vm592_vm1, %v956_v3, 0.0  ;;  %v7722_v22 = vmax.f32 %v7721_v11, 0.0  ;;  %v5455_v42 = vpop.xlane.xlu1 %777 }
 0x1d9   :  { %1081 = vadd.xlane.f32.xlu0 %v1080_v40  ;;  %v5438_v38 = vsub.f32 %v7720_v20, %v833_v5  ;;  %v837_v7 = vmul.f32 0.015625, %v5194_v29  ;;  %v836_v49 = vmul.f32 0.015625, %v5196_v27  ;;  %v7726_v5 = vmax.f32 %v7725_v13, 0.0  ;;  %v7729_v20 = vld [vmem:[#allocation8_spill] sm:$0xff] }
 0x1da   :  { %1084 = vadd.xlane.f32.xlu1 %v1083_v23  ;;  %v7717_v23 = vld [vmem:[#allocation5_spill] sm:$0xff]  ;;  %v959_v51 = vmul.f32 %v5427_v35, %v5427_v35 }
 0x1db   :  { %v7718_v40 = vmax.f32 %v7717_v23, 0.0  ;;  %v961_v44 = vmul.f32 %v5438_v38, %v5438_v38 }
 0x1dc   :  { %v1113_v0 = vsel %vm592_vm1, %v959_v51, 0.0  ;;  %v838_v51 = vmul.f32 0.015625, %v5250_v26 }
 0x1dd   :  { %1087 = vadd.xlane.f32.xlu0 %v1086_v57  ;;  %v5431_v56 = vsub.f32 %v7718_v40, %v830_v12  ;;  %v834_v57 = vmul.f32 0.015625, %v5214_v33  ;;  %v7723_v12 = vld [vmem:[#allocation11_spill] sm:$0xff]  ;;  %v1119_v15 = vsel %vm592_vm1, %v961_v44, 0.0 }
 0x1de   :  { %1090 = vadd.xlane.f32.xlu1 %v1089_v21  ;;  %v5447_v21 = vsub.f32 %v7722_v22, %v832_v59  ;;  %v7724_v33 = vmax.f32 %v7723_v12, 0.0  ;;  %v7727_v59 = vld [vmem:[#allocation9_spill] sm:$0xff]  ;;  %v840_v12 = vmul.f32 0.015625, %v5232_v16 }
 0x1df   :  { %v958_v14 = vmul.f32 %v5431_v56, %v5431_v56  ;;  %v7728_v43 = vmax.f32 %v7727_v59, 0.0  ;;  %v7735_v16 = vld [vmem:[#allocation13_spill] sm:$0xff] }
 0x1e0   :  { %v960_v3 = vmul.f32 %v5447_v21, %v5447_v21 }
 0x1e1   :  { %1093 = vadd.xlane.f32.xlu0 %v1092_v9  ;;  %v5462_v9 = vsub.f32 %v7724_v33, %v835_v61  ;;  %v1110_v29 = vsel %vm592_vm1, %v958_v14, 0.0  ;;  %v5474_v27 = vsub.f32 %v7728_v43, %v837_v7  ;;  %v7730_v61 = vmax.f32 %v7729_v20, 0.0 }
 0x1e2   :  { %1096 = vadd.xlane.f32.xlu1 %v1095_v52  ;;  %v1116_v14 = vsel %vm592_vm1, %v960_v3, 0.0  ;;  %v7733_v3 = vld [vmem:[#allocation14_spill] sm:$0xff] }
 0x1e3   :  { %v963_v22 = vmul.f32 %v5462_v9, %v5462_v9  ;;  %v7734_v59 = vmax.f32 %v7733_v3, 0.0 }
 0x1e5   :  { %1099 = vadd.xlane.f32.xlu0 %v1098_v60  ;;  %v1125_v13 = vsel %vm592_vm1, %v963_v22, 0.0  ;;  %v5501_v43 = vsub.f32 %v7734_v59, %v838_v51 }
 0x1e6   :  { %1102 = vadd.xlane.f32.xlu1 %v1101_v24  ;;  %v5466_v24 = vsub.f32 %v7726_v5, %v834_v57  ;;  %v839_v57 = vmul.f32 0.015625, %v5248_v54  ;;  %v965_v54 = vmul.f32 %v5474_v27, %v5474_v27  ;;  %v7731_v5 = vld [vmem:[#allocation15_spill] sm:$0xff] }
 0x1e8   :  { %v962_v7 = vmul.f32 %v5466_v24, %v5466_v24  ;;  %v1131_v22 = vsel %vm592_vm1, %v965_v54, 0.0  ;;  %v844_v54 = vmul.f32 0.015625, %v5413_v10  ;;  %v7741_v10 = vmax.f32 %v4991_v32, 0.0 }
 0x1e9   :  { %1105 = vadd.xlane.f32.xlu0 %v1104_v17 }
 0x1ea   :  { %1108 = vadd.xlane.f32.xlu1 %v1107_v31  ;;  %v5479_v31 = vsub.f32 %v7730_v61, %v836_v49  ;;  %v841_v49 = vmul.f32 0.015625, %v5230_v25  ;;  %v1122_v25 = vsel %vm592_vm1, %v962_v7, 0.0  ;;  %v843_v61 = vmul.f32 0.015625, %v5398_v48 }
 0x1eb   :  { %v986_v52 = vpop.xlane.xlu0 %985  ;;  %v966_v7 = vmul.f32 %v5501_v43, %v5501_v43  ;;  %v7739_v48 = vmax.f32 %v4975_v18, 0.0 }
 0x1ec   :  { %v1172_v23 = vmul.f32 0.015625, %v986_v52  ;;  %v964_v26 = vmul.f32 %v5479_v31, %v5479_v31 }
 0x1ed   :  { %1111 = vadd.xlane.f32.xlu0 %v1110_v29 }
 0x1ee   :  { %1114 = vadd.xlane.f32.xlu1 %v1113_v0  ;;  %v1236_v33 = vadd.f32 1e-05, %v1172_v23  ;;  %v7732_v0 = vmax.f32 %v7731_v5, 0.0  ;;  %v7736_v23 = vmax.f32 %v7735_v16, 0.0  ;;  %v1128_v51 = vsel %vm592_vm1, %v964_v26, 0.0 }
 0x1ef   :  { %v989_v40 = vpop.xlane.xlu1 %988  ;;  %v980_v60 = vpop.xlane.xlu0 %979 }
 0x1f0   :  { %v1173_v17 = vmul.f32 0.015625, %v989_v40  ;;  %v1170_v11 = vmul.f32 0.015625, %v980_v60  ;;  %v5497_v29 = vsub.f32 %v7732_v0, %v839_v57  ;;  %v5506_v40 = vsub.f32 %v7736_v23, %v841_v49  ;;  %v7737_v60 = vld [vmem:[#allocation12_spill] sm:$0xff] }
 0x1f1   :  { %1117 = vadd.xlane.f32.xlu0 %v1116_v14  ;;  %v842_v57 = vmul.f32 0.015625, %v5380_v46  ;;  %v845_v49 = vmul.f32 0.015625, %v5433_v36  ;;  %v7740_v0 = vmax.f32 %v4971_v53, 0.0  ;;  %v1134_v36 = vsel %vm592_vm1, %v966_v7, 0.0 }
 0x1f2   :  { %v1237_v52 = vadd.f32 1e-05, %v1173_v17  ;;  %v1234_v44 = vadd.f32 1e-05, %v1170_v11  ;;  %1120 = vadd.xlane.f32.xlu1 %v1119_v15  ;;  %v7738_v15 = vmax.f32 %v7737_v60, 0.0  ;;  %v967_v14 = vmul.f32 %v5497_v29, %v5497_v29  ;;  %v7742_v60 = vld [vmem:[#allocation16_spill] sm:$0xff] }
 0x1f3   :  { %v969_v46 = vmul.f32 %v5506_v40, %v5506_v40  ;;  %v5532_v18 = vsub.f32 %v7740_v0, %v842_v57  ;;  %v5540_v23 = vsub.f32 %v7741_v10, %v845_v49 }
 0x1f4   :  { %4010 = vrsqrt.f32 %v1237_v52  ;;  %v5510_v20 = vsub.f32 %v7738_v15, %v840_v12  ;;  %v1137_v3 = vsel %vm592_vm1, %v967_v14, 0.0  ;;  %v7743_v15 = vmax.f32 %v7742_v60, 0.0  ;;  %v7744_v14 = vld [vmem:[#allocation2_spill] sm:$0xff]  ;;  %v7750_v60 = vld [vmem:[#allocation21_spill] sm:$0xff] }
 0x1f5   :  { %4012 = vrsqrt.f32 %v1234_v44  ;;  %1123 = vadd.xlane.f32.xlu0 %v1122_v25  ;;  %v5522_v44 = vsub.f32 %v7739_v48, %v843_v61  ;;  %v1143_v61 = vsel %vm592_vm1, %v969_v46, 0.0  ;;  %v970_v57 = vmul.f32 %v5532_v18, %v5532_v18 }
 0x1f6   :  { %1126 = vadd.xlane.f32.xlu1 %v1125_v13  ;;  %4014 = vrsqrt.f32 %v1236_v33  ;;  %v983_v17 = vpop.xlane.xlu1 %982  ;;  %v968_v13 = vmul.f32 %v5510_v20, %v5510_v20  ;;  %v5544_v53 = vsub.f32 %v7743_v15, %v844_v54  ;;  %v1428_v7 = vsub.s32 1, %v7744_v14 }
 0x1f7   :  { %v1171_v11 = vmul.f32 0.015625, %v983_v17  ;;  %v971_v16 = vmul.f32 %v5522_v44, %v5522_v44 }
 0x1f8   :  { %v1140_v17 = vsel %vm592_vm1, %v968_v13, 0.0  ;;  %v972_v46 = vmul.f32 %v5544_v53, %v5544_v53  ;;  %v7745_v13 = vld [vmem:[#allocation18_spill] sm:$0xff] }
 0x1f9   :  { %v1235_v52 = vadd.f32 1e-05, %v1171_v11  ;;  %1129 = vadd.xlane.f32.xlu0 %v1128_v51  ;;  %v847_v11 = vmul.f32 0.015625, %v5455_v42  ;;  %v1149_v49 = vsel %vm592_vm1, %v971_v16, 0.0  ;;  %v7746_v54 = vmax.f32 %v7745_v13, 0.0 }
 0x1fa   :  { %1132 = vadd.xlane.f32.xlu1 %v1131_v22  ;;  %v998_v33 = vpop.xlane.xlu0 %997  ;;  %v846_v22 = vmul.f32 0.015625, %v5440_v50  ;;  %v973_v50 = vmul.f32 %v5540_v23, %v5540_v23 }
 0x1fb   :  { %v1001_v12 = vpop.xlane.xlu1 %1000  ;;  %4016 = vrsqrt.f32 %v1235_v52  ;;  %v1176_v5 = vmul.f32 0.015625, %v998_v33 }
 0x1fc   :  { %v1177_v26 = vmul.f32 0.015625, %v1001_v12 }
 0x1fd   :  { %v1240_v25 = vadd.f32 1e-05, %v1176_v5  ;;  %1135 = vadd.xlane.f32.xlu0 %v1134_v36  ;;  %v7747_v5 = vld [vmem:[#allocation17_spill] sm:$0xff]  ;;  %v7749_v36 = vld [vmem:[#allocation20_spill] sm:$0xff] }
 0x1fe   :  { %v1241_v59 = vadd.f32 1e-05, %v1177_v26  ;;  %1138 = vadd.xlane.f32.xlu1 %v1137_v3  ;;  %v5560_v26 = vsub.f32 %v7746_v54, %v847_v11  ;;  %v7748_v0 = vmax.f32 %v7747_v5, 0.0  ;;  %v7751_v11 = vld [vmem:[#allocation19_spill] sm:$0xff] }
 0x200   :  { %4018 = vrsqrt.f32 %v1241_v59  ;;  %v5564_v3 = vsub.f32 %v7748_v0, %v846_v22  ;;  %v1496_v22 = vsub.s32 2, %v7744_v14 }
 0x201   :  { %v4011_v51 = vpop.eup %4010  ;;  %4020 = vrsqrt.f32 %v1240_v25  ;;  %1141 = vadd.xlane.f32.xlu0 %v1140_v17  ;;  %v1146_v25 = vsel %vm592_vm1, %v970_v57, 0.0  ;;  %v1152_v57 = vsel %vm592_vm1, %v972_v46, 0.0 }
 0x202   :  { %1144 = vadd.xlane.f32.xlu1 %v1143_v61  ;;  %v4013_v32 = vpop.eup %4012  ;;  %v992_v48 = vpop.xlane.xlu0 %991  ;;  %v1365_v59 = vmul.f32 %v4011_v51, %v7749_v36  ;;  %v4266_v61 = vld [vmem:[%s7400_s4] sm:$0x3f]  ;;  %v1155_v51 = vsel %vm592_vm1, %v973_v50, 0.0 }
 0x203   :  { %v995_v52 = vpop.xlane.xlu1 %994  ;;  %v4015_v12 = vpop.eup %4014  ;;  %v1174_v42 = vmul.f32 0.015625, %v992_v48  ;;  %v1362_v15 = vmul.f32 %v4013_v32, %v7750_v60  ;;  %v5572_v17 = vrot.slane %v4266_v61, %v1428_v7  ;;  %v975_v32 = vmul.f32 %v5560_v26, %v5560_v26 }
 0x204   :  { %v1175_v33 = vmul.f32 0.015625, %v995_v52  ;;  %v1364_v52 = vmul.f32 %v4015_v12, %v7751_v11  ;;  %v974_v7 = vmul.f32 %v5564_v3, %v5564_v3  ;;  %v7752_v12 = vld [vmem:[#allocation22_spill] sm:$0xff]  ;;  %v5586_v54 = vrot.slane %v4266_v61, %v1496_v22 }
 0x205   :  { %v1238_v10 = vadd.f32 1e-05, %v1174_v42  ;;  %1147 = vadd.xlane.f32.xlu0 %v1146_v25  ;;  %v1430_v42 = vmul.f32 %v5572_v17, %v1362_v15 }
 0x206   :  { %v1239_v16 = vadd.f32 1e-05, %v1175_v33  ;;  %1150 = vadd.xlane.f32.xlu1 %v1149_v49  ;;  %v1433_v49 = vmul.f32 %v5572_v17, %v1365_v59  ;;  %v1432_v50 = vmul.f32 %v5572_v17, %v1364_v52  ;;  %v1161_v59 = vsel %vm592_vm1, %v975_v32, 0.0 }
 0x207   :  { %v1158_v25 = vsel %vm592_vm1, %v974_v7, 0.0  ;;  %v1498_v15 = vadd.f32 %v5586_v54, %v1430_v42 }
 0x208   :  { %4022 = vrsqrt.f32 %v1239_v16  ;;  %v4017_v48 = vpop.eup %4016  ;;  %v1501_v16 = vadd.f32 %v5586_v54, %v1433_v49  ;;  %v1500_v22 = vadd.f32 %v5586_v54, %v1432_v50  ;;  %v7754_v49 = vld [vmem:[#allocation24_spill] sm:$0xff] }
 0x209   :  { %4024 = vrsqrt.f32 %v1238_v10  ;;  %1153 = vadd.xlane.f32.xlu0 %v1152_v57  ;;  %v1363_v33 = vmul.f32 %v4017_v48, %v7752_v12  ;;  %v7753_v48 = vld [vmem:[#allocation23_spill] sm:$0xff] }
 0x20a   :  { %1156 = vadd.xlane.f32.xlu1 %v1155_v51  ;;  %v1010_v46 = vpop.xlane.xlu0 %1009  ;;  %v1563_v57 = vpack.c.bf16 %v1501_v16, %v1500_v22 }
 0x20b   :  { %v1013_v13 = vpop.xlane.xlu1 %1012  ;;  %v1180_v0 = vmul.f32 0.015625, %v1010_v46  ;;  %v1431_v36 = vmul.f32 %v5572_v17, %v1363_v33 }
 0x20c   :  { %v1181_v5 = vmul.f32 0.015625, %v1013_v13 }
 0x20d   :  { %v4019_v10 = vpop.eup %4018  ;;  %v1244_v11 = vadd.f32 1e-05, %v1180_v0  ;;  %1159 = vadd.xlane.f32.xlu0 %v1158_v25  ;;  %v1499_v61 = vadd.f32 %v5586_v54, %v1431_v36 }
 0x20e   :  { %v1245_v60 = vadd.f32 1e-05, %v1181_v5  ;;  %1162 = vadd.xlane.f32.xlu1 %v1161_v59  ;;  %v4021_v52 = vpop.eup %4020  ;;  %v1369_v32 = vmul.f32 %v4019_v10, %v7753_v48  ;;  %v7755_v59 = vld [vmem:[#allocation25_spill] sm:$0xff]  ;;  %v7756_v10 = vld [vmem:[#allocation26_spill] sm:$0xff] }
 0x20f   :  { %v1562_v51 = vpack.c.bf16 %v1499_v61, %v1498_v15  ;;  %v1368_v7 = vmul.f32 %v4021_v52, %v7754_v49 }
 0x210   :  { %4026 = vrsqrt.f32 %v1245_v60  ;;  %v1437_v5 = vmul.f32 %v5572_v17, %v1369_v32 }
 0x211   :  { %4028 = vrsqrt.f32 %v1244_v11  ;;  %3860 = vmatprep.mubr.msk.bf16.mxu1 %vm592_vm1, %v1562_v51  ;;  %v1436_v16 = vmul.f32 %v5572_v17, %v1368_v7 }
 0x212   :  { %3861 = vmatmul.mubr.msk.bf16.vlgmr.msra.gmra.mxu1 %vm592_vm1, %v1563_v57  ;;  %v1004_v33 = vpop.xlane.xlu0 %1003  ;;  %v1505_v22 = vadd.f32 %v5586_v54, %v1437_v5  ;;  %v7758_v5 = vld [vmem:[#allocation28_spill] sm:$0xff] }
 0x213   :  { %v1007_v12 = vpop.xlane.xlu1 %1006  ;;  %v1178_v13 = vmul.f32 0.015625, %v1004_v33  ;;  %v1504_v52 = vadd.f32 %v5586_v54, %v1436_v16 }
 0x214   :  { %v1179_v42 = vmul.f32 0.015625, %v1007_v12 }
 0x215   :  { %v4023_v46 = vpop.eup %4022  ;;  %v1242_v36 = vadd.f32 1e-05, %v1178_v13  ;;  %v1565_v13 = vpack.c.bf16 %v1505_v22, %v1504_v52  ;;  %v7759_v22 = vld [vmem:[#allocation29_spill] sm:$0xff] }
 0x216   :  { %v4025_v50 = vpop.eup %4024  ;;  %v1243_v0 = vadd.f32 1e-05, %v1179_v42  ;;  %v1367_v25 = vmul.f32 %v4023_v46, %v7755_v59 }
 0x217   :  { %v1366_v60 = vmul.f32 %v4025_v50, %v7756_v10  ;;  %v7757_v50 = vld [vmem:[#allocation27_spill] sm:$0xff] }
 0x218   :  { %4030 = vrsqrt.f32 %v1243_v0  ;;  %v1435_v11 = vmul.f32 %v5572_v17, %v1367_v25 }
 0x219   :  { %4032 = vrsqrt.f32 %v1242_v36  ;;  %v1434_v15 = vmul.f32 %v5572_v17, %v1366_v60 }
 0x21a   :  { %v1503_v61 = vadd.f32 %v5586_v54, %v1435_v11  ;;  %v1022_v57 = vpop.xlane.xlu0 %1021 }
 0x21b   :  { %v1025_v51 = vpop.xlane.xlu1 %1024  ;;  %v1502_v48 = vadd.f32 %v5586_v54, %v1434_v15  ;;  %v1184_v49 = vmul.f32 0.015625, %v1022_v57 }
 0x21c   :  { %v1185_v32 = vmul.f32 0.015625, %v1025_v51 }
 0x21d   :  { %v1564_v7 = vpack.c.bf16 %v1503_v61, %v1502_v48  ;;  %v4027_v12 = vpop.eup %4026  ;;  %v1248_v42 = vadd.f32 1e-05, %v1184_v49  ;;  %v7760_v48 = vld [vmem:[#allocation30_spill] sm:$0xff] }
 0x21e   :  { %v1249_v33 = vadd.f32 1e-05, %v1185_v32  ;;  %v4029_v46 = vpop.eup %4028  ;;  %v1373_v0 = vmul.f32 %v4027_v12, %v7757_v50 }
 0x21f   :  { %3864 = vmatprep.mubr.msk.bf16.mxu1 %vm592_vm1, %v1564_v7  ;;  %v1372_v36 = vmul.f32 %v4029_v46, %v7758_v5 }
 0x220   :  { %3865 = vmatmul.mubr.msk.bf16.gmra.mxu1 %vm592_vm1, %v1565_v13  ;;  %4034 = vrsqrt.f32 %v1249_v33  ;;  %v1441_v11 = vmul.f32 %v5572_v17, %v1373_v0 }
 0x221   :  { %4036 = vrsqrt.f32 %v1248_v42  ;;  %v1440_v57 = vmul.f32 %v5572_v17, %v1372_v36 }
 0x222   :  { %v1016_v25 = vpop.xlane.xlu0 %1015  ;;  %v1509_v42 = vadd.f32 %v5586_v54, %v1441_v11  ;;  %v7762_v11 = vld [vmem:[#allocation32_spill] sm:$0xff] }
 0x223   :  { %v1019_v59 = vpop.xlane.xlu1 %1018  ;;  %v1182_v10 = vmul.f32 0.015625, %v1016_v25  ;;  %v1508_v33 = vadd.f32 %v5586_v54, %v1440_v57 }
 0x224   :  { %v1183_v16 = vmul.f32 0.015625, %v1019_v59 }
 0x225   :  { %v4031_v60 = vpop.eup %4030  ;;  %v1246_v52 = vadd.f32 1e-05, %v1182_v10  ;;  %v1567_v10 = vpack.c.bf16 %v1509_v42, %v1508_v33  ;;  %v7763_v42 = vld [vmem:[#allocation33_spill] sm:$0xff] }
 0x226   :  { %v4033_v15 = vpop.eup %4032  ;;  %v1247_v61 = vadd.f32 1e-05, %v1183_v16  ;;  %v1371_v51 = vmul.f32 %v4031_v60, %v7759_v22 }
 0x227   :  { %v1370_v32 = vmul.f32 %v4033_v15, %v7760_v48  ;;  %v7761_v15 = vld [vmem:[#allocation31_spill] sm:$0xff] }
 0x228   :  { %4038 = vrsqrt.f32 %v1247_v61  ;;  %v1439_v49 = vmul.f32 %v5572_v17, %v1371_v51 }
 0x229   :  { %4040 = vrsqrt.f32 %v1246_v52  ;;  %v1438_v7 = vmul.f32 %v5572_v17, %v1370_v32 }
 0x22a   :  { %v1507_v12 = vadd.f32 %v5586_v54, %v1439_v49  ;;  %v1034_v46 = vpop.xlane.xlu0 %1033 }
 0x22b   :  { %v1037_v13 = vpop.xlane.xlu1 %1036  ;;  %v1506_v50 = vadd.f32 %v5586_v54, %v1438_v7  ;;  %v1188_v5 = vmul.f32 0.015625, %v1034_v46 }
 0x22c   :  { %v1189_v0 = vmul.f32 0.015625, %v1037_v13 }
 0x22d   :  { %v1566_v36 = vpack.c.bf16 %v1507_v12, %v1506_v50  ;;  %v4035_v59 = vpop.eup %4034  ;;  %v1252_v16 = vadd.f32 1e-05, %v1188_v5  ;;  %v7764_v50 = vld [vmem:[#allocation34_spill] sm:$0xff] }
 0x22e   :  { %v1253_v25 = vadd.f32 1e-05, %v1189_v0  ;;  %v4037_v60 = vpop.eup %4036  ;;  %v1377_v61 = vmul.f32 %v4035_v59, %v7761_v15 }
 0x22f   :  { %3868 = vmatprep.mubr.msk.bf16.mxu1 %vm592_vm1, %v1566_v36  ;;  %v1376_v52 = vmul.f32 %v4037_v60, %v7762_v11 }
 0x230   :  { %3869 = vmatmul.mubr.msk.bf16.gmra.mxu1 %vm592_vm1, %v1567_v10  ;;  %4042 = vrsqrt.f32 %v1253_v25  ;;  %v1445_v49 = vmul.f32 %v5572_v17, %v1377_v61 }
 0x231   :  { %4044 = vrsqrt.f32 %v1252_v16  ;;  %v1444_v46 = vmul.f32 %v5572_v17, %v1376_v52 }
 0x232   :  { %v1028_v51 = vpop.xlane.xlu0 %1027  ;;  %v1513_v16 = vadd.f32 %v5586_v54, %v1445_v49  ;;  %v7766_v49 = vld [vmem:[#allocation36_spill] sm:$0xff] }
 0x233   :  { %v1031_v22 = vpop.xlane.xlu1 %1030  ;;  %v1186_v48 = vmul.f32 0.015625, %v1028_v51  ;;  %v1512_v25 = vadd.f32 %v5586_v54, %v1444_v46 }
 0x234   :  { %v1187_v57 = vmul.f32 0.015625, %v1031_v22 }
 0x235   :  { %v4039_v32 = vpop.eup %4038  ;;  %v1250_v33 = vadd.f32 1e-05, %v1186_v48  ;;  %v1569_v48 = vpack.c.bf16 %v1513_v16, %v1512_v25  ;;  %v7767_v16 = vld [vmem:[#allocation37_spill] sm:$0xff] }
 0x236   :  { %v4041_v7 = vpop.eup %4040  ;;  %v1251_v12 = vadd.f32 1e-05, %v1187_v57  ;;  %v1375_v13 = vmul.f32 %v4039_v32, %v7763_v42 }
 0x237   :  { %v1374_v0 = vmul.f32 %v4041_v7, %v7764_v50  ;;  %v7765_v7 = vld [vmem:[#allocation35_spill] sm:$0xff] }
 0x238   :  { %4046 = vrsqrt.f32 %v1251_v12  ;;  %v1443_v5 = vmul.f32 %v5572_v17, %v1375_v13 }
 0x239   :  { %4048 = vrsqrt.f32 %v1250_v33  ;;  %v1442_v36 = vmul.f32 %v5572_v17, %v1374_v0 }
 0x23a   :  { %v1511_v59 = vadd.f32 %v5586_v54, %v1443_v5  ;;  %v1046_v60 = vpop.xlane.xlu0 %1045 }
 0x23b   :  { %v1049_v10 = vpop.xlane.xlu1 %1048  ;;  %v1510_v15 = vadd.f32 %v5586_v54, %v1442_v36  ;;  %v1192_v11 = vmul.f32 0.015625, %v1046_v60 }
 0x23c   :  { %v1193_v61 = vmul.f32 0.015625, %v1049_v10 }
 0x23d   :  { %v1568_v52 = vpack.c.bf16 %v1511_v59, %v1510_v15  ;;  %v4043_v22 = vpop.eup %4042  ;;  %v1256_v57 = vadd.f32 1e-05, %v1192_v11  ;;  %v7768_v11 = vld [vmem:[#allocation38_spill] sm:$0xff] }
 0x23e   :  { %v1257_v51 = vadd.f32 1e-05, %v1193_v61  ;;  %v4045_v32 = vpop.eup %4044  ;;  %v1381_v12 = vmul.f32 %v4043_v22, %v7765_v7  ;;  %v7769_v7 = vld [vmem:[#allocation7_spill] sm:$0xff] }
 0x23f   :  { %3872 = vmatprep.mubr.msk.bf16.mxu1 %vm592_vm1, %v1568_v52  ;;  %v1380_v33 = vmul.f32 %v4045_v32, %v7766_v49 }
 0x240   :  { %3873 = vmatmul.mubr.msk.bf16.gmra.mxu1 %vm592_vm1, %v1569_v48  ;;  %4050 = vrsqrt.f32 %v1257_v51  ;;  %v1449_v5 = vmul.f32 %v5572_v17, %v1381_v12  ;;  %v7770_v12 = vmax.f32 %v7769_v7, 0.0 }
 0x241   :  { %4052 = vrsqrt.f32 %v1256_v57  ;;  %v1448_v60 = vmul.f32 %v5572_v17, %v1380_v33 }
 0x242   :  { %v1040_v13 = vpop.xlane.xlu0 %1039  ;;  %v1517_v32 = vadd.f32 %v5586_v54, %v1449_v5 }
 0x243   :  { %v1043_v42 = vpop.xlane.xlu1 %1042  ;;  %v1190_v50 = vmul.f32 0.015625, %v1040_v13 }
 0x244   :  { %v1191_v46 = vmul.f32 0.015625, %v1043_v42  ;;  %v7771_v42 = vld [vmem:[#allocation6_spill] sm:$0xff] }
 0x245   :  { %v4047_v0 = vpop.eup %4046  ;;  %v1254_v25 = vadd.f32 1e-05, %v1190_v50  ;;  %v7772_v33 = vmax.f32 %v7771_v42, 0.0  ;;  %v1516_v50 = vadd.f32 %v5586_v54, %v1448_v60 }
 0x246   :  { %v4049_v36 = vpop.eup %4048  ;;  %v1255_v59 = vadd.f32 1e-05, %v1191_v46  ;;  %v1379_v10 = vmul.f32 %v4047_v0, %v7767_v16  ;;  %v781_v61 = vpop.xlane.xlu0 %780 }
 0x247   :  { %v784_v15 = vpop.xlane.xlu1 %783  ;;  %v1378_v52 = vmul.f32 %v4049_v36, %v7768_v11  ;;  %v848_v51 = vmul.f32 0.015625, %v781_v61 }
 0x248   :  { %4054 = vrsqrt.f32 %v1255_v59  ;;  %v849_v22 = vmul.f32 0.015625, %v784_v15  ;;  %v1447_v57 = vmul.f32 %v5572_v17, %v1379_v10  ;;  %v1571_v10 = vpack.c.bf16 %v1517_v32, %v1516_v50 }
 0x249   :  { %4056 = vrsqrt.f32 %v1254_v25  ;;  %v1446_v48 = vmul.f32 %v5572_v17, %v1378_v52  ;;  %v5654_v13 = vsub.f32 %v7772_v33, %v848_v51  ;;  %v7773_v51 = vld [vmem:[#allocation39_spill] sm:$0xff] }
 0x24a   :  { %v5650_v49 = vsub.f32 %v7770_v12, %v849_v22  ;;  %v1515_v46 = vadd.f32 %v5586_v54, %v1447_v57  ;;  %v7774_v12 = vld [vmem:[#allocation40_spill] sm:$0xff] }
 0x24b   :  { %v1514_v0 = vadd.f32 %v5586_v54, %v1446_v48  ;;  %v976_v5 = vmul.f32 %v5654_v13, %v5654_v13 }
 0x24c   :  { %v977_v36 = vmul.f32 %v5650_v49, %v5650_v49 }
 0x24d   :  { %v1570_v59 = vpack.c.bf16 %v1515_v46, %v1514_v0  ;;  %v4051_v25 = vpop.eup %4050  ;;  %v1164_v15 = vsel %vm592_vm1, %v976_v5, 0.0 }
 0x24e   :  { %v1167_v16 = vsel %vm592_vm1, %v977_v36, 0.0  ;;  %v4053_v61 = vpop.eup %4052  ;;  %v1052_v11 = vpop.xlane.xlu0 %1051  ;;  %1165 = vadd.xlane.f32.xlu0 %v1164_v15  ;;  %v1385_v57 = vmul.f32 %v4051_v25, %v7773_v51 }
 0x24f   :  { %3876 = vmatprep.mubr.msk.bf16.mxu1 %vm592_vm1, %v1570_v59  ;;  %1168 = vadd.xlane.f32.xlu1 %v1167_v16  ;;  %v1055_v60 = vpop.xlane.xlu1 %1054  ;;  %v1194_v22 = vmul.f32 0.015625, %v1052_v11  ;;  %v1384_v42 = vmul.f32 %v4053_v61, %v7774_v12 }
 0x250   :  { %v1195_v52 = vmul.f32 0.015625, %v1055_v60  ;;  %3877 = vmatmul.mubr.msk.bf16.gmra.mxu1 %vm592_vm1, %v1571_v10  ;;  %v1453_v36 = vmul.f32 %v5572_v17, %v1385_v57  ;;  %v7775_v10 = vld [vmem:[#allocation41_spill] sm:$0xff] }
 0x251   :  { %v1258_v7 = vadd.f32 1e-05, %v1194_v22  ;;  %v1452_v25 = vmul.f32 %v5572_v17, %v1384_v42 }
 0x252   :  { %v1259_v48 = vadd.f32 1e-05, %v1195_v52  ;;  %v1058_v33 = vpop.xlane.xlu0 %1057  ;;  %v7776_v52 = vld [vmem:[#allocation42_spill] sm:$0xff]  ;;  %v1521_v57 = vadd.f32 %v5586_v54, %v1453_v36 }
 0x253   :  { %v1061_v32 = vpop.xlane.xlu1 %1060  ;;  %v1196_v50 = vmul.f32 0.015625, %v1058_v33  ;;  %v1520_v42 = vadd.f32 %v5586_v54, %v1452_v25 }
 0x254   :  { %4058 = vrsqrt.f32 %v1259_v48  ;;  %v1197_v46 = vmul.f32 0.015625, %v1061_v32 }
 0x255   :  { %v4055_v0 = vpop.eup %4054  ;;  %4060 = vrsqrt.f32 %v1258_v7  ;;  %v1260_v16 = vadd.f32 1e-05, %v1196_v50 }
 0x256   :  { %v4057_v5 = vpop.eup %4056  ;;  %v1261_v59 = vadd.f32 1e-05, %v1197_v46  ;;  %v1383_v15 = vmul.f32 %v4055_v0, %v7775_v10  ;;  %v1064_v11 = vpop.xlane.xlu0 %1063 }
 0x257   :  { %v1067_v60 = vpop.xlane.xlu1 %1066  ;;  %v1382_v61 = vmul.f32 %v4057_v5, %v7776_v52  ;;  %v1198_v51 = vmul.f32 0.015625, %v1064_v11 }
 0x258   :  { %4062 = vrsqrt.f32 %v1261_v59  ;;  %v1199_v22 = vmul.f32 0.015625, %v1067_v60  ;;  %v1451_v48 = vmul.f32 %v5572_v17, %v1383_v15  ;;  %v1573_v60 = vpack.c.bf16 %v1521_v57, %v1520_v42 }
 0x259   :  { %4064 = vrsqrt.f32 %v1260_v16  ;;  %v1450_v7 = vmul.f32 %v5572_v17, %v1382_v61  ;;  %v1262_v32 = vadd.f32 1e-05, %v1198_v51 }
 0x25a   :  { %v1263_v12 = vadd.f32 1e-05, %v1199_v22  ;;  %v1519_v33 = vadd.f32 %v5586_v54, %v1451_v48  ;;  %v1070_v50 = vpop.xlane.xlu0 %1069 }
 0x25b   :  { %v1073_v46 = vpop.xlane.xlu1 %1072  ;;  %v1518_v0 = vadd.f32 %v5586_v54, %v1450_v7  ;;  %v1200_v59 = vmul.f32 0.015625, %v1070_v50 }
 0x25c   :  { %4066 = vrsqrt.f32 %v1263_v12  ;;  %v1201_v5 = vmul.f32 0.015625, %v1073_v46 }
 0x25d   :  { %4068 = vrsqrt.f32 %v1262_v32  ;;  %v1572_v10 = vpack.c.bf16 %v1519_v33, %v1518_v0  ;;  %v1264_v15 = vadd.f32 1e-05, %v1200_v59 }
 0x25e   :  { %v1265_v16 = vadd.f32 1e-05, %v1201_v5  ;;  %v1076_v11 = vpop.xlane.xlu0 %1075 }
 0x25f   :  { %3880 = vmatprep.mubr.msk.bf16.mxu1 %vm592_vm1, %v1572_v10  ;;  %v1079_v36 = vpop.xlane.xlu1 %1078  ;;  %v1202_v25 = vmul.f32 0.015625, %v1076_v11  ;;  %v7778_v11 = vld [vmem:[#allocation44_spill] sm:$0xff] }
 0x260   :  { %4070 = vrsqrt.f32 %v1265_v16  ;;  %v1203_v52 = vmul.f32 0.015625, %v1079_v36  ;;  %3881 = vmatmul.mubr.msk.bf16.gmra.mxu1 %vm592_vm1, %v1573_v60 }
 0x261   :  { %v4059_v61 = vpop.eup %4058  ;;  %4072 = vrsqrt.f32 %v1264_v15  ;;  %v1266_v48 = vadd.f32 1e-05, %v1202_v25  ;;  %v7777_v15 = vld [vmem:[#allocation43_spill] sm:$0xff] }
 0x262   :  { %v4061_v22 = vpop.eup %4060  ;;  %v1267_v51 = vadd.f32 1e-05, %v1203_v52  ;;  %v1387_v7 = vmul.f32 %v4059_v61, %v5276_v58  ;;  %v1082_v32 = vpop.xlane.xlu0 %1081 }
 0x263   :  { %v1085_v12 = vpop.xlane.xlu1 %1084  ;;  %v1386_v57 = vmul.f32 %v4061_v22, %v5280_v19  ;;  %v1204_v42 = vmul.f32 0.015625, %v1082_v32 }
 0x264   :  { %4074 = vrsqrt.f32 %v1267_v51  ;;  %v1205_v33 = vmul.f32 0.015625, %v1085_v12  ;;  %v1455_v46 = vmul.f32 %v5572_v17, %v1387_v7 }
 0x265   :  { %v4063_v50 = vpop.eup %4062  ;;  %4076 = vrsqrt.f32 %v1266_v48  ;;  %v1454_v0 = vmul.f32 %v5572_v17, %v1386_v57  ;;  %v1268_v10 = vadd.f32 1e-05, %v1204_v42 }
 0x266   :  { %v4065_v5 = vpop.eup %4064  ;;  %v1269_v59 = vadd.f32 1e-05, %v1205_v33  ;;  %v1523_v16 = vadd.f32 %v5586_v54, %v1455_v46  ;;  %v1389_v58 = vmul.f32 %v4063_v50, %v7777_v15  ;;  %v1088_v36 = vpop.xlane.xlu0 %1087 }
 0x267   :  { %v1091_v60 = vpop.xlane.xlu1 %1090  ;;  %v1522_v19 = vadd.f32 %v5586_v54, %v1454_v0  ;;  %v1388_v52 = vmul.f32 %v4065_v5, %v7778_v11  ;;  %v1206_v61 = vmul.f32 0.015625, %v1088_v36 }
 0x268   :  { %4078 = vrsqrt.f32 %v1269_v59  ;;  %v1207_v25 = vmul.f32 0.015625, %v1091_v60  ;;  %v1457_v22 = vmul.f32 %v5572_v17, %v1389_v58 }
 0x269   :  { %v4067_v51 = vpop.eup %4066  ;;  %4080 = vrsqrt.f32 %v1268_v10  ;;  %v1574_v48 = vpack.c.bf16 %v1523_v16, %v1522_v19  ;;  %v1456_v7 = vmul.f32 %v5572_v17, %v1388_v52  ;;  %v1270_v57 = vadd.f32 1e-05, %v1206_v61 }
 0x26a   :  { %v4069_v12 = vpop.eup %4068  ;;  %v1271_v32 = vadd.f32 1e-05, %v1207_v25  ;;  %v1525_v33 = vadd.f32 %v5586_v54, %v1457_v22  ;;  %v1391_v42 = vmul.f32 %v4067_v51, %v5306_v62  ;;  %v1094_v50 = vpop.xlane.xlu0 %1093 }
 0x26b   :  { %3884 = vmatprep.mubr.msk.bf16.mxu1 %vm592_vm1, %v1574_v48  ;;  %v1097_v46 = vpop.xlane.xlu1 %1096  ;;  %v1524_v0 = vadd.f32 %v5586_v54, %v1456_v7  ;;  %v1390_v5 = vmul.f32 %v4069_v12, %v5310_v8  ;;  %v1208_v10 = vmul.f32 0.015625, %v1094_v50 }
 0x26c   :  { %4082 = vrsqrt.f32 %v1271_v32  ;;  %v1209_v59 = vmul.f32 0.015625, %v1097_v46  ;;  %v1459_v16 = vmul.f32 %v5572_v17, %v1391_v42 }
 0x26d   :  { %v4071_v15 = vpop.eup %4070  ;;  %4084 = vrsqrt.f32 %v1270_v57  ;;  %v1575_v58 = vpack.c.bf16 %v1525_v33, %v1524_v0  ;;  %v1458_v60 = vmul.f32 %v5572_v17, %v1390_v5  ;;  %v1272_v19 = vadd.f32 1e-05, %v1208_v10 }
 0x26e   :  { %v4073_v36 = vpop.eup %4072  ;;  %v1273_v62 = vadd.f32 1e-05, %v1209_v59  ;;  %v1527_v11 = vadd.f32 %v5586_v54, %v1459_v16  ;;  %v1393_v52 = vmul.f32 %v4071_v15, %v5298_v6  ;;  %v1100_v25 = vpop.xlane.xlu0 %1099 }
 0x26f   :  { %3885 = vmatmul.mubr.msk.bf16.gmra.mxu1 %vm592_vm1, %v1575_v58  ;;  %v1103_v8 = vpop.xlane.xlu1 %1102  ;;  %v1526_v61 = vadd.f32 %v5586_v54, %v1458_v60  ;;  %v1392_v22 = vmul.f32 %v4073_v36, %v5302_v39  ;;  %v1210_v48 = vmul.f32 0.015625, %v1100_v25 }
 0x270   :  { %4086 = vrsqrt.f32 %v1273_v62  ;;  %v1211_v51 = vmul.f32 0.015625, %v1103_v8  ;;  %v1461_v7 = vmul.f32 %v5572_v17, %v1393_v52 }
 0x271   :  { %v4075_v12 = vpop.eup %4074  ;;  %4088 = vrsqrt.f32 %v1272_v19  ;;  %v1576_v32 = vpack.c.bf16 %v1527_v11, %v1526_v61  ;;  %v1460_v57 = vmul.f32 %v5572_v17, %v1392_v22  ;;  %v1274_v42 = vadd.f32 1e-05, %v1210_v48 }
 0x272   :  { %v4077_v33 = vpop.eup %4076  ;;  %v1275_v6 = vadd.f32 1e-05, %v1211_v51  ;;  %v1529_v46 = vadd.f32 %v5586_v54, %v1461_v7  ;;  %v1395_v50 = vmul.f32 %v4075_v12, %v5324_v45  ;;  %v1106_v0 = vpop.xlane.xlu0 %1105 }
 0x273   :  { %3888 = vmatprep.mubr.msk.bf16.mxu1 %vm592_vm1, %v1576_v32  ;;  %v1109_v39 = vpop.xlane.xlu1 %1108  ;;  %v1528_v5 = vadd.f32 %v5586_v54, %v1460_v57  ;;  %v1394_v59 = vmul.f32 %v4077_v33, %v5320_v2  ;;  %v1212_v16 = vmul.f32 0.015625, %v1106_v0 }
 0x274   :  { %4090 = vrsqrt.f32 %v1275_v6  ;;  %v1213_v10 = vmul.f32 0.015625, %v1109_v39  ;;  %v1463_v15 = vmul.f32 %v5572_v17, %v1395_v50 }
 0x275   :  { %v4079_v58 = vpop.eup %4078  ;;  %4092 = vrsqrt.f32 %v1274_v42  ;;  %v1577_v60 = vpack.c.bf16 %v1529_v46, %v1528_v5  ;;  %v1462_v36 = vmul.f32 %v5572_v17, %v1394_v59  ;;  %v1276_v19 = vadd.f32 1e-05, %v1212_v16 }
 0x276   :  { %v4081_v62 = vpop.eup %4080  ;;  %v1277_v45 = vadd.f32 1e-05, %v1213_v10  ;;  %v1531_v11 = vadd.f32 %v5586_v54, %v1463_v15  ;;  %v1397_v52 = vmul.f32 %v4079_v58, %v5338_v55  ;;  %v1112_v8 = vpop.xlane.xlu0 %1111 }
 0x277   :  { %3889 = vmatmul.mubr.msk.bf16.gmra.mxu1 %vm592_vm1, %v1577_v60  ;;  %v1115_v2 = vpop.xlane.xlu1 %1114  ;;  %v1530_v25 = vadd.f32 %v5586_v54, %v1462_v36  ;;  %v1396_v61 = vmul.f32 %v4081_v62, %v5334_v41  ;;  %v1214_v51 = vmul.f32 0.015625, %v1112_v8 }
 0x278   :  { %4094 = vrsqrt.f32 %v1277_v45  ;;  %v1215_v22 = vmul.f32 0.015625, %v1115_v2  ;;  %v1465_v48 = vmul.f32 %v5572_v17, %v1397_v52 }
 0x279   :  { %v4083_v7 = vpop.eup %4082  ;;  %4096 = vrsqrt.f32 %v1276_v19  ;;  %v1578_v12 = vpack.c.bf16 %v1531_v11, %v1530_v25  ;;  %v1464_v32 = vmul.f32 %v5572_v17, %v1396_v61  ;;  %v1278_v33 = vadd.f32 1e-05, %v1214_v51 }
 0x27a   :  { %v4085_v57 = vpop.eup %4084  ;;  %v1279_v55 = vadd.f32 1e-05, %v1215_v22  ;;  %v1533_v6 = vadd.f32 %v5586_v54, %v1465_v48  ;;  %v1399_v42 = vmul.f32 %v4083_v7, %v5357_v47  ;;  %v1118_v46 = vpop.xlane.xlu0 %1117 }
 0x27b   :  { %3892 = vmatprep.mubr.msk.bf16.mxu1 %vm592_vm1, %v1578_v12  ;;  %v1121_v41 = vpop.xlane.xlu1 %1120  ;;  %v1532_v50 = vadd.f32 %v5586_v54, %v1464_v32  ;;  %v1398_v39 = vmul.f32 %v4085_v57, %v5361_v4  ;;  %v1216_v5 = vmul.f32 0.015625, %v1118_v46 }
 0x27c   :  { %4098 = vrsqrt.f32 %v1279_v55  ;;  %v1217_v0 = vmul.f32 0.015625, %v1121_v41  ;;  %v1467_v59 = vmul.f32 %v5572_v17, %v1399_v42 }
 0x27d   :  { %v4087_v10 = vpop.eup %4086  ;;  %4100 = vrsqrt.f32 %v1278_v33  ;;  %v1579_v16 = vpack.c.bf16 %v1533_v6, %v1532_v50  ;;  %v1466_v15 = vmul.f32 %v5572_v17, %v1398_v39  ;;  %v1280_v60 = vadd.f32 1e-05, %v1216_v5 }
 0x27e   :  { %v4089_v58 = vpop.eup %4088  ;;  %v1281_v47 = vadd.f32 1e-05, %v1217_v0  ;;  %v1535_v36 = vadd.f32 %v5586_v54, %v1467_v59  ;;  %v1401_v62 = vmul.f32 %v4087_v10, %v5366_v37  ;;  %v1124_v45 = vpop.xlane.xlu0 %1123 }
 0x27f   :  { %3893 = vmatmul.mubr.msk.bf16.gmra.mxu1 %vm592_vm1, %v1579_v16  ;;  %v1127_v4 = vpop.xlane.xlu1 %1126  ;;  %v1534_v19 = vadd.f32 %v5586_v54, %v1466_v15  ;;  %v1400_v11 = vmul.f32 %v4089_v58, %v5373_v28  ;;  %v1218_v2 = vmul.f32 0.015625, %v1124_v45 }
 0x280   :  { %4102 = vrsqrt.f32 %v1281_v47  ;;  %v1219_v52 = vmul.f32 0.015625, %v1127_v4  ;;  %v1469_v8 = vmul.f32 %v5572_v17, %v1401_v62 }
 0x281   :  { %v4091_v25 = vpop.eup %4090  ;;  %4104 = vrsqrt.f32 %v1280_v60  ;;  %v1580_v61 = vpack.c.bf16 %v1535_v36, %v1534_v19  ;;  %v1468_v22 = vmul.f32 %v5572_v17, %v1400_v11  ;;  %v1282_v48 = vadd.f32 1e-05, %v1218_v2 }
 0x282   :  { %v4093_v51 = vpop.eup %4092  ;;  %v1283_v37 = vadd.f32 1e-05, %v1219_v52  ;;  %v1537_v7 = vadd.f32 %v5586_v54, %v1469_v8  ;;  %v1403_v12 = vmul.f32 %v4091_v25, %v5386_v63  ;;  %v1130_v32 = vpop.xlane.xlu0 %1129 }
 0x283   :  { %3896 = vmatprep.mubr.msk.bf16.mxu1 %vm592_vm1, %v1580_v61  ;;  %v1133_v28 = vpop.xlane.xlu1 %1132  ;;  %v1536_v57 = vadd.f32 %v5586_v54, %v1468_v22  ;;  %v1402_v55 = vmul.f32 %v4093_v51, %v5392_v30  ;;  %v1220_v6 = vmul.f32 0.015625, %v1130_v32 }
 0x284   :  { %4106 = vrsqrt.f32 %v1283_v37  ;;  %v1221_v33 = vmul.f32 0.015625, %v1133_v28  ;;  %v1471_v42 = vmul.f32 %v5572_v17, %v1403_v12 }
 0x285   :  { %v4095_v41 = vpop.eup %4094  ;;  %4108 = vrsqrt.f32 %v1282_v48  ;;  %v1581_v46 = vpack.c.bf16 %v1537_v7, %v1536_v57  ;;  %v1470_v50 = vmul.f32 %v5572_v17, %v1402_v55  ;;  %v1284_v0 = vadd.f32 1e-05, %v1220_v6 }
 0x286   :  { %v4097_v39 = vpop.eup %4096  ;;  %v1285_v63 = vadd.f32 1e-05, %v1221_v33  ;;  %v1539_v5 = vadd.f32 %v5586_v54, %v1471_v42  ;;  %v1405_v59 = vmul.f32 %v4095_v41, %v5402_v34  ;;  %v1136_v10 = vpop.xlane.xlu0 %1135 }
 0x287   :  { %3897 = vmatmul.mubr.msk.bf16.gmra.mxu1 %vm592_vm1, %v1581_v46  ;;  %v1139_v30 = vpop.xlane.xlu1 %1138  ;;  %v1538_v16 = vadd.f32 %v5586_v54, %v1470_v50  ;;  %v1404_v15 = vmul.f32 %v4097_v39, %v5406_v1  ;;  %v1222_v47 = vmul.f32 0.015625, %v1136_v10 }
 0x288   :  { %4110 = vrsqrt.f32 %v1285_v63  ;;  %v1223_v58 = vmul.f32 0.015625, %v1139_v30  ;;  %v1473_v60 = vmul.f32 %v5572_v17, %v1405_v59 }
 0x289   :  { %v4099_v36 = vpop.eup %4098  ;;  %4112 = vrsqrt.f32 %v1284_v0  ;;  %v1582_v62 = vpack.c.bf16 %v1539_v5, %v1538_v16  ;;  %v1472_v4 = vmul.f32 %v5572_v17, %v1404_v15  ;;  %v1286_v19 = vadd.f32 1e-05, %v1222_v47 }
 0x28a   :  { %v4101_v45 = vpop.eup %4100  ;;  %v1287_v34 = vadd.f32 1e-05, %v1223_v58  ;;  %v1541_v11 = vadd.f32 %v5586_v54, %v1473_v60  ;;  %v1407_v52 = vmul.f32 %v4099_v36, %v5427_v35  ;;  %v1142_v2 = vpop.xlane.xlu0 %1141 }
 0x28b   :  { %3900 = vmatprep.mubr.msk.bf16.mxu1 %vm592_vm1, %v1582_v62  ;;  %v1145_v1 = vpop.xlane.xlu1 %1144  ;;  %v1540_v8 = vadd.f32 %v5586_v54, %v1472_v4  ;;  %v1406_v25 = vmul.f32 %v4101_v45, %v5431_v56  ;;  %v1224_v22 = vmul.f32 0.015625, %v1142_v2 }
 0x28c   :  { %4114 = vrsqrt.f32 %v1287_v34  ;;  %v1225_v61 = vmul.f32 0.015625, %v1145_v1  ;;  %v1475_v51 = vmul.f32 %v5572_v17, %v1407_v52 }
 0x28d   :  { %v4103_v37 = vpop.eup %4102  ;;  %4116 = vrsqrt.f32 %v1286_v19  ;;  %v1583_v48 = vpack.c.bf16 %v1541_v11, %v1540_v8  ;;  %v1474_v7 = vmul.f32 %v5572_v17, %v1406_v25  ;;  %v1288_v28 = vadd.f32 1e-05, %v1224_v22 }
 0x28e   :  { %v4105_v12 = vpop.eup %4104  ;;  %v1289_v35 = vadd.f32 1e-05, %v1225_v61  ;;  %v1543_v32 = vadd.f32 %v5586_v54, %v1475_v51  ;;  %v1409_v57 = vmul.f32 %v4103_v37, %v5438_v38  ;;  %v1148_v55 = vpop.xlane.xlu0 %1147 }
 0x28f   :  { %3901 = vmatmul.mubr.msk.bf16.gmra.mxu1 %vm592_vm1, %v1583_v48  ;;  %v1151_v56 = vpop.xlane.xlu1 %1150  ;;  %v1542_v33 = vadd.f32 %v5586_v54, %v1474_v7  ;;  %v1408_v6 = vmul.f32 %v4105_v12, %v5447_v21  ;;  %v1226_v41 = vmul.f32 0.015625, %v1148_v55 }
 0x290   :  { %4118 = vrsqrt.f32 %v1289_v35  ;;  %v1227_v42 = vmul.f32 0.015625, %v1151_v56  ;;  %v1477_v46 = vmul.f32 %v5572_v17, %v1409_v57 }
 0x291   :  { %v4107_v50 = vpop.eup %4106  ;;  %4120 = vrsqrt.f32 %v1288_v28  ;;  %v1584_v39 = vpack.c.bf16 %v1543_v32, %v1542_v33  ;;  %v1476_v63 = vmul.f32 %v5572_v17, %v1408_v6  ;;  %v1290_v5 = vadd.f32 1e-05, %v1226_v41 }
 0x292   :  { %v4109_v0 = vpop.eup %4108  ;;  %v1291_v38 = vadd.f32 1e-05, %v1227_v42  ;;  %v1545_v59 = vadd.f32 %v5586_v54, %v1477_v46  ;;  %v1411_v30 = vmul.f32 %v4107_v50, %v5462_v9  ;;  %v1154_v10 = vpop.xlane.xlu0 %1153 }
 0x293   :  { %3904 = vmatprep.mubr.msk.bf16.mxu1 %vm592_vm1, %v1584_v39  ;;  %v1157_v21 = vpop.xlane.xlu1 %1156  ;;  %v1544_v16 = vadd.f32 %v5586_v54, %v1476_v63  ;;  %v1410_v15 = vmul.f32 %v4109_v0, %v5466_v24  ;;  %v1228_v47 = vmul.f32 0.015625, %v1154_v10 }
 0x294   :  { %4122 = vrsqrt.f32 %v1291_v38  ;;  %v1229_v58 = vmul.f32 0.015625, %v1157_v21  ;;  %v1479_v60 = vmul.f32 %v5572_v17, %v1411_v30 }
 0x295   :  { %v4111_v36 = vpop.eup %4110  ;;  %4124 = vrsqrt.f32 %v1290_v5  ;;  %v1585_v62 = vpack.c.bf16 %v1545_v59, %v1544_v16  ;;  %v1478_v4 = vmul.f32 %v5572_v17, %v1410_v15  ;;  %v1292_v34 = vadd.f32 1e-05, %v1228_v47 }
 0x296   :  { %v4113_v45 = vpop.eup %4112  ;;  %v1293_v9 = vadd.f32 1e-05, %v1229_v58  ;;  %v1547_v19 = vadd.f32 %v5586_v54, %v1479_v60  ;;  %v1413_v11 = vmul.f32 %v4111_v36, %v5474_v27  ;;  %v1160_v52 = vpop.xlane.xlu0 %1159 }
 0x297   :  { %3905 = vmatmul.mubr.msk.bf16.gmra.mxu1 %vm592_vm1, %v1585_v62  ;;  %v1163_v24 = vpop.xlane.xlu1 %1162  ;;  %v1546_v1 = vadd.f32 %v5586_v54, %v1478_v4  ;;  %v1412_v2 = vmul.f32 %v4113_v45, %v5479_v31  ;;  %v1230_v25 = vmul.f32 0.015625, %v1160_v52 }
 0x298   :  { %4126 = vrsqrt.f32 %v1293_v9  ;;  %v1231_v8 = vmul.f32 0.015625, %v1163_v24  ;;  %v1481_v61 = vmul.f32 %v5572_v17, %v1413_v11 }
 0x299   :  { %v4115_v22 = vpop.eup %4114  ;;  %4128 = vrsqrt.f32 %v1292_v34  ;;  %v1586_v51 = vpack.c.bf16 %v1547_v19, %v1546_v1  ;;  %v1480_v37 = vmul.f32 %v5572_v17, %v1412_v2  ;;  %v1294_v7 = vadd.f32 1e-05, %v1230_v25 }
 0x29a   :  { %v4117_v48 = vpop.eup %4116  ;;  %v1295_v27 = vadd.f32 1e-05, %v1231_v8  ;;  %v1549_v12 = vadd.f32 %v5586_v54, %v1481_v61  ;;  %v1415_v35 = vmul.f32 %v4115_v22, %v5497_v29 }
 0x29b   :  { %3908 = vmatprep.mubr.msk.bf16.mxu1 %vm592_vm1, %v1586_v51  ;;  %v1548_v31 = vadd.f32 %v5586_v54, %v1480_v37  ;;  %v1414_v28 = vmul.f32 %v4117_v48, %v5501_v43 }
 0x29c   :  { %4130 = vrsqrt.f32 %v1295_v27  ;;  %v1483_v32 = vmul.f32 %v5572_v17, %v1415_v35 }
 0x29d   :  { %v4119_v57 = vpop.eup %4118  ;;  %4132 = vrsqrt.f32 %v1294_v7  ;;  %v1587_v56 = vpack.c.bf16 %v1549_v12, %v1548_v31  ;;  %v1482_v55 = vmul.f32 %v5572_v17, %v1414_v28 }
 0x29e   :  { %v4121_v33 = vpop.eup %4120  ;;  %v1551_v6 = vadd.f32 %v5586_v54, %v1483_v32  ;;  %v1417_v42 = vmul.f32 %v4119_v57, %v5506_v40 }
 0x29f   :  { %3909 = vmatmul.mubr.msk.bf16.gmra.mxu1 %vm592_vm1, %v1587_v56  ;;  %v1550_v29 = vadd.f32 %v5586_v54, %v1482_v55  ;;  %v1416_v41 = vmul.f32 %v4121_v33, %v5510_v20 }
 0x2a0   :  { %v1485_v43 = vmul.f32 %v5572_v17, %v1417_v42 }
 0x2a1   :  { %v4123_v46 = vpop.eup %4122  ;;  %v1588_v50 = vpack.c.bf16 %v1551_v6, %v1550_v29  ;;  %v1484_v39 = vmul.f32 %v5572_v17, %v1416_v41 }
 0x2a2   :  { %v4125_v63 = vpop.eup %4124  ;;  %v1553_v0 = vadd.f32 %v5586_v54, %v1485_v43  ;;  %v1419_v38 = vmul.f32 %v4123_v46, %v5522_v44 }
 0x2a3   :  { %3912 = vmatprep.mubr.msk.bf16.mxu1 %vm592_vm1, %v1588_v50  ;;  %v1552_v40 = vadd.f32 %v5586_v54, %v1484_v39  ;;  %v1418_v5 = vmul.f32 %v4125_v63, %v5532_v18 }
 0x2a4   :  { %v1487_v59 = vmul.f32 %v5572_v17, %v1419_v38 }
 0x2a5   :  { %v4127_v20 = vpop.eup %4126  ;;  %v1589_v30 = vpack.c.bf16 %v1553_v0, %v1552_v40  ;;  %v1486_v21 = vmul.f32 %v5572_v17, %v1418_v5 }
 0x2a6   :  { %v4129_v10 = vpop.eup %4128  ;;  %v1555_v16 = vadd.f32 %v5586_v54, %v1487_v59  ;;  %v1421_v15 = vmul.f32 %v4127_v20, %v5540_v23 }
 0x2a7   :  { %3913 = vmatmul.mubr.msk.bf16.gmra.mxu1 %vm592_vm1, %v1589_v30  ;;  %v1554_v44 = vadd.f32 %v5586_v54, %v1486_v21  ;;  %v1420_v58 = vmul.f32 %v4129_v10, %v5544_v53 }
 0x2a8   :  { %v1489_v47 = vmul.f32 %v5572_v17, %v1421_v15 }
 0x2a9   :  { %v4131_v18 = vpop.eup %4130  ;;  %v1590_v60 = vpack.c.bf16 %v1555_v16, %v1554_v44  ;;  %v1488_v36 = vmul.f32 %v5572_v17, %v1420_v58 }
 0x2aa   :  { %v4133_v62 = vpop.eup %4132  ;;  %v1557_v4 = vadd.f32 %v5586_v54, %v1489_v47  ;;  %v1423_v45 = vmul.f32 %v4131_v18, %v5560_v26  ;;  %v1604_v26 = vsub.s32 3, %v7744_v14 }
 0x2ab   :  { %3916 = vmatprep.mubr.msk.bf16.mxu1 %vm592_vm1, %v1590_v60  ;;  %v1556_v23 = vadd.f32 %v5586_v54, %v1488_v36  ;;  %v1422_v9 = vmul.f32 %v4133_v62, %v5564_v3  ;;  %v4267_v3 = vld [vmem:[%s7400_s4] sm:$0x3f] }
 0x2ac   :  { %v1491_v34 = vmul.f32 %v5572_v17, %v1423_v45  ;;  %v5818_v1 = vrot.slane %v4267_v3, %v1604_v26 }
 0x2ad   :  { %v1591_v53 = vpack.c.bf16 %v1557_v4, %v1556_v23  ;;  %v1490_v19 = vmul.f32 %v5572_v17, %v1422_v9 }
 0x2ae   :  { %v1559_v11 = vadd.f32 %v5586_v54, %v1491_v34 }
 0x2af   :  { %3917 = vmatmul.mubr.msk.bf16.gmra.mxu1 %vm592_vm1, %v1591_v53  ;;  %v1558_v24 = vadd.f32 %v5586_v54, %v1490_v19 }
 0x2b1   :  { %v1592_v52 = vpack.c.bf16 %v1559_v11, %v1558_v24 }
 0x2b3   :  { %3920 = vmatprep.mubr.msk.bf16.mxu1 %vm592_vm1, %v1592_v52 }
 0x2d2   :  { %v3862_v2 = vpop.f32.mrf.mxu1 }
 0x2d3   :  { %v5821_v8 = vadd.f32 %v3862_v2, %v5818_v1 }
 0x2d4   :  { %v1760_v25 = vpop.f32.mrf.mxu1 }
 0x2d5   :  { %v7546_v61 = vmax.f32 %v5821_v8, 0.0  ;;  %v5825_v22 = vadd.f32 %v1760_v25, %v5818_v1 }
 0x2d6   :  { %v3863_v51 = vpop.f32.mrf.mxu1 }
 0x2d7   :  { %v7542_v37 = vmax.f32 %v5825_v22, 0.0  ;;  %v5829_v48 = vadd.f32 %v3863_v51, %v5818_v1  ;;  %v2085_v7 = vsel %vm592_vm1, %v7546_v61, 0.0  ;;  %v1166_v35 = vpop.xlane.xlu0 %1165 }
 0x2d8   :  { %v1169_v27 = vpop.xlane.xlu1 %1168  ;;  %v1763_v31 = vpop.f32.mrf.mxu1  ;;  %2086 = vadd.xlane.f32.xlu0 %v2085_v7  ;;  %v1232_v32 = vmul.f32 0.015625, %v1166_v35 }
 0x2d9   :  { %v1233_v12 = vmul.f32 0.015625, %v1169_v27  ;;  %v7545_v28 = vmax.f32 %v5829_v48, 0.0  ;;  %v5836_v57 = vadd.f32 %v1763_v31, %v5818_v1  ;;  %v2079_v42 = vsel %vm592_vm1, %v7542_v37, 0.0 }
 0x2da   :  { %v1296_v55 = vadd.f32 1e-05, %v1232_v32 }
 0x2db   :  { %v1297_v56 = vadd.f32 1e-05, %v1233_v12  ;;  %v7541_v33 = vmax.f32 %v5836_v57, 0.0  ;;  %v2088_v6 = vsel %vm592_vm1, %v7545_v28, 0.0 }
 0x2dc   :  { %2089 = vadd.xlane.f32.xlu1 %v2088_v6  ;;  %2080 = vadd.xlane.f32.xlu0 %v2079_v42 }
 0x2dd   :  { %4134 = vrsqrt.f32 %v1297_v56  ;;  %v2082_v41 = vsel %vm592_vm1, %v7541_v33, 0.0 }
 0x2de   :  { %4136 = vrsqrt.f32 %v1296_v55 }
 0x2e0   :  { %v3866_v29 = vpop.f32.mrf.mxu1  ;;  %2083 = vadd.xlane.f32.xlu1 %v2082_v41 }
 0x2e1   :  { %v5849_v43 = vadd.f32 %v3866_v29, %v5818_v1 }
 0x2e2   :  { %v1776_v46 = vpop.f32.mrf.mxu1 }
 0x2e3   :  { %v7538_v50 = vmax.f32 %v5849_v43, 0.0  ;;  %v5853_v39 = vadd.f32 %v1776_v46, %v5818_v1 }
 0x2e4   :  { %v3867_v63 = vpop.f32.mrf.mxu1 }
 0x2e5   :  { %v7534_v0 = vmax.f32 %v5853_v39, 0.0  ;;  %v5857_v38 = vadd.f32 %v3867_v63, %v5818_v1  ;;  %v2097_v40 = vsel %vm592_vm1, %v7538_v50, 0.0 }
 0x2e6   :  { %v1779_v5 = vpop.f32.mrf.mxu1  ;;  %2098 = vadd.xlane.f32.xlu0 %v2097_v40 }
 0x2e7   :  { %v7537_v59 = vmax.f32 %v5857_v38, 0.0  ;;  %v5864_v20 = vadd.f32 %v1779_v5, %v5818_v1  ;;  %v2091_v10 = vsel %vm592_vm1, %v7534_v0, 0.0 }
 0x2e9   :  { %v7533_v30 = vmax.f32 %v5864_v20, 0.0  ;;  %v2100_v21 = vsel %vm592_vm1, %v7537_v59, 0.0 }
 0x2ea   :  { %v4135_v16 = vpop.eup %4134  ;;  %2101 = vadd.xlane.f32.xlu1 %v2100_v21  ;;  %2092 = vadd.xlane.f32.xlu0 %v2091_v10 }
 0x2eb   :  { %v4137_v15 = vpop.eup %4136  ;;  %v1425_v44 = vmul.f32 %v4135_v16, %v5650_v49  ;;  %v2094_v47 = vsel %vm592_vm1, %v7533_v30, 0.0 }
 0x2ec   :  { %v1424_v58 = vmul.f32 %v4137_v15, %v5654_v13 }
 0x2ed   :  { %v1493_v18 = vmul.f32 %v5572_v17, %v1425_v44 }
 0x2ee   :  { %2095 = vadd.xlane.f32.xlu1 %v2094_v47  ;;  %v1492_v60 = vmul.f32 %v5572_v17, %v1424_v58 }
 0x2ef   :  { %v1561_v36 = vadd.f32 %v5586_v54, %v1493_v18 }
 0x2f0   :  { %v3870_v62 = vpop.f32.mrf.mxu1  ;;  %v1560_v4 = vadd.f32 %v5586_v54, %v1492_v60 }
 0x2f1   :  { %v5883_v45 = vadd.f32 %v3870_v62, %v5818_v1 }
 0x2f2   :  { %v1792_v49 = vpop.f32.mrf.mxu1  ;;  %v1593_v23 = vpack.c.bf16 %v1561_v36, %v1560_v4 }
 0x2f3   :  { %v7530_v13 = vmax.f32 %v5883_v45, 0.0  ;;  %v5887_v9 = vadd.f32 %v1792_v49, %v5818_v1 }
 0x2f4   :  { %v3871_v34 = vpop.f32.mrf.mxu1  ;;  %3921 = vmatmul.mubr.msk.bf16.gmra.mxu1 %vm592_vm1, %v1593_v23 }
 0x2f5   :  { %v7526_v17 = vmax.f32 %v5887_v9, 0.0  ;;  %v5892_v53 = vadd.f32 %v3871_v34, %v5818_v1  ;;  %v2109_v54 = vsel %vm592_vm1, %v7530_v13, 0.0 }
 0x2f6   :  { %v1795_v19 = vpop.f32.mrf.mxu1  ;;  %2110 = vadd.xlane.f32.xlu0 %v2109_v54 }
 0x2f7   :  { %v7529_v11 = vmax.f32 %v5892_v53, 0.0  ;;  %v5899_v24 = vadd.f32 %v1795_v19, %v5818_v1  ;;  %v2103_v3 = vsel %vm592_vm1, %v7526_v17, 0.0 }
 0x2f9   :  { %v7525_v52 = vmax.f32 %v5899_v24, 0.0  ;;  %v2112_v26 = vsel %vm592_vm1, %v7529_v11, 0.0 }
 0x2fa   :  { %2113 = vadd.xlane.f32.xlu1 %v2112_v26  ;;  %2104 = vadd.xlane.f32.xlu0 %v2103_v3 }
 0x2fb   :  { %v2106_v2 = vsel %vm592_vm1, %v7525_v52, 0.0 }
 0x2fe   :  { %2107 = vadd.xlane.f32.xlu1 %v2106_v2 }
 0x300   :  { %v3874_v25 = vpop.f32.mrf.mxu1 }
 0x301   :  { %v5912_v51 = vadd.f32 %v3874_v25, %v5818_v1 }
 0x302   :  { %v1808_v27 = vpop.f32.mrf.mxu1 }
 0x303   :  { %v7522_v7 = vmax.f32 %v5912_v51, 0.0  ;;  %v5916_v12 = vadd.f32 %v1808_v27, %v5818_v1 }
 0x304   :  { %v3875_v35 = vpop.f32.mrf.mxu1 }
 0x305   :  { %v7518_v31 = vmax.f32 %v5916_v12, 0.0  ;;  %v5920_v32 = vadd.f32 %v3875_v35, %v5818_v1  ;;  %v2121_v56 = vsel %vm592_vm1, %v7522_v7, 0.0 }
 0x306   :  { %v1811_v55 = vpop.f32.mrf.mxu1  ;;  %2122 = vadd.xlane.f32.xlu0 %v2121_v56 }
 0x307   :  { %v7521_v6 = vmax.f32 %v5920_v32, 0.0  ;;  %v5927_v42 = vadd.f32 %v1811_v55, %v5818_v1  ;;  %v2115_v46 = vsel %vm592_vm1, %v7518_v31, 0.0 }
 0x309   :  { %v7517_v29 = vmax.f32 %v5927_v42, 0.0  ;;  %v2124_v41 = vsel %vm592_vm1, %v7521_v6, 0.0 }
 0x30a   :  { %2125 = vadd.xlane.f32.xlu1 %v2124_v41  ;;  %2116 = vadd.xlane.f32.xlu0 %v2115_v46 }
 0x30b   :  { %v2118_v63 = vsel %vm592_vm1, %v7517_v29, 0.0 }
 0x30e   :  { %2119 = vadd.xlane.f32.xlu1 %v2118_v63 }
 0x310   :  { %v3878_v40 = vpop.f32.mrf.mxu1 }
 0x311   :  { %v5940_v5 = vadd.f32 %v3878_v40, %v5818_v1 }
 0x312   :  { %v1824_v21 = vpop.f32.mrf.mxu1 }
 0x313   :  { %v7514_v10 = vmax.f32 %v5940_v5, 0.0  ;;  %v5944_v16 = vadd.f32 %v1824_v21, %v5818_v1 }
 0x314   :  { %v3879_v15 = vpop.f32.mrf.mxu1 }
 0x315   :  { %v7510_v44 = vmax.f32 %v5944_v16, 0.0  ;;  %v5948_v58 = vadd.f32 %v3879_v15, %v5818_v1  ;;  %v2133_v47 = vsel %vm592_vm1, %v7514_v10, 0.0 }
 0x316   :  { %v1827_v18 = vpop.f32.mrf.mxu1  ;;  %2134 = vadd.xlane.f32.xlu0 %v2133_v47 }
 0x317   :  { %v7513_v60 = vmax.f32 %v5948_v58, 0.0  ;;  %v5955_v36 = vadd.f32 %v1827_v18, %v5818_v1  ;;  %v2127_v49 = vsel %vm592_vm1, %v7510_v44, 0.0 }
 0x319   :  { %v7509_v62 = vmax.f32 %v5955_v36, 0.0  ;;  %v2136_v4 = vsel %vm592_vm1, %v7513_v60, 0.0 }
 0x31a   :  { %2137 = vadd.xlane.f32.xlu1 %v2136_v4  ;;  %2128 = vadd.xlane.f32.xlu0 %v2127_v49 }
 0x31b   :  { %v2130_v23 = vsel %vm592_vm1, %v7509_v62, 0.0 }
 0x31e   :  { %2131 = vadd.xlane.f32.xlu1 %v2130_v23 }
 0x320   :  { %v3882_v34 = vpop.f32.mrf.mxu1 }
 0x321   :  { %v5968_v54 = vadd.f32 %v3882_v34, %v5818_v1 }
 0x322   :  { %v1840_v19 = vpop.f32.mrf.mxu1 }
 0x323   :  { %v7506_v26 = vmax.f32 %v5968_v54, 0.0  ;;  %v5972_v3 = vadd.f32 %v1840_v19, %v5818_v1 }
 0x324   :  { %v3883_v2 = vpop.f32.mrf.mxu1 }
 0x325   :  { %v7502_v25 = vmax.f32 %v5972_v3, 0.0  ;;  %v5976_v27 = vadd.f32 %v3883_v2, %v5818_v1  ;;  %v2145_v35 = vsel %vm592_vm1, %v7506_v26, 0.0 }
 0x326   :  { %v1843_v56 = vpop.f32.mrf.mxu1  ;;  %2146 = vadd.xlane.f32.xlu0 %v2145_v35 }
 0x327   :  { %v7505_v55 = vmax.f32 %v5976_v27, 0.0  ;;  %v5983_v41 = vadd.f32 %v1843_v56, %v5818_v1  ;;  %v2139_v40 = vsel %vm592_vm1, %v7502_v25, 0.0 }
 0x329   :  { %v7501_v46 = vmax.f32 %v5983_v41, 0.0  ;;  %v2148_v63 = vsel %vm592_vm1, %v7505_v55, 0.0 }
 0x32a   :  { %2149 = vadd.xlane.f32.xlu1 %v2148_v63  ;;  %2140 = vadd.xlane.f32.xlu0 %v2139_v40 }
 0x32b   :  { %v2142_v21 = vsel %vm592_vm1, %v7501_v46, 0.0 }
 0x32e   :  { %2143 = vadd.xlane.f32.xlu1 %v2142_v21 }
 0x32f   :  { %v3886_v15 = vpop.f32.mrf.mxu1 }
 0x330   :  { %v5996_v47 = vadd.f32 %v3886_v15, %v5818_v1 }
 0x331   :  { %v1856_v18 = vpop.f32.mrf.mxu1 }
 0x332   :  { %v7500_v4 = vmax.f32 %v5996_v47, 0.0  ;;  %v6000_v49 = vadd.f32 %v1856_v18, %v5818_v1 }
 0x333   :  { %v3887_v23 = vpop.f32.mrf.mxu1 }
 0x334   :  { %v7504_v34 = vmax.f32 %v6000_v49, 0.0  ;;  %v6004_v19 = vadd.f32 %v3887_v23, %v5818_v1  ;;  %v2157_v2 = vsel %vm592_vm1, %v7500_v4, 0.0 }
 0x335   :  { %2158 = vadd.xlane.f32.xlu0 %v2157_v2  ;;  %v1859_v35 = vpop.f32.mrf.mxu1 }
 0x336   :  { %7779 = vst [vmem:[#allocation5_spill] sm:$0xff] %v6004_v19  ;;  %v7503_v56 = vmax.f32 %v6004_v19, 0.0  ;;  %v6011_v63 = vadd.f32 %v1859_v35, %v5818_v1  ;;  %v2151_v23 = vsel %vm592_vm1, %v7504_v34, 0.0 }
 0x337   :  { %v3890_v40 = vpop.f32.mrf.mxu1 }
 0x338   :  { %v7507_v21 = vmax.f32 %v6011_v63, 0.0  ;;  %v6015_v15 = vadd.f32 %v3890_v40, %v5818_v1  ;;  %v2160_v18 = vsel %vm592_vm1, %v7503_v56, 0.0 }
 0x339   :  { %2161 = vadd.xlane.f32.xlu1 %v2160_v18  ;;  %2152 = vadd.xlane.f32.xlu0 %v2151_v23  ;;  %v1872_v2 = vpop.f32.mrf.mxu1 }
 0x33a   :  { %7780 = vst [vmem:[#allocation4_spill] sm:$0xff] %v6015_v15  ;;  %v7508_v35 = vmax.f32 %v6015_v15, 0.0  ;;  %v6025_v4 = vadd.f32 %v1872_v2, %v5818_v1  ;;  %v2154_v56 = vsel %vm592_vm1, %v7507_v21, 0.0 }
 0x33b   :  { %v3891_v46 = vpop.f32.mrf.mxu1 }
 0x33c   :  { %7781 = vst [vmem:[#allocation3_spill] sm:$0xff] %v6025_v4  ;;  %v7512_v40 = vmax.f32 %v6025_v4, 0.0  ;;  %v6029_v25 = vadd.f32 %v3891_v46, %v5818_v1  ;;  %v2169_v18 = vsel %vm592_vm1, %v7508_v35, 0.0 }
 0x33d   :  { %2155 = vadd.xlane.f32.xlu1 %v2154_v56  ;;  %2170 = vadd.xlane.f32.xlu0 %v2169_v18  ;;  %v1875_v23 = vpop.f32.mrf.mxu1 }
 0x33e   :  { %7782 = vst [vmem:[#allocation11_spill] sm:$0xff] %v6029_v25  ;;  %v7511_v2 = vmax.f32 %v6029_v25, 0.0  ;;  %v6039_v34 = vadd.f32 %v1875_v23, %v5818_v1  ;;  %v2163_v56 = vsel %vm592_vm1, %v7512_v40, 0.0  ;;  %v7818_v25 = vmax.f32 %v5829_v48, 0.0 }
 0x33f   :  { %v3894_v55 = vpop.f32.mrf.mxu1 }
 0x340   :  { %7783 = vst [vmem:[#allocation10_spill] sm:$0xff] %v6039_v34  ;;  %v7515_v46 = vmax.f32 %v6039_v34, 0.0  ;;  %v6043_v26 = vadd.f32 %v3894_v55, %v5818_v1  ;;  %v2172_v21 = vsel %vm592_vm1, %v7511_v2, 0.0 }
 0x341   :  { %2173 = vadd.xlane.f32.xlu1 %v2172_v21  ;;  %2164 = vadd.xlane.f32.xlu0 %v2163_v56  ;;  %v1888_v18 = vpop.f32.mrf.mxu1 }
 0x342   :  { %7784 = vst [vmem:[#allocation9_spill] sm:$0xff] %v6043_v26  ;;  %v7516_v23 = vmax.f32 %v6043_v26, 0.0  ;;  %v6053_v35 = vadd.f32 %v1888_v18, %v5818_v1  ;;  %v2166_v2 = vsel %vm592_vm1, %v7515_v46, 0.0 }
 0x343   :  { %v3895_v62 = vpop.f32.mrf.mxu1 }
 0x344   :  { %7785 = vst [vmem:[#allocation8_spill] sm:$0xff] %v6053_v35  ;;  %v7520_v55 = vmax.f32 %v6053_v35, 0.0  ;;  %v6057_v44 = vadd.f32 %v3895_v62, %v5818_v1  ;;  %v2181_v21 = vsel %vm592_vm1, %v7516_v23, 0.0 }
 0x345   :  { %2167 = vadd.xlane.f32.xlu1 %v2166_v2  ;;  %2182 = vadd.xlane.f32.xlu0 %v2181_v21  ;;  %v1891_v56 = vpop.f32.mrf.mxu1 }
 0x346   :  { %7786 = vst [vmem:[#allocation15_spill] sm:$0xff] %v6057_v44  ;;  %v7519_v18 = vmax.f32 %v6057_v44, 0.0  ;;  %v6067_v40 = vadd.f32 %v1891_v56, %v5818_v1  ;;  %v2175_v2 = vsel %vm592_vm1, %v7520_v55, 0.0 }
 0x347   :  { %v3898_v60 = vpop.f32.mrf.mxu1 }
 0x348   :  { %7787 = vst [vmem:[#allocation14_spill] sm:$0xff] %v6067_v40  ;;  %v7523_v62 = vmax.f32 %v6067_v40, 0.0  ;;  %v6071_v10 = vadd.f32 %v3898_v60, %v5818_v1  ;;  %v2184_v46 = vsel %vm592_vm1, %v7519_v18, 0.0 }
 0x349   :  { %2185 = vadd.xlane.f32.xlu1 %v2184_v46  ;;  %2176 = vadd.xlane.f32.xlu0 %v2175_v2  ;;  %v1904_v21 = vpop.f32.mrf.mxu1 }
 0x34a   :  { %7788 = vst [vmem:[#allocation13_spill] sm:$0xff] %v6071_v10  ;;  %v7524_v56 = vmax.f32 %v6071_v10, 0.0  ;;  %v6081_v23 = vadd.f32 %v1904_v21, %v5818_v1  ;;  %v2178_v18 = vsel %vm592_vm1, %v7523_v62, 0.0 }
 0x34b   :  { %v3899_v29 = vpop.f32.mrf.mxu1 }
 0x34c   :  { %7789 = vst [vmem:[#allocation12_spill] sm:$0xff] %v6081_v23  ;;  %v7528_v60 = vmax.f32 %v6081_v23, 0.0  ;;  %v6085_v31 = vadd.f32 %v3899_v29, %v5818_v1  ;;  %v2193_v46 = vsel %vm592_vm1, %v7524_v56, 0.0 }
 0x34d   :  { %2179 = vadd.xlane.f32.xlu1 %v2178_v18  ;;  %2194 = vadd.xlane.f32.xlu0 %v2193_v46  ;;  %v1907_v2 = vpop.f32.mrf.mxu1 }
 0x34e   :  { %7790 = vst [vmem:[#allocation16_spill] sm:$0xff] %v6085_v31  ;;  %v7527_v21 = vmax.f32 %v6085_v31, 0.0  ;;  %v6095_v55 = vadd.f32 %v1907_v2, %v5818_v1  ;;  %v2187_v18 = vsel %vm592_vm1, %v7528_v60, 0.0  ;;  %v7816_v31 = vmax.f32 %v5821_v8, 0.0 }
 0x34f   :  { %v3902_v6 = vpop.f32.mrf.mxu1 }
 0x350   :  { %7791 = vst [vmem:[#allocation18_spill] sm:$0xff] %v6095_v55  ;;  %v7531_v29 = vmax.f32 %v6095_v55, 0.0  ;;  %v6099_v7 = vadd.f32 %v3902_v6, %v5818_v1  ;;  %v2196_v62 = vsel %vm592_vm1, %v7527_v21, 0.0 }
 0x351   :  { %2197 = vadd.xlane.f32.xlu1 %v2196_v62  ;;  %2188 = vadd.xlane.f32.xlu0 %v2187_v18  ;;  %v1920_v46 = vpop.f32.mrf.mxu1 }
 0x352   :  { %7792 = vst [vmem:[#allocation17_spill] sm:$0xff] %v6099_v7  ;;  %v7532_v2 = vmax.f32 %v6099_v7, 0.0  ;;  %v6109_v56 = vadd.f32 %v1920_v46, %v5818_v1  ;;  %v2190_v21 = vsel %vm592_vm1, %v7531_v29, 0.0 }
 0x353   :  { %v3903_v52 = vpop.f32.mrf.mxu1 }
 0x354   :  { %7793 = vst [vmem:[#allocation20_spill] sm:$0xff] %v6109_v56  ;;  %v7536_v6 = vmax.f32 %v6109_v56, 0.0  ;;  %v6113_v17 = vadd.f32 %v3903_v52, %v5818_v1  ;;  %v2205_v62 = vsel %vm592_vm1, %v7532_v2, 0.0 }
 0x355   :  { %2191 = vadd.xlane.f32.xlu1 %v2190_v21  ;;  %2206 = vadd.xlane.f32.xlu0 %v2205_v62  ;;  %v1923_v18 = vpop.f32.mrf.mxu1 }
 0x356   :  { %7794 = vst [vmem:[#allocation21_spill] sm:$0xff] %v6113_v17  ;;  %v7535_v46 = vmax.f32 %v6113_v17, 0.0  ;;  %v6123_v60 = vadd.f32 %v1923_v18, %v5818_v1  ;;  %v2199_v21 = vsel %vm592_vm1, %v7536_v6, 0.0 }
 0x357   :  { %v3906_v11 = vpop.f32.mrf.mxu1 }
 0x358   :  { %7795 = vst [vmem:[#allocation19_spill] sm:$0xff] %v6123_v60  ;;  %v7539_v52 = vmax.f32 %v6123_v60, 0.0  ;;  %v6127_v13 = vadd.f32 %v3906_v11, %v5818_v1  ;;  %v2208_v29 = vsel %vm592_vm1, %v7535_v46, 0.0 }
 0x359   :  { %2209 = vadd.xlane.f32.xlu1 %v2208_v29  ;;  %2200 = vadd.xlane.f32.xlu0 %v2199_v21  ;;  %v1936_v62 = vpop.f32.mrf.mxu1 }
 0x35a   :  { %7796 = vst [vmem:[#allocation22_spill] sm:$0xff] %v6127_v13  ;;  %v7540_v18 = vmax.f32 %v6127_v13, 0.0  ;;  %v6137_v2 = vadd.f32 %v1936_v62, %v5818_v1  ;;  %v2202_v46 = vsel %vm592_vm1, %v7539_v52, 0.0 }
 0x35b   :  { %v3907_v30 = vpop.f32.mrf.mxu1 }
 0x35c   :  { %7797 = vst [vmem:[#allocation23_spill] sm:$0xff] %v6137_v2  ;;  %v7544_v11 = vmax.f32 %v6137_v2, 0.0  ;;  %v6141_v0 = vadd.f32 %v3907_v30, %v5818_v1  ;;  %v2217_v29 = vsel %vm592_vm1, %v7540_v18, 0.0 }
 0x35d   :  { %2203 = vadd.xlane.f32.xlu1 %v2202_v46  ;;  %2218 = vadd.xlane.f32.xlu0 %v2217_v29  ;;  %v1939_v21 = vpop.f32.mrf.mxu1 }
 0x35e   :  { %7798 = vst [vmem:[#allocation24_spill] sm:$0xff] %v6141_v0  ;;  %v7543_v62 = vmax.f32 %v6141_v0, 0.0  ;;  %v6151_v6 = vadd.f32 %v1939_v21, %v5818_v1  ;;  %v2211_v46 = vsel %vm592_vm1, %v7544_v11, 0.0 }
 0x35f   :  { %v3910_v59 = vpop.f32.mrf.mxu1 }
 0x360   :  { %7799 = vst [vmem:[#allocation25_spill] sm:$0xff] %v6151_v6  ;;  %v7547_v30 = vmax.f32 %v6151_v6, 0.0  ;;  %v6155_v50 = vadd.f32 %v3910_v59, %v5818_v1  ;;  %v2220_v52 = vsel %vm592_vm1, %v7543_v62, 0.0 }
 0x361   :  { %2221 = vadd.xlane.f32.xlu1 %v2220_v52  ;;  %2212 = vadd.xlane.f32.xlu0 %v2211_v46  ;;  %v1952_v29 = vpop.f32.mrf.mxu1 }
 0x362   :  { %7800 = vst [vmem:[#allocation26_spill] sm:$0xff] %v6155_v50  ;;  %v7548_v21 = vmax.f32 %v6155_v50, 0.0  ;;  %v6165_v18 = vadd.f32 %v1952_v29, %v5818_v1  ;;  %v2214_v62 = vsel %vm592_vm1, %v7547_v30, 0.0 }
 0x363   :  { %v3911_v33 = vpop.f32.mrf.mxu1 }
 0x364   :  { %7801 = vst [vmem:[#allocation27_spill] sm:$0xff] %v6165_v18  ;;  %v7552_v59 = vmax.f32 %v6165_v18, 0.0  ;;  %v6169_v37 = vadd.f32 %v3911_v33, %v5818_v1  ;;  %v2229_v52 = vsel %vm592_vm1, %v7548_v21, 0.0 }
 0x365   :  { %2215 = vadd.xlane.f32.xlu1 %v2214_v62  ;;  %2230 = vadd.xlane.f32.xlu0 %v2229_v52  ;;  %v1955_v46 = vpop.f32.mrf.mxu1 }
 0x366   :  { %7802 = vst [vmem:[#allocation28_spill] sm:$0xff] %v6169_v37  ;;  %v7550_v29 = vmax.f32 %v6169_v37, 0.0  ;;  %v6179_v11 = vadd.f32 %v1955_v46, %v5818_v1  ;;  %v2223_v62 = vsel %vm592_vm1, %v7552_v59, 0.0 }
 0x367   :  { %v3914_v28 = vpop.f32.mrf.mxu1 }
 0x368   :  { %7803 = vst [vmem:[#allocation29_spill] sm:$0xff] %v6179_v11  ;;  %v6183_v61 = vadd.f32 %v3914_v28, %v5818_v1  ;;  %v2232_v30 = vsel %vm592_vm1, %v7550_v29, 0.0  ;;  %v7807_v29 = vmax.f32 %v6179_v11, 0.0 }
 0x369   :  { %2233 = vadd.xlane.f32.xlu1 %v2232_v30  ;;  %2224 = vadd.xlane.f32.xlu0 %v2223_v62  ;;  %v1968_v52 = vpop.f32.mrf.mxu1 }
 0x36a   :  { %7804 = vst [vmem:[#allocation30_spill] sm:$0xff] %v6183_v61  ;;  %v7554_v46 = vmax.f32 %v6183_v61, 0.0  ;;  %v6193_v21 = vadd.f32 %v1968_v52, %v5818_v1  ;;  %v2226_v37 = vsel %vm592_vm1, %v7807_v29, 0.0 }
 0x36b   :  { %v3915_v33 = vpop.f32.mrf.mxu1 }
 0x36c   :  { %7805 = vst [vmem:[#allocation31_spill] sm:$0xff] %v6193_v21  ;;  %v6197_v14 = vadd.f32 %v3915_v33, %v5818_v1  ;;  %v2241_v30 = vsel %vm592_vm1, %v7554_v46, 0.0  ;;  %v7810_v46 = vmax.f32 %v6193_v21, 0.0 }
 0x36d   :  { %2227 = vadd.xlane.f32.xlu1 %v2226_v37  ;;  %2242 = vadd.xlane.f32.xlu0 %v2241_v30  ;;  %v1971_v62 = vpop.f32.mrf.mxu1 }
 0x36e   :  { %7806 = vst [vmem:[#allocation32_spill] sm:$0xff] %v6197_v14  ;;  %v7557_v52 = vmax.f32 %v6197_v14, 0.0  ;;  %v6207_v59 = vadd.f32 %v1971_v62, %v5818_v1  ;;  %v2235_v37 = vsel %vm592_vm1, %v7810_v46, 0.0 }
 0x36f   :  { %v3918_v28 = vpop.f32.mrf.mxu1 }
 0x370   :  { %7808 = vst [vmem:[#allocation33_spill] sm:$0xff] %v6207_v59  ;;  %v6211_v50 = vadd.f32 %v3918_v28, %v5818_v1  ;;  %v2244_v29 = vsel %vm592_vm1, %v7557_v52, 0.0  ;;  %v7813_v52 = vmax.f32 %v6207_v59, 0.0 }
 0x371   :  { %2245 = vadd.xlane.f32.xlu1 %v2244_v29  ;;  %2236 = vadd.xlane.f32.xlu0 %v2235_v37  ;;  %v1984_v30 = vpop.f32.mrf.mxu1 }
 0x372   :  { %7809 = vst [vmem:[#allocation34_spill] sm:$0xff] %v6211_v50  ;;  %v7560_v62 = vmax.f32 %v6211_v50, 0.0  ;;  %v6221_v61 = vadd.f32 %v1984_v30, %v5818_v1  ;;  %v2238_v14 = vsel %vm592_vm1, %v7813_v52, 0.0 }
 0x373   :  { %v3919_v33 = vpop.f32.mrf.mxu1 }
 0x374   :  { %7811 = vst [vmem:[#allocation35_spill] sm:$0xff] %v6221_v61  ;;  %v6225_v11 = vadd.f32 %v3919_v33, %v5818_v1  ;;  %v2253_v46 = vsel %vm592_vm1, %v7560_v62, 0.0  ;;  %v7815_v52 = vmax.f32 %v6221_v61, 0.0 }
 0x375   :  { %2239 = vadd.xlane.f32.xlu1 %v2238_v14  ;;  %2254 = vadd.xlane.f32.xlu0 %v2253_v46  ;;  %v1987_v29 = vpop.f32.mrf.mxu1  ;;  %v2087_v46 = vpop.xlane.xlu0 %2086 }
 0x376   :  { %7812 = vst [vmem:[#allocation36_spill] sm:$0xff] %v6225_v11  ;;  %v7566_v37 = vmax.f32 %v6225_v11, 0.0  ;;  %v6235_v30 = vadd.f32 %v1987_v29, %v5818_v1  ;;  %v2247_v50 = vsel %vm592_vm1, %v7815_v52, 0.0  ;;  %v2090_v29 = vpop.xlane.xlu1 %2089  ;;  %v2273_v17 = vmul.f32 0.015625, %v2087_v46 }
 0x377   :  { %v2274_v10 = vmul.f32 0.015625, %v2090_v29 }
 0x378   :  { %7814 = vst [vmem:[#allocation37_spill] sm:$0xff] %v6235_v30  ;;  %v7570_v28 = vmax.f32 %v6235_v30, 0.0  ;;  %v2256_v33 = vsel %vm592_vm1, %v7566_v37, 0.0  ;;  %v6271_v55 = vsub.f32 %v7816_v31, %v2273_v17 }
 0x379   :  { %2257 = vadd.xlane.f32.xlu1 %v2256_v33  ;;  %2248 = vadd.xlane.f32.xlu0 %v2247_v50  ;;  %v2081_v62 = vpop.xlane.xlu0 %2080  ;;  %v6283_v34 = vsub.f32 %v7818_v25, %v2274_v10  ;;  %v7820_v25 = vmax.f32 %v5836_v57, 0.0 }
 0x37a   :  { %v2250_v14 = vsel %vm592_vm1, %v7570_v28, 0.0  ;;  %v2084_v59 = vpop.xlane.xlu1 %2083  ;;  %7817 = vst [vmem:[#allocation38_spill] sm:$0xff] %v6271_v55  ;;  %v2271_v44 = vmul.f32 0.015625, %v2081_v62  ;;  %v2401_v31 = vmul.f32 %v6271_v55, %v6271_v55 }
 0x37b   :  { %v2272_v15 = vmul.f32 0.015625, %v2084_v59 }
 0x37d   :  { %2251 = vadd.xlane.f32.xlu1 %v2250_v14  ;;  %v2099_v21 = vpop.xlane.xlu0 %2098  ;;  %v6302_v59 = vsub.f32 %v7820_v25, %v2272_v15 }
 0x37e   :  { %v2102_v18 = vpop.xlane.xlu1 %2101  ;;  %v2277_v29 = vmul.f32 0.015625, %v2099_v21  ;;  %v2402_v21 = vmul.f32 %v6283_v34, %v6283_v34 }
 0x37f   :  { %v2278_v55 = vmul.f32 0.015625, %v2102_v18  ;;  %v7822_v18 = vmax.f32 %v5857_v38, 0.0 }
 0x381   :  { %v2093_v11 = vpop.xlane.xlu0 %2092 }
 0x382   :  { %v2096_v0 = vpop.xlane.xlu1 %2095 }
 0x383   :  { %v2276_v25 = vmul.f32 0.015625, %v2096_v0  ;;  %v7824_v0 = vmax.f32 %v5864_v20, 0.0  ;;  %v7826_v20 = vmax.f32 %v5892_v53, 0.0 }
 0x385   :  { %v2111_v37 = vpop.xlane.xlu0 %2110 }
 0x386   :  { %v2114_v6 = vpop.xlane.xlu1 %2113 }
 0x389   :  { %v2105_v61 = vpop.xlane.xlu0 %2104 }
 0x38a   :  { %v6247_v13 = vpop.xlane.xlu1 %2107 }
 0x38f   :  { %v6249_v33 = vpop.xlane.xlu0 %2122 }
 0x393   :  { %v6251_v50 = vpop.xlane.xlu1 %2125  ;;  %v6253_v52 = vpop.xlane.xlu0 %2116 }
 0x397   :  { %v6255_v14 = vpop.xlane.xlu1 %2119 }
 0x39f   :  { %v6257_v28 = vpop.xlane.xlu0 %2134 }
 0x3a3   :  { %v6259_v30 = vpop.xlane.xlu1 %2137  ;;  %v6261_v2 = vpop.xlane.xlu0 %2128 }
 0x3a7   :  { %v6263_v60 = vpop.xlane.xlu1 %2131 }
 0x3af   :  { %v6265_v7 = vpop.xlane.xlu0 %2146 }
 0x3b3   :  { %v6276_v26 = vpop.xlane.xlu1 %2149  ;;  %v6285_v8 = vpop.xlane.xlu0 %2140 }
 0x3b4   :  { %v6267_v56 = vpop.f32.mrf.mxu1 }
 0x3b6   :  { %v2000_v23 = vpop.f32.mrf.mxu1 }
 0x3b7   :  { %v6274_v40 = vadd.f32 %v2000_v23, %v5818_v1  ;;  %v7819_v23 = vmax.f32 %v5825_v22, 0.0  ;;  %v6304_v19 = vpop.xlane.xlu1 %2143 }
 0x3b8   :  { %v6278_v35 = vpop.f32.mrf.mxu1 }
 0x3b9   :  { %v7591_v46 = vmax.f32 %v6274_v40, 0.0  ;;  %v6291_v62 = vsub.f32 %v7819_v23, %v2271_v44  ;;  %v2469_v44 = vsel %vm592_vm1, %v2401_v31, 0.0  ;;  %v6322_v31 = vsub.f32 %v7822_v18, %v2278_v55 }
 0x3ba   :  { %v2003_v17 = vpop.f32.mrf.mxu1 }
 0x3bb   :  { %v6294_v4 = vadd.f32 %v2003_v17, %v5818_v1  ;;  %v2259_v48 = vsel %vm592_vm1, %v7591_v46, 0.0  ;;  %v7821_v17 = vmax.f32 %v5849_v43, 0.0  ;;  %v2399_v15 = vmul.f32 %v6291_v62, %v6291_v62 }
 0x3bc   :  { %2260 = vadd.xlane.f32.xlu0 %v2259_v48  ;;  %v2275_v48 = vmul.f32 0.015625, %v2093_v11  ;;  %v2472_v43 = vsel %vm592_vm1, %v2402_v21, 0.0  ;;  %v2400_v11 = vmul.f32 %v6302_v59, %v6302_v59  ;;  %v2282_v21 = vmul.f32 0.015625, %v2114_v6 }
 0x3bd   :  { %v7592_v10 = vmax.f32 %v6294_v4, 0.0  ;;  %v6313_v23 = vsub.f32 %v7821_v17, %v2277_v29  ;;  %v7823_v29 = vmax.f32 %v5853_v39, 0.0  ;;  %v2406_v39 = vmul.f32 %v6322_v31, %v6322_v31 }
 0x3be   :  { %v6306_v22 = vpop.xlane.xlu0 %2158  ;;  %v2466_v18 = vsel %vm592_vm1, %v2400_v11, 0.0  ;;  %v6356_v6 = vsub.f32 %v7826_v20, %v2282_v21 }
 0x3bf   :  { %v2262_v57 = vsel %vm592_vm1, %v7592_v10, 0.0  ;;  %v6331_v17 = vsub.f32 %v7823_v29, %v2275_v48  ;;  %v2281_v10 = vmul.f32 0.015625, %v2111_v37  ;;  %v2405_v38 = vmul.f32 %v6313_v23, %v6313_v23 }
 0x3c0   :  { %2263 = vadd.xlane.f32.xlu1 %v2262_v57  ;;  %2470 = vadd.xlane.f32.xlu0 %v2469_v44  ;;  %v2463_v57 = vsel %vm592_vm1, %v2399_v15, 0.0  ;;  %v6340_v44 = vsub.f32 %v7824_v0, %v2276_v25  ;;  %v7825_v37 = vmax.f32 %v5883_v45, 0.0  ;;  %v2279_v15 = vmul.f32 0.015625, %v2105_v61 }
 0x3c1   :  { %v2481_v29 = vsel %vm592_vm1, %v2405_v38, 0.0  ;;  %v2280_v25 = vmul.f32 0.015625, %v6247_v13  ;;  %v2484_v45 = vsel %vm592_vm1, %v2406_v39, 0.0  ;;  %v2285_v0 = vmul.f32 0.015625, %v6249_v33 }
 0x3c2   :  { %v6324_v46 = vpop.xlane.xlu1 %2161  ;;  %v6336_v55 = vpop.xlane.xlu0 %2152  ;;  %v6347_v48 = vsub.f32 %v7825_v37, %v2281_v10  ;;  %v2404_v61 = vmul.f32 %v6340_v44, %v6340_v44  ;;  %v7827_v10 = vmax.f32 %v5887_v9, 0.0  ;;  %v7828_v13 = vmax.f32 %v5899_v24, 0.0 }
 0x3c3   :  { %v2286_v39 = vmul.f32 0.015625, %v6251_v50  ;;  %v2410_v33 = vmul.f32 %v6356_v6, %v6356_v6  ;;  %v2284_v50 = vmul.f32 0.015625, %v6255_v14 }
 0x3c4   :  { %2473 = vadd.xlane.f32.xlu1 %v2472_v43  ;;  %2464 = vadd.xlane.f32.xlu0 %v2463_v57  ;;  %v2403_v43 = vmul.f32 %v6331_v17, %v6331_v17  ;;  %v6366_v38 = vsub.f32 %v7827_v10, %v2279_v15  ;;  %v2409_v53 = vmul.f32 %v6347_v48, %v6347_v48  ;;  %v2478_v9 = vsel %vm592_vm1, %v2404_v61, 0.0 }
 0x3c5   :  { %v6374_v21 = vsub.f32 %v7828_v13, %v2280_v25  ;;  %v7829_v15 = vmax.f32 %v5912_v51, 0.0  ;;  %v2496_v51 = vsel %vm592_vm1, %v2410_v33, 0.0  ;;  %v7831_v10 = vmax.f32 %v5916_v12, 0.0 }
 0x3c6   :  { %v6352_v57 = vpop.xlane.xlu1 %2155  ;;  %v6359_v11 = vpop.xlane.xlu0 %2170  ;;  %v2493_v20 = vsel %vm592_vm1, %v2409_v53, 0.0  ;;  %v2407_v24 = vmul.f32 %v6366_v38, %v6366_v38 }
 0x3c8   :  { %2467 = vadd.xlane.f32.xlu1 %v2466_v18  ;;  %2482 = vadd.xlane.f32.xlu0 %v2481_v29  ;;  %v2475_v18 = vsel %vm592_vm1, %v2403_v43, 0.0  ;;  %v6384_v29 = vsub.f32 %v7829_v15, %v2285_v0  ;;  %v2283_v43 = vmul.f32 0.015625, %v6253_v52  ;;  %v2408_v52 = vmul.f32 %v6374_v21, %v6374_v21 }
 0x3c9   :  { %v2487_v53 = vsel %vm592_vm1, %v2407_v24, 0.0  ;;  %v7833_v15 = vmax.f32 %v5940_v5, 0.0  ;;  %v2288_v5 = vmul.f32 0.015625, %v6263_v60  ;;  %v4006_v60 = vld [vmem:[%s7402_s3 + $0x18] sm:$0xff]  }
 0x3ca   :  { %v6377_v37 = vpop.xlane.xlu1 %2173  ;;  %v6390_v25 = vpop.xlane.xlu0 %2164  ;;  %v6402_v0 = vsub.f32 %v7831_v10, %v2283_v43  ;;  %v2413_v14 = vmul.f32 %v6384_v29, %v6384_v29  ;;  %v2490_v33 = vsel %vm592_vm1, %v2408_v52, 0.0  ;;  %v7835_v52 = vmax.f32 %v5944_v16, 0.0  ;;  %3924 = vmatprep.subr.bf16.mxu0 %v4006_v60 }
 0x3cb   :  { %3925 = vmatpush3.bf16.msra.mxu0 %v4006_v60  ;;  %v6494_v60 = vadd.f32 %v6267_v56, %v5818_v1 }
 0x3cc   :  { %2485 = vadd.xlane.f32.xlu1 %v2484_v45  ;;  %2476 = vadd.xlane.f32.xlu0 %v2475_v18  ;;  %v7830_v45 = vmax.f32 %v5920_v32, 0.0  ;;  %v2289_v18 = vmul.f32 0.015625, %v6257_v28  ;;  %v7832_v32 = vmax.f32 %v5927_v42, 0.0  ;;  %v2505_v24 = vsel %vm592_vm1, %v2413_v14, 0.0 }
 0x3cd   :  { %v2411_v42 = vmul.f32 %v6402_v0, %v6402_v0 }
 0x3ce   :  { %v6395_v61 = vsub.f32 %v7830_v45, %v2286_v39  ;;  %v6408_v13 = vpop.xlane.xlu1 %2167  ;;  %v6412_v39 = vsub.f32 %v7832_v32, %v2284_v50  ;;  %v6415_v12 = vpop.xlane.xlu0 %2182  ;;  %v6422_v43 = vsub.f32 %v7833_v15, %v2289_v18  ;;  %v7834_v50 = vmax.f32 %v5948_v58, 0.0 }
 0x3cf   :  { %v2293_v18 = vmul.f32 0.015625, %v6265_v7  ;;  %v2294_v32 = vmul.f32 0.015625, %v6276_v26 }
 0x3d0   :  { %2479 = vadd.xlane.f32.xlu1 %v2478_v9  ;;  %2494 = vadd.xlane.f32.xlu0 %v2493_v20  ;;  %v2290_v9 = vmul.f32 0.015625, %v6259_v30  ;;  %v2414_v28 = vmul.f32 %v6395_v61, %v6395_v61  ;;  %v2287_v20 = vmul.f32 0.015625, %v6261_v2  ;;  %v2412_v30 = vmul.f32 %v6412_v39, %v6412_v39 }
 0x3d1   :  { %v2417_v14 = vmul.f32 %v6422_v43, %v6422_v43 }
 0x3d2   :  { %v6432_v45 = vsub.f32 %v7834_v50, %v2290_v9  ;;  %v2508_v2 = vsel %vm592_vm1, %v2414_v28, 0.0  ;;  %v6440_v10 = vsub.f32 %v7835_v52, %v2287_v20  ;;  %v6446_v58 = vpop.xlane.xlu0 %2176  ;;  %v2502_v16 = vsel %vm592_vm1, %v2412_v30, 0.0 }
 0x3d3   :  { %v7836_v9 = vmax.f32 %v5955_v36, 0.0  ;;  %v7837_v28 = vmax.f32 %v5968_v54, 0.0  ;;  %v2291_v20 = vmul.f32 0.015625, %v6285_v8  ;;  %v4007_v36 = vld [vmem:[%s7402_s3 + $0x10] sm:$0xff]   ;;  %v7838_v54 = vmax.f32 %v5976_v27, 0.0 }
 0x3d4   :  { %2497 = vadd.xlane.f32.xlu1 %v2496_v51  ;;  %2488 = vadd.xlane.f32.xlu0 %v2487_v53  ;;  %v6435_v51 = vpop.xlane.xlu1 %2185  ;;  %v2499_v53 = vsel %vm592_vm1, %v2411_v42, 0.0  ;;  %v2415_v26 = vmul.f32 %v6440_v10, %v6440_v10 }
 0x3d5   :  { %v6455_v7 = vsub.f32 %v7836_v9, %v2288_v5  ;;  %v6461_v15 = vsub.f32 %v7837_v28, %v2293_v18  ;;  %v6474_v30 = vsub.f32 %v7838_v54, %v2294_v32  ;;  %3926 = vmatprep.subr.bf16.mxu0 %v4007_v36  ;;  %v2292_v18 = vmul.f32 0.015625, %v6304_v19 }
 0x3d6   :  { %v6476_v50 = vpop.xlane.xlu0 %2194  ;;  %3927 = vmatpush3.bf16.msra.mxu0 %v4007_v36  ;;  %v7841_v54 = vmax.f32 %v6000_v49, 0.0  ;;  %v2298_v49 = vmul.f32 0.015625, %v6324_v46  ;;  %v7844_v46 = vld [vmem:[#allocation5_spill] sm:$0xff] }
 0x3d7   :  { %v2416_v5 = vmul.f32 %v6455_v7, %v6455_v7  ;;  %v2421_v27 = vmul.f32 %v6461_v15, %v6461_v15  ;;  %v2422_v32 = vmul.f32 %v6474_v30, %v6474_v30 }
 0x3d8   :  { %2491 = vadd.xlane.f32.xlu1 %v2490_v33  ;;  %2506 = vadd.xlane.f32.xlu0 %v2505_v24  ;;  %v2418_v33 = vmul.f32 %v6432_v45, %v6432_v45  ;;  %v2517_v24 = vsel %vm592_vm1, %v2417_v14, 0.0  ;;  %v6467_v42 = vpop.xlane.xlu1 %2179  ;;  %v4008_v14 = vld [vmem:[%s7402_s3 + $0x8] sm:$0xff]  }
 0x3d9   :  { %v2514_v19 = vsel %vm592_vm1, %v2416_v5, 0.0  ;;  %3928 = vmatprep.subr.bf16.mxu0 %v4008_v14  ;;  %v2529_v28 = vsel %vm592_vm1, %v2421_v27, 0.0  ;;  %v2532_v36 = vsel %vm592_vm1, %v2422_v32, 0.0  ;;  %v2296_v5 = vmul.f32 0.015625, %v6352_v57 }
 0x3da   :  { %v2520_v8 = vsel %vm592_vm1, %v2418_v33, 0.0  ;;  %v2295_v33 = vmul.f32 0.015625, %v6336_v55  ;;  %3929 = vmatpush3.bf16.msra.mxu0 %v4008_v14  ;;  %v2297_v55 = vmul.f32 0.015625, %v6306_v22  ;;  %v7843_v14 = vmax.f32 %v6011_v63, 0.0 }
 0x3db   :  { %v2299_v32 = vmul.f32 0.015625, %v6390_v25 }
 0x3dc   :  { %2509 = vadd.xlane.f32.xlu1 %v2508_v2  ;;  %2500 = vadd.xlane.f32.xlu0 %v2499_v53  ;;  %v7839_v2 = vmax.f32 %v5972_v3, 0.0  ;;  %v2511_v53 = vsel %vm592_vm1, %v2415_v26, 0.0  ;;  %v6496_v3 = vpop.xlane.xlu1 %2197  ;;  %v6517_v26 = vadd.f32 %v6278_v35, %v5818_v1  ;;  %v7842_v35 = vmax.f32 %v5996_v47, 0.0 }
 0x3de   :  { %v6483_v52 = vsub.f32 %v7839_v2, %v2291_v20  ;;  %v6509_v20 = vpop.xlane.xlu0 %2188  ;;  %v7593_v1 = vmax.f32 %v6517_v26, 0.0  ;;  %v6534_v22 = vsub.f32 %v7842_v35, %v2297_v55  ;;  %v7846_v55 = vld [vmem:[#allocation3_spill] sm:$0xff]  ;;  %v7848_v35 = vld [vmem:[#allocation4_spill] sm:$0xff] }
 0x3e0   :  { %2503 = vadd.xlane.f32.xlu1 %v2502_v16  ;;  %2518 = vadd.xlane.f32.xlu0 %v2517_v24  ;;  %v7840_v16 = vmax.f32 %v5983_v41, 0.0  ;;  %v2419_v56 = vmul.f32 %v6483_v52, %v6483_v52  ;;  %v4009_v24 = vld [vmem:[%s7402_s3] sm:$0xff]   ;;  %v7594_v41 = vmax.f32 %v6494_v60, 0.0  ;;  %v2268_v63 = vsel %vm592_vm1, %v7593_v1, 0.0 }
 0x3e1   :  { %3930 = vmatprep.subr.bf16.mxu0 %v4009_v24  ;;  %v2425_v25 = vmul.f32 %v6534_v22, %v6534_v22  ;;  %v2309_v1 = vmul.f32 0.015625, %v6476_v50  ;;  %v7867_v50 = vld [vmem:[#allocation13_spill] sm:$0xff] }
 0x3e2   :  { %v6503_v9 = vsub.f32 %v7840_v16, %v2292_v18  ;;  %v2523_v2 = vsel %vm592_vm1, %v2419_v56, 0.0  ;;  %3931 = vmatpush3.bf16.msra.mxu0 %v4009_v24  ;;  %v6537_v27 = vpop.xlane.xlu0 %2206  ;;  %v2265_v57 = vsel %vm592_vm1, %v7594_v41, 0.0  ;;  %v2301_v56 = vmul.f32 0.015625, %v6359_v11 }
 0x3e4   :  { %2521 = vadd.xlane.f32.xlu1 %v2520_v8  ;;  %2512 = vadd.xlane.f32.xlu0 %v2511_v53  ;;  %v6523_v8 = vsub.f32 %v7841_v54, %v2295_v33  ;;  %v2420_v18 = vmul.f32 %v6503_v9, %v6503_v9  ;;  %v6529_v53 = vpop.xlane.xlu1 %2191  ;;  %v7845_v33 = vmax.f32 %v7844_v46, 0.0 }
 0x3e5   :  { %v2308_v41 = vmul.f32 0.015625, %v6529_v53 }
 0x3e6   :  { %v2526_v16 = vsel %vm592_vm1, %v2420_v18, 0.0  ;;  %v2423_v47 = vmul.f32 %v6523_v8, %v6523_v8  ;;  %v2201_v18 = vpop.xlane.xlu0 %2200 }
 0x3e8   :  { %2515 = vadd.xlane.f32.xlu1 %v2514_v19  ;;  %2530 = vadd.xlane.f32.xlu0 %v2529_v28  ;;  %v6544_v19 = vsub.f32 %v7843_v14, %v2296_v5  ;;  %v6552_v28 = vsub.f32 %v7845_v33, %v2298_v49  ;;  %v6555_v24 = vpop.xlane.xlu1 %2209  ;;  %v2300_v5 = vmul.f32 0.015625, %v6408_v13  ;;  %v7849_v49 = vmax.f32 %v7848_v35, 0.0  ;;  %v7850_v13 = vld [vmem:[#allocation10_spill] sm:$0xff] }
 0x3e9   :  { %v2302_v14 = vmul.f32 0.015625, %v6377_v37  ;;  %v7851_v46 = vmax.f32 %v7850_v13, 0.0  ;;  %v2303_v33 = vmul.f32 0.015625, %v6446_v58  ;;  %v7852_v37 = vld [vmem:[#allocation11_spill] sm:$0xff] }
 0x3ea   :  { %v2424_v11 = vmul.f32 %v6544_v19, %v6544_v19  ;;  %v6591_v35 = vpop.xlane.xlu0 %2218 }
 0x3ec   :  { %2533 = vadd.xlane.f32.xlu1 %v2532_v36  ;;  %2524 = vadd.xlane.f32.xlu0 %v2523_v2  ;;  %v7847_v36 = vmax.f32 %v7846_v55, 0.0  ;;  %v2535_v2 = vsel %vm592_vm1, %v2423_v47, 0.0  ;;  %v6580_v47 = vsub.f32 %v7851_v46, %v2300_v5  ;;  %v2304_v46 = vmul.f32 0.015625, %v6467_v42 }
 0x3ee   :  { %v6564_v54 = vsub.f32 %v7847_v36, %v2299_v32  ;;  %v2426_v32 = vmul.f32 %v6552_v28, %v6552_v28  ;;  %v7853_v36 = vmax.f32 %v7852_v37, 0.0 }
 0x3f0   :  { %2527 = vadd.xlane.f32.xlu1 %v2526_v16  ;;  %2266 = vadd.xlane.f32.xlu0 %v2265_v57  ;;  %v6572_v57 = vsub.f32 %v7849_v49, %v2301_v56  ;;  %v2541_v16 = vsel %vm592_vm1, %v2425_v25, 0.0  ;;  %v2427_v55 = vmul.f32 %v6564_v54, %v6564_v54  ;;  %v2204_v56 = vpop.xlane.xlu1 %2203  ;;  %v6588_v25 = vsub.f32 %v7853_v36, %v2302_v14 }
 0x3f1   :  { %v2544_v5 = vsel %vm592_vm1, %v2426_v32, 0.0  ;;  %v2428_v14 = vmul.f32 %v6580_v47, %v6580_v47  ;;  %v2306_v32 = vmul.f32 0.015625, %v6435_v51  ;;  %v7862_v51 = vld [vmem:[#allocation15_spill] sm:$0xff] }
 0x3f2   :  { %v2429_v58 = vmul.f32 %v6572_v57, %v6572_v57  ;;  %v2430_v42 = vmul.f32 %v6588_v25, %v6588_v25 }
 0x3f4   :  { %2269 = vadd.xlane.f32.xlu1 %v2268_v63  ;;  %2536 = vadd.xlane.f32.xlu0 %v2535_v2  ;;  %v2538_v63 = vsel %vm592_vm1, %v2424_v11, 0.0  ;;  %v2305_v2 = vmul.f32 0.015625, %v6415_v12  ;;  %v7854_v11 = vld [vmem:[#allocation8_spill] sm:$0xff]  ;;  %v7856_v12 = vld [vmem:[#allocation9_spill] sm:$0xff]  ;;  %v6609_v36 = vpop.xlane.xlu1 %2221 }
 0x3f5   :  { %v7855_v49 = vmax.f32 %v7854_v11, 0.0  ;;  %v7859_v11 = vld [vmem:[#allocation14_spill] sm:$0xff] }
 0x3f7   :  { %v6598_v13 = vsub.f32 %v7855_v49, %v2303_v33  ;;  %v2553_v33 = vsel %vm592_vm1, %v2429_v58, 0.0 }
 0x3f8   :  { %2539 = vadd.xlane.f32.xlu1 %v2538_v63  ;;  %2542 = vadd.xlane.f32.xlu0 %v2541_v16  ;;  %v2547_v16 = vsel %vm592_vm1, %v2427_v55, 0.0  ;;  %v7857_v63 = vmax.f32 %v7856_v12, 0.0  ;;  %v7860_v55 = vmax.f32 %v7859_v11, 0.0  ;;  %v2213_v12 = vpop.xlane.xlu0 %2212  ;;  %v2556_v11 = vsel %vm592_vm1, %v2430_v42, 0.0 }
 0x3fa   :  { %v6606_v37 = vsub.f32 %v7857_v63, %v2305_v2  ;;  %v6616_v49 = vsub.f32 %v7860_v55, %v2304_v46  ;;  %v2431_v2 = vmul.f32 %v6598_v13, %v6598_v13  ;;  %v7863_v63 = vmax.f32 %v7862_v51, 0.0 }
 0x3fb   :  { %v7868_v51 = vmax.f32 %v7867_v50, 0.0 }
 0x3fc   :  { %2545 = vadd.xlane.f32.xlu1 %v2544_v5  ;;  %2548 = vadd.xlane.f32.xlu0 %v2547_v16  ;;  %7858 = vst [vmem:[#allocation7_spill] sm:$0xff] %v6606_v37  ;;  %7861 = vst [vmem:[#allocation6_spill] sm:$0xff] %v6616_v49  ;;  %v2307_v5 = vmul.f32 0.015625, %v6509_v20  ;;  %v2550_v16 = vsel %vm592_vm1, %v2428_v14, 0.0  ;;  %v6624_v58 = vsub.f32 %v7863_v63, %v2306_v32  ;;  %v7865_v20 = vld [vmem:[#allocation12_spill] sm:$0xff]  ;;  %v2216_v32 = vpop.xlane.xlu1 %2215  ;;  %v2310_v63 = vmul.f32 0.015625, %v6496_v3 }
 0x3fd   :  { %v2433_v46 = vmul.f32 %v6606_v37, %v6606_v37  ;;  %v7866_v55 = vmax.f32 %v7865_v20, 0.0  ;;  %v6640_v42 = vsub.f32 %v7868_v51, %v2309_v1  ;;  %v2231_v37 = vpop.xlane.xlu0 %2230  ;;  %v7870_v20 = vld [vmem:[#allocation18_spill] sm:$0xff]  ;;  %v7873_v1 = vld [vmem:[#allocation16_spill] sm:$0xff] }
 0x3fe   :  { %7864 = vst [vmem:[#allocation39_spill] sm:$0xff] %v6624_v58  ;;  %v2434_v53 = vmul.f32 %v6624_v58, %v6624_v58  ;;  %v7874_v3 = vmax.f32 %v7873_v1, 0.0 }
 0x3ff   :  { %v6632_v14 = vsub.f32 %v7866_v55, %v2307_v5  ;;  %7869 = vst [vmem:[#allocation40_spill] sm:$0xff] %v6640_v42  ;;  %v2565_v5 = vsel %vm592_vm1, %v2433_v46, 0.0  ;;  %v2313_v46 = vmul.f32 0.015625, %v6537_v27  ;;  %v7878_v27 = vld [vmem:[#allocation17_spill] sm:$0xff] }
 0x400   :  { %2551 = vadd.xlane.f32.xlu1 %v2550_v16  ;;  %2554 = vadd.xlane.f32.xlu0 %v2553_v33  ;;  %v2559_v16 = vsel %vm592_vm1, %v2431_v2, 0.0  ;;  %v2432_v33 = vmul.f32 %v6616_v49, %v6616_v49  ;;  %v7871_v2 = vmax.f32 %v7870_v20, 0.0  ;;  %v2311_v49 = vmul.f32 0.015625, %v2201_v18  ;;  %v2234_v51 = vpop.xlane.xlu1 %2233  ;;  %v7875_v18 = vld [vmem:[#allocation20_spill] sm:$0xff] }
 0x401   :  { %v6655_v50 = vsub.f32 %v7874_v3, %v2310_v63  ;;  %v2568_v58 = vsel %vm592_vm1, %v2434_v53, 0.0  ;;  %v7876_v20 = vmax.f32 %v7875_v18, 0.0  ;;  %v2225_v63 = vpop.xlane.xlu0 %2224  ;;  %v7879_v1 = vmax.f32 %v7878_v27, 0.0 }
 0x402   :  { %v6648_v55 = vsub.f32 %v7871_v2, %v2308_v41  ;;  %v2437_v41 = vmul.f32 %v6640_v42, %v6640_v42  ;;  %v2312_v2 = vmul.f32 0.015625, %v2204_v56  ;;  %v2314_v53 = vmul.f32 0.015625, %v6555_v24  ;;  %v7881_v56 = vld [vmem:[#allocation19_spill] sm:$0xff] }
 0x403   :  { %v6670_v3 = vsub.f32 %v7879_v1, %v2313_v46  ;;  %v7882_v18 = vmax.f32 %v7881_v56, 0.0  ;;  %v7883_v46 = vld [vmem:[#allocation21_spill] sm:$0xff] }
 0x404   :  { %2557 = vadd.xlane.f32.xlu1 %v2556_v11  ;;  %2560 = vadd.xlane.f32.xlu0 %v2559_v16  ;;  %7872 = vst [vmem:[#allocation41_spill] sm:$0xff] %v6648_v55  ;;  %v2562_v11 = vsel %vm592_vm1, %v2432_v33, 0.0  ;;  %v2435_v16 = vmul.f32 %v6632_v14, %v6632_v14  ;;  %v6663_v33 = vsub.f32 %v7876_v20, %v2311_v49  ;;  %v2577_v42 = vsel %vm592_vm1, %v2437_v41, 0.0 }
 0x405   :  { %7880 = vst [vmem:[#allocation43_spill] sm:$0xff] %v6670_v3  ;;  %v2438_v49 = vmul.f32 %v6655_v50, %v6655_v50  ;;  %v2315_v20 = vmul.f32 0.015625, %v2213_v12  ;;  %v7884_v24 = vmax.f32 %v7883_v46, 0.0  ;;  %v2317_v41 = vmul.f32 0.015625, %v6591_v35  ;;  %v2243_v1 = vpop.xlane.xlu0 %2242 }
 0x406   :  { %7877 = vst [vmem:[#allocation42_spill] sm:$0xff] %v6663_v33  ;;  %v2441_v12 = vmul.f32 %v6670_v3, %v6670_v3 }
 0x407   :  { %v6685_v27 = vsub.f32 %v7884_v24, %v2314_v53  ;;  %v2580_v56 = vsel %vm592_vm1, %v2438_v49, 0.0  ;;  %v7889_v53 = vld [vmem:[#allocation22_spill] sm:$0xff]  ;;  %v2318_v49 = vmul.f32 0.015625, %v6609_v36  ;;  %v7895_v36 = vld [vmem:[#allocation24_spill] sm:$0xff] }
 0x408   :  { %2563 = vadd.xlane.f32.xlu1 %v2562_v11  ;;  %2566 = vadd.xlane.f32.xlu0 %v2565_v5  ;;  %v2571_v11 = vsel %vm592_vm1, %v2435_v16, 0.0  ;;  %v2436_v5 = vmul.f32 %v6648_v55, %v6648_v55  ;;  %v6678_v16 = vsub.f32 %v7882_v18, %v2312_v2  ;;  %v7886_v2 = vld [vmem:[#allocation23_spill] sm:$0xff]  ;;  %v7890_v35 = vmax.f32 %v7889_v53, 0.0 }
 0x409   :  { %7885 = vst [vmem:[#allocation44_spill] sm:$0xff] %v6685_v27  ;;  %v2589_v3 = vsel %vm592_vm1, %v2441_v12, 0.0  ;;  %v7896_v53 = vmax.f32 %v7895_v36, 0.0  ;;  %v2321_v12 = vmul.f32 0.015625, %v2231_v37 }
 0x40a   :  { %v2574_v55 = vsel %vm592_vm1, %v2436_v5, 0.0  ;;  %v7887_v5 = vmax.f32 %v7886_v2, 0.0  ;;  %v6700_v46 = vsub.f32 %v7890_v35, %v2317_v41  ;;  %v2237_v41 = vpop.xlane.xlu0 %2236 }
 0x40b   :  { %v6715_v35 = vsub.f32 %v7896_v53, %v2318_v49  ;;  %v7900_v49 = vld [vmem:[#allocation26_spill] sm:$0xff] }
 0x40c   :  { %2569 = vadd.xlane.f32.xlu1 %v2568_v58  ;;  %2572 = vadd.xlane.f32.xlu0 %v2571_v11  ;;  %v2439_v58 = vmul.f32 %v6663_v33, %v6663_v33  ;;  %v2228_v11 = vpop.xlane.xlu1 %2227  ;;  %v6693_v18 = vsub.f32 %v7887_v5, %v2315_v20  ;;  %v2316_v33 = vmul.f32 0.015625, %v2216_v32  ;;  %7891 = vst [vmem:[#allocation3_spill] sm:$0xff] %v6700_v46  ;;  %v7892_v32 = vld [vmem:[#allocation25_spill] sm:$0xff]  ;;  %v2319_v5 = vmul.f32 0.015625, %v2225_v63 }
 0x40d   :  { %v2442_v20 = vmul.f32 %v6685_v27, %v6685_v27  ;;  %v7893_v2 = vmax.f32 %v7892_v32, 0.0  ;;  %v7897_v32 = vld [vmem:[#allocation27_spill] sm:$0xff]  ;;  %v7901_v37 = vmax.f32 %v7900_v49, 0.0 }
 0x40e   :  { %7888 = vst [vmem:[#allocation5_spill] sm:$0xff] %v6693_v18  ;;  %v7898_v63 = vmax.f32 %v7897_v32, 0.0  ;;  %v2255_v53 = vpop.xlane.xlu0 %2254 }
 0x40f   :  { %v2592_v27 = vsel %vm592_vm1, %v2442_v20, 0.0  ;;  %v6729_v36 = vsub.f32 %v7901_v37, %v2321_v12  ;;  %v2322_v20 = vmul.f32 0.015625, %v2234_v51 }
 0x410   :  { %2575 = vadd.xlane.f32.xlu1 %v2574_v55  ;;  %2578 = vadd.xlane.f32.xlu0 %v2577_v42  ;;  %v2583_v55 = vsel %vm592_vm1, %v2439_v58, 0.0  ;;  %v2440_v42 = vmul.f32 %v6678_v16, %v6678_v16  ;;  %v2246_v24 = vpop.xlane.xlu1 %2245  ;;  %v6708_v58 = vsub.f32 %v7893_v2, %v2316_v33  ;;  %v2445_v33 = vmul.f32 %v6700_v46, %v6700_v46 }
 0x411   :  { %v6722_v2 = vsub.f32 %v7898_v63, %v2319_v5  ;;  %7902 = vst [vmem:[#allocation11_spill] sm:$0xff] %v6729_v36  ;;  %v2446_v5 = vmul.f32 %v6715_v35, %v6715_v35  ;;  %v2323_v63 = vmul.f32 0.015625, %v2237_v41 }
 0x412   :  { %7894 = vst [vmem:[#allocation4_spill] sm:$0xff] %v6708_v58  ;;  %v2601_v46 = vsel %vm592_vm1, %v2445_v33, 0.0  ;;  %v2325_v33 = vmul.f32 0.015625, %v2243_v1  ;;  %v7910_v1 = vld [vmem:[#allocation30_spill] sm:$0xff] }
 0x413   :  { %7899 = vst [vmem:[#allocation10_spill] sm:$0xff] %v6722_v2  ;;  %v2604_v37 = vsel %vm592_vm1, %v2446_v5, 0.0  ;;  %v2326_v5 = vmul.f32 0.015625, %v2246_v24 }
 0x414   :  { %2581 = vadd.xlane.f32.xlu1 %v2580_v56  ;;  %2584 = vadd.xlane.f32.xlu0 %v2583_v55  ;;  %v2586_v56 = vsel %vm592_vm1, %v2440_v42, 0.0  ;;  %v2443_v55 = vmul.f32 %v6693_v18, %v6693_v18  ;;  %v2320_v42 = vmul.f32 0.015625, %v2228_v11  ;;  %v7903_v11 = vld [vmem:[#allocation29_spill] sm:$0xff] }
 0x415   :  { %v7904_v32 = vmax.f32 %v7903_v11, 0.0  ;;  %v7907_v11 = vld [vmem:[#allocation31_spill] sm:$0xff] }
 0x416   :  { %v2595_v18 = vsel %vm592_vm1, %v2443_v55, 0.0  ;;  %v7908_v41 = vmax.f32 %v7907_v11, 0.0  ;;  %v7912_v11 = vld [vmem:[#allocation33_spill] sm:$0xff] }
 0x417   :  { %v6736_v55 = vsub.f32 %v7904_v32, %v2320_v42  ;;  %v2449_v42 = vmul.f32 %v6729_v36, %v6729_v36 }
 0x418   :  { %2587 = vadd.xlane.f32.xlu1 %v2586_v56  ;;  %2590 = vadd.xlane.f32.xlu0 %v2589_v3  ;;  %v2444_v3 = vmul.f32 %v6708_v58, %v6708_v58  ;;  %v2240_v56 = vpop.xlane.xlu1 %2239  ;;  %v6750_v32 = vsub.f32 %v7908_v41, %v2323_v63 }
 0x41a   :  { %v2598_v58 = vsel %vm592_vm1, %v2444_v3, 0.0  ;;  %7909 = vst [vmem:[#allocation8_spill] sm:$0xff] %v6750_v32  ;;  %v2324_v3 = vmul.f32 0.015625, %v2240_v56  ;;  %v7913_v56 = vmax.f32 %v7912_v11, 0.0  ;;  %v7917_v11 = vld [vmem:[#allocation35_spill] sm:$0xff] }
 0x41c   :  { %2593 = vadd.xlane.f32.xlu1 %v2592_v27  ;;  %2596 = vadd.xlane.f32.xlu0 %v2595_v18  ;;  %v2447_v27 = vmul.f32 %v6722_v2, %v6722_v2  ;;  %v7905_v18 = vld [vmem:[#allocation28_spill] sm:$0xff]  ;;  %v2258_v49 = vpop.xlane.xlu1 %2257  ;;  %v6764_v41 = vsub.f32 %v7913_v56, %v2324_v3 }
 0x41d   :  { %v7906_v51 = vmax.f32 %v7905_v18, 0.0 }
 0x41e   :  { %v2607_v2 = vsel %vm592_vm1, %v2447_v27, 0.0 }
 0x41f   :  { %v6743_v12 = vsub.f32 %v7906_v51, %v2322_v20  ;;  %v7911_v20 = vmax.f32 %v7910_v1, 0.0  ;;  %v2613_v51 = vsel %vm592_vm1, %v2449_v42, 0.0  ;;  %v2329_v42 = vmul.f32 0.015625, %v2255_v53 }
 0x420   :  { %2599 = vadd.xlane.f32.xlu1 %v2598_v58  ;;  %2602 = vadd.xlane.f32.xlu0 %v2601_v46  ;;  %v2448_v46 = vmul.f32 %v6736_v55, %v6736_v55  ;;  %v2249_v58 = vpop.xlane.xlu0 %2248 }
 0x421   :  { %v6757_v18 = vsub.f32 %v7911_v20, %v2325_v33  ;;  %v2450_v63 = vmul.f32 %v6743_v12, %v6743_v12  ;;  %v2327_v27 = vmul.f32 0.015625, %v2249_v58  ;;  %v7914_v33 = vld [vmem:[#allocation32_spill] sm:$0xff]  ;;  %v7918_v58 = vmax.f32 %v7917_v11, 0.0 }
 0x422   :  { %v2610_v36 = vsel %vm592_vm1, %v2448_v46, 0.0  ;;  %v7915_v24 = vmax.f32 %v7914_v33, 0.0 }
 0x423   :  { %v2616_v20 = vsel %vm592_vm1, %v2450_v63, 0.0  ;;  %v2453_v3 = vmul.f32 %v6757_v18, %v6757_v18  ;;  %v6778_v56 = vsub.f32 %v7918_v58, %v2327_v27  ;;  %v7923_v27 = vld [vmem:[#allocation37_spill] sm:$0xff] }
 0x424   :  { %2605 = vadd.xlane.f32.xlu1 %v2604_v37  ;;  %2608 = vadd.xlane.f32.xlu0 %v2607_v2  ;;  %v2451_v2 = vmul.f32 %v6750_v32, %v6750_v32  ;;  %v2252_v37 = vpop.xlane.xlu1 %2251  ;;  %v6771_v1 = vsub.f32 %v7915_v24, %v2326_v5  ;;  %v7920_v5 = vld [vmem:[#allocation34_spill] sm:$0xff]  ;;  %v2330_v24 = vmul.f32 0.015625, %v2258_v49  ;;  %v7924_v11 = vmax.f32 %v7923_v27, 0.0 }
 0x425   :  { %7919 = vst [vmem:[#allocation14_spill] sm:$0xff] %v6778_v56  ;;  %v2328_v46 = vmul.f32 0.015625, %v2252_v37  ;;  %v2625_v63 = vsel %vm592_vm1, %v2453_v3, 0.0 }
 0x426   :  { %7916 = vst [vmem:[#allocation9_spill] sm:$0xff] %v6771_v1  ;;  %v2619_v32 = vsel %vm592_vm1, %v2451_v2, 0.0  ;;  %v2454_v33 = vmul.f32 %v6771_v1, %v6771_v1 }
 0x427   :  { %v6792_v37 = vsub.f32 %v7924_v11, %v2328_v46  ;;  %v7929_v11 = vmax.f32 %v6274_v40, 0.0 }
 0x428   :  { %2611 = vadd.xlane.f32.xlu1 %v2610_v36  ;;  %2614 = vadd.xlane.f32.xlu0 %v2613_v51  ;;  %v2452_v36 = vmul.f32 %v6764_v41, %v6764_v41  ;;  %v7921_v51 = vmax.f32 %v7920_v5, 0.0 }
 0x429   :  { %7925 = vst [vmem:[#allocation12_spill] sm:$0xff] %v6792_v37  ;;  %v2456_v49 = vmul.f32 %v6792_v37, %v6792_v37 }
 0x42a   :  { %v6785_v53 = vsub.f32 %v7921_v51, %v2329_v42  ;;  %v2622_v2 = vsel %vm592_vm1, %v2452_v36, 0.0  ;;  %v7926_v42 = vld [vmem:[#allocation36_spill] sm:$0xff] }
 0x42b   :  { %v7927_v58 = vmax.f32 %v7926_v42, 0.0  ;;  %v2634_v36 = vsel %vm592_vm1, %v2456_v49, 0.0  ;;  %v7931_v49 = vmax.f32 %v6294_v4, 0.0 }
 0x42c   :  { %2617 = vadd.xlane.f32.xlu1 %v2616_v20  ;;  %2620 = vadd.xlane.f32.xlu0 %v2619_v32  ;;  %7922 = vst [vmem:[#allocation15_spill] sm:$0xff] %v6785_v53  ;;  %v2455_v20 = vmul.f32 %v6778_v56, %v6778_v56  ;;  %v2628_v32 = vsel %vm592_vm1, %v2454_v33, 0.0  ;;  %v2457_v46 = vmul.f32 %v6785_v53, %v6785_v53 }
 0x42d   :  { %v6800_v3 = vsub.f32 %v7927_v58, %v2330_v24 }
 0x42e   :  { %v2631_v5 = vsel %vm592_vm1, %v2455_v20, 0.0  ;;  %v2637_v51 = vsel %vm592_vm1, %v2457_v46, 0.0 }
 0x42f   :  { %7928 = vst [vmem:[#allocation13_spill] sm:$0xff] %v6800_v3 }
 0x430   :  { %2623 = vadd.xlane.f32.xlu1 %v2622_v2  ;;  %2626 = vadd.xlane.f32.xlu0 %v2625_v63  ;;  %v2458_v63 = vmul.f32 %v6800_v3, %v6800_v3 }
 0x432   :  { %v2640_v33 = vsel %vm592_vm1, %v2458_v63, 0.0 }
 0x434   :  { %2629 = vadd.xlane.f32.xlu1 %v2628_v32  ;;  %2632 = vadd.xlane.f32.xlu0 %v2631_v5 }
 0x438   :  { %2635 = vadd.xlane.f32.xlu1 %v2634_v36  ;;  %2638 = vadd.xlane.f32.xlu0 %v2637_v51 }
 0x43c   :  { %2641 = vadd.xlane.f32.xlu1 %v2640_v33 }
 0x445   :  { %v2261_v24 = vpop.xlane.xlu0 %2260 }
 0x446   :  { %v2331_v27 = vmul.f32 0.015625, %v2261_v24 }
 0x448   :  { %v6814_v2 = vsub.f32 %v7929_v11, %v2331_v27 }
 0x449   :  { %v2264_v20 = vpop.xlane.xlu1 %2263  ;;  %v2471_v32 = vpop.xlane.xlu0 %2470 }
 0x44a   :  { %7930 = vst [vmem:[#allocation18_spill] sm:$0xff] %v6814_v2  ;;  %v2332_v42 = vmul.f32 0.015625, %v2264_v20  ;;  %v2657_v58 = vmul.f32 0.015625, %v2471_v32  ;;  %v2459_v5 = vmul.f32 %v6814_v2, %v6814_v2 }
 0x44c   :  { %v6820_v46 = vsub.f32 %v7931_v49, %v2332_v42  ;;  %v2643_v36 = vsel %vm592_vm1, %v2459_v5, 0.0  ;;  %v2721_v51 = vadd.f32 1e-05, %v2657_v58 }
 0x44d   :  { %v2474_v63 = vpop.xlane.xlu1 %2473  ;;  %2644 = vadd.xlane.f32.xlu0 %v2643_v36  ;;  %v2465_v33 = vpop.xlane.xlu0 %2464 }
 0x44e   :  { %7932 = vst [vmem:[#allocation16_spill] sm:$0xff] %v6820_v46  ;;  %v2658_v40 = vmul.f32 0.015625, %v2474_v63  ;;  %v2655_v24 = vmul.f32 0.015625, %v2465_v33  ;;  %v2460_v27 = vmul.f32 %v6820_v46, %v6820_v46  ;;  %4138 = vrsqrt.f32 %v2721_v51 }
 0x450   :  { %v2722_v11 = vadd.f32 1e-05, %v2658_v40  ;;  %v2719_v20 = vadd.f32 1e-05, %v2655_v24  ;;  %v2646_v32 = vsel %vm592_vm1, %v2460_v27, 0.0 }
 0x451   :  { %2647 = vadd.xlane.f32.xlu1 %v2646_v32  ;;  %v2468_v4 = vpop.xlane.xlu1 %2467  ;;  %v2483_v42 = vpop.xlane.xlu0 %2482 }
 0x452   :  { %4140 = vrsqrt.f32 %v2722_v11  ;;  %v2656_v49 = vmul.f32 0.015625, %v2468_v4  ;;  %v2661_v5 = vmul.f32 0.015625, %v2483_v42  ;;  %v7933_v11 = vld [vmem:[#allocation2_spill] sm:$0xff] }
 0x453   :  { %4142 = vrsqrt.f32 %v2719_v20  ;;  %v2913_v4 = vsub.s32 4, %v7933_v11 }
 0x454   :  { %v2720_v58 = vadd.f32 1e-05, %v2656_v49  ;;  %v2725_v36 = vadd.f32 1e-05, %v2661_v5 }
 0x455   :  { %v2486_v2 = vpop.xlane.xlu1 %2485  ;;  %v2477_v63 = vpop.xlane.xlu0 %2476 }
 0x456   :  { %4144 = vrsqrt.f32 %v2720_v58  ;;  %v2662_v33 = vmul.f32 0.015625, %v2486_v2  ;;  %v2659_v3 = vmul.f32 0.015625, %v2477_v63 }
 0x457   :  { %4146 = vrsqrt.f32 %v2725_v36 }
 0x458   :  { %v2726_v46 = vadd.f32 1e-05, %v2662_v33  ;;  %v2723_v40 = vadd.f32 1e-05, %v2659_v3  ;;  %v4268_v3 = vld [vmem:[%s7400_s4] sm:$0x3f] }
 0x459   :  { %v2480_v24 = vpop.xlane.xlu1 %2479  ;;  %v2495_v27 = vpop.xlane.xlu0 %2494 }
 0x45a   :  { %4148 = vrsqrt.f32 %v2726_v46  ;;  %v2660_v51 = vmul.f32 0.015625, %v2480_v24  ;;  %v2665_v32 = vmul.f32 0.015625, %v2495_v27  ;;  %v6830_v46 = vrot.slane %v4268_v3, %v2913_v4  ;;  %v7934_v27 = vld [vmem:[#allocation38_spill] sm:$0xff] }
 0x45b   :  { %4150 = vrsqrt.f32 %v2723_v40  ;;  %v4139_v53 = vpop.eup %4138 }
 0x45c   :  { %v2724_v42 = vadd.f32 1e-05, %v2660_v51  ;;  %v2729_v20 = vadd.f32 1e-05, %v2665_v32  ;;  %v2849_v51 = vmul.f32 %v4139_v53, %v7934_v27 }
 0x45d   :  { %v2498_v49 = vpop.xlane.xlu1 %2497  ;;  %v2489_v5 = vpop.xlane.xlu0 %2488 }
 0x45e   :  { %4152 = vrsqrt.f32 %v2724_v42  ;;  %v2666_v58 = vmul.f32 0.015625, %v2498_v49  ;;  %v2663_v2 = vmul.f32 0.015625, %v2489_v5  ;;  %v2981_v49 = vsub.s32 5, %v7933_v11 }
 0x45f   :  { %v4141_v63 = vpop.eup %4140  ;;  %4154 = vrsqrt.f32 %v2729_v20  ;;  %v2917_v20 = vmul.f32 %v6830_v46, %v2849_v51 }
 0x460   :  { %v4143_v33 = vpop.eup %4142  ;;  %v2850_v36 = vmul.f32 %v4141_v63, %v6283_v34  ;;  %v2730_v40 = vadd.f32 1e-05, %v2666_v58  ;;  %v2727_v24 = vadd.f32 1e-05, %v2663_v2 }
 0x461   :  { %v2492_v32 = vpop.xlane.xlu1 %2491  ;;  %v2507_v37 = vpop.xlane.xlu0 %2506  ;;  %v2847_v42 = vmul.f32 %v4143_v33, %v6291_v62  ;;  %v6840_v62 = vrot.slane %v4268_v3, %v2981_v49 }
 0x462   :  { %4156 = vrsqrt.f32 %v2730_v40  ;;  %v2664_v5 = vmul.f32 0.015625, %v2492_v32  ;;  %v2669_v56 = vmul.f32 0.015625, %v2507_v37  ;;  %v2918_v4 = vmul.f32 %v6830_v46, %v2850_v36 }
 0x463   :  { %v4145_v1 = vpop.eup %4144  ;;  %4158 = vrsqrt.f32 %v2727_v24  ;;  %v2915_v34 = vmul.f32 %v6830_v46, %v2847_v42 }
 0x464   :  { %v2728_v58 = vadd.f32 1e-05, %v2664_v5  ;;  %v2733_v2 = vadd.f32 1e-05, %v2669_v56  ;;  %v2848_v53 = vmul.f32 %v4145_v1, %v6302_v59  ;;  %v4147_v11 = vpop.eup %4146  ;;  %v2986_v56 = vadd.f32 %v6840_v62, %v2918_v4 }
 0x465   :  { %v2510_v63 = vpop.xlane.xlu1 %2509  ;;  %v2501_v27 = vpop.xlane.xlu0 %2500  ;;  %v2983_v24 = vadd.f32 %v6840_v62, %v2915_v34  ;;  %v2985_v5 = vadd.f32 %v6840_v62, %v2917_v20 }
 0x466   :  { %4160 = vrsqrt.f32 %v2728_v58  ;;  %v2670_v33 = vmul.f32 0.015625, %v2510_v63  ;;  %v2667_v37 = vmul.f32 0.015625, %v2501_v27  ;;  %v2916_v40 = vmul.f32 %v6830_v46, %v2848_v53 }
 0x467   :  { %v4149_v36 = vpop.eup %4148  ;;  %4162 = vrsqrt.f32 %v2733_v2  ;;  %v2853_v53 = vmul.f32 %v4147_v11, %v6313_v23  ;;  %v3048_v27 = vpack.c.bf16 %v2986_v56, %v2985_v5 }
 0x468   :  { %v4151_v32 = vpop.eup %4150  ;;  %v2734_v59 = vadd.f32 1e-05, %v2670_v33  ;;  %v2731_v1 = vadd.f32 1e-05, %v2667_v37  ;;  %v2984_v51 = vadd.f32 %v6840_v62, %v2916_v40  ;;  %v2854_v3 = vmul.f32 %v4149_v36, %v6322_v31 }
 0x469   :  { %v2504_v42 = vpop.xlane.xlu1 %2503  ;;  %v2519_v49 = vpop.xlane.xlu0 %2518  ;;  %v2851_v58 = vmul.f32 %v4151_v32, %v6331_v17  ;;  %v2921_v11 = vmul.f32 %v6830_v46, %v2853_v53 }
 0x46a   :  { %4164 = vrsqrt.f32 %v2734_v59  ;;  %v2668_v2 = vmul.f32 0.015625, %v2504_v42  ;;  %v2673_v34 = vmul.f32 0.015625, %v2519_v49  ;;  %v3047_v63 = vpack.c.bf16 %v2984_v51, %v2983_v24 }
 0x46b   :  { %v4153_v4 = vpop.eup %4152  ;;  %4166 = vrsqrt.f32 %v2731_v1  ;;  %v2919_v33 = vmul.f32 %v6830_v46, %v2851_v58  ;;  %v2922_v37 = vmul.f32 %v6830_v46, %v2854_v3 }
 0x46c   :  { %v2732_v31 = vadd.f32 1e-05, %v2668_v2  ;;  %3932 = vmatprep.mubr.msk.bf16.mxu0 %vm592_vm1, %v3047_v63  ;;  %v2852_v20 = vmul.f32 %v4153_v4, %v6340_v44  ;;  %v2737_v40 = vadd.f32 1e-05, %v2673_v34  ;;  %v4155_v36 = vpop.eup %4154  ;;  %v2989_v2 = vadd.f32 %v6840_v62, %v2921_v11 }
 0x46d   :  { %v2522_v17 = vpop.xlane.xlu1 %2521  ;;  %3933 = vmatmul.mubr.msk.bf16.vlgmr.msra.gmra.mxu0 %vm592_vm1, %v3048_v27  ;;  %v2513_v23 = vpop.xlane.xlu0 %2512  ;;  %v2987_v1 = vadd.f32 %v6840_v62, %v2919_v33  ;;  %v2990_v51 = vadd.f32 %v6840_v62, %v2922_v37  ;;  %v2857_v63 = vmul.f32 %v4155_v36, %v6347_v48 }
 0x46e   :  { %4168 = vrsqrt.f32 %v2732_v31  ;;  %v2674_v24 = vmul.f32 0.015625, %v2522_v17  ;;  %v2671_v56 = vmul.f32 0.015625, %v2513_v23  ;;  %v2920_v32 = vmul.f32 %v6830_v46, %v2852_v20 }
 0x46f   :  { %v4157_v59 = vpop.eup %4156  ;;  %4170 = vrsqrt.f32 %v2737_v40  ;;  %v3050_v31 = vpack.c.bf16 %v2990_v51, %v2989_v2  ;;  %v2925_v36 = vmul.f32 %v6830_v46, %v2857_v63 }
 0x470   :  { %v4159_v3 = vpop.eup %4158  ;;  %v2738_v44 = vadd.f32 1e-05, %v2674_v24  ;;  %v2735_v42 = vadd.f32 1e-05, %v2671_v56  ;;  %v2988_v49 = vadd.f32 %v6840_v62, %v2920_v32  ;;  %v2858_v5 = vmul.f32 %v4157_v59, %v6356_v6 }
 0x471   :  { %v2516_v58 = vpop.xlane.xlu1 %2515  ;;  %v2531_v53 = vpop.xlane.xlu0 %2530  ;;  %v2855_v34 = vmul.f32 %v4159_v3, %v6366_v38  ;;  %v2993_v2 = vadd.f32 %v6840_v62, %v2925_v36 }
 0x472   :  { %4172 = vrsqrt.f32 %v2738_v44  ;;  %v2672_v4 = vmul.f32 0.015625, %v2516_v58  ;;  %v2677_v27 = vmul.f32 0.015625, %v2531_v53  ;;  %v3049_v33 = vpack.c.bf16 %v2988_v49, %v2987_v1 }
 0x473   :  { %v4161_v37 = vpop.eup %4160  ;;  %4174 = vrsqrt.f32 %v2735_v42  ;;  %v2923_v20 = vmul.f32 %v6830_v46, %v2855_v34  ;;  %v2926_v6 = vmul.f32 %v6830_v46, %v2858_v5 }
 0x474   :  { %v4163_v40 = vpop.eup %4162  ;;  %v2736_v17 = vadd.f32 1e-05, %v2672_v4  ;;  %3936 = vmatprep.mubr.msk.bf16.mxu0 %vm592_vm1, %v3049_v33  ;;  %v2856_v23 = vmul.f32 %v4161_v37, %v6374_v21  ;;  %v2741_v38 = vadd.f32 1e-05, %v2677_v27 }
 0x475   :  { %v2534_v11 = vpop.xlane.xlu1 %2533  ;;  %3937 = vmatmul.mubr.msk.bf16.gmra.mxu0 %vm592_vm1, %v3050_v31  ;;  %v2525_v48 = vpop.xlane.xlu0 %2524  ;;  %v2991_v1 = vadd.f32 %v6840_v62, %v2923_v20  ;;  %v2994_v51 = vadd.f32 %v6840_v62, %v2926_v6  ;;  %v2861_v3 = vmul.f32 %v4163_v40, %v6384_v29 }
 0x476   :  { %4176 = vrsqrt.f32 %v2736_v17  ;;  %v2678_v24 = vmul.f32 0.015625, %v2534_v11  ;;  %v2675_v56 = vmul.f32 0.015625, %v2525_v48  ;;  %v2924_v32 = vmul.f32 %v6830_v46, %v2856_v23 }
 0x477   :  { %v4165_v59 = vpop.eup %4164  ;;  %4178 = vrsqrt.f32 %v2741_v38  ;;  %v3052_v29 = vpack.c.bf16 %v2994_v51, %v2993_v2  ;;  %v2929_v37 = vmul.f32 %v6830_v46, %v2861_v3 }
 0x478   :  { %v4167_v21 = vpop.eup %4166  ;;  %v2742_v44 = vadd.f32 1e-05, %v2678_v24  ;;  %v2739_v42 = vadd.f32 1e-05, %v2675_v56  ;;  %v2992_v49 = vadd.f32 %v6840_v62, %v2924_v32  ;;  %v2862_v5 = vmul.f32 %v4165_v59, %v6395_v61 }
 0x479   :  { %v2528_v58 = vpop.xlane.xlu1 %2527  ;;  %v2267_v53 = vpop.xlane.xlu0 %2266  ;;  %v2859_v34 = vmul.f32 %v4167_v21, %v6402_v0  ;;  %v7935_v61 = vmax.f32 %v6494_v60, 0.0  ;;  %v2997_v56 = vadd.f32 %v6840_v62, %v2929_v37  ;;  %v7936_v59 = vmax.f32 %v6517_v26, 0.0 }
 0x47a   :  { %4180 = vrsqrt.f32 %v2742_v44  ;;  %v2676_v63 = vmul.f32 0.015625, %v2528_v58  ;;  %v2333_v4 = vmul.f32 0.015625, %v2267_v53  ;;  %v3051_v27 = vpack.c.bf16 %v2992_v49, %v2991_v1 }
 0x47b   :  { %v4169_v33 = vpop.eup %4168  ;;  %4182 = vrsqrt.f32 %v2739_v42  ;;  %v2930_v31 = vmul.f32 %v6830_v46, %v2862_v5  ;;  %v2927_v23 = vmul.f32 %v6830_v46, %v2859_v34 }
 0x47c   :  { %v2740_v20 = vadd.f32 1e-05, %v2676_v63  ;;  %v6882_v6 = vsub.f32 %v7935_v61, %v2333_v4  ;;  %3940 = vmatprep.mubr.msk.bf16.mxu0 %vm592_vm1, %v3051_v27  ;;  %v2860_v0 = vmul.f32 %v4169_v33, %v6412_v39  ;;  %v4171_v38 = vpop.eup %4170 }
 0x47d   :  { %v2270_v40 = vpop.xlane.xlu1 %2269  ;;  %3941 = vmatmul.mubr.msk.bf16.gmra.mxu0 %vm592_vm1, %v3052_v29  ;;  %v2537_v17 = vpop.xlane.xlu0 %2536  ;;  %v2998_v39 = vadd.f32 %v6840_v62, %v2930_v31  ;;  %v2995_v49 = vadd.f32 %v6840_v62, %v2927_v23  ;;  %v2865_v53 = vmul.f32 %v4171_v38, %v6422_v43 }
 0x47e   :  { %4184 = vrsqrt.f32 %v2740_v20  ;;  %v2334_v11 = vmul.f32 0.015625, %v2270_v40  ;;  %v2679_v48 = vmul.f32 0.015625, %v2537_v17  ;;  %v2461_v36 = vmul.f32 %v6882_v6, %v6882_v6 }
 0x47f   :  { %v4173_v60 = vpop.eup %4172  ;;  %v2928_v24 = vmul.f32 %v6830_v46, %v2860_v0  ;;  %v2933_v61 = vmul.f32 %v6830_v46, %v2865_v53 }
 0x480   :  { %v4175_v32 = vpop.eup %4174  ;;  %v6895_v1 = vsub.f32 %v7936_v59, %v2334_v11  ;;  %v2743_v51 = vadd.f32 1e-05, %v2679_v48  ;;  %v2649_v3 = vsel %vm592_vm1, %v2461_v36, 0.0  ;;  %v2866_v21 = vmul.f32 %v4173_v60, %v6432_v45 }
 0x481   :  { %v2540_v44 = vpop.xlane.xlu1 %2539  ;;  %2650 = vadd.xlane.f32.xlu0 %v2649_v3  ;;  %v2543_v42 = vpop.xlane.xlu0 %2542  ;;  %v2996_v5 = vadd.f32 %v6840_v62, %v2928_v24  ;;  %v2863_v58 = vmul.f32 %v4175_v32, %v6440_v10  ;;  %v3054_v45 = vpack.c.bf16 %v2998_v39, %v2997_v56  ;;  %v3001_v59 = vadd.f32 %v6840_v62, %v2933_v61 }
 0x482   :  { %4186 = vrsqrt.f32 %v2743_v51  ;;  %v2680_v26 = vmul.f32 0.015625, %v2540_v44  ;;  %v2681_v2 = vmul.f32 0.015625, %v2543_v42  ;;  %v2462_v34 = vmul.f32 %v6895_v1, %v6895_v1 }
 0x483   :  { %v4177_v63 = vpop.eup %4176  ;;  %v3053_v4 = vpack.c.bf16 %v2996_v5, %v2995_v49  ;;  %v2931_v27 = vmul.f32 %v6830_v46, %v2863_v58  ;;  %v2934_v33 = vmul.f32 %v6830_v46, %v2866_v21 }
 0x484   :  { %v2744_v29 = vadd.f32 1e-05, %v2680_v26  ;;  %v2745_v37 = vadd.f32 1e-05, %v2681_v2  ;;  %v2652_v31 = vsel %vm592_vm1, %v2462_v34, 0.0  ;;  %v2864_v10 = vmul.f32 %v4177_v63, %v6455_v7  ;;  %v4179_v0 = vpop.eup %4178 }
 0x485   :  { %3944 = vmatprep.mubr.msk.bf16.mxu0 %vm592_vm1, %v3053_v4  ;;  %2653 = vadd.xlane.f32.xlu1 %v2652_v31  ;;  %v2546_v43 = vpop.xlane.xlu1 %2545  ;;  %v2549_v20 = vpop.xlane.xlu0 %2548  ;;  %v2999_v11 = vadd.f32 %v6840_v62, %v2931_v27  ;;  %v3002_v7 = vadd.f32 %v6840_v62, %v2934_v33  ;;  %v2869_v3 = vmul.f32 %v4179_v0, %v6461_v15 }
 0x486   :  { %4188 = vrsqrt.f32 %v2744_v29  ;;  %v2682_v40 = vmul.f32 0.015625, %v2546_v43  ;;  %3945 = vmatmul.mubr.msk.bf16.gmra.mxu0 %vm592_vm1, %v3054_v45  ;;  %v2683_v17 = vmul.f32 0.015625, %v2549_v20  ;;  %v2932_v23 = vmul.f32 %v6830_v46, %v2864_v10 }
 0x487   :  { %v4181_v38 = vpop.eup %4180  ;;  %4190 = vrsqrt.f32 %v2745_v37  ;;  %v3056_v26 = vpack.c.bf16 %v3002_v7, %v3001_v59  ;;  %v2937_v15 = vmul.f32 %v6830_v46, %v2869_v3 }
 0x488   :  { %v4183_v48 = vpop.eup %4182  ;;  %v2746_v36 = vadd.f32 1e-05, %v2682_v40  ;;  %v2747_v60 = vadd.f32 1e-05, %v2683_v17  ;;  %v3000_v24 = vadd.f32 %v6840_v62, %v2932_v23  ;;  %v2870_v56 = vmul.f32 %v4181_v38, %v6474_v30 }
 0x489   :  { %v2552_v39 = vpop.xlane.xlu1 %2551  ;;  %v2555_v32 = vpop.xlane.xlu0 %2554  ;;  %v2867_v51 = vmul.f32 %v4183_v48, %v6483_v52  ;;  %v3005_v61 = vadd.f32 %v6840_v62, %v2937_v15 }
 0x48a   :  { %4192 = vrsqrt.f32 %v2746_v36  ;;  %v2684_v21 = vmul.f32 0.015625, %v2552_v39  ;;  %v2685_v44 = vmul.f32 0.015625, %v2555_v32  ;;  %v3055_v42 = vpack.c.bf16 %v3000_v24, %v2999_v11 }
 0x48b   :  { %v4185_v49 = vpop.eup %4184  ;;  %4194 = vrsqrt.f32 %v2747_v60  ;;  %v2935_v5 = vmul.f32 %v6830_v46, %v2867_v51  ;;  %v2938_v58 = vmul.f32 %v6830_v46, %v2870_v56 }
 0x48c   :  { %v2748_v53 = vadd.f32 1e-05, %v2684_v21  ;;  %v2749_v30 = vadd.f32 1e-05, %v2685_v44  ;;  %3948 = vmatprep.mubr.msk.bf16.mxu0 %vm592_vm1, %v3055_v42  ;;  %v2868_v2 = vmul.f32 %v4185_v49, %v6503_v9 }
 0x48d   :  { %v2558_v52 = vpop.xlane.xlu1 %2557  ;;  %v2561_v34 = vpop.xlane.xlu0 %2560  ;;  %v3003_v33 = vadd.f32 %v6840_v62, %v2935_v5  ;;  %v3006_v29 = vadd.f32 %v6840_v62, %v2938_v58 }
 0x48e   :  { %4196 = vrsqrt.f32 %v2748_v53  ;;  %v2686_v63 = vmul.f32 0.015625, %v2558_v52  ;;  %3949 = vmatmul.mubr.msk.bf16.gmra.mxu0 %vm592_vm1, %v3056_v26  ;;  %v2687_v4 = vmul.f32 0.015625, %v2561_v34  ;;  %v2936_v45 = vmul.f32 %v6830_v46, %v2868_v2 }
 0x48f   :  { %v4187_v27 = vpop.eup %4186  ;;  %4198 = vrsqrt.f32 %v2749_v30  ;;  %v3058_v36 = vpack.c.bf16 %v3006_v29, %v3005_v61 }
 0x490   :  { %v2750_v37 = vadd.f32 1e-05, %v2686_v63  ;;  %v2751_v31 = vadd.f32 1e-05, %v2687_v4  ;;  %v3004_v9 = vadd.f32 %v6840_v62, %v2936_v45  ;;  %v2871_v10 = vmul.f32 %v4187_v27, %v6523_v8 }
 0x491   :  { %v2564_v43 = vpop.xlane.xlu1 %2563  ;;  %v2567_v20 = vpop.xlane.xlu0 %2566 }
 0x492   :  { %4200 = vrsqrt.f32 %v2750_v37  ;;  %v2688_v0 = vmul.f32 0.015625, %v2564_v43  ;;  %v2689_v40 = vmul.f32 0.015625, %v2567_v20  ;;  %v3057_v17 = vpack.c.bf16 %v3004_v9, %v3003_v33 }
 0x493   :  { %v4189_v23 = vpop.eup %4188  ;;  %4202 = vrsqrt.f32 %v2751_v31  ;;  %v2939_v38 = vmul.f32 %v6830_v46, %v2871_v10 }
 0x494   :  { %v4191_v11 = vpop.eup %4190  ;;  %v2752_v7 = vadd.f32 1e-05, %v2688_v0  ;;  %v2753_v48 = vadd.f32 1e-05, %v2689_v40  ;;  %3952 = vmatprep.mubr.msk.bf16.mxu0 %vm592_vm1, %v3057_v17  ;;  %v2872_v8 = vmul.f32 %v4189_v23, %v6544_v19 }
 0x495   :  { %v2570_v60 = vpop.xlane.xlu1 %2569  ;;  %v2573_v24 = vpop.xlane.xlu0 %2572  ;;  %v2873_v56 = vmul.f32 %v4191_v11, %v6534_v22  ;;  %v3007_v3 = vadd.f32 %v6840_v62, %v2939_v38 }
 0x496   :  { %4204 = vrsqrt.f32 %v2752_v7  ;;  %v2690_v39 = vmul.f32 0.015625, %v2570_v60  ;;  %3953 = vmatmul.mubr.msk.bf16.gmra.mxu0 %vm592_vm1, %v3058_v36  ;;  %v2691_v32 = vmul.f32 0.015625, %v2573_v24  ;;  %v2940_v59 = vmul.f32 %v6830_v46, %v2872_v8 }
 0x497   :  { %v4193_v51 = vpop.eup %4192  ;;  %4206 = vrsqrt.f32 %v2753_v48  ;;  %v2941_v58 = vmul.f32 %v6830_v46, %v2873_v56 }
 0x498   :  { %v4195_v21 = vpop.eup %4194  ;;  %v2754_v44 = vadd.f32 1e-05, %v2690_v39  ;;  %v2755_v42 = vadd.f32 1e-05, %v2691_v32  ;;  %v3008_v19 = vadd.f32 %v6840_v62, %v2940_v59  ;;  %v2874_v49 = vmul.f32 %v4193_v51, %v6552_v28  ;;  %v7937_v59 = vld [vmem:[#allocation6_spill] sm:$0xff] }
 0x499   :  { %v2576_v5 = vpop.xlane.xlu1 %2575  ;;  %v2579_v22 = vpop.xlane.xlu0 %2578  ;;  %v2875_v53 = vmul.f32 %v4195_v21, %v6564_v54  ;;  %v3009_v54 = vadd.f32 %v6840_v62, %v2941_v58 }
 0x49a   :  { %4208 = vrsqrt.f32 %v2754_v44  ;;  %v2692_v30 = vmul.f32 0.015625, %v2576_v5  ;;  %v2693_v26 = vmul.f32 0.015625, %v2579_v22  ;;  %v3059_v2 = vpack.c.bf16 %v3008_v19, %v3007_v3 }
 0x49b   :  { %v4197_v52 = vpop.eup %4196  ;;  %4210 = vrsqrt.f32 %v2755_v42  ;;  %v2942_v34 = vmul.f32 %v6830_v46, %v2874_v49  ;;  %v2943_v15 = vmul.f32 %v6830_v46, %v2875_v53  ;;  %v7938_v42 = vld [vmem:[#allocation7_spill] sm:$0xff] }
 0x49c   :  { %v4199_v63 = vpop.eup %4198  ;;  %v2756_v4 = vadd.f32 1e-05, %v2692_v30  ;;  %v2757_v45 = vadd.f32 1e-05, %v2693_v26  ;;  %3956 = vmatprep.mubr.msk.bf16.mxu0 %vm592_vm1, %v3059_v2  ;;  %v2876_v28 = vmul.f32 %v4197_v52, %v6580_v47 }
 0x49d   :  { %v2582_v27 = vpop.xlane.xlu1 %2581  ;;  %v2585_v33 = vpop.xlane.xlu0 %2584  ;;  %v3010_v29 = vadd.f32 %v6840_v62, %v2942_v34  ;;  %v2877_v37 = vmul.f32 %v4199_v63, %v6572_v57  ;;  %v3011_v61 = vadd.f32 %v6840_v62, %v2943_v15  ;;  %v7939_v15 = vld [vmem:[#allocation39_spill] sm:$0xff] }
 0x49e   :  { %4212 = vrsqrt.f32 %v2756_v4  ;;  %v2694_v31 = vmul.f32 0.015625, %v2582_v27  ;;  %v2695_v9 = vmul.f32 0.015625, %v2585_v33  ;;  %v2944_v10 = vmul.f32 %v6830_v46, %v2876_v28 }
 0x49f   :  { %v4201_v43 = vpop.eup %4200  ;;  %4214 = vrsqrt.f32 %v2757_v45  ;;  %v3060_v20 = vpack.c.bf16 %v3010_v29, %v3009_v54  ;;  %v2945_v11 = vmul.f32 %v6830_v46, %v2877_v37 }
 0x4a0   :  { %v4203_v0 = vpop.eup %4202  ;;  %v2758_v47 = vadd.f32 1e-05, %v2694_v31  ;;  %v2759_v40 = vadd.f32 1e-05, %v2695_v9  ;;  %v3012_v17 = vadd.f32 %v6840_v62, %v2944_v10  ;;  %v2878_v23 = vmul.f32 %v4201_v43, %v6588_v25 }
 0x4a1   :  { %3957 = vmatmul.mubr.msk.bf16.gmra.mxu0 %vm592_vm1, %v3060_v20  ;;  %v2588_v57 = vpop.xlane.xlu1 %2587  ;;  %v2591_v38 = vpop.xlane.xlu0 %2590  ;;  %v2879_v7 = vmul.f32 %v4203_v0, %v6598_v13  ;;  %v3013_v13 = vadd.f32 %v6840_v62, %v2945_v11 }
 0x4a2   :  { %4216 = vrsqrt.f32 %v2758_v47  ;;  %v2696_v48 = vmul.f32 0.015625, %v2588_v57  ;;  %v2697_v36 = vmul.f32 0.015625, %v2591_v38  ;;  %v3061_v8 = vpack.c.bf16 %v3012_v17, %v3011_v61  ;;  %v7940_v61 = vld [vmem:[#allocation41_spill] sm:$0xff] }
 0x4a3   :  { %v4205_v60 = vpop.eup %4204  ;;  %4218 = vrsqrt.f32 %v2759_v40  ;;  %v2946_v24 = vmul.f32 %v6830_v46, %v2878_v23  ;;  %v2947_v56 = vmul.f32 %v6830_v46, %v2879_v7  ;;  %v7941_v23 = vld [vmem:[#allocation40_spill] sm:$0xff] }
 0x4a4   :  { %v4207_v39 = vpop.eup %4206  ;;  %v2760_v25 = vadd.f32 1e-05, %v2696_v48  ;;  %v2761_v32 = vadd.f32 1e-05, %v2697_v36  ;;  %3960 = vmatprep.mubr.msk.bf16.mxu0 %vm592_vm1, %v3061_v8  ;;  %v2880_v51 = vmul.f32 %v4205_v60, %v7937_v59 }
 0x4a5   :  { %v2594_v3 = vpop.xlane.xlu1 %2593  ;;  %v2597_v21 = vpop.xlane.xlu0 %2596  ;;  %v3014_v44 = vadd.f32 %v6840_v62, %v2946_v24  ;;  %v2881_v19 = vmul.f32 %v4207_v39, %v7938_v42  ;;  %v3015_v30 = vadd.f32 %v6840_v62, %v2947_v56 }
 0x4a6   :  { %4220 = vrsqrt.f32 %v2760_v25  ;;  %v2698_v49 = vmul.f32 0.015625, %v2594_v3  ;;  %v2699_v5 = vmul.f32 0.015625, %v2597_v21  ;;  %v2948_v22 = vmul.f32 %v6830_v46, %v2880_v51  ;;  %v7942_v3 = vld [vmem:[#allocation42_spill] sm:$0xff] }
 0x4a7   :  { %v4209_v58 = vpop.eup %4208  ;;  %4222 = vrsqrt.f32 %v2761_v32  ;;  %v3062_v53 = vpack.c.bf16 %v3014_v44, %v3013_v13  ;;  %v2949_v28 = vmul.f32 %v6830_v46, %v2881_v19 }
 0x4a8   :  { %v4211_v26 = vpop.eup %4210  ;;  %v2762_v2 = vadd.f32 1e-05, %v2698_v49  ;;  %v2763_v52 = vadd.f32 1e-05, %v2699_v5  ;;  %v3016_v34 = vadd.f32 %v6840_v62, %v2948_v22  ;;  %v2882_v63 = vmul.f32 %v4209_v58, %v7939_v15 }
 0x4a9   :  { %3961 = vmatmul.mubr.msk.bf16.gmra.mxu0 %vm592_vm1, %v3062_v53  ;;  %v2600_v4 = vpop.xlane.xlu1 %2599  ;;  %v2603_v45 = vpop.xlane.xlu0 %2602  ;;  %v2883_v27 = vmul.f32 %v4211_v26, %v6632_v14  ;;  %v3017_v14 = vadd.f32 %v6840_v62, %v2949_v28 }
 0x4aa   :  { %4224 = vrsqrt.f32 %v2762_v2  ;;  %v2700_v33 = vmul.f32 0.015625, %v2600_v4  ;;  %v2701_v54 = vmul.f32 0.015625, %v2603_v45  ;;  %v3063_v29 = vpack.c.bf16 %v3016_v34, %v3015_v30  ;;  %v7943_v34 = vld [vmem:[#allocation43_spill] sm:$0xff] }
 0x4ab   :  { %v4213_v37 = vpop.eup %4212  ;;  %4226 = vrsqrt.f32 %v2763_v52  ;;  %v2950_v31 = vmul.f32 %v6830_v46, %v2882_v63  ;;  %v2951_v9 = vmul.f32 %v6830_v46, %v2883_v27 }
 0x4ac   :  { %v4215_v10 = vpop.eup %4214  ;;  %v2764_v43 = vadd.f32 1e-05, %v2700_v33  ;;  %v2765_v20 = vadd.f32 1e-05, %v2701_v54  ;;  %3964 = vmatprep.mubr.msk.bf16.mxu0 %vm592_vm1, %v3063_v29  ;;  %v2884_v0 = vmul.f32 %v4213_v37, %v7940_v61  ;;  %v7945_v61 = vld [vmem:[#allocation5_spill] sm:$0xff] }
 0x4ad   :  { %v2606_v47 = vpop.xlane.xlu1 %2605  ;;  %v2609_v40 = vpop.xlane.xlu0 %2608  ;;  %v3018_v17 = vadd.f32 %v6840_v62, %v2950_v31  ;;  %v2885_v57 = vmul.f32 %v4215_v10, %v7941_v23  ;;  %v3019_v8 = vadd.f32 %v6840_v62, %v2951_v9  ;;  %v7944_v31 = vld [vmem:[#allocation44_spill] sm:$0xff] }
 0x4ae   :  { %4228 = vrsqrt.f32 %v2764_v43  ;;  %v2702_v38 = vmul.f32 0.015625, %v2606_v47  ;;  %v2703_v11 = vmul.f32 0.015625, %v2609_v40  ;;  %v2952_v7 = vmul.f32 %v6830_v46, %v2884_v0 }
 0x4af   :  { %v4217_v48 = vpop.eup %4216  ;;  %4230 = vrsqrt.f32 %v2765_v20  ;;  %v3064_v36 = vpack.c.bf16 %v3018_v17, %v3017_v14  ;;  %v2953_v51 = vmul.f32 %v6830_v46, %v2885_v57 }
 0x4b0   :  { %v4219_v60 = vpop.eup %4218  ;;  %v2766_v24 = vadd.f32 1e-05, %v2702_v38  ;;  %v2767_v56 = vadd.f32 1e-05, %v2703_v11  ;;  %v3020_v39 = vadd.f32 %v6840_v62, %v2952_v7  ;;  %v2886_v25 = vmul.f32 %v4217_v48, %v6655_v50  ;;  %v7946_v48 = vld [vmem:[#allocation4_spill] sm:$0xff] }
 0x4b1   :  { %3965 = vmatmul.mubr.msk.bf16.gmra.mxu0 %vm592_vm1, %v3064_v36  ;;  %v2612_v32 = vpop.xlane.xlu1 %2611  ;;  %v2615_v59 = vpop.xlane.xlu0 %2614  ;;  %v2887_v21 = vmul.f32 %v4219_v60, %v7942_v3  ;;  %v3021_v2 = vadd.f32 %v6840_v62, %v2953_v51 }
 0x4b2   :  { %4232 = vrsqrt.f32 %v2766_v24  ;;  %v2704_v13 = vmul.f32 0.015625, %v2612_v32  ;;  %v2705_v44 = vmul.f32 0.015625, %v2615_v59  ;;  %v3065_v42 = vpack.c.bf16 %v3020_v39, %v3019_v8  ;;  %v7947_v39 = vld [vmem:[#allocation3_spill] sm:$0xff] }
 0x4b3   :  { %v4221_v19 = vpop.eup %4220  ;;  %4234 = vrsqrt.f32 %v2767_v56  ;;  %v2954_v49 = vmul.f32 %v6830_v46, %v2886_v25  ;;  %v2955_v5 = vmul.f32 %v6830_v46, %v2887_v21 }
 0x4b4   :  { %v4223_v22 = vpop.eup %4222  ;;  %v2768_v50 = vadd.f32 1e-05, %v2704_v13  ;;  %v2769_v58 = vadd.f32 1e-05, %v2705_v44  ;;  %3968 = vmatprep.mubr.msk.bf16.mxu0 %vm592_vm1, %v3065_v42  ;;  %v2888_v53 = vmul.f32 %v4221_v19, %v6678_v16 }
 0x4b5   :  { %v2618_v30 = vpop.xlane.xlu1 %2617  ;;  %v2621_v26 = vpop.xlane.xlu0 %2620  ;;  %v3022_v52 = vadd.f32 %v6840_v62, %v2954_v49  ;;  %v2889_v15 = vmul.f32 %v4223_v22, %v7943_v34  ;;  %v3023_v33 = vadd.f32 %v6840_v62, %v2955_v5 }
 0x4b6   :  { %4236 = vrsqrt.f32 %v2768_v50  ;;  %v2706_v63 = vmul.f32 0.015625, %v2618_v30  ;;  %v2707_v4 = vmul.f32 0.015625, %v2621_v26  ;;  %v2956_v45 = vmul.f32 %v6830_v46, %v2888_v53  ;;  %v7948_v53 = vld [vmem:[#allocation10_spill] sm:$0xff] }
 0x4b7   :  { %v4225_v28 = vpop.eup %4224  ;;  %4238 = vrsqrt.f32 %v2769_v58  ;;  %v3066_v27 = vpack.c.bf16 %v3022_v52, %v3021_v2  ;;  %v2957_v20 = vmul.f32 %v6830_v46, %v2889_v15 }
 0x4b8   :  { %v4227_v54 = vpop.eup %4226  ;;  %v2770_v16 = vadd.f32 1e-05, %v2706_v63  ;;  %v2771_v29 = vadd.f32 1e-05, %v2707_v4  ;;  %v3024_v37 = vadd.f32 %v6840_v62, %v2956_v45  ;;  %v2890_v9 = vmul.f32 %v4225_v28, %v7944_v31 }
 0x4b9   :  { %3969 = vmatmul.mubr.msk.bf16.gmra.mxu0 %vm592_vm1, %v3066_v27  ;;  %v2624_v10 = vpop.xlane.xlu1 %2623  ;;  %v2627_v43 = vpop.xlane.xlu0 %2626  ;;  %v2891_v0 = vmul.f32 %v4227_v54, %v7945_v61  ;;  %v3025_v24 = vadd.f32 %v6840_v62, %v2957_v20 }
 0x4ba   :  { %4240 = vrsqrt.f32 %v2770_v16  ;;  %v2708_v47 = vmul.f32 0.015625, %v2624_v10  ;;  %v2709_v40 = vmul.f32 0.015625, %v2627_v43  ;;  %v3067_v14 = vpack.c.bf16 %v3024_v37, %v3023_v33  ;;  %v7949_v16 = vld [vmem:[#allocation11_spill] sm:$0xff] }
 0x4bb   :  { %v4229_v17 = vpop.eup %4228  ;;  %4242 = vrsqrt.f32 %v2771_v29  ;;  %v2958_v23 = vmul.f32 %v6830_v46, %v2890_v9  ;;  %v2959_v57 = vmul.f32 %v6830_v46, %v2891_v0 }
 0x4bc   :  { %v4231_v38 = vpop.eup %4230  ;;  %v2772_v11 = vadd.f32 1e-05, %v2708_v47  ;;  %v2773_v7 = vadd.f32 1e-05, %v2709_v40  ;;  %3972 = vmatprep.mubr.msk.bf16.mxu0 %vm592_vm1, %v3067_v14  ;;  %v2892_v36 = vmul.f32 %v4229_v17, %v7946_v48  ;;  %v7950_v40 = vld [vmem:[#allocation8_spill] sm:$0xff] }
 0x4bd   :  { %v2630_v8 = vpop.xlane.xlu1 %2629  ;;  %v2633_v60 = vpop.xlane.xlu0 %2632  ;;  %v3026_v56 = vadd.f32 %v6840_v62, %v2958_v23  ;;  %v2893_v25 = vmul.f32 %v4231_v38, %v7947_v39  ;;  %v3027_v13 = vadd.f32 %v6840_v62, %v2959_v57 }
 0x4be   :  { %4244 = vrsqrt.f32 %v2772_v11  ;;  %v2710_v32 = vmul.f32 0.015625, %v2630_v8  ;;  %v2711_v59 = vmul.f32 0.015625, %v2633_v60  ;;  %v2960_v51 = vmul.f32 %v6830_v46, %v2892_v36 }
 0x4bf   :  { %v4233_v3 = vpop.eup %4232  ;;  %4246 = vrsqrt.f32 %v2773_v7  ;;  %v3068_v21 = vpack.c.bf16 %v3026_v56, %v3025_v24  ;;  %v2961_v58 = vmul.f32 %v6830_v46, %v2893_v25 }
 0x4c0   :  { %v4235_v44 = vpop.eup %4234  ;;  %v2774_v42 = vadd.f32 1e-05, %v2710_v32  ;;  %v2775_v19 = vadd.f32 1e-05, %v2711_v59  ;;  %v3028_v49 = vadd.f32 %v6840_v62, %v2960_v51  ;;  %v2894_v5 = vmul.f32 %v4233_v3, %v6715_v35  ;;  %v7951_v32 = vld [vmem:[#allocation9_spill] sm:$0xff] }
 0x4c1   :  { %3973 = vmatmul.mubr.msk.bf16.gmra.mxu0 %vm592_vm1, %v3068_v21  ;;  %v2636_v22 = vpop.xlane.xlu1 %2635  ;;  %v2639_v50 = vpop.xlane.xlu0 %2638  ;;  %v2895_v30 = vmul.f32 %v4235_v44, %v7948_v53  ;;  %v3029_v33 = vadd.f32 %v6840_v62, %v2961_v58 }
 0x4c2   :  { %4248 = vrsqrt.f32 %v2774_v42  ;;  %v2712_v26 = vmul.f32 0.015625, %v2636_v22  ;;  %v2713_v2 = vmul.f32 0.015625, %v2639_v50  ;;  %v3069_v52 = vpack.c.bf16 %v3028_v49, %v3027_v13  ;;  %v7953_v49 = vld [vmem:[#allocation12_spill] sm:$0xff]  ;;  %v7954_v50 = vld [vmem:[#allocation15_spill] sm:$0xff] }
 0x4c3   :  { %v4237_v34 = vpop.eup %4236  ;;  %4250 = vrsqrt.f32 %v2775_v19  ;;  %v2962_v15 = vmul.f32 %v6830_v46, %v2894_v5  ;;  %v2963_v63 = vmul.f32 %v6830_v46, %v2895_v30 }
 0x4c4   :  { %v4239_v4 = vpop.eup %4238  ;;  %v2776_v35 = vadd.f32 1e-05, %v2712_v26  ;;  %v2777_v45 = vadd.f32 1e-05, %v2713_v2  ;;  %3976 = vmatprep.mubr.msk.bf16.mxu0 %vm592_vm1, %v3069_v52  ;;  %v2896_v28 = vmul.f32 %v4237_v34, %v6736_v55 }
 0x4c5   :  { %v2642_v27 = vpop.xlane.xlu1 %2641  ;;  %v3030_v54 = vadd.f32 %v6840_v62, %v2962_v15  ;;  %v2897_v29 = vmul.f32 %v4239_v4, %v7949_v16  ;;  %v3031_v43 = vadd.f32 %v6840_v62, %v2963_v63  ;;  %v7955_v63 = vld [vmem:[#allocation13_spill] sm:$0xff] }
 0x4c6   :  { %4252 = vrsqrt.f32 %v2776_v35  ;;  %v2714_v37 = vmul.f32 0.015625, %v2642_v27  ;;  %v2964_v31 = vmul.f32 %v6830_v46, %v2896_v28 }
 0x4c7   :  { %v4241_v9 = vpop.eup %4240  ;;  %4254 = vrsqrt.f32 %v2777_v45  ;;  %v3070_v10 = vpack.c.bf16 %v3030_v54, %v3029_v33  ;;  %v2965_v47 = vmul.f32 %v6830_v46, %v2897_v29 }
 0x4c8   :  { %v4243_v20 = vpop.eup %4242  ;;  %v2778_v61 = vadd.f32 1e-05, %v2714_v37  ;;  %v3032_v55 = vadd.f32 %v6840_v62, %v2964_v31  ;;  %v2898_v0 = vmul.f32 %v4241_v9, %v6743_v12 }
 0x4c9   :  { %3977 = vmatmul.mubr.msk.bf16.gmra.mxu0 %vm592_vm1, %v3070_v10  ;;  %v2899_v14 = vmul.f32 %v4243_v20, %v7950_v40  ;;  %v3033_v11 = vadd.f32 %v6840_v62, %v2965_v47  ;;  %v7956_v10 = vld [vmem:[#allocation18_spill] sm:$0xff] }
 0x4ca   :  { %4256 = vrsqrt.f32 %v2778_v61  ;;  %v3071_v17 = vpack.c.bf16 %v3032_v55, %v3031_v43  ;;  %v2966_v23 = vmul.f32 %v6830_v46, %v2898_v0  ;;  %v7957_v61 = vld [vmem:[#allocation16_spill] sm:$0xff] }
 0x4cb   :  { %v4245_v57 = vpop.eup %4244  ;;  %v2967_v48 = vmul.f32 %v6830_v46, %v2899_v14 }
 0x4cc   :  { %v4247_v38 = vpop.eup %4246  ;;  %3980 = vmatprep.mubr.msk.bf16.mxu0 %vm592_vm1, %v3071_v17  ;;  %v3034_v7 = vadd.f32 %v6840_v62, %v2966_v23  ;;  %v2900_v12 = vmul.f32 %v4245_v57, %v6764_v41  ;;  %v7952_v41 = vld [vmem:[#allocation14_spill] sm:$0xff] }
 0x4cd   :  { %v2901_v36 = vmul.f32 %v4247_v38, %v6757_v18  ;;  %v3035_v39 = vadd.f32 %v6840_v62, %v2967_v48 }
 0x4ce   :  { %v3072_v8 = vpack.c.bf16 %v3034_v7, %v3033_v11  ;;  %v2968_v60 = vmul.f32 %v6830_v46, %v2900_v12 }
 0x4cf   :  { %v4249_v24 = vpop.eup %4248  ;;  %v2969_v51 = vmul.f32 %v6830_v46, %v2901_v36 }
 0x4d0   :  { %v4251_v56 = vpop.eup %4250  ;;  %v3036_v25 = vadd.f32 %v6840_v62, %v2968_v60  ;;  %v2902_v59 = vmul.f32 %v4249_v24, %v7951_v32 }
 0x4d1   :  { %3981 = vmatmul.mubr.msk.bf16.gmra.mxu0 %vm592_vm1, %v3072_v8  ;;  %v2903_v3 = vmul.f32 %v4251_v56, %v7952_v41  ;;  %v3037_v42 = vadd.f32 %v6840_v62, %v2969_v51 }
 0x4d2   :  { %v3073_v21 = vpack.c.bf16 %v3036_v25, %v3035_v39  ;;  %v2970_v18 = vmul.f32 %v6830_v46, %v2902_v59  ;;  %v7076_v59 = vld [vmem:[%s7403_s5] ss:$0 sm:$0xff] }
 0x4d3   :  { %v4253_v13 = vpop.eup %4252  ;;  %v2971_v22 = vmul.f32 %v6830_v46, %v2903_v3 }
 0x4d4   :  { %v4255_v44 = vpop.eup %4254  ;;  %3984 = vmatprep.mubr.msk.bf16.mxu0 %vm592_vm1, %v3073_v21  ;;  %v3038_v19 = vadd.f32 %v6840_v62, %v2970_v18  ;;  %v2904_v5 = vmul.f32 %v4253_v13, %v7953_v49 }
 0x4d5   :  { %v2905_v58 = vmul.f32 %v4255_v44, %v7954_v50  ;;  %v3039_v34 = vadd.f32 %v6840_v62, %v2971_v22 }
 0x4d6   :  { %v2645_v53 = vpop.xlane.xlu0 %2644  ;;  %v3074_v30 = vpack.c.bf16 %v3038_v19, %v3037_v42  ;;  %v2972_v26 = vmul.f32 %v6830_v46, %v2904_v5 }
 0x4d7   :  { %v4257_v2 = vpop.eup %4256  ;;  %v2715_v52 = vmul.f32 0.015625, %v2645_v53  ;;  %v2973_v35 = vmul.f32 %v6830_v46, %v2905_v58 }
 0x4d8   :  { %v3040_v15 = vadd.f32 %v6840_v62, %v2972_v26  ;;  %v2906_v4 = vmul.f32 %v4257_v2, %v7955_v63 }
 0x4d9   :  { %v2779_v45 = vadd.f32 1e-05, %v2715_v52  ;;  %3985 = vmatmul.mubr.msk.bf16.gmra.mxu0 %vm592_vm1, %v3074_v30  ;;  %v3041_v16 = vadd.f32 %v6840_v62, %v2973_v35 }
 0x4da   :  { %v2648_v28 = vpop.xlane.xlu1 %2647  ;;  %v3075_v27 = vpack.c.bf16 %v3040_v15, %v3039_v34  ;;  %v2974_v33 = vmul.f32 %v6830_v46, %v2906_v4 }
 0x4db   :  { %4258 = vrsqrt.f32 %v2779_v45  ;;  %v2716_v54 = vmul.f32 0.015625, %v2648_v28 }
 0x4dc   :  { %3988 = vmatprep.mubr.msk.bf16.mxu0 %vm592_vm1, %v3075_v27  ;;  %v3042_v29 = vadd.f32 %v6840_v62, %v2974_v33 }
 0x4dd   :  { %v2780_v37 = vadd.f32 1e-05, %v2716_v54 }
 0x4de   :  { %v3076_v31 = vpack.c.bf16 %v3042_v29, %v3041_v16 }
 0x4df   :  { %4260 = vrsqrt.f32 %v2780_v37 }
 0x4e1   :  { %3989 = vmatmul.mubr.msk.bf16.gmra.mxu0 %vm592_vm1, %v3076_v31 }
 0x4e8   :  { %v4259_v9 = vpop.eup %4258 }
 0x4e9   :  { %v2907_v43 = vmul.f32 %v4259_v9, %v7956_v10 }
 0x4eb   :  { %v2975_v0 = vmul.f32 %v6830_v46, %v2907_v43 }
 0x4ec   :  { %v4261_v20 = vpop.eup %4260 }
 0x4ed   :  { %v2908_v55 = vmul.f32 %v4261_v20, %v7957_v61  ;;  %v3043_v40 = vadd.f32 %v6840_v62, %v2975_v0 }
 0x4ef   :  { %v2976_v47 = vmul.f32 %v6830_v46, %v2908_v55 }
 0x4f1   :  { %v3044_v14 = vadd.f32 %v6840_v62, %v2976_v47 }
 0x4f3   :  { %v3077_v17 = vpack.c.bf16 %v3044_v14, %v3043_v40 }
 0x4f5   :  { %3992 = vmatprep.mubr.msk.bf16.mxu0 %vm592_vm1, %v3077_v17 }
 0x50a   :  { %v2651_v23 = vpop.xlane.xlu0 %2650 }
 0x50b   :  { %v2717_v57 = vmul.f32 0.015625, %v2651_v23 }
 0x50d   :  { %v2781_v38 = vadd.f32 1e-05, %v2717_v57 }
 0x50e   :  { %v2654_v11 = vpop.xlane.xlu1 %2653 }
 0x50f   :  { %4262 = vrsqrt.f32 %v2781_v38  ;;  %v2718_v7 = vmul.f32 0.015625, %v2654_v11 }
 0x511   :  { %v2782_v12 = vadd.f32 1e-05, %v2718_v7 }
 0x513   :  { %4264 = vrsqrt.f32 %v2782_v12 }
 0x51c   :  { %v4263_v48 = vpop.eup %4262 }
 0x51d   :  { %v2909_v36 = vmul.f32 %v4263_v48, %v6882_v6 }
 0x51f   :  { %v2977_v24 = vmul.f32 %v6830_v46, %v2909_v36 }
 0x520   :  { %v4265_v8 = vpop.eup %4264 }
 0x521   :  { %v2910_v60 = vmul.f32 %v4265_v8, %v6895_v1  ;;  %v3045_v39 = vadd.f32 %v6840_v62, %v2977_v24 }
 0x523   :  { %v2978_v56 = vmul.f32 %v6830_v46, %v2910_v60 }
 0x525   :  { %v3046_v25 = vadd.f32 %v6840_v62, %v2978_v56 }
 0x527   :  { %v3078_v32 = vpack.c.bf16 %v3046_v25, %v3045_v39 }
 0x529   :  { %3993 = vmatmul.mubr.msk.bf16.gmra.mxu0 %vm592_vm1, %v3078_v32 }
 0x52d   :  { %v3934_v6 = vpop.f32.mrf.mxu0 }
 0x52e   :  { %v3256_v1 = vadd.f32 %v3934_v6, %v7076_v59 }
 0x52f   :  { %v3247_v51 = vpop.f32.mrf.mxu0 }
 0x530   :  { %3505 = vst.msk [vmem:[%s7404_s6 + $0x10] sm:$0xff] %vm3502_vm2, %v3256_v1  ;;  %v3248_v46 = vadd.f32 %v7076_v59, %v3247_v51 }
 0x531   :  { %v3935_v62 = vpop.f32.mrf.mxu0 }
 0x532   :  { %3503 = vst.msk [vmem:[%s7404_s6] sm:$0xff] %vm3502_vm2, %v3248_v46  ;;  %v3259_v41 = vadd.f32 %v3935_v62, %v7076_v59 }
 0x533   :  { %v3250_v3 = vpop.f32.mrf.mxu0 }
 0x534   :  { %3506 = vst.msk [vmem:[%s7404_s6 + $0x18] sm:$0xff] %vm3502_vm2, %v3259_v41  ;;  %v3251_v21 = vadd.f32 %v7076_v59, %v3250_v3 }
 0x535   :  { %v3938_v18 = vpop.f32.mrf.mxu0 }
 0x536   :  { %3504 = vst.msk [vmem:[%s7404_s6 + $0x8] sm:$0xff] %vm3502_vm2, %v3251_v21  ;;  %v3272_v13 = vadd.f32 %v3938_v18, %v7076_v59 }
 0x537   :  { %v3263_v44 = vpop.f32.mrf.mxu0 }
 0x538   :  { %3509 = vst.msk [vmem:[%s7404_s6 + $0x30] sm:$0xff] %vm3502_vm2, %v3272_v13  ;;  %v3264_v42 = vadd.f32 %v7076_v59, %v3263_v44 }
 0x539   :  { %v3939_v19 = vpop.f32.mrf.mxu0 }
 0x53a   :  { %3507 = vst.msk [vmem:[%s7404_s6 + $0x20] sm:$0xff] %vm3502_vm2, %v3264_v42  ;;  %v3275_v49 = vadd.f32 %v3939_v19, %v7076_v59 }
 0x53b   :  { %v3266_v5 = vpop.f32.mrf.mxu0 }
 0x53c   :  { %3510 = vst.msk [vmem:[%s7404_s6 + $0x38] sm:$0xff] %vm3502_vm2, %v3275_v49  ;;  %v3267_v22 = vadd.f32 %v7076_v59, %v3266_v5 }
 0x53d   :  { %v3942_v50 = vpop.f32.mrf.mxu0 }
 0x53e   :  { %3508 = vst.msk [vmem:[%s7404_s6 + $0x28] sm:$0xff] %vm3502_vm2, %v3267_v22  ;;  %v3288_v58 = vadd.f32 %v3942_v50, %v7076_v59 }
 0x53f   :  { %v3279_v53 = vpop.f32.mrf.mxu0 }
 0x540   :  { %3513 = vst.msk [vmem:[%s7404_s6 + $0x50] sm:$0xff] %vm3502_vm2, %v3288_v58  ;;  %v3280_v30 = vadd.f32 %v7076_v59, %v3279_v53 }
 0x541   :  { %v3943_v26 = vpop.f32.mrf.mxu0 }
 0x542   :  { %3511 = vst.msk [vmem:[%s7404_s6 + $0x40] sm:$0xff] %vm3502_vm2, %v3280_v30  ;;  %v3291_v2 = vadd.f32 %v3943_v26, %v7076_v59 }
 0x543   :  { %v3282_v52 = vpop.f32.mrf.mxu0 }
 0x544   :  { %3514 = vst.msk [vmem:[%s7404_s6 + $0x58] sm:$0xff] %vm3502_vm2, %v3291_v2  ;;  %v3283_v34 = vadd.f32 %v7076_v59, %v3282_v52 }
 0x546   :  { %3512 = vst.msk [vmem:[%s7404_s6 + $0x48] sm:$0xff] %vm3502_vm2, %v3283_v34  ;;  %v3946_v15 = vpop.f32.mrf.mxu0 }
 0x547   :  { %v3304_v63 = vadd.f32 %v3946_v15, %v7076_v59 }
 0x548   :  { %v3295_v4 = vpop.f32.mrf.mxu0 }
 0x549   :  { %3517 = vst.msk [vmem:[%s7404_s6 + $0x70] sm:$0xff] %vm3502_vm2, %v3304_v63  ;;  %v3296_v35 = vadd.f32 %v7076_v59, %v3295_v4 }
 0x54a   :  { %v3947_v45 = vpop.f32.mrf.mxu0 }
 0x54b   :  { %3515 = vst.msk [vmem:[%s7404_s6 + $0x60] sm:$0xff] %vm3502_vm2, %v3296_v35  ;;  %v3307_v28 = vadd.f32 %v3947_v45, %v7076_v59 }
 0x54c   :  { %v3298_v27 = vpop.f32.mrf.mxu0 }
 0x54d   :  { %3518 = vst.msk [vmem:[%s7404_s6 + $0x78] sm:$0xff] %vm3502_vm2, %v3307_v28  ;;  %v3299_v33 = vadd.f32 %v7076_v59, %v3298_v27 }
 0x54e   :  { %v3950_v54 = vpop.f32.mrf.mxu0 }
 0x54f   :  { %3516 = vst.msk [vmem:[%s7404_s6 + $0x68] sm:$0xff] %vm3502_vm2, %v3299_v33  ;;  %v3320_v16 = vadd.f32 %v3950_v54, %v7076_v59 }
 0x550   :  { %v3311_v29 = vpop.f32.mrf.mxu0 }
 0x551   :  { %3521 = vst.msk [vmem:[%s7404_s6 + $0x90] sm:$0xff] %vm3502_vm2, %v3320_v16  ;;  %v3312_v37 = vadd.f32 %v7076_v59, %v3311_v29 }
 0x552   :  { %v3951_v31 = vpop.f32.mrf.mxu0 }
 0x553   :  { %3519 = vst.msk [vmem:[%s7404_s6 + $0x80] sm:$0xff] %vm3502_vm2, %v3312_v37  ;;  %v3323_v9 = vadd.f32 %v3951_v31, %v7076_v59 }
 0x554   :  { %v3314_v10 = vpop.f32.mrf.mxu0 }
 0x555   :  { %3522 = vst.msk [vmem:[%s7404_s6 + $0x98] sm:$0xff] %vm3502_vm2, %v3323_v9  ;;  %v3315_v43 = vadd.f32 %v7076_v59, %v3314_v10 }
 0x556   :  { %v3954_v20 = vpop.f32.mrf.mxu0 }
 0x557   :  { %3520 = vst.msk [vmem:[%s7404_s6 + $0x88] sm:$0xff] %vm3502_vm2, %v3315_v43  ;;  %v3336_v61 = vadd.f32 %v3954_v20, %v7076_v59 }
 0x558   :  { %v3327_v55 = vpop.f32.mrf.mxu0 }
 0x559   :  { %3525 = vst.msk [vmem:[%s7404_s6 + $0xb0] sm:$0xff] %vm3502_vm2, %v3336_v61  ;;  %v3328_v0 = vadd.f32 %v7076_v59, %v3327_v55 }
 0x55a   :  { %v3955_v47 = vpop.f32.mrf.mxu0 }
 0x55b   :  { %3523 = vst.msk [vmem:[%s7404_s6 + $0xa0] sm:$0xff] %vm3502_vm2, %v3328_v0  ;;  %v3339_v40 = vadd.f32 %v3955_v47, %v7076_v59 }
 0x55c   :  { %v3330_v14 = vpop.f32.mrf.mxu0 }
 0x55d   :  { %3526 = vst.msk [vmem:[%s7404_s6 + $0xb8] sm:$0xff] %vm3502_vm2, %v3339_v40  ;;  %v3331_v17 = vadd.f32 %v7076_v59, %v3330_v14 }
 0x55f   :  { %3524 = vst.msk [vmem:[%s7404_s6 + $0xa8] sm:$0xff] %vm3502_vm2, %v3331_v17 }
 0x561   :  { %v3958_v23 = vpop.f32.mrf.mxu0 }
 0x562   :  { %v3352_v57 = vadd.f32 %v3958_v23, %v7076_v59 }
 0x563   :  { %v3343_v38 = vpop.f32.mrf.mxu0 }
 0x564   :  { %3529 = vst.msk [vmem:[%s7404_s6 + $0xd0] sm:$0xff] %vm3502_vm2, %v3352_v57  ;;  %v3344_v11 = vadd.f32 %v7076_v59, %v3343_v38 }
 0x565   :  { %v3959_v7 = vpop.f32.mrf.mxu0 }
 0x566   :  { %3527 = vst.msk [vmem:[%s7404_s6 + $0xc0] sm:$0xff] %vm3502_vm2, %v3344_v11  ;;  %v3355_v12 = vadd.f32 %v3959_v7, %v7076_v59 }
 0x567   :  { %v3346_v48 = vpop.f32.mrf.mxu0 }
 0x568   :  { %3530 = vst.msk [vmem:[%s7404_s6 + $0xd8] sm:$0xff] %vm3502_vm2, %v3355_v12  ;;  %v3347_v36 = vadd.f32 %v7076_v59, %v3346_v48 }
 0x569   :  { %v3962_v8 = vpop.f32.mrf.mxu0 }
 0x56a   :  { %3528 = vst.msk [vmem:[%s7404_s6 + $0xc8] sm:$0xff] %vm3502_vm2, %v3347_v36  ;;  %v3368_v60 = vadd.f32 %v3962_v8, %v7076_v59 }
 0x56b   :  { %v3359_v24 = vpop.f32.mrf.mxu0 }
 0x56c   :  { %3533 = vst.msk [vmem:[%s7404_s6 + $0xf0] sm:$0xff] %vm3502_vm2, %v3368_v60  ;;  %v3360_v56 = vadd.f32 %v7076_v59, %v3359_v24 }
 0x56d   :  { %v3963_v39 = vpop.f32.mrf.mxu0 }
 0x56e   :  { %3531 = vst.msk [vmem:[%s7404_s6 + $0xe0] sm:$0xff] %vm3502_vm2, %v3360_v56  ;;  %v3371_v25 = vadd.f32 %v3963_v39, %v7076_v59 }
 0x56f   :  { %v3362_v32 = vpop.f32.mrf.mxu0 }
 0x570   :  { %3534 = vst.msk [vmem:[%s7404_s6 + $0xf8] sm:$0xff] %vm3502_vm2, %v3371_v25  ;;  %v3363_v6 = vadd.f32 %v7076_v59, %v3362_v32 }
 0x571   :  { %v3966_v1 = vpop.f32.mrf.mxu0 }
 0x572   :  { %3532 = vst.msk [vmem:[%s7404_s6 + $0xe8] sm:$0xff] %vm3502_vm2, %v3363_v6  ;;  %v3384_v51 = vadd.f32 %v3966_v1, %v7076_v59 }
 0x573   :  { %v3375_v46 = vpop.f32.mrf.mxu0 }
 0x574   :  { %3537 = vst.msk [vmem:[%s7404_s6 + $0x110] sm:$0xff] %vm3502_vm2, %v3384_v51  ;;  %v3376_v62 = vadd.f32 %v7076_v59, %v3375_v46 }
 0x575   :  { %v3967_v41 = vpop.f32.mrf.mxu0 }
 0x576   :  { %3535 = vst.msk [vmem:[%s7404_s6 + $0x100] sm:$0xff] %vm3502_vm2, %v3376_v62  ;;  %v3387_v3 = vadd.f32 %v3967_v41, %v7076_v59 }
 0x577   :  { %v3378_v21 = vpop.f32.mrf.mxu0 }
 0x578   :  { %3538 = vst.msk [vmem:[%s7404_s6 + $0x118] sm:$0xff] %vm3502_vm2, %v3387_v3  ;;  %v3379_v18 = vadd.f32 %v7076_v59, %v3378_v21 }
 0x579   :  { %v3970_v13 = vpop.f32.mrf.mxu0 }
 0x57a   :  { %3536 = vst.msk [vmem:[%s7404_s6 + $0x108] sm:$0xff] %vm3502_vm2, %v3379_v18  ;;  %v3400_v44 = vadd.f32 %v3970_v13, %v7076_v59 }
 0x57b   :  { %v3391_v42 = vpop.f32.mrf.mxu0 }
 0x57c   :  { %3541 = vst.msk [vmem:[%s7404_s6 + $0x130] sm:$0xff] %vm3502_vm2, %v3400_v44  ;;  %v3392_v19 = vadd.f32 %v7076_v59, %v3391_v42 }
 0x57d   :  { %v3971_v49 = vpop.f32.mrf.mxu0 }
 0x57e   :  { %3539 = vst.msk [vmem:[%s7404_s6 + $0x120] sm:$0xff] %vm3502_vm2, %v3392_v19  ;;  %v3403_v5 = vadd.f32 %v3971_v49, %v7076_v59 }
 0x57f   :  { %v3394_v22 = vpop.f32.mrf.mxu0 }
 0x580   :  { %3542 = vst.msk [vmem:[%s7404_s6 + $0x138] sm:$0xff] %vm3502_vm2, %v3403_v5  ;;  %v3395_v50 = vadd.f32 %v7076_v59, %v3394_v22 }
 0x581   :  { %v3974_v58 = vpop.f32.mrf.mxu0 }
 0x582   :  { %3540 = vst.msk [vmem:[%s7404_s6 + $0x128] sm:$0xff] %vm3502_vm2, %v3395_v50  ;;  %v3416_v53 = vadd.f32 %v3974_v58, %v7076_v59 }
 0x583   :  { %v3407_v30 = vpop.f32.mrf.mxu0 }
 0x584   :  { %3545 = vst.msk [vmem:[%s7404_s6 + $0x150] sm:$0xff] %vm3502_vm2, %v3416_v53  ;;  %v3408_v26 = vadd.f32 %v7076_v59, %v3407_v30 }
 0x585   :  { %v3975_v2 = vpop.f32.mrf.mxu0 }
 0x586   :  { %3543 = vst.msk [vmem:[%s7404_s6 + $0x140] sm:$0xff] %vm3502_vm2, %v3408_v26  ;;  %v3419_v52 = vadd.f32 %v3975_v2, %v7076_v59 }
 0x587   :  { %v3410_v34 = vpop.f32.mrf.mxu0 }
 0x588   :  { %3546 = vst.msk [vmem:[%s7404_s6 + $0x158] sm:$0xff] %vm3502_vm2, %v3419_v52  ;;  %v3411_v15 = vadd.f32 %v7076_v59, %v3410_v34 }
 0x589   :  { %v3978_v63 = vpop.f32.mrf.mxu0 }
 0x58a   :  { %3544 = vst.msk [vmem:[%s7404_s6 + $0x148] sm:$0xff] %vm3502_vm2, %v3411_v15  ;;  %v3432_v4 = vadd.f32 %v3978_v63, %v7076_v59 }
 0x58b   :  { %v3423_v35 = vpop.f32.mrf.mxu0 }
 0x58c   :  { %3549 = vst.msk [vmem:[%s7404_s6 + $0x170] sm:$0xff] %vm3502_vm2, %v3432_v4  ;;  %v3424_v45 = vadd.f32 %v7076_v59, %v3423_v35 }
 0x58d   :  { %v3979_v28 = vpop.f32.mrf.mxu0 }
 0x58e   :  { %3547 = vst.msk [vmem:[%s7404_s6 + $0x160] sm:$0xff] %vm3502_vm2, %v3424_v45  ;;  %v3435_v27 = vadd.f32 %v3979_v28, %v7076_v59 }
 0x58f   :  { %v3426_v33 = vpop.f32.mrf.mxu0 }
 0x590   :  { %3550 = vst.msk [vmem:[%s7404_s6 + $0x178] sm:$0xff] %vm3502_vm2, %v3435_v27  ;;  %v3427_v54 = vadd.f32 %v7076_v59, %v3426_v33 }
 0x591   :  { %v3982_v16 = vpop.f32.mrf.mxu0 }
 0x592   :  { %3548 = vst.msk [vmem:[%s7404_s6 + $0x168] sm:$0xff] %vm3502_vm2, %v3427_v54  ;;  %v3448_v29 = vadd.f32 %v3982_v16, %v7076_v59 }
 0x593   :  { %v3439_v37 = vpop.f32.mrf.mxu0 }
 0x594   :  { %3553 = vst.msk [vmem:[%s7404_s6 + $0x190] sm:$0xff] %vm3502_vm2, %v3448_v29  ;;  %v3440_v31 = vadd.f32 %v7076_v59, %v3439_v37 }
 0x595   :  { %v3983_v9 = vpop.f32.mrf.mxu0 }
 0x596   :  { %3551 = vst.msk [vmem:[%s7404_s6 + $0x180] sm:$0xff] %vm3502_vm2, %v3440_v31  ;;  %v3451_v10 = vadd.f32 %v3983_v9, %v7076_v59 }
 0x597   :  { %v3442_v43 = vpop.f32.mrf.mxu0 }
 0x598   :  { %3554 = vst.msk [vmem:[%s7404_s6 + $0x198] sm:$0xff] %vm3502_vm2, %v3451_v10  ;;  %v3443_v20 = vadd.f32 %v7076_v59, %v3442_v43 }
 0x599   :  { %v3986_v61 = vpop.f32.mrf.mxu0 }
 0x59a   :  { %3552 = vst.msk [vmem:[%s7404_s6 + $0x188] sm:$0xff] %vm3502_vm2, %v3443_v20  ;;  %v3464_v55 = vadd.f32 %v3986_v61, %v7076_v59 }
 0x59b   :  { %v3455_v0 = vpop.f32.mrf.mxu0 }
 0x59c   :  { %3557 = vst.msk [vmem:[%s7404_s6 + $0x1b0] sm:$0xff] %vm3502_vm2, %v3464_v55  ;;  %v3456_v47 = vadd.f32 %v7076_v59, %v3455_v0 }
 0x59d   :  { %v3987_v40 = vpop.f32.mrf.mxu0 }
 0x59e   :  { %3555 = vst.msk [vmem:[%s7404_s6 + $0x1a0] sm:$0xff] %vm3502_vm2, %v3456_v47  ;;  %v3467_v14 = vadd.f32 %v3987_v40, %v7076_v59 }
 0x59f   :  { %v3458_v17 = vpop.f32.mrf.mxu0 }
 0x5a0   :  { %3558 = vst.msk [vmem:[%s7404_s6 + $0x1b8] sm:$0xff] %vm3502_vm2, %v3467_v14  ;;  %v3459_v23 = vadd.f32 %v7076_v59, %v3458_v17 }
 0x5a1   :  { %v3990_v57 = vpop.f32.mrf.mxu0 }
 0x5a2   :  { %3556 = vst.msk [vmem:[%s7404_s6 + $0x1a8] sm:$0xff] %vm3502_vm2, %v3459_v23  ;;  %v3480_v38 = vadd.f32 %v3990_v57, %v7076_v59 }
 0x5a3   :  { %v3471_v11 = vpop.f32.mrf.mxu0 }
 0x5a4   :  { %3561 = vst.msk [vmem:[%s7404_s6 + $0x1d0] sm:$0xff] %vm3502_vm2, %v3480_v38  ;;  %v3472_v7 = vadd.f32 %v7076_v59, %v3471_v11 }
 0x5a5   :  { %v3991_v12 = vpop.f32.mrf.mxu0 }
 0x5a6   :  { %3559 = vst.msk [vmem:[%s7404_s6 + $0x1c0] sm:$0xff] %vm3502_vm2, %v3472_v7  ;;  %v3483_v48 = vadd.f32 %v3991_v12, %v7076_v59 }
 0x5a7   :  { %v3474_v36 = vpop.f32.mrf.mxu0 }
 0x5a8   :  { %3562 = vst.msk [vmem:[%s7404_s6 + $0x1d8] sm:$0xff] %vm3502_vm2, %v3483_v48  ;;  %v3475_v8 = vadd.f32 %v7076_v59, %v3474_v36 }
 0x5aa   :  { %3560 = vst.msk [vmem:[%s7404_s6 + $0x1c8] sm:$0xff] %vm3502_vm2, %v3475_v8 }
 0x5e9   :  { %v3994_v60 = vpop.f32.mrf.mxu0 }
 0x5ea   :  { %v3496_v24 = vadd.f32 %v3994_v60, %v7076_v59 }
 0x5eb   :  { %v3487_v56 = vpop.f32.mrf.mxu0 }
 0x5ec   :  { %3565 = vst.msk [vmem:[%s7404_s6 + $0x1f0] sm:$0xff] %vm3502_vm2, %v3496_v24  ;;  %v3488_v39 = vadd.f32 %v7076_v59, %v3487_v56 }
 0x5ed   :  { %v3995_v25 = vpop.f32.mrf.mxu0 }
 0x5ee   :  { %3563 = vst.msk [vmem:[%s7404_s6 + $0x1e0] sm:$0xff] %vm3502_vm2, %v3488_v39  ;;  %v3499_v32 = vadd.f32 %v3995_v25, %v7076_v59 }
 0x5ef   :  { %v3490_v6 = vpop.f32.mrf.mxu0 }
 0x5f0   :  { %3566 = vst.msk [vmem:[%s7404_s6 + $0x1f8] sm:$0xff] %vm3502_vm2, %v3499_v32  ;;  %v3491_v1 = vadd.f32 %v7076_v59, %v3490_v6 }
 0x5f2   :  { %3564 = vst.msk [vmem:[%s7404_s6 + $0x1e8] sm:$0xff] %vm3502_vm2, %v3491_v1 }

</bundles_post_ra>
